<compile_context>
chip_gen: v7x
topology: tpu7x:2x2x1
jax: 0.10.0
libtpu: 0.0.40
codegen_flags: <defaults>
</compile_context>

<pallas_src>
from functools import partial

import jax
import jax.numpy as jnp
from jax import lax
from jax.experimental import pallas as pl
from jax.experimental.pallas import tpu as pltpu

MXU_DTYPE = jnp.bfloat16   # MXU operand dtype (f32 accumulation everywhere)


# ---------------------------------------------------------------------------
# Fused Pallas kernel: 5 residual blocks + both heads for `nb` images
# ---------------------------------------------------------------------------
def _refinement_stage_kernel(x_ref, wi0_ref, wi_ref, bi_ref, w1_ref, b1_ref,
                             w2_ref, b2_ref, wh0_ref, bh0_ref, wh1_ref,
                             bh1_ref, o_ref, canvas_ref, patches_ref,
                             *, H, W, nb):
    C = wi0_ref.shape[0]
    HW = H * W
    CV = (H + 6) * W            # per-image canvas lanes (row-padded, flat)
    TOP = 3 * W                 # canvas lane where the image interior starts
    mxu = wi0_ref.dtype         # MXU operand dtype (bf16 by default)
    cdt = canvas_ref.dtype

    # Zero only the halo lanes of the per-image canvases; the interior is
    # fully overwritten before every conv.  Done every grid step so each
    # TensorCore's private scratch is initialised under megacore splitting.
    for b in range(nb):
        base = b * CV
        canvas_ref[:, base:base + TOP] = jnp.zeros((C, TOP), cdt)
        canvas_ref[:, base + TOP + HW:base + CV] = (
            jnp.zeros((C, CV - TOP - HW), cdt))

    # Column masks that zero the row-wraparound lanes of the +-dx taps
    # (a dx shift in the flat H*W lane layout bleeds across row boundaries).
    w_idx = lax.broadcasted_iota(jnp.int32, (1, HW), 1) % W
    col_mask = {-2: w_idx >= 2, -1: w_idx >= 1,
                1: w_idx < W - 1, 2: w_idx < W - 2}

    def conv3x3(t_f32, w9, bias, dil):
        # t_f32: (C, nb*HW) f32.  w9: (C, 9C) mxu.  bias: (C, 1) f32.
        # 1) activation -> bf16 canvas interior (one store per image)
        for b in range(nb):
            canvas_ref[:, b * CV + TOP:b * CV + TOP + HW] = (
                t_f32[:, b * HW:(b + 1) * HW].astype(cdt))
        # 2) the 9 taps are pure lane slices of the canvas, written straight
        #    into the persistent (9C, nb*HW) bf16 patches scratch
        k = 0
        for dy in (-dil, 0, dil):
            for dx in (-dil, 0, dil):
                start = TOP + dy * W + dx
                for b in range(nb):
                    tap = canvas_ref[:, b * CV + start:b * CV + start + HW]
                    if dx != 0:
                        tap = jnp.where(col_mask[dx], tap, jnp.zeros_like(tap))
                    patches_ref[k * C:(k + 1) * C, b * HW:(b + 1) * HW] = tap
                k += 1
        # 3) one deep im2col matmul; the MXU column dim is all nb*HW pixels
        acc = jnp.dot(w9, patches_ref[...], preferred_element_type=jnp.float32)
        return jnp.maximum(acc + bias, 0.0)

    def refinement_block(t_f32, w_init, b_init, w1, b1, w2, b2):
        init = jnp.dot(w_init, t_f32.astype(mxu),
                       preferred_element_type=jnp.float32)
        init = jnp.maximum(init + b_init, 0.0)        # 1x1 conv + bias + ReLU
        tr = conv3x3(init, w1, b1, 1)                 # conv3x3 pad=1 (BN folded)
        tr = conv3x3(tr, w2, b2, 2)                   # conv3x3 dil=2 pad=2
        return init + tr                              # residual (f32)

    # input block (nb, Cin, HW) -> channel-major (Cin, nb*HW)
    if nb == 1:
        t = x_ref[0].astype(jnp.float32)
    else:
        t = jnp.concatenate([x_ref[b] for b in range(nb)],
                            axis=-1).astype(jnp.float32)

    # block 0 (in_channels -> C), then blocks 1..4 (C -> C) in a fori_loop
    # over the stacked weight refs (dynamic first-axis Ref indexing).
    t = refinement_block(t, wi0_ref[...], bi_ref[0], w1_ref[0], b1_ref[0],
                         w2_ref[0], b2_ref[0])

    def body(blk, t_carry):
        return refinement_block(t_carry, wi_ref[blk], bi_ref[blk + 1],
                                w1_ref[blk + 1], b1_ref[blk + 1],
                                w2_ref[blk + 1], b2_ref[blk + 1])
    t = lax.fori_loop(0, 4, body, t)

    # Fused heads: one (2C, C) entry matmul + one block-diagonal (n_out, 2C)
    # output matmul.  The output slab is channel-major and lane-dense.
    e = jnp.dot(wh0_ref[...], t.astype(mxu), preferred_element_type=jnp.float32)
    e = jnp.maximum(e + bh0_ref[...], 0.0)
    out = jnp.dot(wh1_ref[...], e.astype(mxu),
                  preferred_element_type=jnp.float32) + bh1_ref[...]
    for b in range(nb):
        o_ref[b] = out[:, b * HW:(b + 1) * HW].astype(o_ref.dtype)


# ---------------------------------------------------------------------------
# Wrapper: NCHW in, [heatmaps, pafs] NCHW out
# ---------------------------------------------------------------------------
def refinement_stage_forward(x_nchw, ops, n_hm, n_paf, imgs_per_step=2):
    N, Cin, H, W = x_nchw.shape
    assert W >= 3, "flat row-padded canvas layout assumes W >= 3"
    C = ops["wi0"].shape[0]
    n_out = ops["wh1"].shape[0]
    HW = H * W
    mxu_dt = ops["wi0"].dtype

    # Images per grid step: amortise matmul fill/drain + per-step overhead,
    # but keep >= 2 grid steps so v7x megacore can still split the batch.
    nb = imgs_per_step if (imgs_per_step > 1 and N % imgs_per_step == 0
                           and N // imgs_per_step >= 2) else 1

    x = x_nchw.reshape(N, Cin, HW).astype(jnp.float32)   # channel-major, free

    operand_keys = ("wi0", "wi", "bi", "w1", "b1", "w2", "b2",
                    "wh0", "bh0", "wh1", "bh1")
    operands = [ops[k] for k in operand_keys]

    def full_spec(a):
        zeros = (0,) * a.ndim
        return pl.BlockSpec(a.shape, lambda n, _z=zeros: _z)

    out = pl.pallas_call(
        partial(_refinement_stage_kernel, H=H, W=W, nb=nb),
        out_shape=jax.ShapeDtypeStruct((N, n_out, HW), jnp.float32),
        grid=(N // nb,),
        in_specs=[pl.BlockSpec((nb, Cin, HW), lambda n: (n, 0, 0))]
                 + [full_spec(a) for a in operands],
        out_specs=pl.BlockSpec((nb, n_out, HW), lambda n: (n, 0, 0)),
        scratch_shapes=[
            pltpu.VMEM((C, nb * (H + 6) * W), mxu_dt),     # padded canvas
            pltpu.VMEM((9 * C, nb * HW), mxu_dt),          # im2col patches
        ],
        compiler_params=pltpu.CompilerParams(
            dimension_semantics=("parallel",),
            vmem_limit_bytes=32 * 1024 * 1024),
    )(x, *operands)

    out = out.reshape(N, n_out, H, W)                      # already NCHW
    heatmaps = out[:, :n_hm]
    pafs = out[:, n_hm:n_hm + n_paf]
    return [heatmaps, pafs]


# ---------------------------------------------------------------------------
# Parameter construction, eval-mode BN folding, kernel operand packing
# ---------------------------------------------------------------------------
def make_params(key, in_channels, C, n_hm, n_paf):
    keys = iter(jax.random.split(key, 128))
    nk = lambda: next(keys)

    def w_conv(shape, fan_in):
        return jax.random.normal(nk(), shape, jnp.float32) * (0.5 / fan_in ** 0.5)

    def bias(n):
        return 0.05 * jax.random.normal(nk(), (n,), jnp.float32)

    def bn(n):
        return dict(
            gamma=1.0 + 0.1 * jax.random.normal(nk(), (n,), jnp.float32),
            beta=0.05 * jax.random.normal(nk(), (n,), jnp.float32),
            mean=0.05 * jax.random.normal(nk(), (n,), jnp.float32),
            var=jax.random.uniform(nk(), (n,), jnp.float32, 0.5, 1.5))

    p = {}
    for i in range(5):
        cin_b = in_channels if i == 0 else C
        p[f"b{i}_init_w"] = w_conv((cin_b, C), cin_b)       # 1x1, no BN
        p[f"b{i}_init_b"] = bias(C)
        p[f"b{i}_c1_w"] = w_conv((3, 3, C, C), 9 * C)       # 3x3, pad=1, BN
        p[f"b{i}_c1_b"] = bias(C)
        p[f"b{i}_c1_bn"] = bn(C)
        p[f"b{i}_c2_w"] = w_conv((3, 3, C, C), 9 * C)       # 3x3, dil=2, BN
        p[f"b{i}_c2_b"] = bias(C)
        p[f"b{i}_c2_bn"] = bn(C)
    p["hm0_w"], p["hm0_b"] = w_conv((C, C), C), bias(C)
    p["hm1_w"], p["hm1_b"] = w_conv((C, n_hm), C), bias(n_hm)
    p["paf0_w"], p["paf0_b"] = w_conv((C, C), C), bias(C)
    p["paf1_w"], p["paf1_b"] = w_conv((C, n_paf), C), bias(n_paf)
    return p


def _fold_bn(w_hwio, b, bn, eps=1e-5):
    # Eval-mode BatchNorm folded into the conv: exact for inference.
    s = bn["gamma"] / jnp.sqrt(bn["var"] + eps)
    return w_hwio * s, (b - bn["mean"]) * s + bn["beta"]


def fold_params(p):
    f = {}
    for i in range(5):
        f[f"b{i}_init_w"] = p[f"b{i}_init_w"]
        f[f"b{i}_init_b"] = p[f"b{i}_init_b"]
        f[f"b{i}_c1_w"], f[f"b{i}_c1_b"] = _fold_bn(
            p[f"b{i}_c1_w"], p[f"b{i}_c1_b"], p[f"b{i}_c1_bn"])
        f[f"b{i}_c2_w"], f[f"b{i}_c2_b"] = _fold_bn(
            p[f"b{i}_c2_w"], p[f"b{i}_c2_b"], p[f"b{i}_c2_bn"])
    for k in ("hm0_w", "hm0_b", "hm1_w", "hm1_b",
              "paf0_w", "paf0_b", "paf1_w", "paf1_b"):
        f[k] = p[k]
    return f


def prepare_operands(f, C, n_hm, n_paf, mxu_dtype=MXU_DTYPE):
    """Pack folded weights into the transposed (out-major) kernel layout."""
    def w9_of(w_hwio):
        # (3,3,Cin,Cout) -> (Cout, 9*Cin), columns ordered (ky, kx, cin) to
        # match the kernel's tap order (dy outer, dx inner, then channels).
        cout = w_hwio.shape[3]
        return jnp.transpose(w_hwio, (3, 0, 1, 2)).reshape(cout, -1)

    ops = {}
    ops["wi0"] = f["b0_init_w"].T.astype(mxu_dtype)                    # (C, Cin)
    ops["wi"] = jnp.stack(
        [f[f"b{i}_init_w"].T for i in range(1, 5)]).astype(mxu_dtype)  # (4,C,C)
    ops["bi"] = jnp.stack([f[f"b{i}_init_b"] for i in range(5)])[:, :, None]
    ops["w1"] = jnp.stack(
        [w9_of(f[f"b{i}_c1_w"]) for i in range(5)]).astype(mxu_dtype)  # (5,C,9C)
    ops["b1"] = jnp.stack([f[f"b{i}_c1_b"] for i in range(5)])[:, :, None]
    ops["w2"] = jnp.stack(
        [w9_of(f[f"b{i}_c2_w"]) for i in range(5)]).astype(mxu_dtype)  # (5,C,9C)
    ops["b2"] = jnp.stack([f[f"b{i}_c2_b"] for i in range(5)])[:, :, None]
    # fused head entry (hm0 ; paf0) -> (2C, C)
    ops["wh0"] = jnp.concatenate([f["hm0_w"].T, f["paf0_w"].T],
                                 axis=0).astype(mxu_dtype)
    ops["bh0"] = jnp.concatenate([f["hm0_b"], f["paf0_b"]])[:, None]
    # fused, block-diagonal head output -> (n_hm + n_paf, 2C)
    n_out = n_hm + n_paf
    wh1 = jnp.zeros((n_out, 2 * C), jnp.float32)
    wh1 = wh1.at[:n_hm, :C].set(f["hm1_w"].T)
    wh1 = wh1.at[n_hm:, C:].set(f["paf1_w"].T)
    ops["wh1"] = wh1.astype(mxu_dtype)
    ops["bh1"] = jnp.concatenate([f["hm1_b"], f["paf1_b"]])[:, None]
    return ops


# ---------------------------------------------------------------------------
# Plain-JAX reference (same folded weights, same MXU-operand quantization)
# ---------------------------------------------------------------------------
def reference_forward(x_nchw, f, mxu_dtype=MXU_DTYPE):
    x = jnp.transpose(x_nchw, (0, 2, 3, 1)).astype(jnp.float32)

    def c1x1(t, w, b, relu=True):
        y = jnp.einsum("nhwc,cd->nhwd", t.astype(mxu_dtype),
                       w.astype(mxu_dtype),
                       preferred_element_type=jnp.float32) + b
        return jnp.maximum(y, 0.0) if relu else y

    def c3x3(t, w_hwio, b, dil):
        dn = lax.conv_dimension_numbers(t.shape, w_hwio.shape,
                                        ("NHWC", "HWIO", "NHWC"))
        y = lax.conv_general_dilated(
            t.astype(mxu_dtype), w_hwio.astype(mxu_dtype), (1, 1),
            [(dil, dil), (dil, dil)], rhs_dilation=(dil, dil),
            dimension_numbers=dn, preferred_element_type=jnp.float32)
        return jnp.maximum(y + b, 0.0)

    t = x
    for i in range(5):
        init = c1x1(t, f[f"b{i}_init_w"], f[f"b{i}_init_b"])
        tr = c3x3(init, f[f"b{i}_c1_w"], f[f"b{i}_c1_b"], 1)
        tr = c3x3(tr, f[f"b{i}_c2_w"], f[f"b{i}_c2_b"], 2)
        t = init + tr
    h = c1x1(t, f["hm0_w"], f["hm0_b"])
    h = c1x1(h, f["hm1_w"], f["hm1_b"], relu=False)
    p = c1x1(t, f["paf0_w"], f["paf0_b"])
    p = c1x1(p, f["paf1_w"], f["paf1_b"], relu=False)
    return [jnp.transpose(h, (0, 3, 1, 2)), jnp.transpose(p, (0, 3, 1, 2))]


# ---------------------------------------------------------------------------
if __name__ == "__main__":
    # Small, module-consistent shapes (production: C=128, 19 heatmaps,
    # 38 pafs, larger spatial).
    N, Cin, C, H, W = 4, 48, 32, 16, 16
    n_hm, n_paf = 19, 38

    key = jax.random.PRNGKey(0)
    kx, kp = jax.random.split(key)
    x = jax.random.normal(kx, (N, Cin, H, W), jnp.float32)      # NCHW input

    params = make_params(kp, Cin, C, n_hm, n_paf)
    folded = fold_params(params)                 # eval-mode BN folded
    ops = prepare_operands(folded, C, n_hm, n_paf)

    fwd = jax.jit(partial(refinement_stage_forward, n_hm=n_hm, n_paf=n_paf))
    heatmaps, pafs = fwd(x, ops)
    jax.block_until_ready(heatmaps)
    jax.block_until_ready(pafs)

    # Sanity check against a plain-JAX reference that applies the same bf16
    # MXU-operand rounding (set MXU_DTYPE = jnp.float32 for exact fp32 math).
    ref_hm, ref_paf = reference_forward(x, folded)
    assert heatmaps.shape == (N, n_hm, H, W)
    assert pafs.shape == (N, n_paf, H, W)
    err_hm = float(jnp.max(jnp.abs(heatmaps - ref_hm)))
    err_paf = float(jnp.max(jnp.abs(pafs - ref_paf)))
    assert bool(jnp.allclose(heatmaps, ref_hm, atol=1e-2, rtol=1e-2)), err_hm
    assert bool(jnp.allclose(pafs, ref_paf, atol=1e-2, rtol=1e-2)), err_paf

    print("KERNEL_OK")
</pallas_src>

<mosaic_0001>
module attributes {stable_mosaic.version = 11 : i64} {
  func.func @_refinement_stage_kernel(%arg0: i32, %arg1: memref<2x48x256xf32, #tpu.memory_space<vmem>>, %arg2: memref<32x48xbf16, #tpu.memory_space<vmem>>, %arg3: memref<4x32x32xbf16, #tpu.memory_space<vmem>>, %arg4: memref<5x32x1xf32, #tpu.memory_space<vmem>>, %arg5: memref<5x32x288xbf16, #tpu.memory_space<vmem>>, %arg6: memref<5x32x1xf32, #tpu.memory_space<vmem>>, %arg7: memref<5x32x288xbf16, #tpu.memory_space<vmem>>, %arg8: memref<5x32x1xf32, #tpu.memory_space<vmem>>, %arg9: memref<64x32xbf16, #tpu.memory_space<vmem>>, %arg10: memref<64x1xf32, #tpu.memory_space<vmem>>, %arg11: memref<57x64xbf16, #tpu.memory_space<vmem>>, %arg12: memref<57x1xf32, #tpu.memory_space<vmem>>, %arg13: memref<2x57x256xf32, #tpu.memory_space<vmem>>, %arg14: memref<32x704xbf16, #tpu.memory_space<vmem>>, %arg15: memref<288x512xbf16, #tpu.memory_space<vmem>>) attributes {dimension_semantics = [#tpu.dimension_semantics<parallel>], iteration_bounds = array<i64: 2>, scalar_prefetch = 0 : i64, scratch_operands = 2 : i64, tpu.core_type = #tpu.core_type<tc>, window_params = [{transform_indices = @transform_0, window_bounds = array<i64: 2, 48, 256>}, {pipeline_mode = #tpu.pipeline_mode<synchronous>, transform_indices = @transform_1, window_bounds = array<i64: 32, 48>}, {pipeline_mode = #tpu.pipeline_mode<synchronous>, transform_indices = @transform_2, window_bounds = array<i64: 4, 32, 32>}, {pipeline_mode = #tpu.pipeline_mode<synchronous>, transform_indices = @transform_3, window_bounds = array<i64: 5, 32, 1>}, {pipeline_mode = #tpu.pipeline_mode<synchronous>, transform_indices = @transform_4, window_bounds = array<i64: 5, 32, 288>}, {pipeline_mode = #tpu.pipeline_mode<synchronous>, transform_indices = @transform_5, window_bounds = array<i64: 5, 32, 1>}, {pipeline_mode = #tpu.pipeline_mode<synchronous>, transform_indices = @transform_6, window_bounds = array<i64: 5, 32, 288>}, {pipeline_mode = #tpu.pipeline_mode<synchronous>, transform_indices = @transform_7, window_bounds = array<i64: 5, 32, 1>}, {pipeline_mode = #tpu.pipeline_mode<synchronous>, transform_indices = @transform_8, window_bounds = array<i64: 64, 32>}, {pipeline_mode = #tpu.pipeline_mode<synchronous>, transform_indices = @transform_9, window_bounds = array<i64: 64, 1>}, {pipeline_mode = #tpu.pipeline_mode<synchronous>, transform_indices = @transform_10, window_bounds = array<i64: 57, 64>}, {pipeline_mode = #tpu.pipeline_mode<synchronous>, transform_indices = @transform_11, window_bounds = array<i64: 57, 1>}, {transform_indices = @transform_12, window_bounds = array<i64: 2, 57, 256>}]} {
    %cst = arith.constant 0.000000e+00 : bf16
    %0 = vector.broadcast %cst : bf16 to vector<32x48xbf16>
    %c0 = arith.constant 0 : index
    %c0_0 = arith.constant 0 : index
    %1 = vector.load %arg14[%c0, %c0_0] : memref<32x704xbf16, #tpu.memory_space<vmem>>, vector<32x48xbf16>
    tpu.vector_store %arg14[%c0, %c0_0], %0 {strides = array<i32>} : memref<32x704xbf16, #tpu.memory_space<vmem>>, vector<32x48xbf16>,
    %cst_1 = arith.constant 0.000000e+00 : bf16
    %2 = vector.broadcast %cst_1 : bf16 to vector<32x48xbf16>
    %c0_2 = arith.constant 0 : index
    %c304 = arith.constant 304 : index
    %3 = vector.load %arg14[%c0_2, %c304] : memref<32x704xbf16, #tpu.memory_space<vmem>>, vector<32x48xbf16>
    tpu.vector_store %arg14[%c0_2, %c304], %2 {strides = array<i32>} : memref<32x704xbf16, #tpu.memory_space<vmem>>, vector<32x48xbf16>,
    %cst_3 = arith.constant 0.000000e+00 : bf16
    %4 = vector.broadcast %cst_3 : bf16 to vector<32x48xbf16>
    %c0_4 = arith.constant 0 : index
    %c352 = arith.constant 352 : index
    %5 = vector.load %arg14[%c0_4, %c352] : memref<32x704xbf16, #tpu.memory_space<vmem>>, vector<32x48xbf16>
    tpu.vector_store %arg14[%c0_4, %c352], %4 {strides = array<i32>} : memref<32x704xbf16, #tpu.memory_space<vmem>>, vector<32x48xbf16>,
    %cst_5 = arith.constant 0.000000e+00 : bf16
    %6 = vector.broadcast %cst_5 : bf16 to vector<32x48xbf16>
    %c0_6 = arith.constant 0 : index
    %c656 = arith.constant 656 : index
    %7 = vector.load %arg14[%c0_6, %c656] : memref<32x704xbf16, #tpu.memory_space<vmem>>, vector<32x48xbf16>
    tpu.vector_store %arg14[%c0_6, %c656], %6 {strides = array<i32>} : memref<32x704xbf16, #tpu.memory_space<vmem>>, vector<32x48xbf16>,
    %8 = tpu.iota {dimensions = array<i32: 1>} : vector<1x256xi32>
    %c16_i32 = arith.constant 16 : i32
    %c0_i32 = arith.constant 0 : i32
    %9 = arith.cmpi eq, %c16_i32, %c0_i32 : i32
    %c1_i32 = arith.constant 1 : i32
    %10 = arith.select %9, %c1_i32, %c16_i32 : i32
    %11 = vector.broadcast %10 : i32 to vector<1x256xi32>
    %12 = arith.remsi %8, %11 : vector<1x256xi32>
    %c0_i32_7 = arith.constant 0 : i32
    %13 = vector.broadcast %c0_i32_7 : i32 to vector<1x256xi32>
    %14 = arith.cmpi ne, %12, %13 : vector<1x256xi32>
    %c0_i32_8 = arith.constant 0 : i32
    %15 = vector.broadcast %c0_i32_8 : i32 to vector<1x256xi32>
    %16 = arith.cmpi slt, %12, %15 : vector<1x256xi32>
    %c0_i32_9 = arith.constant 0 : i32
    %17 = arith.cmpi slt, %10, %c0_i32_9 : i32
    %18 = vector.broadcast %17 : i1 to vector<1x256xi1>
    %19 = vector.broadcast %18 : vector<1x256xi1> to vector<1x256xi1>
    %20 = arith.xori %16, %19 : vector<1x256xi1>
    %21 = arith.andi %20, %14 : vector<1x256xi1>
    %22 = vector.broadcast %10 : i32 to vector<1x256xi32>
    %23 = arith.addi %12, %22 : vector<1x256xi32>
    %24 = arith.select %21, %23, %12 : vector<1x256xi1>, vector<1x256xi32>
    %c2_i32 = arith.constant 2 : i32
    %25 = vector.broadcast %c2_i32 : i32 to vector<1x256xi32>
    %26 = arith.cmpi sge, %24, %25 : vector<1x256xi32>
    %c1_i32_10 = arith.constant 1 : i32
    %27 = vector.broadcast %c1_i32_10 : i32 to vector<1x256xi32>
    %28 = arith.cmpi sge, %24, %27 : vector<1x256xi32>
    %c15_i32 = arith.constant 15 : i32
    %29 = vector.broadcast %c15_i32 : i32 to vector<1x256xi32>
    %30 = arith.cmpi slt, %24, %29 : vector<1x256xi32>
    %c14_i32 = arith.constant 14 : i32
    %31 = vector.broadcast %c14_i32 : i32 to vector<1x256xi32>
    %32 = arith.cmpi slt, %24, %31 : vector<1x256xi32>
    %c0_11 = arith.constant 0 : index
    %c0_12 = arith.constant 0 : index
    %c0_13 = arith.constant 0 : index
    %33 = vector.load %arg1[%c0_11, %c0_12, %c0_13] : memref<2x48x256xf32, #tpu.memory_space<vmem>>, vector<1x48x256xf32>
    %34 = vector.shape_cast %33 : vector<1x48x256xf32> to vector<48x256xf32>
    %c1 = arith.constant 1 : index
    %c0_14 = arith.constant 0 : index
    %c0_15 = arith.constant 0 : index
    %35 = vector.load %arg1[%c1, %c0_14, %c0_15] : memref<2x48x256xf32, #tpu.memory_space<vmem>>, vector<1x48x256xf32>
    %36 = vector.shape_cast %35 : vector<1x48x256xf32> to vector<48x256xf32>
    %37 = tpu.concatenate %34, %36 in 1 : vector<48x256xf32>, vector<48x256xf32> -> vector<48x512xf32>
    %c0_16 = arith.constant 0 : index
    %c0_17 = arith.constant 0 : index
    %38 = vector.load %arg2[%c0_16, %c0_17] : memref<32x48xbf16, #tpu.memory_space<vmem>>, vector<32x48xbf16>
    %c0_18 = arith.constant 0 : index
    %c0_19 = arith.constant 0 : index
    %c0_20 = arith.constant 0 : index
    %39 = vector.load %arg4[%c0_18, %c0_19, %c0_20] : memref<5x32x1xf32, #tpu.memory_space<vmem>>, vector<1x32x1xf32>
    %40 = vector.shape_cast %39 : vector<1x32x1xf32> to vector<32x1xf32>
    %c0_21 = arith.constant 0 : index
    %c0_22 = arith.constant 0 : index
    %c0_23 = arith.constant 0 : index
    %41 = vector.load %arg5[%c0_21, %c0_22, %c0_23] : memref<5x32x288xbf16, #tpu.memory_space<vmem>>, vector<1x32x288xbf16>
    %42 = vector.shape_cast %41 : vector<1x32x288xbf16> to vector<32x288xbf16>
    %c0_24 = arith.constant 0 : index
    %c0_25 = arith.constant 0 : index
    %c0_26 = arith.constant 0 : index
    %43 = vector.load %arg6[%c0_24, %c0_25, %c0_26] : memref<5x32x1xf32, #tpu.memory_space<vmem>>, vector<1x32x1xf32>
    %44 = vector.shape_cast %43 : vector<1x32x1xf32> to vector<32x1xf32>
    %c0_27 = arith.constant 0 : index
    %c0_28 = arith.constant 0 : index
    %c0_29 = arith.constant 0 : index
    %45 = vector.load %arg7[%c0_27, %c0_28, %c0_29] : memref<5x32x288xbf16, #tpu.memory_space<vmem>>, vector<1x32x288xbf16>
    %46 = vector.shape_cast %45 : vector<1x32x288xbf16> to vector<32x288xbf16>
    %c0_30 = arith.constant 0 : index
    %c0_31 = arith.constant 0 : index
    %c0_32 = arith.constant 0 : index
    %47 = vector.load %arg8[%c0_30, %c0_31, %c0_32] : memref<5x32x1xf32, #tpu.memory_space<vmem>>, vector<1x32x1xf32>
    %48 = vector.shape_cast %47 : vector<1x32x1xf32> to vector<32x1xf32>
    %49 = arith.truncf %37 : vector<48x512xf32> to vector<48x512xbf16>
    %cst_33 = arith.constant dense<0.000000e+00> : vector<32x512xf32>
    %50 = tpu.matmul %38, %49, %cst_33 {dimension_numbers = #tpu.dot_dimension_numbers<[1], [0], [0], [1], [0, 0, 1, 1], [], []>} : vector<32x48xbf16>, vector<48x512xbf16>, vector<32x512xf32> -> vector<32x512xf32>
    %51 = vector.broadcast %40 : vector<32x1xf32> to vector<32x512xf32>
    %52 = arith.addf %50, %51 : vector<32x512xf32>
    %cst_34 = arith.constant 0.000000e+00 : f32
    %53 = vector.broadcast %cst_34 : f32 to vector<32x512xf32>
    %54 = arith.maximumf %52, %53 : vector<32x512xf32>
    %55 = vector.extract_strided_slice %54 {offsets = [0, 0], sizes = [32, 256], strides = [1, 1]} : vector<32x512xf32> to vector<32x256xf32>
    %56 = arith.truncf %55 : vector<32x256xf32> to vector<32x256xbf16>
    %c0_35 = arith.constant 0 : index
    %c48 = arith.constant 48 : index
    %57 = vector.load %arg14[%c0_35, %c48] : memref<32x704xbf16, #tpu.memory_space<vmem>>, vector<32x256xbf16>
    tpu.vector_store %arg14[%c0_35, %c48], %56 {strides = array<i32>} : memref<32x704xbf16, #tpu.memory_space<vmem>>, vector<32x256xbf16>,
    %58 = vector.extract_strided_slice %54 {offsets = [0, 256], sizes = [32, 256], strides = [1, 1]} : vector<32x512xf32> to vector<32x256xf32>
    %59 = arith.truncf %58 : vector<32x256xf32> to vector<32x256xbf16>
    %c0_36 = arith.constant 0 : index
    %c400 = arith.constant 400 : index
    %60 = vector.load %arg14[%c0_36, %c400] : memref<32x704xbf16, #tpu.memory_space<vmem>>, vector<32x256xbf16>
    tpu.vector_store %arg14[%c0_36, %c400], %59 {strides = array<i32>} : memref<32x704xbf16, #tpu.memory_space<vmem>>, vector<32x256xbf16>,
    %c0_37 = arith.constant 0 : index
    %c31 = arith.constant 31 : index
    %61 = vector.load %arg14[%c0_37, %c31] : memref<32x704xbf16, #tpu.memory_space<vmem>>, vector<32x256xbf16>
    %cst_38 = arith.constant 0.000000e+00 : bf16
    %62 = vector.broadcast %cst_38 : bf16 to vector<32x256xbf16>
    %63 = vector.shape_cast %28 : vector<1x256xi1> to vector<1x256xi1>
    %64 = vector.broadcast %63 : vector<1x256xi1> to vector<32x256xi1>
    %65 = arith.select %64, %61, %62 : vector<32x256xi1>, vector<32x256xbf16>
    %c0_39 = arith.constant 0 : index
    %c0_40 = arith.constant 0 : index
    %66 = vector.load %arg15[%c0_39, %c0_40] : memref<288x512xbf16, #tpu.memory_space<vmem>>, vector<32x256xbf16>
    tpu.vector_store %arg15[%c0_39, %c0_40], %65 {strides = array<i32>} : memref<288x512xbf16, #tpu.memory_space<vmem>>, vector<32x256xbf16>,
    %c0_41 = arith.constant 0 : index
    %c383 = arith.constant 383 : index
    %67 = vector.load %arg14[%c0_41, %c383] : memref<32x704xbf16, #tpu.memory_space<vmem>>, vector<32x256xbf16>
    %cst_42 = arith.constant 0.000000e+00 : bf16
    %68 = vector.broadcast %cst_42 : bf16 to vector<32x256xbf16>
    %69 = vector.shape_cast %28 : vector<1x256xi1> to vector<1x256xi1>
    %70 = vector.broadcast %69 : vector<1x256xi1> to vector<32x256xi1>
    %71 = arith.select %70, %67, %68 : vector<32x256xi1>, vector<32x256xbf16>
    %c0_43 = arith.constant 0 : index
    %c256 = arith.constant 256 : index
    %72 = vector.load %arg15[%c0_43, %c256] : memref<288x512xbf16, #tpu.memory_space<vmem>>, vector<32x256xbf16>
    tpu.vector_store %arg15[%c0_43, %c256], %71 {strides = array<i32>} : memref<288x512xbf16, #tpu.memory_space<vmem>>, vector<32x256xbf16>,
    %c0_44 = arith.constant 0 : index
    %c32 = arith.constant 32 : index
    %73 = vector.load %arg14[%c0_44, %c32] : memref<32x704xbf16, #tpu.memory_space<vmem>>, vector<32x256xbf16>
    %c32_45 = arith.constant 32 : index
    %c0_46 = arith.constant 0 : index
    %74 = vector.load %arg15[%c32_45, %c0_46] : memref<288x512xbf16, #tpu.memory_space<vmem>>, vector<32x256xbf16>
    tpu.vector_store %arg15[%c32_45, %c0_46], %73 {strides = array<i32>} : memref<288x512xbf16, #tpu.memory_space<vmem>>, vector<32x256xbf16>,
    %c0_47 = arith.constant 0 : index
    %c384 = arith.constant 384 : index
    %75 = vector.load %arg14[%c0_47, %c384] : memref<32x704xbf16, #tpu.memory_space<vmem>>, vector<32x256xbf16>
    %c32_48 = arith.constant 32 : index
    %c256_49 = arith.constant 256 : index
    %76 = vector.load %arg15[%c32_48, %c256_49] : memref<288x512xbf16, #tpu.memory_space<vmem>>, vector<32x256xbf16>
    tpu.vector_store %arg15[%c32_48, %c256_49], %75 {strides = array<i32>} : memref<288x512xbf16, #tpu.memory_space<vmem>>, vector<32x256xbf16>,
    %c0_50 = arith.constant 0 : index
    %c33 = arith.constant 33 : index
    %77 = vector.load %arg14[%c0_50, %c33] : memref<32x704xbf16, #tpu.memory_space<vmem>>, vector<32x256xbf16>
    %cst_51 = arith.constant 0.000000e+00 : bf16
    %78 = vector.broadcast %cst_51 : bf16 to vector<32x256xbf16>
    %79 = vector.shape_cast %30 : vector<1x256xi1> to vector<1x256xi1>
    %80 = vector.broadcast %79 : vector<1x256xi1> to vector<32x256xi1>
    %81 = arith.select %80, %77, %78 : vector<32x256xi1>, vector<32x256xbf16>
    %c64 = arith.constant 64 : index
    %c0_52 = arith.constant 0 : index
    %82 = vector.load %arg15[%c64, %c0_52] : memref<288x512xbf16, #tpu.memory_space<vmem>>, vector<32x256xbf16>
    tpu.vector_store %arg15[%c64, %c0_52], %81 {strides = array<i32>} : memref<288x512xbf16, #tpu.memory_space<vmem>>, vector<32x256xbf16>,
    %c0_53 = arith.constant 0 : index
    %c385 = arith.constant 385 : index
    %83 = vector.load %arg14[%c0_53, %c385] : memref<32x704xbf16, #tpu.memory_space<vmem>>, vector<32x256xbf16>
    %cst_54 = arith.constant 0.000000e+00 : bf16
    %84 = vector.broadcast %cst_54 : bf16 to vector<32x256xbf16>
    %85 = vector.shape_cast %30 : vector<1x256xi1> to vector<1x256xi1>
    %86 = vector.broadcast %85 : vector<1x256xi1> to vector<32x256xi1>
    %87 = arith.select %86, %83, %84 : vector<32x256xi1>, vector<32x256xbf16>
    %c64_55 = arith.constant 64 : index
    %c256_56 = arith.constant 256 : index
    %88 = vector.load %arg15[%c64_55, %c256_56] : memref<288x512xbf16, #tpu.memory_space<vmem>>, vector<32x256xbf16>
    tpu.vector_store %arg15[%c64_55, %c256_56], %87 {strides = array<i32>} : memref<288x512xbf16, #tpu.memory_space<vmem>>, vector<32x256xbf16>,
    %c0_57 = arith.constant 0 : index
    %c47 = arith.constant 47 : index
    %89 = vector.load %arg14[%c0_57, %c47] : memref<32x704xbf16, #tpu.memory_space<vmem>>, vector<32x256xbf16>
    %cst_58 = arith.constant 0.000000e+00 : bf16
    %90 = vector.broadcast %cst_58 : bf16 to vector<32x256xbf16>
    %91 = vector.shape_cast %28 : vector<1x256xi1> to vector<1x256xi1>
    %92 = vector.broadcast %91 : vector<1x256xi1> to vector<32x256xi1>
    %93 = arith.select %92, %89, %90 : vector<32x256xi1>, vector<32x256xbf16>
    %c96 = arith.constant 96 : index
    %c0_59 = arith.constant 0 : index
    %94 = vector.load %arg15[%c96, %c0_59] : memref<288x512xbf16, #tpu.memory_space<vmem>>, vector<32x256xbf16>
    tpu.vector_store %arg15[%c96, %c0_59], %93 {strides = array<i32>} : memref<288x512xbf16, #tpu.memory_space<vmem>>, vector<32x256xbf16>,
    %c0_60 = arith.constant 0 : index
    %c399 = arith.constant 399 : index
    %95 = vector.load %arg14[%c0_60, %c399] : memref<32x704xbf16, #tpu.memory_space<vmem>>, vector<32x256xbf16>
    %cst_61 = arith.constant 0.000000e+00 : bf16
    %96 = vector.broadcast %cst_61 : bf16 to vector<32x256xbf16>
    %97 = vector.shape_cast %28 : vector<1x256xi1> to vector<1x256xi1>
    %98 = vector.broadcast %97 : vector<1x256xi1> to vector<32x256xi1>
    %99 = arith.select %98, %95, %96 : vector<32x256xi1>, vector<32x256xbf16>
    %c96_62 = arith.constant 96 : index
    %c256_63 = arith.constant 256 : index
    %100 = vector.load %arg15[%c96_62, %c256_63] : memref<288x512xbf16, #tpu.memory_space<vmem>>, vector<32x256xbf16>
    tpu.vector_store %arg15[%c96_62, %c256_63], %99 {strides = array<i32>} : memref<288x512xbf16, #tpu.memory_space<vmem>>, vector<32x256xbf16>,
    %c0_64 = arith.constant 0 : index
    %c48_65 = arith.constant 48 : index
    %101 = vector.load %arg14[%c0_64, %c48_65] : memref<32x704xbf16, #tpu.memory_space<vmem>>, vector<32x256xbf16>
    %c128 = arith.constant 128 : index
    %c0_66 = arith.constant 0 : index
    %102 = vector.load %arg15[%c128, %c0_66] : memref<288x512xbf16, #tpu.memory_space<vmem>>, vector<32x256xbf16>
    tpu.vector_store %arg15[%c128, %c0_66], %101 {strides = array<i32>} : memref<288x512xbf16, #tpu.memory_space<vmem>>, vector<32x256xbf16>,
    %c0_67 = arith.constant 0 : index
    %c400_68 = arith.constant 400 : index
    %103 = vector.load %arg14[%c0_67, %c400_68] : memref<32x704xbf16, #tpu.memory_space<vmem>>, vector<32x256xbf16>
    %c128_69 = arith.constant 128 : index
    %c256_70 = arith.constant 256 : index
    %104 = vector.load %arg15[%c128_69, %c256_70] : memref<288x512xbf16, #tpu.memory_space<vmem>>, vector<32x256xbf16>
    tpu.vector_store %arg15[%c128_69, %c256_70], %103 {strides = array<i32>} : memref<288x512xbf16, #tpu.memory_space<vmem>>, vector<32x256xbf16>,
    %c0_71 = arith.constant 0 : index
    %c49 = arith.constant 49 : index
    %105 = vector.load %arg14[%c0_71, %c49] : memref<32x704xbf16, #tpu.memory_space<vmem>>, vector<32x256xbf16>
    %cst_72 = arith.constant 0.000000e+00 : bf16
    %106 = vector.broadcast %cst_72 : bf16 to vector<32x256xbf16>
    %107 = vector.shape_cast %30 : vector<1x256xi1> to vector<1x256xi1>
    %108 = vector.broadcast %107 : vector<1x256xi1> to vector<32x256xi1>
    %109 = arith.select %108, %105, %106 : vector<32x256xi1>, vector<32x256xbf16>
    %c160 = arith.constant 160 : index
    %c0_73 = arith.constant 0 : index
    %110 = vector.load %arg15[%c160, %c0_73] : memref<288x512xbf16, #tpu.memory_space<vmem>>, vector<32x256xbf16>
    tpu.vector_store %arg15[%c160, %c0_73], %109 {strides = array<i32>} : memref<288x512xbf16, #tpu.memory_space<vmem>>, vector<32x256xbf16>,
    %c0_74 = arith.constant 0 : index
    %c401 = arith.constant 401 : index
    %111 = vector.load %arg14[%c0_74, %c401] : memref<32x704xbf16, #tpu.memory_space<vmem>>, vector<32x256xbf16>
    %cst_75 = arith.constant 0.000000e+00 : bf16
    %112 = vector.broadcast %cst_75 : bf16 to vector<32x256xbf16>
    %113 = vector.shape_cast %30 : vector<1x256xi1> to vector<1x256xi1>
    %114 = vector.broadcast %113 : vector<1x256xi1> to vector<32x256xi1>
    %115 = arith.select %114, %111, %112 : vector<32x256xi1>, vector<32x256xbf16>
    %c160_76 = arith.constant 160 : index
    %c256_77 = arith.constant 256 : index
    %116 = vector.load %arg15[%c160_76, %c256_77] : memref<288x512xbf16, #tpu.memory_space<vmem>>, vector<32x256xbf16>
    tpu.vector_store %arg15[%c160_76, %c256_77], %115 {strides = array<i32>} : memref<288x512xbf16, #tpu.memory_space<vmem>>, vector<32x256xbf16>,
    %c0_78 = arith.constant 0 : index
    %c63 = arith.constant 63 : index
    %117 = vector.load %arg14[%c0_78, %c63] : memref<32x704xbf16, #tpu.memory_space<vmem>>, vector<32x256xbf16>
    %cst_79 = arith.constant 0.000000e+00 : bf16
    %118 = vector.broadcast %cst_79 : bf16 to vector<32x256xbf16>
    %119 = vector.shape_cast %28 : vector<1x256xi1> to vector<1x256xi1>
    %120 = vector.broadcast %119 : vector<1x256xi1> to vector<32x256xi1>
    %121 = arith.select %120, %117, %118 : vector<32x256xi1>, vector<32x256xbf16>
    %c192 = arith.constant 192 : index
    %c0_80 = arith.constant 0 : index
    %122 = vector.load %arg15[%c192, %c0_80] : memref<288x512xbf16, #tpu.memory_space<vmem>>, vector<32x256xbf16>
    tpu.vector_store %arg15[%c192, %c0_80], %121 {strides = array<i32>} : memref<288x512xbf16, #tpu.memory_space<vmem>>, vector<32x256xbf16>,
    %c0_81 = arith.constant 0 : index
    %c415 = arith.constant 415 : index
    %123 = vector.load %arg14[%c0_81, %c415] : memref<32x704xbf16, #tpu.memory_space<vmem>>, vector<32x256xbf16>
    %cst_82 = arith.constant 0.000000e+00 : bf16
    %124 = vector.broadcast %cst_82 : bf16 to vector<32x256xbf16>
    %125 = vector.shape_cast %28 : vector<1x256xi1> to vector<1x256xi1>
    %126 = vector.broadcast %125 : vector<1x256xi1> to vector<32x256xi1>
    %127 = arith.select %126, %123, %124 : vector<32x256xi1>, vector<32x256xbf16>
    %c192_83 = arith.constant 192 : index
    %c256_84 = arith.constant 256 : index
    %128 = vector.load %arg15[%c192_83, %c256_84] : memref<288x512xbf16, #tpu.memory_space<vmem>>, vector<32x256xbf16>
    tpu.vector_store %arg15[%c192_83, %c256_84], %127 {strides = array<i32>} : memref<288x512xbf16, #tpu.memory_space<vmem>>, vector<32x256xbf16>,
    %c0_85 = arith.constant 0 : index
    %c64_86 = arith.constant 64 : index
    %129 = vector.load %arg14[%c0_85, %c64_86] : memref<32x704xbf16, #tpu.memory_space<vmem>>, vector<32x256xbf16>
    %c224 = arith.constant 224 : index
    %c0_87 = arith.constant 0 : index
    %130 = vector.load %arg15[%c224, %c0_87] : memref<288x512xbf16, #tpu.memory_space<vmem>>, vector<32x256xbf16>
    tpu.vector_store %arg15[%c224, %c0_87], %129 {strides = array<i32>} : memref<288x512xbf16, #tpu.memory_space<vmem>>, vector<32x256xbf16>,
    %c0_88 = arith.constant 0 : index
    %c416 = arith.constant 416 : index
    %131 = vector.load %arg14[%c0_88, %c416] : memref<32x704xbf16, #tpu.memory_space<vmem>>, vector<32x256xbf16>
    %c224_89 = arith.constant 224 : index
    %c256_90 = arith.constant 256 : index
    %132 = vector.load %arg15[%c224_89, %c256_90] : memref<288x512xbf16, #tpu.memory_space<vmem>>, vector<32x256xbf16>
    tpu.vector_store %arg15[%c224_89, %c256_90], %131 {strides = array<i32>} : memref<288x512xbf16, #tpu.memory_space<vmem>>, vector<32x256xbf16>,
    %c0_91 = arith.constant 0 : index
    %c65 = arith.constant 65 : index
    %133 = vector.load %arg14[%c0_91, %c65] : memref<32x704xbf16, #tpu.memory_space<vmem>>, vector<32x256xbf16>
    %cst_92 = arith.constant 0.000000e+00 : bf16
    %134 = vector.broadcast %cst_92 : bf16 to vector<32x256xbf16>
    %135 = vector.shape_cast %30 : vector<1x256xi1> to vector<1x256xi1>
    %136 = vector.broadcast %135 : vector<1x256xi1> to vector<32x256xi1>
    %137 = arith.select %136, %133, %134 : vector<32x256xi1>, vector<32x256xbf16>
    %c256_93 = arith.constant 256 : index
    %c0_94 = arith.constant 0 : index
    %138 = vector.load %arg15[%c256_93, %c0_94] : memref<288x512xbf16, #tpu.memory_space<vmem>>, vector<32x256xbf16>
    tpu.vector_store %arg15[%c256_93, %c0_94], %137 {strides = array<i32>} : memref<288x512xbf16, #tpu.memory_space<vmem>>, vector<32x256xbf16>,
    %c0_95 = arith.constant 0 : index
    %c417 = arith.constant 417 : index
    %139 = vector.load %arg14[%c0_95, %c417] : memref<32x704xbf16, #tpu.memory_space<vmem>>, vector<32x256xbf16>
    %cst_96 = arith.constant 0.000000e+00 : bf16
    %140 = vector.broadcast %cst_96 : bf16 to vector<32x256xbf16>
    %141 = vector.shape_cast %30 : vector<1x256xi1> to vector<1x256xi1>
    %142 = vector.broadcast %141 : vector<1x256xi1> to vector<32x256xi1>
    %143 = arith.select %142, %139, %140 : vector<32x256xi1>, vector<32x256xbf16>
    %c256_97 = arith.constant 256 : index
    %c256_98 = arith.constant 256 : index
    %144 = vector.load %arg15[%c256_97, %c256_98] : memref<288x512xbf16, #tpu.memory_space<vmem>>, vector<32x256xbf16>
    tpu.vector_store %arg15[%c256_97, %c256_98], %143 {strides = array<i32>} : memref<288x512xbf16, #tpu.memory_space<vmem>>, vector<32x256xbf16>,
    %c0_99 = arith.constant 0 : index
    %c0_100 = arith.constant 0 : index
    %145 = vector.load %arg15[%c0_99, %c0_100] : memref<288x512xbf16, #tpu.memory_space<vmem>>, vector<288x512xbf16>
    %cst_101 = arith.constant dense<0.000000e+00> : vector<32x512xf32>
    %146 = tpu.matmul %42, %145, %cst_101 {dimension_numbers = #tpu.dot_dimension_numbers<[1], [0], [0], [1], [0, 0, 1, 1], [], []>} : vector<32x288xbf16>, vector<288x512xbf16>, vector<32x512xf32> -> vector<32x512xf32>
    %147 = vector.broadcast %44 : vector<32x1xf32> to vector<32x512xf32>
    %148 = arith.addf %146, %147 : vector<32x512xf32>
    %cst_102 = arith.constant 0.000000e+00 : f32
    %149 = vector.broadcast %cst_102 : f32 to vector<32x512xf32>
    %150 = arith.maximumf %148, %149 : vector<32x512xf32>
    %151 = vector.extract_strided_slice %150 {offsets = [0, 0], sizes = [32, 256], strides = [1, 1]} : vector<32x512xf32> to vector<32x256xf32>
    %152 = arith.truncf %151 : vector<32x256xf32> to vector<32x256xbf16>
    %c0_103 = arith.constant 0 : index
    %c48_104 = arith.constant 48 : index
    %153 = vector.load %arg14[%c0_103, %c48_104] : memref<32x704xbf16, #tpu.memory_space<vmem>>, vector<32x256xbf16>
    tpu.vector_store %arg14[%c0_103, %c48_104], %152 {strides = array<i32>} : memref<32x704xbf16, #tpu.memory_space<vmem>>, vector<32x256xbf16>,
    %154 = vector.extract_strided_slice %150 {offsets = [0, 256], sizes = [32, 256], strides = [1, 1]} : vector<32x512xf32> to vector<32x256xf32>
    %155 = arith.truncf %154 : vector<32x256xf32> to vector<32x256xbf16>
    %c0_105 = arith.constant 0 : index
    %c400_106 = arith.constant 400 : index
    %156 = vector.load %arg14[%c0_105, %c400_106] : memref<32x704xbf16, #tpu.memory_space<vmem>>, vector<32x256xbf16>
    tpu.vector_store %arg14[%c0_105, %c400_106], %155 {strides = array<i32>} : memref<32x704xbf16, #tpu.memory_space<vmem>>, vector<32x256xbf16>,
    %c0_107 = arith.constant 0 : index
    %c14 = arith.constant 14 : index
    %157 = vector.load %arg14[%c0_107, %c14] : memref<32x704xbf16, #tpu.memory_space<vmem>>, vector<32x256xbf16>
    %cst_108 = arith.constant 0.000000e+00 : bf16
    %158 = vector.broadcast %cst_108 : bf16 to vector<32x256xbf16>
    %159 = vector.shape_cast %26 : vector<1x256xi1> to vector<1x256xi1>
    %160 = vector.broadcast %159 : vector<1x256xi1> to vector<32x256xi1>
    %161 = arith.select %160, %157, %158 : vector<32x256xi1>, vector<32x256xbf16>
    %c0_109 = arith.constant 0 : index
    %c0_110 = arith.constant 0 : index
    %162 = vector.load %arg15[%c0_109, %c0_110] : memref<288x512xbf16, #tpu.memory_space<vmem>>, vector<32x256xbf16>
    tpu.vector_store %arg15[%c0_109, %c0_110], %161 {strides = array<i32>} : memref<288x512xbf16, #tpu.memory_space<vmem>>, vector<32x256xbf16>,
    %c0_111 = arith.constant 0 : index
    %c366 = arith.constant 366 : index
    %163 = vector.load %arg14[%c0_111, %c366] : memref<32x704xbf16, #tpu.memory_space<vmem>>, vector<32x256xbf16>
    %cst_112 = arith.constant 0.000000e+00 : bf16
    %164 = vector.broadcast %cst_112 : bf16 to vector<32x256xbf16>
    %165 = vector.shape_cast %26 : vector<1x256xi1> to vector<1x256xi1>
    %166 = vector.broadcast %165 : vector<1x256xi1> to vector<32x256xi1>
    %167 = arith.select %166, %163, %164 : vector<32x256xi1>, vector<32x256xbf16>
    %c0_113 = arith.constant 0 : index
    %c256_114 = arith.constant 256 : index
    %168 = vector.load %arg15[%c0_113, %c256_114] : memref<288x512xbf16, #tpu.memory_space<vmem>>, vector<32x256xbf16>
    tpu.vector_store %arg15[%c0_113, %c256_114], %167 {strides = array<i32>} : memref<288x512xbf16, #tpu.memory_space<vmem>>, vector<32x256xbf16>,
    %c0_115 = arith.constant 0 : index
    %c16 = arith.constant 16 : index
    %169 = vector.load %arg14[%c0_115, %c16] : memref<32x704xbf16, #tpu.memory_space<vmem>>, vector<32x256xbf16>
    %c32_116 = arith.constant 32 : index
    %c0_117 = arith.constant 0 : index
    %170 = vector.load %arg15[%c32_116, %c0_117] : memref<288x512xbf16, #tpu.memory_space<vmem>>, vector<32x256xbf16>
    tpu.vector_store %arg15[%c32_116, %c0_117], %169 {strides = array<i32>} : memref<288x512xbf16, #tpu.memory_space<vmem>>, vector<32x256xbf16>,
    %c0_118 = arith.constant 0 : index
    %c368 = arith.constant 368 : index
    %171 = vector.load %arg14[%c0_118, %c368] : memref<32x704xbf16, #tpu.memory_space<vmem>>, vector<32x256xbf16>
    %c32_119 = arith.constant 32 : index
    %c256_120 = arith.constant 256 : index
    %172 = vector.load %arg15[%c32_119, %c256_120] : memref<288x512xbf16, #tpu.memory_space<vmem>>, vector<32x256xbf16>
    tpu.vector_store %arg15[%c32_119, %c256_120], %171 {strides = array<i32>} : memref<288x512xbf16, #tpu.memory_space<vmem>>, vector<32x256xbf16>,
    %c0_121 = arith.constant 0 : index
    %c18 = arith.constant 18 : index
    %173 = vector.load %arg14[%c0_121, %c18] : memref<32x704xbf16, #tpu.memory_space<vmem>>, vector<32x256xbf16>
    %cst_122 = arith.constant 0.000000e+00 : bf16
    %174 = vector.broadcast %cst_122 : bf16 to vector<32x256xbf16>
    %175 = vector.shape_cast %32 : vector<1x256xi1> to vector<1x256xi1>
    %176 = vector.broadcast %175 : vector<1x256xi1> to vector<32x256xi1>
    %177 = arith.select %176, %173, %174 : vector<32x256xi1>, vector<32x256xbf16>
    %c64_123 = arith.constant 64 : index
    %c0_124 = arith.constant 0 : index
    %178 = vector.load %arg15[%c64_123, %c0_124] : memref<288x512xbf16, #tpu.memory_space<vmem>>, vector<32x256xbf16>
    tpu.vector_store %arg15[%c64_123, %c0_124], %177 {strides = array<i32>} : memref<288x512xbf16, #tpu.memory_space<vmem>>, vector<32x256xbf16>,
    %c0_125 = arith.constant 0 : index
    %c370 = arith.constant 370 : index
    %179 = vector.load %arg14[%c0_125, %c370] : memref<32x704xbf16, #tpu.memory_space<vmem>>, vector<32x256xbf16>
    %cst_126 = arith.constant 0.000000e+00 : bf16
    %180 = vector.broadcast %cst_126 : bf16 to vector<32x256xbf16>
    %181 = vector.shape_cast %32 : vector<1x256xi1> to vector<1x256xi1>
    %182 = vector.broadcast %181 : vector<1x256xi1> to vector<32x256xi1>
    %183 = arith.select %182, %179, %180 : vector<32x256xi1>, vector<32x256xbf16>
    %c64_127 = arith.constant 64 : index
    %c256_128 = arith.constant 256 : index
    %184 = vector.load %arg15[%c64_127, %c256_128] : memref<288x512xbf16, #tpu.memory_space<vmem>>, vector<32x256xbf16>
    tpu.vector_store %arg15[%c64_127, %c256_128], %183 {strides = array<i32>} : memref<288x512xbf16, #tpu.memory_space<vmem>>, vector<32x256xbf16>,
    %c0_129 = arith.constant 0 : index
    %c46 = arith.constant 46 : index
    %185 = vector.load %arg14[%c0_129, %c46] : memref<32x704xbf16, #tpu.memory_space<vmem>>, vector<32x256xbf16>
    %cst_130 = arith.constant 0.000000e+00 : bf16
    %186 = vector.broadcast %cst_130 : bf16 to vector<32x256xbf16>
    %187 = vector.shape_cast %26 : vector<1x256xi1> to vector<1x256xi1>
    %188 = vector.broadcast %187 : vector<1x256xi1> to vector<32x256xi1>
    %189 = arith.select %188, %185, %186 : vector<32x256xi1>, vector<32x256xbf16>
    %c96_131 = arith.constant 96 : index
    %c0_132 = arith.constant 0 : index
    %190 = vector.load %arg15[%c96_131, %c0_132] : memref<288x512xbf16, #tpu.memory_space<vmem>>, vector<32x256xbf16>
    tpu.vector_store %arg15[%c96_131, %c0_132], %189 {strides = array<i32>} : memref<288x512xbf16, #tpu.memory_space<vmem>>, vector<32x256xbf16>,
    %c0_133 = arith.constant 0 : index
    %c398 = arith.constant 398 : index
    %191 = vector.load %arg14[%c0_133, %c398] : memref<32x704xbf16, #tpu.memory_space<vmem>>, vector<32x256xbf16>
    %cst_134 = arith.constant 0.000000e+00 : bf16
    %192 = vector.broadcast %cst_134 : bf16 to vector<32x256xbf16>
    %193 = vector.shape_cast %26 : vector<1x256xi1> to vector<1x256xi1>
    %194 = vector.broadcast %193 : vector<1x256xi1> to vector<32x256xi1>
    %195 = arith.select %194, %191, %192 : vector<32x256xi1>, vector<32x256xbf16>
    %c96_135 = arith.constant 96 : index
    %c256_136 = arith.constant 256 : index
    %196 = vector.load %arg15[%c96_135, %c256_136] : memref<288x512xbf16, #tpu.memory_space<vmem>>, vector<32x256xbf16>
    tpu.vector_store %arg15[%c96_135, %c256_136], %195 {strides = array<i32>} : memref<288x512xbf16, #tpu.memory_space<vmem>>, vector<32x256xbf16>,
    %c0_137 = arith.constant 0 : index
    %c48_138 = arith.constant 48 : index
    %197 = vector.load %arg14[%c0_137, %c48_138] : memref<32x704xbf16, #tpu.memory_space<vmem>>, vector<32x256xbf16>
    %c128_139 = arith.constant 128 : index
    %c0_140 = arith.constant 0 : index
    %198 = vector.load %arg15[%c128_139, %c0_140] : memref<288x512xbf16, #tpu.memory_space<vmem>>, vector<32x256xbf16>
    tpu.vector_store %arg15[%c128_139, %c0_140], %197 {strides = array<i32>} : memref<288x512xbf16, #tpu.memory_space<vmem>>, vector<32x256xbf16>,
    %c0_141 = arith.constant 0 : index
    %c400_142 = arith.constant 400 : index
    %199 = vector.load %arg14[%c0_141, %c400_142] : memref<32x704xbf16, #tpu.memory_space<vmem>>, vector<32x256xbf16>
    %c128_143 = arith.constant 128 : index
    %c256_144 = arith.constant 256 : index
    %200 = vector.load %arg15[%c128_143, %c256_144] : memref<288x512xbf16, #tpu.memory_space<vmem>>, vector<32x256xbf16>
    tpu.vector_store %arg15[%c128_143, %c256_144], %199 {strides = array<i32>} : memref<288x512xbf16, #tpu.memory_space<vmem>>, vector<32x256xbf16>,
    %c0_145 = arith.constant 0 : index
    %c50 = arith.constant 50 : index
    %201 = vector.load %arg14[%c0_145, %c50] : memref<32x704xbf16, #tpu.memory_space<vmem>>, vector<32x256xbf16>
    %cst_146 = arith.constant 0.000000e+00 : bf16
    %202 = vector.broadcast %cst_146 : bf16 to vector<32x256xbf16>
    %203 = vector.shape_cast %32 : vector<1x256xi1> to vector<1x256xi1>
    %204 = vector.broadcast %203 : vector<1x256xi1> to vector<32x256xi1>
    %205 = arith.select %204, %201, %202 : vector<32x256xi1>, vector<32x256xbf16>
    %c160_147 = arith.constant 160 : index
    %c0_148 = arith.constant 0 : index
    %206 = vector.load %arg15[%c160_147, %c0_148] : memref<288x512xbf16, #tpu.memory_space<vmem>>, vector<32x256xbf16>
    tpu.vector_store %arg15[%c160_147, %c0_148], %205 {strides = array<i32>} : memref<288x512xbf16, #tpu.memory_space<vmem>>, vector<32x256xbf16>,
    %c0_149 = arith.constant 0 : index
    %c402 = arith.constant 402 : index
    %207 = vector.load %arg14[%c0_149, %c402] : memref<32x704xbf16, #tpu.memory_space<vmem>>, vector<32x256xbf16>
    %cst_150 = arith.constant 0.000000e+00 : bf16
    %208 = vector.broadcast %cst_150 : bf16 to vector<32x256xbf16>
    %209 = vector.shape_cast %32 : vector<1x256xi1> to vector<1x256xi1>
    %210 = vector.broadcast %209 : vector<1x256xi1> to vector<32x256xi1>
    %211 = arith.select %210, %207, %208 : vector<32x256xi1>, vector<32x256xbf16>
    %c160_151 = arith.constant 160 : index
    %c256_152 = arith.constant 256 : index
    %212 = vector.load %arg15[%c160_151, %c256_152] : memref<288x512xbf16, #tpu.memory_space<vmem>>, vector<32x256xbf16>
    tpu.vector_store %arg15[%c160_151, %c256_152], %211 {strides = array<i32>} : memref<288x512xbf16, #tpu.memory_space<vmem>>, vector<32x256xbf16>,
    %c0_153 = arith.constant 0 : index
    %c78 = arith.constant 78 : index
    %213 = vector.load %arg14[%c0_153, %c78] : memref<32x704xbf16, #tpu.memory_space<vmem>>, vector<32x256xbf16>
    %cst_154 = arith.constant 0.000000e+00 : bf16
    %214 = vector.broadcast %cst_154 : bf16 to vector<32x256xbf16>
    %215 = vector.shape_cast %26 : vector<1x256xi1> to vector<1x256xi1>
    %216 = vector.broadcast %215 : vector<1x256xi1> to vector<32x256xi1>
    %217 = arith.select %216, %213, %214 : vector<32x256xi1>, vector<32x256xbf16>
    %c192_155 = arith.constant 192 : index
    %c0_156 = arith.constant 0 : index
    %218 = vector.load %arg15[%c192_155, %c0_156] : memref<288x512xbf16, #tpu.memory_space<vmem>>, vector<32x256xbf16>
    tpu.vector_store %arg15[%c192_155, %c0_156], %217 {strides = array<i32>} : memref<288x512xbf16, #tpu.memory_space<vmem>>, vector<32x256xbf16>,
    %c0_157 = arith.constant 0 : index
    %c430 = arith.constant 430 : index
    %219 = vector.load %arg14[%c0_157, %c430] : memref<32x704xbf16, #tpu.memory_space<vmem>>, vector<32x256xbf16>
    %cst_158 = arith.constant 0.000000e+00 : bf16
    %220 = vector.broadcast %cst_158 : bf16 to vector<32x256xbf16>
    %221 = vector.shape_cast %26 : vector<1x256xi1> to vector<1x256xi1>
    %222 = vector.broadcast %221 : vector<1x256xi1> to vector<32x256xi1>
    %223 = arith.select %222, %219, %220 : vector<32x256xi1>, vector<32x256xbf16>
    %c192_159 = arith.constant 192 : index
    %c256_160 = arith.constant 256 : index
    %224 = vector.load %arg15[%c192_159, %c256_160] : memref<288x512xbf16, #tpu.memory_space<vmem>>, vector<32x256xbf16>
    tpu.vector_store %arg15[%c192_159, %c256_160], %223 {strides = array<i32>} : memref<288x512xbf16, #tpu.memory_space<vmem>>, vector<32x256xbf16>,
    %c0_161 = arith.constant 0 : index
    %c80 = arith.constant 80 : index
    %225 = vector.load %arg14[%c0_161, %c80] : memref<32x704xbf16, #tpu.memory_space<vmem>>, vector<32x256xbf16>
    %c224_162 = arith.constant 224 : index
    %c0_163 = arith.constant 0 : index
    %226 = vector.load %arg15[%c224_162, %c0_163] : memref<288x512xbf16, #tpu.memory_space<vmem>>, vector<32x256xbf16>
    tpu.vector_store %arg15[%c224_162, %c0_163], %225 {strides = array<i32>} : memref<288x512xbf16, #tpu.memory_space<vmem>>, vector<32x256xbf16>,
    %c0_164 = arith.constant 0 : index
    %c432 = arith.constant 432 : index
    %227 = vector.load %arg14[%c0_164, %c432] : memref<32x704xbf16, #tpu.memory_space<vmem>>, vector<32x256xbf16>
    %c224_165 = arith.constant 224 : index
    %c256_166 = arith.constant 256 : index
    %228 = vector.load %arg15[%c224_165, %c256_166] : memref<288x512xbf16, #tpu.memory_space<vmem>>, vector<32x256xbf16>
    tpu.vector_store %arg15[%c224_165, %c256_166], %227 {strides = array<i32>} : memref<288x512xbf16, #tpu.memory_space<vmem>>, vector<32x256xbf16>,
    %c0_167 = arith.constant 0 : index
    %c82 = arith.constant 82 : index
    %229 = vector.load %arg14[%c0_167, %c82] : memref<32x704xbf16, #tpu.memory_space<vmem>>, vector<32x256xbf16>
    %cst_168 = arith.constant 0.000000e+00 : bf16
    %230 = vector.broadcast %cst_168 : bf16 to vector<32x256xbf16>
    %231 = vector.shape_cast %32 : vector<1x256xi1> to vector<1x256xi1>
    %232 = vector.broadcast %231 : vector<1x256xi1> to vector<32x256xi1>
    %233 = arith.select %232, %229, %230 : vector<32x256xi1>, vector<32x256xbf16>
    %c256_169 = arith.constant 256 : index
    %c0_170 = arith.constant 0 : index
    %234 = vector.load %arg15[%c256_169, %c0_170] : memref<288x512xbf16, #tpu.memory_space<vmem>>, vector<32x256xbf16>
    tpu.vector_store %arg15[%c256_169, %c0_170], %233 {strides = array<i32>} : memref<288x512xbf16, #tpu.memory_space<vmem>>, vector<32x256xbf16>,
    %c0_171 = arith.constant 0 : index
    %c434 = arith.constant 434 : index
    %235 = vector.load %arg14[%c0_171, %c434] : memref<32x704xbf16, #tpu.memory_space<vmem>>, vector<32x256xbf16>
    %cst_172 = arith.constant 0.000000e+00 : bf16
    %236 = vector.broadcast %cst_172 : bf16 to vector<32x256xbf16>
    %237 = vector.shape_cast %32 : vector<1x256xi1> to vector<1x256xi1>
    %238 = vector.broadcast %237 : vector<1x256xi1> to vector<32x256xi1>
    %239 = arith.select %238, %235, %236 : vector<32x256xi1>, vector<32x256xbf16>
    %c256_173 = arith.constant 256 : index
    %c256_174 = arith.constant 256 : index
    %240 = vector.load %arg15[%c256_173, %c256_174] : memref<288x512xbf16, #tpu.memory_space<vmem>>, vector<32x256xbf16>
    tpu.vector_store %arg15[%c256_173, %c256_174], %239 {strides = array<i32>} : memref<288x512xbf16, #tpu.memory_space<vmem>>, vector<32x256xbf16>,
    %c0_175 = arith.constant 0 : index
    %c0_176 = arith.constant 0 : index
    %241 = vector.load %arg15[%c0_175, %c0_176] : memref<288x512xbf16, #tpu.memory_space<vmem>>, vector<288x512xbf16>
    %cst_177 = arith.constant dense<0.000000e+00> : vector<32x512xf32>
    %242 = tpu.matmul %46, %241, %cst_177 {dimension_numbers = #tpu.dot_dimension_numbers<[1], [0], [0], [1], [0, 0, 1, 1], [], []>} : vector<32x288xbf16>, vector<288x512xbf16>, vector<32x512xf32> -> vector<32x512xf32>
    %243 = vector.broadcast %48 : vector<32x1xf32> to vector<32x512xf32>
    %244 = arith.addf %242, %243 : vector<32x512xf32>
    %cst_178 = arith.constant 0.000000e+00 : f32
    %245 = vector.broadcast %cst_178 : f32 to vector<32x512xf32>
    %246 = arith.maximumf %244, %245 : vector<32x512xf32>
    %247 = arith.addf %54, %246 : vector<32x512xf32>
    %c0_i32_179 = arith.constant 0 : i32
    %c4_i32 = arith.constant 4 : i32
    %248 = arith.addi %c0_i32_179, %c4_i32 : i32
    %c1_i32_180 = arith.constant 1 : i32
    %249 = scf.for %arg16 = %c0_i32_179 to %248 step %c1_i32_180 iter_args(%arg17 = %247) -> (vector<32x512xf32>)  : i32 {
      %272 = arith.index_cast %arg16 : i32 to index
      %c0_199 = arith.constant 0 : index
      %c0_200 = arith.constant 0 : index
      %273 = vector.load %arg3[%272, %c0_199, %c0_200] : memref<4x32x32xbf16, #tpu.memory_space<vmem>>, vector<1x32x32xbf16>
      %274 = vector.shape_cast %273 : vector<1x32x32xbf16> to vector<32x32xbf16>
      %c1_i32_201 = arith.constant 1 : i32
      %275 = arith.addi %arg16, %c1_i32_201 : i32
      %276 = arith.index_cast %275 : i32 to index
      %c0_202 = arith.constant 0 : index
      %c0_203 = arith.constant 0 : index
      %277 = vector.load %arg4[%276, %c0_202, %c0_203] : memref<5x32x1xf32, #tpu.memory_space<vmem>>, vector<1x32x1xf32>
      %278 = vector.shape_cast %277 : vector<1x32x1xf32> to vector<32x1xf32>
      %c1_i32_204 = arith.constant 1 : i32
      %279 = arith.addi %arg16, %c1_i32_204 : i32
      %280 = arith.index_cast %279 : i32 to index
      %c0_205 = arith.constant 0 : index
      %c0_206 = arith.constant 0 : index
      %281 = vector.load %arg5[%280, %c0_205, %c0_206] : memref<5x32x288xbf16, #tpu.memory_space<vmem>>, vector<1x32x288xbf16>
      %282 = vector.shape_cast %281 : vector<1x32x288xbf16> to vector<32x288xbf16>
      %c1_i32_207 = arith.constant 1 : i32
      %283 = arith.addi %arg16, %c1_i32_207 : i32
      %284 = arith.index_cast %283 : i32 to index
      %c0_208 = arith.constant 0 : index
      %c0_209 = arith.constant 0 : index
      %285 = vector.load %arg6[%284, %c0_208, %c0_209] : memref<5x32x1xf32, #tpu.memory_space<vmem>>, vector<1x32x1xf32>
      %286 = vector.shape_cast %285 : vector<1x32x1xf32> to vector<32x1xf32>
      %c1_i32_210 = arith.constant 1 : i32
      %287 = arith.addi %arg16, %c1_i32_210 : i32
      %288 = arith.index_cast %287 : i32 to index
      %c0_211 = arith.constant 0 : index
      %c0_212 = arith.constant 0 : index
      %289 = vector.load %arg7[%288, %c0_211, %c0_212] : memref<5x32x288xbf16, #tpu.memory_space<vmem>>, vector<1x32x288xbf16>
      %290 = vector.shape_cast %289 : vector<1x32x288xbf16> to vector<32x288xbf16>
      %c1_i32_213 = arith.constant 1 : i32
      %291 = arith.addi %arg16, %c1_i32_213 : i32
      %292 = arith.index_cast %291 : i32 to index
      %c0_214 = arith.constant 0 : index
      %c0_215 = arith.constant 0 : index
      %293 = vector.load %arg8[%292, %c0_214, %c0_215] : memref<5x32x1xf32, #tpu.memory_space<vmem>>, vector<1x32x1xf32>
      %294 = vector.shape_cast %293 : vector<1x32x1xf32> to vector<32x1xf32>
      %295 = arith.truncf %arg17 : vector<32x512xf32> to vector<32x512xbf16>
      %cst_216 = arith.constant dense<0.000000e+00> : vector<32x512xf32>
      %296 = tpu.matmul %274, %295, %cst_216 {dimension_numbers = #tpu.dot_dimension_numbers<[1], [0], [0], [1], [0, 0, 1, 1], [], []>} : vector<32x32xbf16>, vector<32x512xbf16>, vector<32x512xf32> -> vector<32x512xf32>
      %297 = vector.broadcast %278 : vector<32x1xf32> to vector<32x512xf32>
      %298 = arith.addf %296, %297 : vector<32x512xf32>
      %cst_217 = arith.constant 0.000000e+00 : f32
      %299 = vector.broadcast %cst_217 : f32 to vector<32x512xf32>
      %300 = arith.maximumf %298, %299 : vector<32x512xf32>
      %301 = vector.extract_strided_slice %300 {offsets = [0, 0], sizes = [32, 256], strides = [1, 1]} : vector<32x512xf32> to vector<32x256xf32>
      %302 = arith.truncf %301 : vector<32x256xf32> to vector<32x256xbf16>
      %c0_218 = arith.constant 0 : index
      %c48_219 = arith.constant 48 : index
      %303 = vector.load %arg14[%c0_218, %c48_219] : memref<32x704xbf16, #tpu.memory_space<vmem>>, vector<32x256xbf16>
      tpu.vector_store %arg14[%c0_218, %c48_219], %302 {strides = array<i32>} : memref<32x704xbf16, #tpu.memory_space<vmem>>, vector<32x256xbf16>,
      %304 = vector.extract_strided_slice %300 {offsets = [0, 256], sizes = [32, 256], strides = [1, 1]} : vector<32x512xf32> to vector<32x256xf32>
      %305 = arith.truncf %304 : vector<32x256xf32> to vector<32x256xbf16>
      %c0_220 = arith.constant 0 : index
      %c400_221 = arith.constant 400 : index
      %306 = vector.load %arg14[%c0_220, %c400_221] : memref<32x704xbf16, #tpu.memory_space<vmem>>, vector<32x256xbf16>
      tpu.vector_store %arg14[%c0_220, %c400_221], %305 {strides = array<i32>} : memref<32x704xbf16, #tpu.memory_space<vmem>>, vector<32x256xbf16>,
      %c0_222 = arith.constant 0 : index
      %c31_223 = arith.constant 31 : index
      %307 = vector.load %arg14[%c0_222, %c31_223] : memref<32x704xbf16, #tpu.memory_space<vmem>>, vector<32x256xbf16>
      %cst_224 = arith.constant 0.000000e+00 : bf16
      %308 = vector.broadcast %cst_224 : bf16 to vector<32x256xbf16>
      %309 = vector.shape_cast %28 : vector<1x256xi1> to vector<1x256xi1>
      %310 = vector.broadcast %309 : vector<1x256xi1> to vector<32x256xi1>
      %311 = arith.select %310, %307, %308 : vector<32x256xi1>, vector<32x256xbf16>
      %c0_225 = arith.constant 0 : index
      %c0_226 = arith.constant 0 : index
      %312 = vector.load %arg15[%c0_225, %c0_226] : memref<288x512xbf16, #tpu.memory_space<vmem>>, vector<32x256xbf16>
      tpu.vector_store %arg15[%c0_225, %c0_226], %311 {strides = array<i32>} : memref<288x512xbf16, #tpu.memory_space<vmem>>, vector<32x256xbf16>,
      %c0_227 = arith.constant 0 : index
      %c383_228 = arith.constant 383 : index
      %313 = vector.load %arg14[%c0_227, %c383_228] : memref<32x704xbf16, #tpu.memory_space<vmem>>, vector<32x256xbf16>
      %cst_229 = arith.constant 0.000000e+00 : bf16
      %314 = vector.broadcast %cst_229 : bf16 to vector<32x256xbf16>
      %315 = vector.shape_cast %28 : vector<1x256xi1> to vector<1x256xi1>
      %316 = vector.broadcast %315 : vector<1x256xi1> to vector<32x256xi1>
      %317 = arith.select %316, %313, %314 : vector<32x256xi1>, vector<32x256xbf16>
      %c0_230 = arith.constant 0 : index
      %c256_231 = arith.constant 256 : index
      %318 = vector.load %arg15[%c0_230, %c256_231] : memref<288x512xbf16, #tpu.memory_space<vmem>>, vector<32x256xbf16>
      tpu.vector_store %arg15[%c0_230, %c256_231], %317 {strides = array<i32>} : memref<288x512xbf16, #tpu.memory_space<vmem>>, vector<32x256xbf16>,
      %c0_232 = arith.constant 0 : index
      %c32_233 = arith.constant 32 : index
      %319 = vector.load %arg14[%c0_232, %c32_233] : memref<32x704xbf16, #tpu.memory_space<vmem>>, vector<32x256xbf16>
      %c32_234 = arith.constant 32 : index
      %c0_235 = arith.constant 0 : index
      %320 = vector.load %arg15[%c32_234, %c0_235] : memref<288x512xbf16, #tpu.memory_space<vmem>>, vector<32x256xbf16>
      tpu.vector_store %arg15[%c32_234, %c0_235], %319 {strides = array<i32>} : memref<288x512xbf16, #tpu.memory_space<vmem>>, vector<32x256xbf16>,
      %c0_236 = arith.constant 0 : index
      %c384_237 = arith.constant 384 : index
      %321 = vector.load %arg14[%c0_236, %c384_237] : memref<32x704xbf16, #tpu.memory_space<vmem>>, vector<32x256xbf16>
      %c32_238 = arith.constant 32 : index
      %c256_239 = arith.constant 256 : index
      %322 = vector.load %arg15[%c32_238, %c256_239] : memref<288x512xbf16, #tpu.memory_space<vmem>>, vector<32x256xbf16>
      tpu.vector_store %arg15[%c32_238, %c256_239], %321 {strides = array<i32>} : memref<288x512xbf16, #tpu.memory_space<vmem>>, vector<32x256xbf16>,
      %c0_240 = arith.constant 0 : index
      %c33_241 = arith.constant 33 : index
      %323 = vector.load %arg14[%c0_240, %c33_241] : memref<32x704xbf16, #tpu.memory_space<vmem>>, vector<32x256xbf16>
      %cst_242 = arith.constant 0.000000e+00 : bf16
      %324 = vector.broadcast %cst_242 : bf16 to vector<32x256xbf16>
      %325 = vector.shape_cast %30 : vector<1x256xi1> to vector<1x256xi1>
      %326 = vector.broadcast %325 : vector<1x256xi1> to vector<32x256xi1>
      %327 = arith.select %326, %323, %324 : vector<32x256xi1>, vector<32x256xbf16>
      %c64_243 = arith.constant 64 : index
      %c0_244 = arith.constant 0 : index
      %328 = vector.load %arg15[%c64_243, %c0_244] : memref<288x512xbf16, #tpu.memory_space<vmem>>, vector<32x256xbf16>
      tpu.vector_store %arg15[%c64_243, %c0_244], %327 {strides = array<i32>} : memref<288x512xbf16, #tpu.memory_space<vmem>>, vector<32x256xbf16>,
      %c0_245 = arith.constant 0 : index
      %c385_246 = arith.constant 385 : index
      %329 = vector.load %arg14[%c0_245, %c385_246] : memref<32x704xbf16, #tpu.memory_space<vmem>>, vector<32x256xbf16>
      %cst_247 = arith.constant 0.000000e+00 : bf16
      %330 = vector.broadcast %cst_247 : bf16 to vector<32x256xbf16>
      %331 = vector.shape_cast %30 : vector<1x256xi1> to vector<1x256xi1>
      %332 = vector.broadcast %331 : vector<1x256xi1> to vector<32x256xi1>
      %333 = arith.select %332, %329, %330 : vector<32x256xi1>, vector<32x256xbf16>
      %c64_248 = arith.constant 64 : index
      %c256_249 = arith.constant 256 : index
      %334 = vector.load %arg15[%c64_248, %c256_249] : memref<288x512xbf16, #tpu.memory_space<vmem>>, vector<32x256xbf16>
      tpu.vector_store %arg15[%c64_248, %c256_249], %333 {strides = array<i32>} : memref<288x512xbf16, #tpu.memory_space<vmem>>, vector<32x256xbf16>,
      %c0_250 = arith.constant 0 : index
      %c47_251 = arith.constant 47 : index
      %335 = vector.load %arg14[%c0_250, %c47_251] : memref<32x704xbf16, #tpu.memory_space<vmem>>, vector<32x256xbf16>
      %cst_252 = arith.constant 0.000000e+00 : bf16
      %336 = vector.broadcast %cst_252 : bf16 to vector<32x256xbf16>
      %337 = vector.shape_cast %28 : vector<1x256xi1> to vector<1x256xi1>
      %338 = vector.broadcast %337 : vector<1x256xi1> to vector<32x256xi1>
      %339 = arith.select %338, %335, %336 : vector<32x256xi1>, vector<32x256xbf16>
      %c96_253 = arith.constant 96 : index
      %c0_254 = arith.constant 0 : index
      %340 = vector.load %arg15[%c96_253, %c0_254] : memref<288x512xbf16, #tpu.memory_space<vmem>>, vector<32x256xbf16>
      tpu.vector_store %arg15[%c96_253, %c0_254], %339 {strides = array<i32>} : memref<288x512xbf16, #tpu.memory_space<vmem>>, vector<32x256xbf16>,
      %c0_255 = arith.constant 0 : index
      %c399_256 = arith.constant 399 : index
      %341 = vector.load %arg14[%c0_255, %c399_256] : memref<32x704xbf16, #tpu.memory_space<vmem>>, vector<32x256xbf16>
      %cst_257 = arith.constant 0.000000e+00 : bf16
      %342 = vector.broadcast %cst_257 : bf16 to vector<32x256xbf16>
      %343 = vector.shape_cast %28 : vector<1x256xi1> to vector<1x256xi1>
      %344 = vector.broadcast %343 : vector<1x256xi1> to vector<32x256xi1>
      %345 = arith.select %344, %341, %342 : vector<32x256xi1>, vector<32x256xbf16>
      %c96_258 = arith.constant 96 : index
      %c256_259 = arith.constant 256 : index
      %346 = vector.load %arg15[%c96_258, %c256_259] : memref<288x512xbf16, #tpu.memory_space<vmem>>, vector<32x256xbf16>
      tpu.vector_store %arg15[%c96_258, %c256_259], %345 {strides = array<i32>} : memref<288x512xbf16, #tpu.memory_space<vmem>>, vector<32x256xbf16>,
      %c0_260 = arith.constant 0 : index
      %c48_261 = arith.constant 48 : index
      %347 = vector.load %arg14[%c0_260, %c48_261] : memref<32x704xbf16, #tpu.memory_space<vmem>>, vector<32x256xbf16>
      %c128_262 = arith.constant 128 : index
      %c0_263 = arith.constant 0 : index
      %348 = vector.load %arg15[%c128_262, %c0_263] : memref<288x512xbf16, #tpu.memory_space<vmem>>, vector<32x256xbf16>
      tpu.vector_store %arg15[%c128_262, %c0_263], %347 {strides = array<i32>} : memref<288x512xbf16, #tpu.memory_space<vmem>>, vector<32x256xbf16>,
      %c0_264 = arith.constant 0 : index
      %c400_265 = arith.constant 400 : index
      %349 = vector.load %arg14[%c0_264, %c400_265] : memref<32x704xbf16, #tpu.memory_space<vmem>>, vector<32x256xbf16>
      %c128_266 = arith.constant 128 : index
      %c256_267 = arith.constant 256 : index
      %350 = vector.load %arg15[%c128_266, %c256_267] : memref<288x512xbf16, #tpu.memory_space<vmem>>, vector<32x256xbf16>
      tpu.vector_store %arg15[%c128_266, %c256_267], %349 {strides = array<i32>} : memref<288x512xbf16, #tpu.memory_space<vmem>>, vector<32x256xbf16>,
      %c0_268 = arith.constant 0 : index
      %c49_269 = arith.constant 49 : index
      %351 = vector.load %arg14[%c0_268, %c49_269] : memref<32x704xbf16, #tpu.memory_space<vmem>>, vector<32x256xbf16>
      %cst_270 = arith.constant 0.000000e+00 : bf16
      %352 = vector.broadcast %cst_270 : bf16 to vector<32x256xbf16>
      %353 = vector.shape_cast %30 : vector<1x256xi1> to vector<1x256xi1>
      %354 = vector.broadcast %353 : vector<1x256xi1> to vector<32x256xi1>
      %355 = arith.select %354, %351, %352 : vector<32x256xi1>, vector<32x256xbf16>
      %c160_271 = arith.constant 160 : index
      %c0_272 = arith.constant 0 : index
      %356 = vector.load %arg15[%c160_271, %c0_272] : memref<288x512xbf16, #tpu.memory_space<vmem>>, vector<32x256xbf16>
      tpu.vector_store %arg15[%c160_271, %c0_272], %355 {strides = array<i32>} : memref<288x512xbf16, #tpu.memory_space<vmem>>, vector<32x256xbf16>,
      %c0_273 = arith.constant 0 : index
      %c401_274 = arith.constant 401 : index
      %357 = vector.load %arg14[%c0_273, %c401_274] : memref<32x704xbf16, #tpu.memory_space<vmem>>, vector<32x256xbf16>
      %cst_275 = arith.constant 0.000000e+00 : bf16
      %358 = vector.broadcast %cst_275 : bf16 to vector<32x256xbf16>
      %359 = vector.shape_cast %30 : vector<1x256xi1> to vector<1x256xi1>
      %360 = vector.broadcast %359 : vector<1x256xi1> to vector<32x256xi1>
      %361 = arith.select %360, %357, %358 : vector<32x256xi1>, vector<32x256xbf16>
      %c160_276 = arith.constant 160 : index
      %c256_277 = arith.constant 256 : index
      %362 = vector.load %arg15[%c160_276, %c256_277] : memref<288x512xbf16, #tpu.memory_space<vmem>>, vector<32x256xbf16>
      tpu.vector_store %arg15[%c160_276, %c256_277], %361 {strides = array<i32>} : memref<288x512xbf16, #tpu.memory_space<vmem>>, vector<32x256xbf16>,
      %c0_278 = arith.constant 0 : index
      %c63_279 = arith.constant 63 : index
      %363 = vector.load %arg14[%c0_278, %c63_279] : memref<32x704xbf16, #tpu.memory_space<vmem>>, vector<32x256xbf16>
      %cst_280 = arith.constant 0.000000e+00 : bf16
      %364 = vector.broadcast %cst_280 : bf16 to vector<32x256xbf16>
      %365 = vector.shape_cast %28 : vector<1x256xi1> to vector<1x256xi1>
      %366 = vector.broadcast %365 : vector<1x256xi1> to vector<32x256xi1>
      %367 = arith.select %366, %363, %364 : vector<32x256xi1>, vector<32x256xbf16>
      %c192_281 = arith.constant 192 : index
      %c0_282 = arith.constant 0 : index
      %368 = vector.load %arg15[%c192_281, %c0_282] : memref<288x512xbf16, #tpu.memory_space<vmem>>, vector<32x256xbf16>
      tpu.vector_store %arg15[%c192_281, %c0_282], %367 {strides = array<i32>} : memref<288x512xbf16, #tpu.memory_space<vmem>>, vector<32x256xbf16>,
      %c0_283 = arith.constant 0 : index
      %c415_284 = arith.constant 415 : index
      %369 = vector.load %arg14[%c0_283, %c415_284] : memref<32x704xbf16, #tpu.memory_space<vmem>>, vector<32x256xbf16>
      %cst_285 = arith.constant 0.000000e+00 : bf16
      %370 = vector.broadcast %cst_285 : bf16 to vector<32x256xbf16>
      %371 = vector.shape_cast %28 : vector<1x256xi1> to vector<1x256xi1>
      %372 = vector.broadcast %371 : vector<1x256xi1> to vector<32x256xi1>
      %373 = arith.select %372, %369, %370 : vector<32x256xi1>, vector<32x256xbf16>
      %c192_286 = arith.constant 192 : index
      %c256_287 = arith.constant 256 : index
      %374 = vector.load %arg15[%c192_286, %c256_287] : memref<288x512xbf16, #tpu.memory_space<vmem>>, vector<32x256xbf16>
      tpu.vector_store %arg15[%c192_286, %c256_287], %373 {strides = array<i32>} : memref<288x512xbf16, #tpu.memory_space<vmem>>, vector<32x256xbf16>,
      %c0_288 = arith.constant 0 : index
      %c64_289 = arith.constant 64 : index
      %375 = vector.load %arg14[%c0_288, %c64_289] : memref<32x704xbf16, #tpu.memory_space<vmem>>, vector<32x256xbf16>
      %c224_290 = arith.constant 224 : index
      %c0_291 = arith.constant 0 : index
      %376 = vector.load %arg15[%c224_290, %c0_291] : memref<288x512xbf16, #tpu.memory_space<vmem>>, vector<32x256xbf16>
      tpu.vector_store %arg15[%c224_290, %c0_291], %375 {strides = array<i32>} : memref<288x512xbf16, #tpu.memory_space<vmem>>, vector<32x256xbf16>,
      %c0_292 = arith.constant 0 : index
      %c416_293 = arith.constant 416 : index
      %377 = vector.load %arg14[%c0_292, %c416_293] : memref<32x704xbf16, #tpu.memory_space<vmem>>, vector<32x256xbf16>
      %c224_294 = arith.constant 224 : index
      %c256_295 = arith.constant 256 : index
      %378 = vector.load %arg15[%c224_294, %c256_295] : memref<288x512xbf16, #tpu.memory_space<vmem>>, vector<32x256xbf16>
      tpu.vector_store %arg15[%c224_294, %c256_295], %377 {strides = array<i32>} : memref<288x512xbf16, #tpu.memory_space<vmem>>, vector<32x256xbf16>,
      %c0_296 = arith.constant 0 : index
      %c65_297 = arith.constant 65 : index
      %379 = vector.load %arg14[%c0_296, %c65_297] : memref<32x704xbf16, #tpu.memory_space<vmem>>, vector<32x256xbf16>
      %cst_298 = arith.constant 0.000000e+00 : bf16
      %380 = vector.broadcast %cst_298 : bf16 to vector<32x256xbf16>
      %381 = vector.shape_cast %30 : vector<1x256xi1> to vector<1x256xi1>
      %382 = vector.broadcast %381 : vector<1x256xi1> to vector<32x256xi1>
      %383 = arith.select %382, %379, %380 : vector<32x256xi1>, vector<32x256xbf16>
      %c256_299 = arith.constant 256 : index
      %c0_300 = arith.constant 0 : index
      %384 = vector.load %arg15[%c256_299, %c0_300] : memref<288x512xbf16, #tpu.memory_space<vmem>>, vector<32x256xbf16>
      tpu.vector_store %arg15[%c256_299, %c0_300], %383 {strides = array<i32>} : memref<288x512xbf16, #tpu.memory_space<vmem>>, vector<32x256xbf16>,
      %c0_301 = arith.constant 0 : index
      %c417_302 = arith.constant 417 : index
      %385 = vector.load %arg14[%c0_301, %c417_302] : memref<32x704xbf16, #tpu.memory_space<vmem>>, vector<32x256xbf16>
      %cst_303 = arith.constant 0.000000e+00 : bf16
      %386 = vector.broadcast %cst_303 : bf16 to vector<32x256xbf16>
      %387 = vector.shape_cast %30 : vector<1x256xi1> to vector<1x256xi1>
      %388 = vector.broadcast %387 : vector<1x256xi1> to vector<32x256xi1>
      %389 = arith.select %388, %385, %386 : vector<32x256xi1>, vector<32x256xbf16>
      %c256_304 = arith.constant 256 : index
      %c256_305 = arith.constant 256 : index
      %390 = vector.load %arg15[%c256_304, %c256_305] : memref<288x512xbf16, #tpu.memory_space<vmem>>, vector<32x256xbf16>
      tpu.vector_store %arg15[%c256_304, %c256_305], %389 {strides = array<i32>} : memref<288x512xbf16, #tpu.memory_space<vmem>>, vector<32x256xbf16>,
      %c0_306 = arith.constant 0 : index
      %c0_307 = arith.constant 0 : index
      %391 = vector.load %arg15[%c0_306, %c0_307] : memref<288x512xbf16, #tpu.memory_space<vmem>>, vector<288x512xbf16>
      %cst_308 = arith.constant dense<0.000000e+00> : vector<32x512xf32>
      %392 = tpu.matmul %282, %391, %cst_308 {dimension_numbers = #tpu.dot_dimension_numbers<[1], [0], [0], [1], [0, 0, 1, 1], [], []>} : vector<32x288xbf16>, vector<288x512xbf16>, vector<32x512xf32> -> vector<32x512xf32>
      %393 = vector.broadcast %286 : vector<32x1xf32> to vector<32x512xf32>
      %394 = arith.addf %392, %393 : vector<32x512xf32>
      %cst_309 = arith.constant 0.000000e+00 : f32
      %395 = vector.broadcast %cst_309 : f32 to vector<32x512xf32>
      %396 = arith.maximumf %394, %395 : vector<32x512xf32>
      %397 = vector.extract_strided_slice %396 {offsets = [0, 0], sizes = [32, 256], strides = [1, 1]} : vector<32x512xf32> to vector<32x256xf32>
      %398 = arith.truncf %397 : vector<32x256xf32> to vector<32x256xbf16>
      %c0_310 = arith.constant 0 : index
      %c48_311 = arith.constant 48 : index
      %399 = vector.load %arg14[%c0_310, %c48_311] : memref<32x704xbf16, #tpu.memory_space<vmem>>, vector<32x256xbf16>
      tpu.vector_store %arg14[%c0_310, %c48_311], %398 {strides = array<i32>} : memref<32x704xbf16, #tpu.memory_space<vmem>>, vector<32x256xbf16>,
      %400 = vector.extract_strided_slice %396 {offsets = [0, 256], sizes = [32, 256], strides = [1, 1]} : vector<32x512xf32> to vector<32x256xf32>
      %401 = arith.truncf %400 : vector<32x256xf32> to vector<32x256xbf16>
      %c0_312 = arith.constant 0 : index
      %c400_313 = arith.constant 400 : index
      %402 = vector.load %arg14[%c0_312, %c400_313] : memref<32x704xbf16, #tpu.memory_space<vmem>>, vector<32x256xbf16>
      tpu.vector_store %arg14[%c0_312, %c400_313], %401 {strides = array<i32>} : memref<32x704xbf16, #tpu.memory_space<vmem>>, vector<32x256xbf16>,
      %c0_314 = arith.constant 0 : index
      %c14_315 = arith.constant 14 : index
      %403 = vector.load %arg14[%c0_314, %c14_315] : memref<32x704xbf16, #tpu.memory_space<vmem>>, vector<32x256xbf16>
      %cst_316 = arith.constant 0.000000e+00 : bf16
      %404 = vector.broadcast %cst_316 : bf16 to vector<32x256xbf16>
      %405 = vector.shape_cast %26 : vector<1x256xi1> to vector<1x256xi1>
      %406 = vector.broadcast %405 : vector<1x256xi1> to vector<32x256xi1>
      %407 = arith.select %406, %403, %404 : vector<32x256xi1>, vector<32x256xbf16>
      %c0_317 = arith.constant 0 : index
      %c0_318 = arith.constant 0 : index
      %408 = vector.load %arg15[%c0_317, %c0_318] : memref<288x512xbf16, #tpu.memory_space<vmem>>, vector<32x256xbf16>
      tpu.vector_store %arg15[%c0_317, %c0_318], %407 {strides = array<i32>} : memref<288x512xbf16, #tpu.memory_space<vmem>>, vector<32x256xbf16>,
      %c0_319 = arith.constant 0 : index
      %c366_320 = arith.constant 366 : index
      %409 = vector.load %arg14[%c0_319, %c366_320] : memref<32x704xbf16, #tpu.memory_space<vmem>>, vector<32x256xbf16>
      %cst_321 = arith.constant 0.000000e+00 : bf16
      %410 = vector.broadcast %cst_321 : bf16 to vector<32x256xbf16>
      %411 = vector.shape_cast %26 : vector<1x256xi1> to vector<1x256xi1>
      %412 = vector.broadcast %411 : vector<1x256xi1> to vector<32x256xi1>
      %413 = arith.select %412, %409, %410 : vector<32x256xi1>, vector<32x256xbf16>
      %c0_322 = arith.constant 0 : index
      %c256_323 = arith.constant 256 : index
      %414 = vector.load %arg15[%c0_322, %c256_323] : memref<288x512xbf16, #tpu.memory_space<vmem>>, vector<32x256xbf16>
      tpu.vector_store %arg15[%c0_322, %c256_323], %413 {strides = array<i32>} : memref<288x512xbf16, #tpu.memory_space<vmem>>, vector<32x256xbf16>,
      %c0_324 = arith.constant 0 : index
      %c16_325 = arith.constant 16 : index
      %415 = vector.load %arg14[%c0_324, %c16_325] : memref<32x704xbf16, #tpu.memory_space<vmem>>, vector<32x256xbf16>
      %c32_326 = arith.constant 32 : index
      %c0_327 = arith.constant 0 : index
      %416 = vector.load %arg15[%c32_326, %c0_327] : memref<288x512xbf16, #tpu.memory_space<vmem>>, vector<32x256xbf16>
      tpu.vector_store %arg15[%c32_326, %c0_327], %415 {strides = array<i32>} : memref<288x512xbf16, #tpu.memory_space<vmem>>, vector<32x256xbf16>,
      %c0_328 = arith.constant 0 : index
      %c368_329 = arith.constant 368 : index
      %417 = vector.load %arg14[%c0_328, %c368_329] : memref<32x704xbf16, #tpu.memory_space<vmem>>, vector<32x256xbf16>
      %c32_330 = arith.constant 32 : index
      %c256_331 = arith.constant 256 : index
      %418 = vector.load %arg15[%c32_330, %c256_331] : memref<288x512xbf16, #tpu.memory_space<vmem>>, vector<32x256xbf16>
      tpu.vector_store %arg15[%c32_330, %c256_331], %417 {strides = array<i32>} : memref<288x512xbf16, #tpu.memory_space<vmem>>, vector<32x256xbf16>,
      %c0_332 = arith.constant 0 : index
      %c18_333 = arith.constant 18 : index
      %419 = vector.load %arg14[%c0_332, %c18_333] : memref<32x704xbf16, #tpu.memory_space<vmem>>, vector<32x256xbf16>
      %cst_334 = arith.constant 0.000000e+00 : bf16
      %420 = vector.broadcast %cst_334 : bf16 to vector<32x256xbf16>
      %421 = vector.shape_cast %32 : vector<1x256xi1> to vector<1x256xi1>
      %422 = vector.broadcast %421 : vector<1x256xi1> to vector<32x256xi1>
      %423 = arith.select %422, %419, %420 : vector<32x256xi1>, vector<32x256xbf16>
      %c64_335 = arith.constant 64 : index
      %c0_336 = arith.constant 0 : index
      %424 = vector.load %arg15[%c64_335, %c0_336] : memref<288x512xbf16, #tpu.memory_space<vmem>>, vector<32x256xbf16>
      tpu.vector_store %arg15[%c64_335, %c0_336], %423 {strides = array<i32>} : memref<288x512xbf16, #tpu.memory_space<vmem>>, vector<32x256xbf16>,
      %c0_337 = arith.constant 0 : index
      %c370_338 = arith.constant 370 : index
      %425 = vector.load %arg14[%c0_337, %c370_338] : memref<32x704xbf16, #tpu.memory_space<vmem>>, vector<32x256xbf16>
      %cst_339 = arith.constant 0.000000e+00 : bf16
      %426 = vector.broadcast %cst_339 : bf16 to vector<32x256xbf16>
      %427 = vector.shape_cast %32 : vector<1x256xi1> to vector<1x256xi1>
      %428 = vector.broadcast %427 : vector<1x256xi1> to vector<32x256xi1>
      %429 = arith.select %428, %425, %426 : vector<32x256xi1>, vector<32x256xbf16>
      %c64_340 = arith.constant 64 : index
      %c256_341 = arith.constant 256 : index
      %430 = vector.load %arg15[%c64_340, %c256_341] : memref<288x512xbf16, #tpu.memory_space<vmem>>, vector<32x256xbf16>
      tpu.vector_store %arg15[%c64_340, %c256_341], %429 {strides = array<i32>} : memref<288x512xbf16, #tpu.memory_space<vmem>>, vector<32x256xbf16>,
      %c0_342 = arith.constant 0 : index
      %c46_343 = arith.constant 46 : index
      %431 = vector.load %arg14[%c0_342, %c46_343] : memref<32x704xbf16, #tpu.memory_space<vmem>>, vector<32x256xbf16>
      %cst_344 = arith.constant 0.000000e+00 : bf16
      %432 = vector.broadcast %cst_344 : bf16 to vector<32x256xbf16>
      %433 = vector.shape_cast %26 : vector<1x256xi1> to vector<1x256xi1>
      %434 = vector.broadcast %433 : vector<1x256xi1> to vector<32x256xi1>
      %435 = arith.select %434, %431, %432 : vector<32x256xi1>, vector<32x256xbf16>
      %c96_345 = arith.constant 96 : index
      %c0_346 = arith.constant 0 : index
      %436 = vector.load %arg15[%c96_345, %c0_346] : memref<288x512xbf16, #tpu.memory_space<vmem>>, vector<32x256xbf16>
      tpu.vector_store %arg15[%c96_345, %c0_346], %435 {strides = array<i32>} : memref<288x512xbf16, #tpu.memory_space<vmem>>, vector<32x256xbf16>,
      %c0_347 = arith.constant 0 : index
      %c398_348 = arith.constant 398 : index
      %437 = vector.load %arg14[%c0_347, %c398_348] : memref<32x704xbf16, #tpu.memory_space<vmem>>, vector<32x256xbf16>
      %cst_349 = arith.constant 0.000000e+00 : bf16
      %438 = vector.broadcast %cst_349 : bf16 to vector<32x256xbf16>
      %439 = vector.shape_cast %26 : vector<1x256xi1> to vector<1x256xi1>
      %440 = vector.broadcast %439 : vector<1x256xi1> to vector<32x256xi1>
      %441 = arith.select %440, %437, %438 : vector<32x256xi1>, vector<32x256xbf16>
      %c96_350 = arith.constant 96 : index
      %c256_351 = arith.constant 256 : index
      %442 = vector.load %arg15[%c96_350, %c256_351] : memref<288x512xbf16, #tpu.memory_space<vmem>>, vector<32x256xbf16>
      tpu.vector_store %arg15[%c96_350, %c256_351], %441 {strides = array<i32>} : memref<288x512xbf16, #tpu.memory_space<vmem>>, vector<32x256xbf16>,
      %c0_352 = arith.constant 0 : index
      %c48_353 = arith.constant 48 : index
      %443 = vector.load %arg14[%c0_352, %c48_353] : memref<32x704xbf16, #tpu.memory_space<vmem>>, vector<32x256xbf16>
      %c128_354 = arith.constant 128 : index
      %c0_355 = arith.constant 0 : index
      %444 = vector.load %arg15[%c128_354, %c0_355] : memref<288x512xbf16, #tpu.memory_space<vmem>>, vector<32x256xbf16>
      tpu.vector_store %arg15[%c128_354, %c0_355], %443 {strides = array<i32>} : memref<288x512xbf16, #tpu.memory_space<vmem>>, vector<32x256xbf16>,
      %c0_356 = arith.constant 0 : index
      %c400_357 = arith.constant 400 : index
      %445 = vector.load %arg14[%c0_356, %c400_357] : memref<32x704xbf16, #tpu.memory_space<vmem>>, vector<32x256xbf16>
      %c128_358 = arith.constant 128 : index
      %c256_359 = arith.constant 256 : index
      %446 = vector.load %arg15[%c128_358, %c256_359] : memref<288x512xbf16, #tpu.memory_space<vmem>>, vector<32x256xbf16>
      tpu.vector_store %arg15[%c128_358, %c256_359], %445 {strides = array<i32>} : memref<288x512xbf16, #tpu.memory_space<vmem>>, vector<32x256xbf16>,
      %c0_360 = arith.constant 0 : index
      %c50_361 = arith.constant 50 : index
      %447 = vector.load %arg14[%c0_360, %c50_361] : memref<32x704xbf16, #tpu.memory_space<vmem>>, vector<32x256xbf16>
      %cst_362 = arith.constant 0.000000e+00 : bf16
      %448 = vector.broadcast %cst_362 : bf16 to vector<32x256xbf16>
      %449 = vector.shape_cast %32 : vector<1x256xi1> to vector<1x256xi1>
      %450 = vector.broadcast %449 : vector<1x256xi1> to vector<32x256xi1>
      %451 = arith.select %450, %447, %448 : vector<32x256xi1>, vector<32x256xbf16>
      %c160_363 = arith.constant 160 : index
      %c0_364 = arith.constant 0 : index
      %452 = vector.load %arg15[%c160_363, %c0_364] : memref<288x512xbf16, #tpu.memory_space<vmem>>, vector<32x256xbf16>
      tpu.vector_store %arg15[%c160_363, %c0_364], %451 {strides = array<i32>} : memref<288x512xbf16, #tpu.memory_space<vmem>>, vector<32x256xbf16>,
      %c0_365 = arith.constant 0 : index
      %c402_366 = arith.constant 402 : index
      %453 = vector.load %arg14[%c0_365, %c402_366] : memref<32x704xbf16, #tpu.memory_space<vmem>>, vector<32x256xbf16>
      %cst_367 = arith.constant 0.000000e+00 : bf16
      %454 = vector.broadcast %cst_367 : bf16 to vector<32x256xbf16>
      %455 = vector.shape_cast %32 : vector<1x256xi1> to vector<1x256xi1>
      %456 = vector.broadcast %455 : vector<1x256xi1> to vector<32x256xi1>
      %457 = arith.select %456, %453, %454 : vector<32x256xi1>, vector<32x256xbf16>
      %c160_368 = arith.constant 160 : index
      %c256_369 = arith.constant 256 : index
      %458 = vector.load %arg15[%c160_368, %c256_369] : memref<288x512xbf16, #tpu.memory_space<vmem>>, vector<32x256xbf16>
      tpu.vector_store %arg15[%c160_368, %c256_369], %457 {strides = array<i32>} : memref<288x512xbf16, #tpu.memory_space<vmem>>, vector<32x256xbf16>,
      %c0_370 = arith.constant 0 : index
      %c78_371 = arith.constant 78 : index
      %459 = vector.load %arg14[%c0_370, %c78_371] : memref<32x704xbf16, #tpu.memory_space<vmem>>, vector<32x256xbf16>
      %cst_372 = arith.constant 0.000000e+00 : bf16
      %460 = vector.broadcast %cst_372 : bf16 to vector<32x256xbf16>
      %461 = vector.shape_cast %26 : vector<1x256xi1> to vector<1x256xi1>
      %462 = vector.broadcast %461 : vector<1x256xi1> to vector<32x256xi1>
      %463 = arith.select %462, %459, %460 : vector<32x256xi1>, vector<32x256xbf16>
      %c192_373 = arith.constant 192 : index
      %c0_374 = arith.constant 0 : index
      %464 = vector.load %arg15[%c192_373, %c0_374] : memref<288x512xbf16, #tpu.memory_space<vmem>>, vector<32x256xbf16>
      tpu.vector_store %arg15[%c192_373, %c0_374], %463 {strides = array<i32>} : memref<288x512xbf16, #tpu.memory_space<vmem>>, vector<32x256xbf16>,
      %c0_375 = arith.constant 0 : index
      %c430_376 = arith.constant 430 : index
      %465 = vector.load %arg14[%c0_375, %c430_376] : memref<32x704xbf16, #tpu.memory_space<vmem>>, vector<32x256xbf16>
      %cst_377 = arith.constant 0.000000e+00 : bf16
      %466 = vector.broadcast %cst_377 : bf16 to vector<32x256xbf16>
      %467 = vector.shape_cast %26 : vector<1x256xi1> to vector<1x256xi1>
      %468 = vector.broadcast %467 : vector<1x256xi1> to vector<32x256xi1>
      %469 = arith.select %468, %465, %466 : vector<32x256xi1>, vector<32x256xbf16>
      %c192_378 = arith.constant 192 : index
      %c256_379 = arith.constant 256 : index
      %470 = vector.load %arg15[%c192_378, %c256_379] : memref<288x512xbf16, #tpu.memory_space<vmem>>, vector<32x256xbf16>
      tpu.vector_store %arg15[%c192_378, %c256_379], %469 {strides = array<i32>} : memref<288x512xbf16, #tpu.memory_space<vmem>>, vector<32x256xbf16>,
      %c0_380 = arith.constant 0 : index
      %c80_381 = arith.constant 80 : index
      %471 = vector.load %arg14[%c0_380, %c80_381] : memref<32x704xbf16, #tpu.memory_space<vmem>>, vector<32x256xbf16>
      %c224_382 = arith.constant 224 : index
      %c0_383 = arith.constant 0 : index
      %472 = vector.load %arg15[%c224_382, %c0_383] : memref<288x512xbf16, #tpu.memory_space<vmem>>, vector<32x256xbf16>
      tpu.vector_store %arg15[%c224_382, %c0_383], %471 {strides = array<i32>} : memref<288x512xbf16, #tpu.memory_space<vmem>>, vector<32x256xbf16>,
      %c0_384 = arith.constant 0 : index
      %c432_385 = arith.constant 432 : index
      %473 = vector.load %arg14[%c0_384, %c432_385] : memref<32x704xbf16, #tpu.memory_space<vmem>>, vector<32x256xbf16>
      %c224_386 = arith.constant 224 : index
      %c256_387 = arith.constant 256 : index
      %474 = vector.load %arg15[%c224_386, %c256_387] : memref<288x512xbf16, #tpu.memory_space<vmem>>, vector<32x256xbf16>
      tpu.vector_store %arg15[%c224_386, %c256_387], %473 {strides = array<i32>} : memref<288x512xbf16, #tpu.memory_space<vmem>>, vector<32x256xbf16>,
      %c0_388 = arith.constant 0 : index
      %c82_389 = arith.constant 82 : index
      %475 = vector.load %arg14[%c0_388, %c82_389] : memref<32x704xbf16, #tpu.memory_space<vmem>>, vector<32x256xbf16>
      %cst_390 = arith.constant 0.000000e+00 : bf16
      %476 = vector.broadcast %cst_390 : bf16 to vector<32x256xbf16>
      %477 = vector.shape_cast %32 : vector<1x256xi1> to vector<1x256xi1>
      %478 = vector.broadcast %477 : vector<1x256xi1> to vector<32x256xi1>
      %479 = arith.select %478, %475, %476 : vector<32x256xi1>, vector<32x256xbf16>
      %c256_391 = arith.constant 256 : index
      %c0_392 = arith.constant 0 : index
      %480 = vector.load %arg15[%c256_391, %c0_392] : memref<288x512xbf16, #tpu.memory_space<vmem>>, vector<32x256xbf16>
      tpu.vector_store %arg15[%c256_391, %c0_392], %479 {strides = array<i32>} : memref<288x512xbf16, #tpu.memory_space<vmem>>, vector<32x256xbf16>,
      %c0_393 = arith.constant 0 : index
      %c434_394 = arith.constant 434 : index
      %481 = vector.load %arg14[%c0_393, %c434_394] : memref<32x704xbf16, #tpu.memory_space<vmem>>, vector<32x256xbf16>
      %cst_395 = arith.constant 0.000000e+00 : bf16
      %482 = vector.broadcast %cst_395 : bf16 to vector<32x256xbf16>
      %483 = vector.shape_cast %32 : vector<1x256xi1> to vector<1x256xi1>
      %484 = vector.broadcast %483 : vector<1x256xi1> to vector<32x256xi1>
      %485 = arith.select %484, %481, %482 : vector<32x256xi1>, vector<32x256xbf16>
      %c256_396 = arith.constant 256 : index
      %c256_397 = arith.constant 256 : index
      %486 = vector.load %arg15[%c256_396, %c256_397] : memref<288x512xbf16, #tpu.memory_space<vmem>>, vector<32x256xbf16>
      tpu.vector_store %arg15[%c256_396, %c256_397], %485 {strides = array<i32>} : memref<288x512xbf16, #tpu.memory_space<vmem>>, vector<32x256xbf16>,
      %c0_398 = arith.constant 0 : index
      %c0_399 = arith.constant 0 : index
      %487 = vector.load %arg15[%c0_398, %c0_399] : memref<288x512xbf16, #tpu.memory_space<vmem>>, vector<288x512xbf16>
      %cst_400 = arith.constant dense<0.000000e+00> : vector<32x512xf32>
      %488 = tpu.matmul %290, %487, %cst_400 {dimension_numbers = #tpu.dot_dimension_numbers<[1], [0], [0], [1], [0, 0, 1, 1], [], []>} : vector<32x288xbf16>, vector<288x512xbf16>, vector<32x512xf32> -> vector<32x512xf32>
      %489 = vector.broadcast %294 : vector<32x1xf32> to vector<32x512xf32>
      %490 = arith.addf %488, %489 : vector<32x512xf32>
      %cst_401 = arith.constant 0.000000e+00 : f32
      %491 = vector.broadcast %cst_401 : f32 to vector<32x512xf32>
      %492 = arith.maximumf %490, %491 : vector<32x512xf32>
      %493 = arith.addf %300, %492 : vector<32x512xf32>
      scf.yield %493 : vector<32x512xf32>
    }
    %c4_i32_181 = arith.constant 4 : i32
    %c0_182 = arith.constant 0 : index
    %c0_183 = arith.constant 0 : index
    %250 = vector.load %arg9[%c0_182, %c0_183] : memref<64x32xbf16, #tpu.memory_space<vmem>>, vector<64x32xbf16>
    %251 = arith.truncf %249 : vector<32x512xf32> to vector<32x512xbf16>
    %cst_184 = arith.constant dense<0.000000e+00> : vector<64x512xf32>
    %252 = tpu.matmul %250, %251, %cst_184 {dimension_numbers = #tpu.dot_dimension_numbers<[1], [0], [0], [1], [0, 0, 1, 1], [], []>} : vector<64x32xbf16>, vector<32x512xbf16>, vector<64x512xf32> -> vector<64x512xf32>
    %c0_185 = arith.constant 0 : index
    %c0_186 = arith.constant 0 : index
    %253 = vector.load %arg10[%c0_185, %c0_186] : memref<64x1xf32, #tpu.memory_space<vmem>>, vector<64x1xf32>
    %254 = vector.broadcast %253 : vector<64x1xf32> to vector<64x512xf32>
    %255 = arith.addf %252, %254 : vector<64x512xf32>
    %cst_187 = arith.constant 0.000000e+00 : f32
    %256 = vector.broadcast %cst_187 : f32 to vector<64x512xf32>
    %257 = arith.maximumf %255, %256 : vector<64x512xf32>
    %c0_188 = arith.constant 0 : index
    %c0_189 = arith.constant 0 : index
    %258 = vector.load %arg11[%c0_188, %c0_189] : memref<57x64xbf16, #tpu.memory_space<vmem>>, vector<57x64xbf16>
    %259 = arith.truncf %257 : vector<64x512xf32> to vector<64x512xbf16>
    %cst_190 = arith.constant dense<0.000000e+00> : vector<57x512xf32>
    %260 = tpu.matmul %258, %259, %cst_190 {dimension_numbers = #tpu.dot_dimension_numbers<[1], [0], [0], [1], [0, 0, 1, 1], [], []>} : vector<57x64xbf16>, vector<64x512xbf16>, vector<57x512xf32> -> vector<57x512xf32>
    %c0_191 = arith.constant 0 : index
    %c0_192 = arith.constant 0 : index
    %261 = vector.load %arg12[%c0_191, %c0_192] : memref<57x1xf32, #tpu.memory_space<vmem>>, vector<57x1xf32>
    %262 = vector.broadcast %261 : vector<57x1xf32> to vector<57x512xf32>
    %263 = arith.addf %260, %262 : vector<57x512xf32>
    %264 = vector.extract_strided_slice %263 {offsets = [0, 0], sizes = [57, 256], strides = [1, 1]} : vector<57x512xf32> to vector<57x256xf32>
    %c0_193 = arith.constant 0 : index
    %c0_194 = arith.constant 0 : index
    %c0_195 = arith.constant 0 : index
    %265 = vector.load %arg13[%c0_193, %c0_194, %c0_195] : memref<2x57x256xf32, #tpu.memory_space<vmem>>, vector<1x57x256xf32>
    %266 = vector.shape_cast %265 : vector<1x57x256xf32> to vector<57x256xf32>
    %267 = vector.shape_cast %264 : vector<57x256xf32> to vector<1x57x256xf32>
    tpu.vector_store %arg13[%c0_193, %c0_194, %c0_195], %267 {strides = array<i32>} : memref<2x57x256xf32, #tpu.memory_space<vmem>>, vector<1x57x256xf32>,
    %268 = vector.extract_strided_slice %263 {offsets = [0, 256], sizes = [57, 256], strides = [1, 1]} : vector<57x512xf32> to vector<57x256xf32>
    %c1_196 = arith.constant 1 : index
    %c0_197 = arith.constant 0 : index
    %c0_198 = arith.constant 0 : index
    %269 = vector.load %arg13[%c1_196, %c0_197, %c0_198] : memref<2x57x256xf32, #tpu.memory_space<vmem>>, vector<1x57x256xf32>
    %270 = vector.shape_cast %269 : vector<1x57x256xf32> to vector<57x256xf32>
    %271 = vector.shape_cast %268 : vector<57x256xf32> to vector<1x57x256xf32>
    tpu.vector_store %arg13[%c1_196, %c0_197, %c0_198], %271 {strides = array<i32>} : memref<2x57x256xf32, #tpu.memory_space<vmem>>, vector<1x57x256xf32>,
    return
  }
  func.func @transform_0(%arg0: i32) -> (i32, i32, i32) {
    %c0_i32 = arith.constant 0 : i32
    %c0_i32_0 = arith.constant 0 : i32
    %c0_i32_1 = arith.constant 0 : i32
    return %arg0, %c0_i32, %c0_i32_0 : i32, i32, i32
  }
  func.func @transform_1(%arg0: i32) -> (i32, i32) {
    %c0_i32 = arith.constant 0 : i32
    %c0_i32_0 = arith.constant 0 : i32
    %c0_i32_1 = arith.constant 0 : i32
    return %c0_i32, %c0_i32_0 : i32, i32
  }
  func.func @transform_2(%arg0: i32) -> (i32, i32, i32) {
    %c0_i32 = arith.constant 0 : i32
    %c0_i32_0 = arith.constant 0 : i32
    %c0_i32_1 = arith.constant 0 : i32
    %c0_i32_2 = arith.constant 0 : i32
    return %c0_i32, %c0_i32_0, %c0_i32_1 : i32, i32, i32
  }
  func.func @transform_3(%arg0: i32) -> (i32, i32, i32) {
    %c0_i32 = arith.constant 0 : i32
    %c0_i32_0 = arith.constant 0 : i32
    %c0_i32_1 = arith.constant 0 : i32
    %c0_i32_2 = arith.constant 0 : i32
    return %c0_i32, %c0_i32_0, %c0_i32_1 : i32, i32, i32
  }
  func.func @transform_4(%arg0: i32) -> (i32, i32, i32) {
    %c0_i32 = arith.constant 0 : i32
    %c0_i32_0 = arith.constant 0 : i32
    %c0_i32_1 = arith.constant 0 : i32
    %c0_i32_2 = arith.constant 0 : i32
    return %c0_i32, %c0_i32_0, %c0_i32_1 : i32, i32, i32
  }
  func.func @transform_5(%arg0: i32) -> (i32, i32, i32) {
    %c0_i32 = arith.constant 0 : i32
    %c0_i32_0 = arith.constant 0 : i32
    %c0_i32_1 = arith.constant 0 : i32
    %c0_i32_2 = arith.constant 0 : i32
    return %c0_i32, %c0_i32_0, %c0_i32_1 : i32, i32, i32
  }
  func.func @transform_6(%arg0: i32) -> (i32, i32, i32) {
    %c0_i32 = arith.constant 0 : i32
    %c0_i32_0 = arith.constant 0 : i32
    %c0_i32_1 = arith.constant 0 : i32
    %c0_i32_2 = arith.constant 0 : i32
    return %c0_i32, %c0_i32_0, %c0_i32_1 : i32, i32, i32
  }
  func.func @transform_7(%arg0: i32) -> (i32, i32, i32) {
    %c0_i32 = arith.constant 0 : i32
    %c0_i32_0 = arith.constant 0 : i32
    %c0_i32_1 = arith.constant 0 : i32
    %c0_i32_2 = arith.constant 0 : i32
    return %c0_i32, %c0_i32_0, %c0_i32_1 : i32, i32, i32
  }
  func.func @transform_8(%arg0: i32) -> (i32, i32) {
    %c0_i32 = arith.constant 0 : i32
    %c0_i32_0 = arith.constant 0 : i32
    %c0_i32_1 = arith.constant 0 : i32
    return %c0_i32, %c0_i32_0 : i32, i32
  }
  func.func @transform_9(%arg0: i32) -> (i32, i32) {
    %c0_i32 = arith.constant 0 : i32
    %c0_i32_0 = arith.constant 0 : i32
    %c0_i32_1 = arith.constant 0 : i32
    return %c0_i32, %c0_i32_0 : i32, i32
  }
  func.func @transform_10(%arg0: i32) -> (i32, i32) {
    %c0_i32 = arith.constant 0 : i32
    %c0_i32_0 = arith.constant 0 : i32
    %c0_i32_1 = arith.constant 0 : i32
    return %c0_i32, %c0_i32_0 : i32, i32
  }
  func.func @transform_11(%arg0: i32) -> (i32, i32) {
    %c0_i32 = arith.constant 0 : i32
    %c0_i32_0 = arith.constant 0 : i32
    %c0_i32_1 = arith.constant 0 : i32
    return %c0_i32, %c0_i32_0 : i32, i32
  }
  func.func @transform_12(%arg0: i32) -> (i32, i32, i32) {
    %c0_i32 = arith.constant 0 : i32
    %c0_i32_0 = arith.constant 0 : i32
    %c0_i32_1 = arith.constant 0 : i32
    return %arg0, %c0_i32, %c0_i32_0 : i32, i32, i32
  }
}

</mosaic_0001>

<bundles_post_ra>
// kernel: refinement_stage_forward.1
= control target key start
LH: loop header
LB: loop body
LE: loop exit
PB: predicated region body
PF: predicated region fallthrough
CT: control target
= control target key end

     0   :  { %s7169_s21 = smov 0   ;;  %s10766_s0 = inlined_call_operand.vmem [shape: f32[4,48,256], index: 0, kind: input, shape index: {}]   ;;  %s10767_s1 = inlined_call_operand.vmem [shape: bf16[32,48], index: 1, kind: input, shape index: {}]   ;;  %s10768_s2 = inlined_call_operand.vmem [shape: bf16[4,32,32], index: 2, kind: input, shape index: {}]   ;;  %s10769_s3 = inlined_call_operand.vmem [shape: f32[5,32,1], index: 3, kind: input, shape index: {}]   ;;  %s10770_s4 = inlined_call_operand.vmem [shape: bf16[5,32,288], index: 4, kind: input, shape index: {}]   ;;  %s10771_s5 = inlined_call_operand.vmem [shape: f32[5,32,1], index: 5, kind: input, shape index: {}]   ;;  %s10772_s6 = inlined_call_operand.vmem [shape: bf16[5,32,288], index: 6, kind: input, shape index: {}]   ;;  %s10773_s7 = inlined_call_operand.vmem [shape: f32[5,32,1], index: 7, kind: input, shape index: {}]   ;;  %s10774_s8 = inlined_call_operand.vmem [shape: bf16[64,32], index: 8, kind: input, shape index: {}]   ;;  %s10775_s9 = inlined_call_operand.vmem [shape: f32[64,1], index: 9, kind: input, shape index: {}]   ;;  %s10776_s10 = inlined_call_operand.vmem [shape: bf16[57,64], index: 10, kind: input, shape index: {}]   ;;  %s10777_s11 = inlined_call_operand.vmem [shape: f32[57,1], index: 11, kind: input, shape index: {}]   ;;  %s10778_s12 = inlined_call_operand.vmem [shape: f32[4,57,256], index: 12, kind: output, shape index: {}]  }
   0x1 LB: > { %s6374_s22 = sadd.s32 4294967295, %s6978_s21   ;;  %p6378_p0 = scmp.ge.s32.totalorder %s6978_s21, 1  ;;  %s6978_s21 = sphi %s7169_s21, %s22_s21  }
   0x2   : > { %p364_p1 = scmp.lt.s32.totalorder %s6978_s21, 3 }
   0x4   : > { %p365_p2 = pnand %p6378_p0, %p364_p1 }
   0x6   : > { %368 = sbr.rel (%p365_p2) target bundleno = 3688 (0xe68), region = 68 }
   0xd   : > { %s6379_s23 = sshll.u32 %s6374_s22, 1  ;;  %vm10917_vm0 = vcmask 392192   ;;  %v440_v0 = vlaneseq  ;;  %v10810_v1 = vmov 0   ;;  %v504_v2 = vld [vmem:[%s10769_s3] sm:$0xff]  ;;  %v506_v4 = vld [vmem:[%s10769_s3 + $0x10] sm:$0xff]  ;;  %v505_v5 = vld [vmem:[%s10769_s3 + $0x8] sm:$0xff] }
   0xe   : > { %p409_p3 = scmp.lt.s32.totalorder %s6379_s23, 3  ;;  %612 = vmatprep.mubr.bf16.mxu0 %v10810_v1  ;;  %665 = vmatprep.mubr.bf16.mxu1 %v10810_v1  ;;  %426 = vst.msk [vmem:[#allocation2] sm:$0xff] %vm10917_vm0, %v10810_v1  ;;  %427 = vst.msk [vmem:[#allocation2 + $0x30] sm:$0xff] %vm10917_vm0, %v10810_v1  ;;  %v507_v6 = vld [vmem:[%s10769_s3 + $0x18] sm:$0xff]  ;;  %v6856_v50 = vld [vmem:[%s10767_s1] sm:$0xff]   ;;  %s7049_s25 = smov 31  }
   0xf   : > { %6854 = vset.pattern.permute.xlu0 %v10810_v1  ;;  %6855 = vset.pattern.permute.xlu1 %v10810_v1  ;;  %v441_v3 = vand.u32 127, %v440_v0  ;;  %v779_v22 = vshrl.u32 %v440_v0, 7  ;;  %s7050_s26 = smov 127   ;;  %v6857_v56 = vld [vmem:[%s10767_s1 + $0x8] sm:$0xff]   ;;  %s7051_s29 = smov 33   ;;  %vm428_vm7 = vcmask 785792  }
  0x10   : > { %s11705_s23 = smov (!%p409_p3, %s6379_s23), 3  ;;  %546 = vperm.xlu0 %6854, %v504_v2   ;;  %556 = vperm.xlu1 %6855, %v506_v4   ;;  %s7052_s30 = smov 1   ;;  %429 = vst.msk [vmem:[#allocation2 + $0x10] sm:$0xff] %vm428_vm7, %v10810_v1  ;;  %vm431_vm8 = vcmask 1048320   ;;  %430 = vst.msk [vmem:[#allocation2 + $0x40] sm:$0xff] %vm428_vm7, %v10810_v1  ;;  %vm10787_vm9 = vcmask 130048  }
  0x11   : > { %s6653_s14 = smul.u32 96, %s11705_s23  ;;  %s6523_s15 = sshll.u32 %s11705_s23, 7  ;;  %v442_v7 = vadd.s32 128, %v441_v3  ;;  %v7213_v15 = vand.u32 15, %v441_v3  ;;  %v7234_v41 = vsub.s32 4, %v779_v22  ;;  %v7236_v42 = vsub.s32 0, %v779_v22 }
  0x12   : > { %s7200_s18 = scalar_lea.vmem %s10778_s12, %s6523_s15  ;;  %s7053_s13 = smov 47   ;;  %432 = vst.msk [vmem:[#allocation2 + $0x10] sm:$0xff] %vm431_vm8, %v10810_v1  ;;  %435 = vst.msk [vmem:[#allocation2 + $0x40] sm:$0xff] %vm431_vm8, %v10810_v1  ;;  %vm437_vm10 = vcmask 523392   ;;  %vm10789_vm11 = vcmask 1047936   ;;  %vm10788_vm12 = vcmask 1047680  }
  0x13   : > { %s7205_s22 = scalar_lea.vmem %s10766_s0, %s6653_s14  ;;  %v7215_v16 = vand.u32 15, %v442_v7  ;;  %vm469_vm1 = vcmp.ge.s32.totalorder %v7213_v15, 1  ;;  %vm471_vm4 = vcmp.lt.s32.totalorder %v7213_v15, 15  ;;  %s7054_s14 = smov 15   ;;  %434 = vst.msk [vmem:[#allocation2 + $0x18] sm:$0xff] %vm10787_vm9, %v10810_v1  ;;  %436 = vst.msk [vmem:[#allocation2 + $0x48] sm:$0xff] %vm10787_vm9, %v10810_v1 }
  0x14   : > { %551 = vperm.xlu0 %6854, %v505_v5   ;;  %v476_v8 = vld [vmem:[%s7205_s22 + $0x8] sm:$0xff]  ;;  %v478_v9 = vld [vmem:[%s7205_s22 + $0x18] sm:$0xff]  ;;  %561 = vperm.xlu1 %6855, %v507_v6   ;;  %v475_v13 = vld [vmem:[%s7205_s22] sm:$0xff]  ;;  %s7055_s15 = smov 49   ;;  %s7056_s16 = smov 17   ;;  %438 = vst.msk [vmem:[#allocation2 + $0x28] sm:$0xff] %vm437_vm10, %v10810_v1 }
  0x15   : > { %v6385_v10 = vld [vmem:[%s7205_s22 + $0x68] sm:$0xff]  ;;  %v533_v11 = vpack.c.bf16 %v478_v9, %v476_v8  ;;  %v6387_v12 = vld [vmem:[%s7205_s22 + $0x78] sm:$0xff]  ;;  %v477_v14 = vld [vmem:[%s7205_s22 + $0x10] sm:$0xff]  ;;  %vm470_vm2 = vcmp.ge.s32.totalorder %v7215_v16, 1  ;;  %vm472_vm5 = vcmp.lt.s32.totalorder %v7215_v16, 15  ;;  %s7057_s17 = smov 63  }
  0x16   : > { %v535_v17 = vpack.c.bf16 %v6387_v12, %v6385_v10  ;;  %v532_v18 = vpack.c.bf16 %v477_v14, %v475_v13  ;;  %v6384_v19 = vld [vmem:[%s7205_s22 + $0x60] sm:$0xff]  ;;  %v6386_v20 = vld [vmem:[%s7205_s22 + $0x70] sm:$0xff]  ;;  %v480_v21 = vld [vmem:[%s7205_s22 + $0x28] sm:$0xff]  ;;  %s7058_s19 = smov 65   ;;  %439 = vst.msk [vmem:[#allocation2 + $0x58] sm:$0xff] %vm437_vm10, %v10810_v1  ;;  %s7059_s20 = smov 48  }
  0x17   : > { %580 = vmatprep.subr.bf16.mxu0 %v533_v11  ;;  %v534_v23 = vpack.c.bf16 %v6386_v20, %v6384_v19  ;;  %v482_v24 = vld [vmem:[%s7205_s22 + $0x38] sm:$0xff]  ;;  %v6389_v25 = vld [vmem:[%s7205_s22 + $0x88] sm:$0xff]  ;;  %v479_v29 = vld [vmem:[%s7205_s22 + $0x20] sm:$0xff]  ;;  %s7061_s23 = smov 96   ;;  %vm10791_vm13 = vcmask 1039360   ;;  %s7062_s24 = smov 80  }
  0x18   : > { %v6391_v26 = vld [vmem:[%s7205_s22 + $0x98] sm:$0xff]  ;;  %633 = vmatprep.subr.bf16.mxu1 %v535_v17  ;;  %581 = vmatpush1.bf16.msra.mxu0 %v532_v18  ;;  %v537_v27 = vpack.c.bf16 %v482_v24, %v480_v21  ;;  %v481_v30 = vld [vmem:[%s7205_s22 + $0x30] sm:$0xff]  ;;  %v6388_v31 = vld [vmem:[%s7205_s22 + $0x80] sm:$0xff]  ;;  %s7064_s27 = smov 97   ;;  %s7065_s28 = smov 113   ;;  %vm790_vm8 = vcmask 252928  }
  0x19   : > { %v539_v28 = vpack.c.bf16 %v6391_v26, %v6389_v25  ;;  %634 = vmatpush1.bf16.msra.mxu1 %v534_v23  ;;  %v536_v32 = vpack.c.bf16 %v481_v30, %v479_v29  ;;  %v6390_v33 = vld [vmem:[%s7205_s22 + $0x90] sm:$0xff]  ;;  %v484_v34 = vld [vmem:[%s7205_s22 + $0x48] sm:$0xff]  ;;  %v486_v35 = vld [vmem:[%s7205_s22 + $0x58] sm:$0xff] }
  0x1a   : > { %582 = vmatprep.subr.bf16.mxu0 %v537_v27  ;;  %v538_v36 = vpack.c.bf16 %v6390_v33, %v6388_v31  ;;  %v541_v37 = vpack.c.bf16 %v486_v35, %v484_v34  ;;  %v6393_v38 = vld [vmem:[%s7205_s22 + $0xa8] sm:$0xff]  ;;  %v6395_v39 = vld [vmem:[%s7205_s22 + $0xb8] sm:$0xff]  ;;  %v483_v40 = vld [vmem:[%s7205_s22 + $0x40] sm:$0xff] }
  0x1b   : > { %635 = vmatprep.subr.bf16.mxu1 %v539_v28  ;;  %v543_v43 = vpack.c.bf16 %v6395_v39, %v6393_v38  ;;  %v485_v44 = vld [vmem:[%s7205_s22 + $0x50] sm:$0xff]  ;;  %v6392_v45 = vld [vmem:[%s7205_s22 + $0xa0] sm:$0xff]  ;;  %vm776_vm3 = vmpackc.low %vm470_vm2, %vm469_vm1 }
  0x1c   : > { %v6394_v46 = vld [vmem:[%s7205_s22 + $0xb0] sm:$0xff]  ;;  %583 = vmatpush1.bf16.msra.mxu0 %v536_v32  ;;  %v540_v47 = vpack.c.bf16 %v485_v44, %v483_v40  ;;  %v777_v49 = vsel %vm776_vm3, 65537, %v10810_v1  ;;  %vm939_vm6 = vmpackc.low %vm472_vm5, %vm471_vm4  ;;  %s7060_s22 = smov 16  }
  0x1d   : > { %636 = vmatpush1.bf16.msra.mxu1 %v538_v36  ;;  %584 = vmatprep.subr.bf16.mxu0 %v541_v37  ;;  %v542_v48 = vpack.c.bf16 %v6394_v46, %v6392_v45  ;;  %v785_v51 = vrot.slane %v777_v49, %v7234_v41  ;;  %v781_v52 = vrot.slane %v777_v49, %v7236_v42  ;;  %v940_v53 = vsel %vm939_vm6, 65537, %v10810_v1 }
  0x1e   : > { %637 = vmatprep.subr.bf16.mxu1 %v543_v43  ;;  %v948_v54 = vrot.slane %v940_v53, %v7234_v41  ;;  %v944_v55 = vrot.slane %v940_v53, %v7236_v42 }
  0x1f   : > { %788 = vrot.lane.b32.xlu1 %v785_v51, %s7049_s25  ;;  %786 = vrot.lane.b32.xlu0 %v781_v52, %s7049_s25  ;;  %s7063_s25 = smov 112  }
  0x20   : > { %585 = vmatpush1.bf16.msra.mxu0 %v540_v47 }
  0x21   : > { %638 = vmatpush1.bf16.msra.mxu1 %v542_v48 }
  0x23   : > { %6398 = vmatmul.mubr.msk.bf16.vlgmr.msra.gmra.mrb[0].mxu0 %vm10917_vm0, %v6856_v50  ;;  %840 = vrot.lane.b32.xlu1 %v785_v51, %s7050_s26 }
  0x24   : > { %6400 = vmatmul.mubr.msk.bf16.vlgmr.msra.gmra.mrb[0].mxu1 %vm10917_vm0, %v6856_v50  ;;  %622 = vmatprep.mubr.bf16.mxu0 %v10810_v1 }
  0x25   : > { %675 = vmatprep.mubr.bf16.mxu1 %v10810_v1  ;;  %838 = vrot.lane.b32.xlu0 %v781_v52, %s7050_s26 }
  0x27   : > { %951 = vrot.lane.b32.xlu1 %v948_v54, %s7051_s29 }
  0x29   : > { %949 = vrot.lane.b32.xlu0 %v944_v55, %s7051_s29  ;;  %s7066_s29 = smov 95  }
  0x2b   : > { %6399 = vmatmul.mubr.msk.bf16.gmra.mrb[4].mxu0 %vm10917_vm0, %v6857_v56  ;;  %1003 = vrot.lane.b32.xlu1 %v948_v54, %s7052_s30 }
  0x2c   : > { %6401 = vmatmul.mubr.msk.bf16.gmra.mrb[4].mxu1 %vm10917_vm0, %v6857_v56 }
  0x2d   : > { %1001 = vrot.lane.b32.xlu0 %v944_v55, %s7052_s30 }
  0x2f   : > { %1053 = vrot.lane.b32.xlu1 %v785_v51, %s7053_s13 }
  0x31   : > { %1051 = vrot.lane.b32.xlu0 %v781_v52, %s7053_s13  ;;  %s7067_s13 = smov 81  }
  0x33   : > { %1105 = vrot.lane.b32.xlu1 %v785_v51, %s7054_s14 }
  0x35   : > { %1103 = vrot.lane.b32.xlu0 %v781_v52, %s7054_s14  ;;  %s7068_s14 = smov 79  }
  0x37   : > { %1231 = vrot.lane.b32.xlu1 %v948_v54, %s7055_s15 }
  0x39   : > { %1229 = vrot.lane.b32.xlu0 %v944_v55, %s7055_s15  ;;  %s7069_s15 = smov 111  }
  0x3b   : > { %1283 = vrot.lane.b32.xlu1 %v948_v54, %s7056_s16 }
  0x3d   : > { %1281 = vrot.lane.b32.xlu0 %v944_v55, %s7056_s16  ;;  %s7070_s16 = smov 64  }
  0x3f   : > { %1335 = vrot.lane.b32.xlu1 %v785_v51, %s7057_s17 }
  0x41   : > { %1333 = vrot.lane.b32.xlu0 %v781_v52, %s7057_s17 }
  0x43   : > { %1500 = vrot.lane.b32.xlu1 %v944_v55, %s7058_s19 }
  0x45   : > { %1502 = vrot.lane.b32.xlu0 %v948_v54, %s7058_s19 }
  0x8f   : > { %v547_v57 = vpop.permute.xlu0 %546  ;;  %v557_v58 = vpop.permute.xlu1 %556 }
  0x93   : > { %v552_v59 = vpop.permute.xlu0 %551  ;;  %v562_v24 = vpop.permute.xlu1 %561 }
  0xf6   : > { %v614_v60 = vpop.f32.mrb[0].mxu0 }
  0xf7   : > { %v7281_v61 = vadd.f32 %v614_v60, %v547_v57  ;;  %v667_v62 = vpop.f32.mrb[0].mxu1  ;;  %v616_v63 = vpop.f32.mrb[1].mxu0 }
  0xf8   : > { %v7285_v0 = vadd.f32 %v616_v63, %v547_v57  ;;  %v669_v2 = vpop.f32.mrb[1].mxu1  ;;  %v618_v3 = vpop.f32.mrb[2].mxu0  ;;  %v7294_v11 = vadd.f32 %v667_v62, %v547_v57 }
  0xf9   : > { %v7287_v4 = vadd.f32 %v618_v3, %v552_v59  ;;  %v671_v5 = vpop.f32.mrb[2].mxu1  ;;  %v620_v6 = vpop.f32.mrb[3].mxu0  ;;  %v10809_v10 = vmax.f32 %v7281_v61, 0.0  ;;  %v7300_v17 = vadd.f32 %v669_v2, %v547_v57 }
  0xfa   : > { %v7289_v7 = vadd.f32 %v671_v5, %v552_v59  ;;  %v7291_v8 = vadd.f32 %v620_v6, %v552_v59  ;;  %v673_v9 = vpop.f32.mrb[3].mxu1  ;;  %v10804_v14 = vmax.f32 %v7285_v0, 0.0  ;;  %v10807_v25 = vmax.f32 %v7294_v11, 0.0 }
  0xfb   : > { %11068 = vst [vmem:[#allocation4_spill] sm:$0xff] %v7287_v4  ;;  %v10797_v12 = vmax.f32 %v7287_v4, 0.0  ;;  %v7297_v13 = vadd.f32 %v673_v9, %v552_v59  ;;  %11072 = vst [vmem:[#allocation8_spill] sm:$0xff] %v7300_v17  ;;  %v10801_v29 = vmax.f32 %v7300_v17, 0.0  ;;  %v7373_v59 = vpop.permute.xlu1 %788 }
  0xfc   : > { %11069 = vst [vmem:[#allocation5_spill] sm:$0xff] %v7289_v7  ;;  %11070 = vst [vmem:[#allocation6_spill] sm:$0xff] %v7291_v8  ;;  %v10793_v18 = vmax.f32 %v7291_v8, 0.0  ;;  %v10794_v20 = vmax.f32 %v7289_v7, 0.0  ;;  %vm10912_vm7 = vcmp.ne.s16.totalorder %v7373_v59, 0 }
  0xfd   : > { %11071 = vst [vmem:[#allocation7_spill] sm:$0xff] %v7297_v13  ;;  %v702_v19 = vpack.c.bf16 %v10797_v12, %v10809_v10  ;;  %v10790_v22 = vmax.f32 %v7297_v13, 0.0  ;;  %11082 = vst [vmem:[#allocation18_spill] sm:$0xff] %v7373_v59 }
  0xfe   : > { %v703_v21 = vpack.c.bf16 %v10793_v18, %v10804_v14  ;;  %v624_v23 = vpop.f32.mrb[4].mxu0  ;;  %v734_v34 = vpack.c.bf16 %v10794_v20, %v10807_v25 }
  0xff   : > { %v7314_v26 = vadd.f32 %v624_v23, %v557_v58  ;;  %v626_v27 = vpop.f32.mrb[5].mxu0  ;;  %710 = vrot.lane.b32.xlu0 %v702_v19, %s7059_s20  ;;  %v677_v28 = vpop.f32.mrb[4].mxu1  ;;  %v735_v40 = vpack.c.bf16 %v10790_v22, %v10801_v29 }
 0x100   : > { %v7318_v30 = vadd.f32 %v626_v27, %v557_v58  ;;  %v628_v31 = vpop.f32.mrb[6].mxu0  ;;  %712 = vrot.lane.b32.xlu1 %v703_v21, %s7059_s20  ;;  %v7321_v32 = vadd.f32 %v677_v28, %v557_v58  ;;  %v679_v33 = vpop.f32.mrb[5].mxu1 }
 0x101   : > { %11073 = vst [vmem:[#allocation9_spill] sm:$0xff] %v7314_v26  ;;  %v10786_v35 = vmax.f32 %v7314_v26, 0.0  ;;  %v7328_v36 = vadd.f32 %v628_v31, %v562_v24  ;;  %v630_v37 = vpop.f32.mrb[7].mxu0  ;;  %v7330_v38 = vadd.f32 %v679_v33, %v557_v58  ;;  %v681_v39 = vpop.f32.mrb[6].mxu1 }
 0x102   : > { %11074 = vst [vmem:[#allocation10_spill] sm:$0xff] %v7318_v30  ;;  %11075 = vst [vmem:[#allocation11_spill] sm:$0xff] %v7321_v32  ;;  %v10784_v43 = vmax.f32 %v7318_v30, 0.0  ;;  %v7337_v44 = vadd.f32 %v630_v37, %v562_v24  ;;  %v7339_v45 = vadd.f32 %v681_v39, %v562_v24  ;;  %v683_v46 = vpop.f32.mrb[7].mxu1  ;;  %v10785_v48 = vmax.f32 %v7321_v32, 0.0  ;;  %v7371_v58 = vpop.permute.xlu0 %786 }
 0x103   : > { %11076 = vst [vmem:[#allocation12_spill] sm:$0xff] %v7328_v36  ;;  %11077 = vst [vmem:[#allocation13_spill] sm:$0xff] %v7330_v38  ;;  %v10782_v47 = vmax.f32 %v7328_v36, 0.0  ;;  %742 = vrot.lane.b32.xlu0 %v734_v34, %s7060_s22  ;;  %v7344_v49 = vadd.f32 %v683_v46, %v562_v24  ;;  %v10783_v51 = vmax.f32 %v7330_v38, 0.0  ;;  %v7377_v62 = vpop.permute.xlu1 %840  ;;  %vm10914_vm15 = vcmp.ne.s16.totalorder %v7371_v58, 0 }
 0x104   : > { %11078 = vst [vmem:[#allocation14_spill] sm:$0xff] %v7337_v44  ;;  %11079 = vst [vmem:[#allocation15_spill] sm:$0xff] %v7339_v45  ;;  %v10780_v50 = vmax.f32 %v7337_v44, 0.0  ;;  %v10781_v52 = vmax.f32 %v7339_v45, 0.0  ;;  %744 = vrot.lane.b32.xlu1 %v735_v40, %s7060_s22  ;;  %v6860_v32 = vld [vmem:[%s10770_s4 + $0x4] ss:$12 sps:$4 sm:$0xff]  }
 0x105   : > { %11080 = vst [vmem:[#allocation16_spill] sm:$0xff] %v7344_v49  ;;  %v704_v53 = vpack.c.bf16 %v10782_v47, %v10786_v35  ;;  %v10779_v54 = vmax.f32 %v7344_v49, 0.0  ;;  %11081 = vst [vmem:[#allocation17_spill] sm:$0xff] %v7371_v58  ;;  %1747 = vmatprep.mubr.bf16.mxu0 %v6860_v32  ;;  %1853 = vmatprep.mubr.bf16.mxu1 %v6860_v32 }
 0x106   : > { %v705_v55 = vpack.c.bf16 %v10780_v50, %v10784_v43  ;;  %v736_v56 = vpack.c.bf16 %v10781_v52, %v10785_v48  ;;  %v7375_v60 = vpop.permute.xlu0 %838  ;;  %11084 = vst [vmem:[#allocation20_spill] sm:$0xff] %v7377_v62 }
 0x107   : > { %714 = vrot.lane.b32.xlu0 %v704_v53, %s7059_s20  ;;  %v737_v57 = vpack.c.bf16 %v10779_v54, %v10783_v51  ;;  %11083 = vst [vmem:[#allocation19_spill] sm:$0xff] %v7375_v60  ;;  %v7381_v2 = vpop.permute.xlu1 %951  ;;  %v7442_v50 = vsel %vm10791_vm13, %v7375_v60, %v7377_v62  ;;  %vm10817_vm10 = vcmp.ne.s16.totalorder %v7375_v60, 0 }
 0x108   : > { %716 = vrot.lane.b32.xlu1 %v705_v55, %s7059_s20  ;;  %11086 = vst [vmem:[#allocation22_spill] sm:$0xff] %v7381_v2  ;;  %11101 = vst [vmem:[#allocation37_spill] sm:$0xff] %v7442_v50  ;;  %vm10915_vm14 = vcmp.ne.s16.totalorder %v7442_v50, 0 }
 0x10a   : > { %v7379_v63 = vpop.permute.xlu0 %949 }
 0x10b   : > { %746 = vrot.lane.b32.xlu0 %v736_v56, %s7060_s22  ;;  %11085 = vst [vmem:[#allocation21_spill] sm:$0xff] %v7379_v63  ;;  %v7385_v5 = vpop.permute.xlu1 %1003  ;;  %vm10913_vm2 = vcmp.ne.s16.totalorder %v7379_v63, 0 }
 0x10c   : > { %748 = vrot.lane.b32.xlu1 %v737_v57, %s7060_s22  ;;  %11088 = vst [vmem:[#allocation24_spill] sm:$0xff] %v7385_v5 }
 0x10e   : > { %v7383_v3 = vpop.permute.xlu0 %1001 }
 0x10f   : > { %11087 = vst [vmem:[#allocation23_spill] sm:$0xff] %v7383_v3  ;;  %v7389_v9 = vpop.permute.xlu1 %1053  ;;  %vm10821_vm1 = vcmp.ne.s16.totalorder %v7383_v3, 0 }
 0x110   : > { %11090 = vst [vmem:[#allocation26_spill] sm:$0xff] %v7389_v9 }
 0x112   : > { %v7387_v6 = vpop.permute.xlu0 %1051 }
 0x113   : > { %11089 = vst [vmem:[#allocation25_spill] sm:$0xff] %v7387_v6  ;;  %v7393_v21 = vpop.permute.xlu1 %1105  ;;  %vm10816_vm4 = vcmp.ne.s16.totalorder %v7387_v6, 0 }
 0x114   : > { %11092 = vst [vmem:[#allocation28_spill] sm:$0xff] %v7393_v21 }
 0x116   : > { %v7391_v19 = vpop.permute.xlu0 %1103 }
 0x117   : > { %11091 = vst [vmem:[#allocation27_spill] sm:$0xff] %v7391_v19  ;;  %v7397_v24 = vpop.permute.xlu1 %1231  ;;  %vm10818_vm3 = vcmp.ne.s16.totalorder %v7391_v19, 0 }
 0x118   : > { %11094 = vst [vmem:[#allocation30_spill] sm:$0xff] %v7397_v24 }
 0x11a   : > { %v7395_v23 = vpop.permute.xlu0 %1229 }
 0x11b   : > { %11093 = vst [vmem:[#allocation29_spill] sm:$0xff] %v7395_v23  ;;  %v7401_v28 = vpop.permute.xlu1 %1283  ;;  %vm10815_vm5 = vcmp.ne.s16.totalorder %v7395_v23, 0 }
 0x11c   : > { %11096 = vst [vmem:[#allocation32_spill] sm:$0xff] %v7401_v28 }
 0x11e   : > { %v7399_v27 = vpop.permute.xlu0 %1281 }
 0x11f   : > { %11095 = vst [vmem:[#allocation31_spill] sm:$0xff] %v7399_v27  ;;  %v7405_v33 = vpop.permute.xlu1 %1335  ;;  %vm10792_vm6 = vcmp.ne.s16.totalorder %v7399_v27, 0 }
 0x120   : > { %11098 = vst [vmem:[#allocation34_spill] sm:$0xff] %v7405_v33 }
 0x122   : > { %v7403_v31 = vpop.permute.xlu0 %1333 }
 0x123   : > { %11097 = vst [vmem:[#allocation33_spill] sm:$0xff] %v7403_v31  ;;  %v7409_v37 = vpop.permute.xlu1 %1500 }
 0x124   : > { %11100 = vst [vmem:[#allocation36_spill] sm:$0xff] %v7409_v37 }
 0x126   : > { %v7407_v34 = vpop.permute.xlu0 %1502 }
 0x127   : > { %11099 = vst [vmem:[#allocation35_spill] sm:$0xff] %v7407_v34 }
 0x171   : > { %v7411_v39 = vpop.permute.xlu0 %710 }
 0x172   : > { %728 = vst.msk [vmem:[#allocation2] sm:$0xff] %vm10789_vm11, %v7411_v39  ;;  %v7415_v40 = vpop.permute.xlu1 %712 }
 0x173   : > { %730 = vst.msk [vmem:[#allocation2 + $0x10] sm:$0xff] %vm10917_vm0, %v7415_v40 }
 0x175   : > { %v743_v46 = vpop.permute.xlu0 %742 }
 0x176   : > { %760 = vst.msk [vmem:[#allocation2 + $0x18] sm:$0xff] %vm10788_vm12, %v743_v46  ;;  %v745_v53 = vpop.permute.xlu1 %744 }
 0x177   : > { %v7421_v55 = vsel %vm10787_vm9, %v743_v46, %v745_v53  ;;  %762 = vst.msk [vmem:[#allocation2 + $0x28] sm:$0xff] %vm10787_vm9, %v745_v53 }
 0x178   : > { %761 = vst [vmem:[#allocation2 + $0x20] sm:$0xff] %v7421_v55 }
 0x179   : > { %v7425_v56 = vpop.permute.xlu0 %714  ;;  %v7427_v57 = vld [vmem:[#allocation2] sm:$0xff] }
 0x17a   : > { %731 = vst.msk [vmem:[#allocation2 + $0x30] sm:$0xff] %vm10789_vm11, %v7425_v56  ;;  %v7431_v54 = vpop.permute.xlu1 %716  ;;  %896 = vrot.lane.b32.xlu0 %v7427_v57, %s7061_s23  ;;  %v7456_v51 = vld [vmem:[#allocation2 + $0x10] sm:$0xff]  ;;  %v795_v48 = vsel %vm10914_vm15, %v7427_v57, 0  ;;  %v958_v35 = vsel %vm10913_vm2, %v7427_v57, 0  ;;  %vm10796_vm11 = vcmp.ne.s16.totalorder %v7381_v2, 0 }
 0x17b   : > { %733 = vst.msk [vmem:[#allocation2 + $0x40] sm:$0xff] %vm10917_vm0, %v7431_v54 }
 0x17d   : > { %v7437_v46 = vld [vmem:[#allocation2 + $0x18] sm:$0xff]  ;;  %v747_v53 = vpop.permute.xlu0 %746 }
 0x17e   : > { %925 = vst [vmem:[#allocation3 + $0x50] sm:$0xff] %v7437_v46  ;;  %763 = vst.msk [vmem:[#allocation2 + $0x48] sm:$0xff] %vm10788_vm12, %v747_v53  ;;  %v749_v52 = vpop.permute.xlu1 %748  ;;  %1161 = vrot.lane.b32.xlu0 %v7427_v57, %s7062_s24  ;;  %1198 = vrot.lane.b32.xlu1 %v7437_v46, %s7063_s25  ;;  %v848_v43 = vsel %vm10915_vm14, %v7437_v46, 0 }
 0x17f   : > { %v7451_v47 = vsel %vm10787_vm9, %v747_v53, %v749_v52  ;;  %765 = vst.msk [vmem:[#allocation2 + $0x58] sm:$0xff] %vm10787_vm9, %v749_v52  ;;  %v1009_v53 = vsel %vm10821_vm1, %v7437_v46, 0  ;;  %vm953_vm9 = vcmask 269312  }
 0x180   : > { %764 = vst [vmem:[#allocation2 + $0x50] sm:$0xff] %v7451_v47 }
 0x181   : > { %v7628_v10 = vld [vmem:[#allocation2 + $0x30] sm:$0xff] }
 0x182   : > { %900 = vrot.lane.b32.xlu1 %v7456_v51, %s7061_s23  ;;  %861 = vrot.lane.b32.xlu0 %v848_v43, %s7052_s30  ;;  %v1112_v43 = vsel %vm10818_vm3, %v7437_v46, 0  ;;  %v7651_v1 = vld [vmem:[#allocation2 + $0x40] sm:$0xff] }
 0x185   : > { %v7466_v52 = vld [vmem:[#allocation2 + $0x48] sm:$0xff] }
 0x186   : > { %927 = vst [vmem:[#allocation3 + $0x70] sm:$0xff] %v7466_v52  ;;  %1021 = vrot.lane.b32.xlu1 %v1009_v53, %s7050_s26  ;;  %807 = vrot.lane.b32.xlu0 %v795_v48, %s7064_s27  ;;  %v1060_v48 = vsel %vm10816_vm4, %v7427_v57, 0  ;;  %v7495_v53 = vld [vmem:[#allocation2 + $0x28] sm:$0xff] }
 0x187   : > { %v1387_v50 = vsel %vm10912_vm7, %v7495_v53, 0  ;;  %v924_v7 = vld [vmem:[#allocation2 + $0x50] sm:$0xff] }
 0x18a   : > { %1124 = vrot.lane.b32.xlu1 %v1112_v43, %s7065_s28  ;;  %970 = vrot.lane.b32.xlu0 %v958_v35, %s7066_s29  ;;  %v1238_v35 = vsel %vm10815_vm5, %v7427_v57, 0  ;;  %v7507_v43 = vsel %vm10917_vm0, %v7411_v39, %v7415_v40  ;;  %v7525_v39 = vsel %vm790_vm8, %v7371_v58, %v7373_v59  ;;  %v847_v40 = vsel %vm10817_vm10, %v7456_v51, 0 }
 0x18b   : > { %11102 = vst [vmem:[#allocation38_spill] sm:$0xff] %v7525_v39  ;;  %vm10795_vm12 = vcmp.ne.s16.totalorder %v7525_v39, 0  ;;  %vm10798_vm8 = vcmask 7168  }
 0x18c   : > { %v796_v22 = vsel %vm10795_vm12, %v7507_v43, 0  ;;  %v7558_v20 = vsel %vm10798_vm8, %v7383_v3, %v7385_v5  ;;  %vm10803_vm12 = vcmp.ne.s16.totalorder %v7389_v9, 0  ;;  %vm1107_vm8 = vcmask 121856  }
 0x18d   : > { %11104 = vst [vmem:[#allocation40_spill] sm:$0xff] %v7558_v20  ;;  %v7586_v29 = vsel %vm1107_vm8, %v7391_v19, %v7393_v21  ;;  %vm1285_vm8 = vcmask 138240   ;;  %v1241_v19 = vsel %vm10815_vm5, %v7628_v10, 0  ;;  %vm11109_vm5 = vcmp.ne.s16.totalorder %v7381_v2, 0 }
 0x18e   : > { %1165 = vrot.lane.b32.xlu1 %v7456_v51, %s7062_s24  ;;  %1072 = vrot.lane.b32.xlu0 %v1060_v48, %s7067_s13  ;;  %v1290_v48 = vsel %vm10792_vm6, %v7437_v46, 0  ;;  %vm10800_vm6 = vcmp.ne.s16.totalorder %v7385_v5, 0  ;;  %11106 = vst [vmem:[#allocation42_spill] sm:$0xff] %v7586_v29  ;;  %v7614_v25 = vsel %vm1285_vm8, %v7399_v27, %v7401_v28  ;;  %vm10904_vm8 = vcmask 515072  }
 0x18f   : > { %11108 = vst [vmem:[#allocation44_spill] sm:$0xff] %v7614_v25 }
 0x192   : > { %1202 = vrot.lane.b32.xlu1 %v7495_v53, %s7063_s25  ;;  %1250 = vrot.lane.b32.xlu0 %v1238_v35, %s7068_s14  ;;  %v797_v35 = vsel %vm10912_vm7, %v7456_v51, 0 }
 0x196   : > { %1302 = vrot.lane.b32.xlu1 %v1290_v48, %s7069_s15  ;;  %898 = vrot.lane.b32.xlu0 %v7507_v43, %s7061_s23  ;;  %v7537_v48 = vsel %vm953_vm9, %v7379_v63, %v7381_v2  ;;  %vm1055_vm9 = vcmask 384000  }
 0x197   : > { %11103 = vst [vmem:[#allocation39_spill] sm:$0xff] %v7537_v48  ;;  %vm10799_vm13 = vcmp.ne.s16.totalorder %v7537_v48, 0  ;;  %v7572_v12 = vsel %vm1055_vm9, %v7387_v6, %v7389_v9  ;;  %vm1233_vm9 = vcmask 400384  }
 0x198   : > { %v959_v18 = vsel %vm10799_vm13, %v7507_v43, 0  ;;  %11105 = vst [vmem:[#allocation41_spill] sm:$0xff] %v7572_v12  ;;  %vm10806_vm13 = vcmp.ne.s16.totalorder %v7393_v21, 0  ;;  %v7600_v14 = vsel %vm1233_vm9, %v7395_v23, %v7397_v24  ;;  %vm10882_vm9 = vcmp.ne.s16.totalorder %v7614_v25, 0 }
 0x199   : > { %11107 = vst [vmem:[#allocation43_spill] sm:$0xff] %v7600_v14 }
 0x19a   : > { %811 = vrot.lane.b32.xlu1 %v797_v35, %s7064_s27  ;;  %1163 = vrot.lane.b32.xlu0 %v7507_v43, %s7062_s24  ;;  %v960_v35 = vsel %vm10796_vm11, %v7456_v51, 0  ;;  %vm10802_vm11 = vcmp.ne.s16.totalorder %v7558_v20, 0 }
 0x19e   : > { %859 = vrot.lane.b32.xlu1 %v847_v40, %s7052_s30  ;;  %1200 = vrot.lane.b32.xlu0 %v7421_v55, %s7063_s25  ;;  %v1011_v40 = vsel %vm10800_vm6, %v7495_v53, 0  ;;  %vm10805_vm6 = vcmp.ne.s16.totalorder %v7572_v12, 0 }
 0x1a2   : > { %974 = vrot.lane.b32.xlu1 %v960_v35, %s7066_s29  ;;  %809 = vrot.lane.b32.xlu0 %v796_v22, %s7064_s27  ;;  %v1062_v22 = vsel %vm10803_vm12, %v7456_v51, 0  ;;  %v1010_v35 = vsel %vm10802_vm11, %v7421_v55, 0  ;;  %vm10911_vm11 = vcmp.ne.s16.totalorder %v7397_v24, 0  ;;  %vm10808_vm12 = vcmp.ne.s16.totalorder %v7586_v29, 0 }
 0x1a6   : > { %1025 = vrot.lane.b32.xlu1 %v1011_v40, %s7050_s26  ;;  %972 = vrot.lane.b32.xlu0 %v959_v18, %s7066_s29  ;;  %v1114_v18 = vsel %vm10806_vm13, %v7495_v53, 0  ;;  %v1061_v40 = vsel %vm10805_vm6, %v7507_v43, 0  ;;  %vm10890_vm6 = vcmp.ne.s16.totalorder %v7401_v28, 0  ;;  %vm10889_vm13 = vcmp.ne.s16.totalorder %v7600_v14, 0 }
 0x1aa   : > { %1076 = vrot.lane.b32.xlu1 %v1062_v22, %s7067_s13  ;;  %1023 = vrot.lane.b32.xlu0 %v1010_v35, %s7050_s26  ;;  %v1240_v22 = vsel %vm10911_vm11, %v7456_v51, 0  ;;  %v1113_v35 = vsel %vm10808_vm12, %v7421_v55, 0  ;;  %vm10878_vm12 = vcmp.ne.s16.totalorder %v7377_v62, 0 }
 0x1ae   : > { %1128 = vrot.lane.b32.xlu1 %v1114_v18, %s7065_s28  ;;  %1074 = vrot.lane.b32.xlu0 %v1061_v40, %s7067_s13  ;;  %v1292_v18 = vsel %vm10890_vm6, %v7495_v53, 0  ;;  %v1239_v40 = vsel %vm10889_vm13, %v7507_v43, 0 }
 0x1b2   : > { %1254 = vrot.lane.b32.xlu1 %v1240_v22, %s7068_s14  ;;  %1126 = vrot.lane.b32.xlu0 %v1113_v35, %s7065_s28  ;;  %v1291_v22 = vsel %vm10882_vm9, %v7421_v55, 0  ;;  %v849_v35 = vsel %vm10878_vm12, %v7421_v55, 0 }
 0x1b6   : > { %1306 = vrot.lane.b32.xlu1 %v1292_v18, %s7069_s15  ;;  %1252 = vrot.lane.b32.xlu0 %v1239_v40, %s7068_s14  ;;  %v851_v18 = vsel %vm10915_vm14, %v7466_v52, 0  ;;  %v1012_v40 = vsel %vm10821_vm1, %v7466_v52, 0  ;;  %vm11115_vm1 = vcmp.ne.s16.totalorder %v7393_v21, 0  ;;  %vm10920_vm14 = vcmask 113664  }
 0x1ba   : > { %1304 = vrot.lane.b32.xlu0 %v1291_v22, %s7069_s15  ;;  %863 = vrot.lane.b32.xlu1 %v849_v35, %s7052_s30  ;;  %v798_v22 = vsel %vm10914_vm15, %v7628_v10, 0  ;;  %v1115_v35 = vsel %vm10818_vm3, %v7466_v52, 0  ;;  %vm11112_vm3 = vcmp.ne.s16.totalorder %v7385_v5, 0 }
 0x1be   : > { %1167 = vrot.lane.b32.xlu0 %v7628_v10, %s7062_s24  ;;  %902 = vrot.lane.b32.xlu1 %v7628_v10, %s7061_s23 }
 0x1c2   : > { %1204 = vrot.lane.b32.xlu1 %v7466_v52, %s7063_s25  ;;  %867 = vrot.lane.b32.xlu0 %v851_v18, %s7052_s30  ;;  %v961_v18 = vsel %vm10913_vm2, %v7628_v10, 0 }
 0x1c6   : > { %1027 = vrot.lane.b32.xlu1 %v1012_v40, %s7050_s26  ;;  %813 = vrot.lane.b32.xlu0 %v798_v22, %s7064_s27  ;;  %v7662_v40 = vld [vmem:[#allocation2 + $0x58] sm:$0xff]  ;;  %v1063_v22 = vsel %vm10816_vm4, %v7628_v10, 0  ;;  %vm11110_vm4 = vcmp.ne.s16.totalorder %v7525_v39, 0 }
 0x1ca   : > { %1130 = vrot.lane.b32.xlu1 %v1115_v35, %s7065_s28  ;;  %906 = vrot.lane.b32.xlu0 %v7651_v1, %s7061_s23  ;;  %v800_v35 = vsel %vm10912_vm7, %v7651_v1, 0 }
 0x1ce   : > { %1171 = vrot.lane.b32.xlu1 %v7651_v1, %s7062_s24  ;;  %976 = vrot.lane.b32.xlu0 %v961_v18, %s7066_s29  ;;  %v7681_v18 = vsel %vm10917_vm0, %v7425_v56, %v7431_v54  ;;  %v963_v54 = vsel %vm11109_vm5, %v7651_v1, 0  ;;  %v7702_v56 = vsel %vm10904_vm8, %v7403_v31, %v7405_v33  ;;  %vm11114_vm5 = vcmp.ne.s16.totalorder %v7525_v39, 0 }
 0x1cf   : > { %11111 = vst [vmem:[#allocation45_spill] sm:$0xff] %v7702_v56 }
 0x1d2   : > { %1208 = vrot.lane.b32.xlu1 %v7662_v40, %s7063_s25  ;;  %1078 = vrot.lane.b32.xlu0 %v1063_v22, %s7067_s13  ;;  %v850_v22 = vsel %vm10817_vm10, %v7651_v1, 0  ;;  %vm10875_vm10 = vcmp.ne.s16.totalorder %v7702_v56, 0 }
 0x1d6   : > { %817 = vrot.lane.b32.xlu1 %v800_v35, %s7064_s27  ;;  %1256 = vrot.lane.b32.xlu0 %v1241_v19, %s7068_s14  ;;  %v799_v19 = vsel %vm11110_vm4, %v7681_v18, 0  ;;  %v1014_v35 = vsel %vm11112_vm3, %v7662_v40, 0  ;;  %vm11113_vm4 = vcmp.ne.s16.totalorder %v7389_v9, 0  ;;  %vm10871_vm3 = vcmp.ne.s16.totalorder %v7403_v31, 0 }
 0x1d7   : > { %v1345_v21 = vsel %vm10871_vm3, %v7628_v10, 0 }
 0x1da   : > { %865 = vrot.lane.b32.xlu1 %v850_v22, %s7052_s30  ;;  %1169 = vrot.lane.b32.xlu0 %v7681_v18, %s7062_s24  ;;  %v1343_v22 = vsel %vm10875_vm10, %v7507_v43, 0 }
 0x1de   : > { %904 = vrot.lane.b32.xlu1 %v7681_v18, %s7061_s23  ;;  %1206 = vrot.lane.b32.xlu0 %v7451_v47, %s7063_s25 }
 0x1e2   : > { %980 = vrot.lane.b32.xlu1 %v963_v54, %s7066_s29  ;;  %815 = vrot.lane.b32.xlu0 %v799_v19, %s7064_s27  ;;  %v1065_v54 = vsel %vm11113_vm4, %v7651_v1, 0  ;;  %v1386_v19 = vsel %vm11114_vm5, %v7421_v55, 0  ;;  %vm10864_vm4 = vcmp.ne.s16.totalorder %v7405_v33, 0  ;;  %vm11117_vm5 = vcmp.ne.s16.totalorder %v7537_v48, 0 }
 0x1e6   : > { %1031 = vrot.lane.b32.xlu1 %v1014_v35, %s7050_s26  ;;  %1356 = vrot.lane.b32.xlu0 %v1343_v22, %s7058_s19  ;;  %v1117_v35 = vsel %vm11115_vm1, %v7662_v40, 0  ;;  %v1342_v22 = vsel %vm10871_vm3, %v7427_v57, 0  ;;  %vm11116_vm1 = vcmp.ne.s16.totalorder %v7399_v27, 0  ;;  %v1344_v27 = vsel %vm10864_vm4, %v7456_v51, 0 }
 0x1e7   : > { %vm11123_vm3 = vcmask 7168  }
 0x1ea   : > { %1082 = vrot.lane.b32.xlu1 %v1065_v54, %s7067_s13  ;;  %1399 = vrot.lane.b32.xlu0 %v1386_v19, %s7064_s27  ;;  %v1243_v19 = vsel %vm10911_vm11, %v7651_v1, 0 }
 0x1ec   : > { %v7723_v5 = vpop.permute.xlu0 %896 }
 0x1ee   : > { %1134 = vrot.lane.b32.xlu1 %v1117_v35, %s7065_s28  ;;  %1354 = vrot.lane.b32.xlu0 %v1342_v22, %s7058_s19  ;;  %v1295_v22 = vsel %vm10890_vm6, %v7662_v40, 0  ;;  %vm10909_vm6 = vcmask 785408  }
 0x1f0   : > { %v7734_v9 = vpop.permute.xlu1 %1198  ;;  %v7736_v54 = vpop.permute.xlu0 %1161 }
 0x1f2   : > { %1260 = vrot.lane.b32.xlu1 %v1243_v19, %s7068_s14  ;;  %1360 = vrot.lane.b32.xlu0 %v1345_v21, %s7058_s19  ;;  %v852_v21 = vsel %vm10878_vm12, %v7451_v47, 0  ;;  %vm11125_vm12 = vcmp.ne.s16.totalorder %v7537_v48, 0 }
 0x1f4   : > { %v7746_v60 = vpop.permute.xlu1 %900  ;;  %v7748_v35 = vpop.permute.xlu0 %861 }
 0x1f6   : > { %1312 = vrot.lane.b32.xlu1 %v1295_v22, %s7069_s15  ;;  %1435 = vrot.lane.b32.xlu0 %v7507_v43, %s7070_s16  ;;  %v1293_v22 = vsel %vm11116_vm1, %v7466_v52, 0  ;;  %vm11118_vm1 = vcmp.ne.s16.totalorder %v7558_v20, 0  ;;  %v1385_v20 = vsel %vm10914_vm15, %v7437_v46, 0 }
 0x1f7   : > { %v1013_v3 = vsel %vm11118_vm1, %v7451_v47, 0  ;;  %vm11120_vm1 = vcmp.ne.s16.totalorder %v7586_v29, 0  ;;  %v1388_v29 = vsel %vm10914_vm15, %v7466_v52, 0 }
 0x1f8   : > { %v7756_v31 = vpop.permute.xlu1 %1021  ;;  %v808_v24 = vpop.permute.xlu0 %807 }
 0x1fa   : > { %1472 = vrot.lane.b32.xlu0 %v7421_v55, %s7061_s23  ;;  %869 = vrot.lane.b32.xlu1 %v852_v21, %s7052_s30  ;;  %v962_v21 = vsel %vm11117_vm5, %v7681_v18, 0  ;;  %vm11119_vm5 = vcmp.ne.s16.totalorder %v7572_v12, 0  ;;  %v1347_v12 = vsel %vm10864_vm4, %v7651_v1, 0  ;;  %vm10905_vm4 = vcmask 531456   ;;  %s7074_s30 = smov 114  }
 0x1fb   : > { %v7886_v58 = vsel %vm10905_vm4, %v7409_v37, %v7407_v34 }
 0x1fc   : > { %v7764_v19 = vpop.permute.xlu1 %1124  ;;  %v7766_v28 = vpop.permute.xlu0 %970  ;;  %11122 = vst [vmem:[#allocation46_spill] sm:$0xff] %v7886_v58 }
 0x1fe   : > { %1433 = vrot.lane.b32.xlu0 %v7427_v57, %s7070_s16  ;;  %1308 = vrot.lane.b32.xlu1 %v1293_v22, %s7069_s15 }
 0x200   : > { %v7775_v62 = vpop.permute.xlu1 %1165  ;;  %v7777_v23 = vpop.permute.xlu0 %1072 }
 0x202   : > { %978 = vrot.lane.b32.xlu0 %v962_v21, %s7066_s29  ;;  %1358 = vrot.lane.b32.xlu1 %v1344_v27, %s7058_s19  ;;  %v1064_v27 = vsel %vm11119_vm5, %v7681_v18, 0  ;;  %vm10910_vm5 = vcmask 793600  }
 0x204   : > { %v7787_v6 = vpop.permute.xlu1 %1202  ;;  %v7789_v22 = vpop.permute.xlu0 %1250 }
 0x206   : > { %1029 = vrot.lane.b32.xlu0 %v1013_v3, %s7050_s26  ;;  %1401 = vrot.lane.b32.xlu1 %v1387_v50, %s7064_s27  ;;  %v1116_v50 = vsel %vm11120_vm1, %v7451_v47, 0  ;;  %vm11121_vm1 = vcmp.ne.s16.totalorder %v7525_v39, 0  ;;  %s7073_s26 = smov 18  }
 0x208   : > { %v7799_v49 = vpop.permute.xlu1 %1302  ;;  %v7801_v21 = vpop.permute.xlu0 %898 }
 0x20a   : > { %1080 = vrot.lane.b32.xlu0 %v1064_v27, %s7067_s13  ;;  %1397 = vrot.lane.b32.xlu1 %v1385_v20, %s7064_s27  ;;  %v1390_v20 = vsel %vm10912_vm7, %v7662_v40, 0 }
 0x20c   : > { %v812_v44 = vpop.permute.xlu1 %811  ;;  %v7811_v3 = vpop.permute.xlu0 %1163 }
 0x20e   : > { %1132 = vrot.lane.b32.xlu0 %v1116_v50, %s7065_s28  ;;  %1364 = vrot.lane.b32.xlu1 %v1347_v12, %s7058_s19 }
 0x210   : > { %v860_v45 = vpop.permute.xlu1 %859  ;;  %v7821_v36 = vpop.permute.xlu0 %1200 }
 0x212   : > { %1441 = vrot.lane.b32.xlu0 %v7681_v18, %s7070_s16  ;;  %1407 = vrot.lane.b32.xlu1 %v1390_v20, %s7064_s27 }
 0x214   : > { %v7829_v27 = vpop.permute.xlu1 %974  ;;  %v810_v33 = vpop.permute.xlu0 %809 }
 0x215   : > { %v820_v50 = vsel %vm10910_vm5, %v808_v24, %v810_v33  ;;  %v821_v12 = vsel %vm10910_vm5, %v810_v33, %v812_v44  ;;  %v1242_v24 = vsel %vm10889_vm13, %v7681_v18, 0 }
 0x216   : > { %1478 = vrot.lane.b32.xlu0 %v7451_v47, %s7061_s23  ;;  %1403 = vrot.lane.b32.xlu1 %v1388_v29, %s7064_s27  ;;  %v1294_v29 = vsel %vm10882_vm9, %v7451_v47, 0  ;;  %vm474_vm9 = vcmp.lt.s32.totalorder %v7215_v16, 14 }
 0x217   : > { %1715 = vmatprep.subr.bf16.mxu0 %v821_v12 }
 0x218   : > { %v7839_v59 = vpop.permute.xlu1 %1025  ;;  %v7841_v20 = vpop.permute.xlu0 %972  ;;  %1716 = vmatpush1.bf16.msra.mxu0 %v820_v50 }
 0x21a   : > { %1258 = vrot.lane.b32.xlu0 %v1242_v24, %s7068_s14  ;;  %1437 = vrot.lane.b32.xlu1 %v7456_v51, %s7070_s16  ;;  %v1346_v24 = vsel %vm10875_vm10, %v7681_v18, 0  ;;  %vm11124_vm10 = vmmov %vm11123_vm3  ;;  %s7077_s14 = smov 78  }
 0x21b   : > { %v872_v26 = vsel %vm11124_vm10, %v860_v45, %v7748_v35  ;;  %vm10880_vm10 = vcmp.ne.s16.totalorder %v7409_v37, 0 }
 0x21c   : > { %v7849_v44 = vpop.permute.xlu1 %1076  ;;  %v7851_v33 = vpop.permute.xlu0 %1023 }
 0x21e   : > { %1310 = vrot.lane.b32.xlu0 %v1294_v29, %s7069_s15  ;;  %1474 = vrot.lane.b32.xlu1 %v7495_v53, %s7061_s23  ;;  %v1389_v29 = vsel %vm11121_vm1, %v7451_v47, 0  ;;  %vm10879_vm1 = vcmp.ne.s16.totalorder %v7886_v58, 0  ;;  %s7078_s15 = smov 82  }
 0x21f   : > { %v1509_v30 = vsel %vm10879_vm1, %v7507_v43, 0 }
 0x220   : > { %v7859_v50 = vpop.permute.xlu1 %1128  ;;  %v7861_v12 = vpop.permute.xlu0 %1074 }
 0x222   : > { %1362 = vrot.lane.b32.xlu0 %v1346_v24, %s7058_s19  ;;  %1470 = vrot.lane.b32.xlu1 %v7437_v46, %s7061_s23  ;;  %s7075_s19 = smov 46  }
 0x224   : > { %v7869_v25 = vpop.permute.xlu1 %1254  ;;  %v7871_v14 = vpop.permute.xlu0 %1126 }
 0x226   : > { %1405 = vrot.lane.b32.xlu0 %v1389_v29, %s7064_s27  ;;  %1443 = vrot.lane.b32.xlu1 %v7651_v1, %s7070_s16 }
 0x228   : > { %v7879_v56 = vpop.permute.xlu1 %1306  ;;  %v7881_v24 = vpop.permute.xlu0 %1252 }
 0x22a   : > { %1439 = vrot.lane.b32.xlu0 %v7628_v10, %s7070_s16  ;;  %1480 = vrot.lane.b32.xlu1 %v7662_v40, %s7061_s23  ;;  %s7072_s16 = smov 110  }
 0x22c   : > { %v864_v29 = vpop.permute.xlu1 %863  ;;  %v7893_v39 = vpop.permute.xlu0 %1304 }
 0x22d   : > { %v873_v38 = vsel %vm11123_vm3, %v7748_v35, %v864_v29  ;;  %vm10881_vm3 = vcmp.ne.s16.totalorder %v7407_v34, 0  ;;  %v1512_v35 = vsel %vm10879_vm1, %v7681_v18, 0  ;;  %vm11128_vm1 = vcmp.ne.s16.totalorder %v7381_v2, 0 }
 0x22e   : > { %1522 = vrot.lane.b32.xlu0 %v1509_v30, %s7057_s17  ;;  %1476 = vrot.lane.b32.xlu1 %v7466_v52, %s7061_s23  ;;  %v1551_v30 = vsel %vm11125_vm12, %v7421_v55, 0  ;;  %v1510_v43 = vsel %vm10881_vm3, %v7456_v51, 0  ;;  %vm11126_vm12 = vcmp.ne.s16.totalorder %v7381_v2, 0  ;;  %s7076_s23 = smov 50  }
 0x22f   : > { %1821 = vmatprep.subr.bf16.mxu1 %v873_v38  ;;  %v1552_v32 = vsel %vm11126_vm12, %v7495_v53, 0  ;;  %vm11127_vm12 = vcmp.ne.s16.totalorder %v7537_v48, 0 }
 0x230   : > { %v7909_v29 = vpop.permute.xlu1 %902  ;;  %v7911_v13 = vpop.permute.xlu0 %1167  ;;  %1822 = vmatpush1.bf16.msra.mxu1 %v872_v26  ;;  %v1508_v26 = vsel %vm10880_vm10, %v7427_v57, 0 }
 0x232   : > { %1564 = vrot.lane.b32.xlu0 %v1551_v30, %s7066_s29  ;;  %1524 = vrot.lane.b32.xlu1 %v1510_v43, %s7057_s17  ;;  %v1550_v30 = vsel %vm10913_vm2, %v7437_v46, 0  ;;  %v1513_v43 = vsel %vm10881_vm3, %v7651_v1, 0  ;;  %v1511_v1 = vsel %vm10880_vm10, %v7628_v10, 0  ;;  %v517_v10 = vld [vmem:[%s10771_s5 + $0x8] sm:$0xff]  ;;  %vm473_vm3 = vcmp.lt.s32.totalorder %v7213_v15, 14 }
 0x233   : > { %vm2203_vm13 = vmpackc.low %vm474_vm9, %vm473_vm3  ;;  %vm11130_vm9 = vcmask 7168  }
 0x234   : > { %v7922_v38 = vpop.permute.xlu1 %1204  ;;  %v7924_v45 = vpop.permute.xlu0 %867  ;;  %vm11131_vm3 = vmmov %vm11130_vm9 }
 0x236   : > { %1520 = vrot.lane.b32.xlu0 %v1508_v26, %s7057_s17  ;;  %1566 = vrot.lane.b32.xlu1 %v1552_v32, %s7066_s29  ;;  %v1554_v26 = vsel %vm11127_vm12, %v7451_v47, 0  ;;  %v1555_v32 = vsel %vm11128_vm1, %v7662_v40, 0  ;;  %v516_v47 = vld [vmem:[%s10771_s5] sm:$0xff]  ;;  %v1553_v40 = vsel %vm10913_vm2, %v7466_v52, 0  ;;  %v519_v52 = vld [vmem:[%s10771_s5 + $0x18] sm:$0xff]  ;;  %vm467_vm1 = vcmp.ge.s32.totalorder %v7213_v15, 2 }
 0x237   : > { %vm468_vm12 = vcmp.ge.s32.totalorder %v7215_v16, 2 }
 0x238   : > { %v7934_v51 = vpop.permute.xlu1 %1027  ;;  %v814_v55 = vpop.permute.xlu0 %813  ;;  %vm2013_vm10 = vmpackc.low %vm468_vm12, %vm467_vm1  ;;  %vm11132_vm1 = vcmask 1039360  }
 0x239   : > { %vm11133_vm12 = vmmov %vm11132_vm1 }
 0x23a   : > { %1528 = vrot.lane.b32.xlu0 %v1512_v35, %s7057_s17  ;;  %1562 = vrot.lane.b32.xlu1 %v1550_v30, %s7066_s29 }
 0x23c   : > { %v7944_v57 = vpop.permute.xlu1 %1130  ;;  %v907_v53 = vpop.permute.xlu0 %906 }
 0x23e   : > { %1530 = vrot.lane.b32.xlu1 %v1513_v43, %s7057_s17  ;;  %1570 = vrot.lane.b32.xlu0 %v1554_v26, %s7066_s29  ;;  %v518_v43 = vld [vmem:[%s10771_s5 + $0x10] sm:$0xff] }
 0x240   : > { %v7954_v46 = vpop.permute.xlu1 %1171  ;;  %v7956_v18 = vpop.permute.xlu0 %976 }
 0x242   : > { %1572 = vrot.lane.b32.xlu1 %v1555_v32, %s7066_s29  ;;  %1526 = vrot.lane.b32.xlu0 %v1511_v1, %s7057_s17 }
 0x244   : > { %v7969_v35 = vpop.permute.xlu1 %1208  ;;  %v7971_v30 = vpop.permute.xlu0 %1078 }
 0x246   : > { %1568 = vrot.lane.b32.xlu1 %v1553_v40, %s7066_s29  ;;  %1660 = vperm.xlu0 %6854, %v516_v47   ;;  %s7071_s29 = smov 14  }
 0x248   : > { %v818_v26 = vpop.permute.xlu1 %817  ;;  %v7983_v32 = vpop.permute.xlu0 %1256 }
 0x24a   : > { %1665 = vperm.xlu1 %6855, %v517_v10   ;;  %1670 = vperm.xlu0 %6854, %v518_v43   ;;  %v11129_v43 = vmov 0  }
 0x24b   : > { %v2014_v37 = vsel %vm2013_vm10, 65537, %v11129_v43  ;;  %v2204_v2 = vsel %vm2203_vm13, 65537, %v11129_v43  ;;  %vm10908_vm13 = vcmask 777216   ;;  %vm10907_vm10 = vcmask 662528  }
 0x24c   : > { %v7988_v1 = vpop.permute.xlu1 %865  ;;  %v7990_v47 = vpop.permute.xlu0 %1169  ;;  %v8000_v34 = vrot.slane %v2014_v37, %v7234_v41  ;;  %v8003_v58 = vrot.slane %v2014_v37, %v7236_v42  ;;  %v910_v37 = vsel %vm10909_vm6, %v7801_v21, %v7746_v60  ;;  %v909_v60 = vsel %vm10909_vm6, %v7723_v5, %v7801_v21 }
 0x24d   : > { %v983_v21 = vsel %vm10908_vm13, %v7766_v28, %v7841_v20 }
 0x24e   : > { %1675 = vperm.xlu1 %6855, %v519_v52   ;;  %2023 = vrot.lane.b32.xlu0 %v8003_v58, %s7071_s29 }
 0x250   : > { %v905_v40 = vpop.permute.xlu1 %904  ;;  %v7996_v10 = vpop.permute.xlu0 %1206 }
 0x252   : > { %2025 = vrot.lane.b32.xlu1 %v8000_v34, %s7071_s29  ;;  %2075 = vrot.lane.b32.xlu0 %v8003_v58, %s7072_s16 }
 0x254   : > { %v8005_v52 = vpop.permute.xlu1 %980  ;;  %v816_v48 = vpop.permute.xlu0 %815 }
 0x255   : > { %v822_v15 = vsel %vm10910_vm5, %v814_v55, %v816_v48  ;;  %v823_v16 = vsel %vm10910_vm5, %v816_v48, %v818_v26  ;;  %v8024_v55 = vrot.slane %v2204_v2, %v7234_v41  ;;  %v8029_v48 = vrot.slane %v2204_v2, %v7236_v42 }
 0x256   : > { %1717 = vmatprep.subr.bf16.mxu0 %v823_v16  ;;  %2077 = vrot.lane.b32.xlu1 %v8000_v34, %s7072_s16  ;;  %v912_v26 = vsel %vm10909_vm6, %v905_v40, %v907_v53  ;;  %v911_v41 = vsel %vm10909_vm6, %v7909_v29, %v905_v40  ;;  %v984_v42 = vsel %vm10908_vm13, %v7841_v20, %v7829_v27 }
 0x257   : > { %1718 = vmatpush1.bf16.msra.mxu0 %v822_v15  ;;  %2213 = vrot.lane.b32.xlu0 %v8029_v48, %s7073_s26 }
 0x258   : > { %v8017_v63 = vpop.permute.xlu1 %1031  ;;  %v8019_v8 = vpop.permute.xlu0 %1356  ;;  %1719 = vmatprep.subr.bf16.mxu0 %v910_v37 }
 0x25a   : > { %2215 = vrot.lane.b32.xlu1 %v8024_v55, %s7073_s26 }
 0x25b   : > { %1720 = vmatpush1.bf16.msra.mxu0 %v909_v60  ;;  %2263 = vrot.lane.b32.xlu0 %v8029_v48, %s7074_s30  ;;  %v874_v60 = vsel %vm11131_vm3, %v7988_v1, %v7924_v45  ;;  %v1600_v1 = vld [vmem:[#allocation3 + $0x70] sm:$0xff]  ;;  %vm10921_vm3 = vcmask 654336  }
 0x25c   : > { %v8035_v15 = vpop.permute.xlu1 %1082  ;;  %v8037_v16 = vpop.permute.xlu0 %1399  ;;  %1721 = vmatprep.subr.bf16.mxu0 %v912_v26  ;;  %v922_v26 = vld [vmem:[#allocation2 + $0x20] sm:$0xff] }
 0x25e   : > { %2265 = vrot.lane.b32.xlu1 %v8024_v55, %s7074_s30 }
 0x25f   : > { %1722 = vmatpush1.bf16.msra.mxu0 %v911_v41  ;;  %2313 = vrot.lane.b32.xlu0 %v8003_v58, %s7075_s19 }
 0x260   : > { %v8048_v2 = vpop.permute.xlu1 %1134  ;;  %v8050_v5 = vpop.permute.xlu0 %1354  ;;  %1723 = vmatprep.subr.bf16.mxu0 %v984_v42 }
 0x262   : > { %2315 = vrot.lane.b32.xlu1 %v8000_v34, %s7075_s19 }
 0x263   : > { %1724 = vmatpush1.bf16.msra.mxu0 %v983_v21  ;;  %2479 = vrot.lane.b32.xlu0 %v8029_v48, %s7076_s23  ;;  %v1596_v21 = vld [vmem:[#allocation3 + $0x50] sm:$0xff] }
 0x264   : > { %v8059_v29 = vpop.permute.xlu1 %1260  ;;  %v8061_v27 = vpop.permute.xlu0 %1360 }
 0x266   : > { %2481 = vrot.lane.b32.xlu1 %v8024_v55, %s7076_s23 }
 0x267   : > { %2573 = vrot.lane.b32.xlu0 %v8003_v58, %s7077_s14 }
 0x268   : > { %v8067_v53 = vpop.permute.xlu1 %1312  ;;  %v8069_v40 = vpop.permute.xlu0 %1435 }
 0x26a   : > { %2575 = vrot.lane.b32.xlu1 %v8000_v34, %s7077_s14 }
 0x26b   : > { %2737 = vrot.lane.b32.xlu0 %v8029_v48, %s7078_s15 }
 0x26c   : > { %v870_v28 = vpop.permute.xlu1 %869  ;;  %v8075_v20 = vpop.permute.xlu0 %1472 }
 0x26d   : > { %v875_v37 = vsel %vm11130_vm9, %v7924_v45, %v870_v28  ;;  %vm11134_vm9 = vmmov %vm11132_vm1 }
 0x26e   : > { %1823 = vmatprep.subr.bf16.mxu1 %v875_v37  ;;  %v1034_v37 = vsel %vm11132_vm1, %v7851_v33, %v7839_v59  ;;  %vm10901_vm1 = vcmask 924672   ;;  %2739 = vrot.lane.b32.xlu1 %v8024_v55, %s7078_s15 }
 0x26f   : > { %1824 = vmatpush1.bf16.msra.mxu1 %v874_v60  ;;  %v1086_v60 = vsel %vm10907_vm10, %v7861_v12, %v7849_v44 }
 0x270   : > { %v8082_v41 = vpop.permute.xlu1 %1308  ;;  %v8084_v42 = vpop.permute.xlu0 %1433  ;;  %1825 = vmatprep.subr.bf16.mxu1 %v922_v26 }
 0x273   : > { %1826 = vmatpush1.bf16.msra.mxu1 %v1596_v21 }
 0x274   : > { %v8086_v4 = vpop.permute.xlu1 %1358  ;;  %v979_v17 = vpop.permute.xlu0 %978  ;;  %1827 = vmatprep.subr.bf16.mxu1 %v924_v7 }
 0x275   : > { %v985_v28 = vsel %vm10908_vm13, %v7956_v18, %v979_v17  ;;  %v986_v45 = vsel %vm10908_vm13, %v979_v17, %v8005_v52  ;;  %v1033_v17 = vsel %vm11133_vm12, %v7756_v31, %v7851_v33  ;;  %v1085_v18 = vsel %vm10907_vm10, %v7777_v23, %v7861_v12  ;;  %vm11135_vm12 = vmmov %vm11134_vm9 }
 0x276   : > { %1725 = vmatprep.subr.bf16.mxu0 %v986_v45  ;;  %v1138_v33 = vsel %vm10901_vm1, %v7871_v14, %v7859_v50 }
 0x277   : > { %1726 = vmatpush1.bf16.msra.mxu0 %v985_v28  ;;  %1828 = vmatpush1.bf16.msra.mxu1 %v1600_v1 }
 0x278   : > { %v8098_v26 = vpop.permute.xlu1 %1401  ;;  %v1030_v7 = vpop.permute.xlu0 %1029  ;;  %1727 = vmatprep.subr.bf16.mxu0 %v1086_v60  ;;  %1829 = vmatprep.subr.bf16.mxu1 %v1034_v37 }
 0x279   : > { %v1036_v59 = vsel %vm11134_vm9, %v1030_v7, %v8017_v63  ;;  %v1035_v23 = vsel %vm11135_vm12, %v7934_v51, %v1030_v7  ;;  %v1175_v63 = vsel %vm10921_vm3, %v7811_v3, %v7775_v62  ;;  %v1137_v51 = vsel %vm10901_vm1, %v7764_v19, %v7871_v14 }
 0x27a   : > { %v1177_v62 = vsel %vm10921_vm3, %v7990_v47, %v7954_v46  ;;  %vm10922_vm9 = vcmask 916480   ;;  %vm10902_vm12 = vcmask 646144   ;;  %v1176_v14 = vsel %vm10921_vm3, %v7911_v13, %v7990_v47 }
 0x27b   : > { %1728 = vmatpush1.bf16.msra.mxu0 %v1085_v18  ;;  %1830 = vmatpush1.bf16.msra.mxu1 %v1033_v17  ;;  %v1212_v19 = vsel %vm10922_vm9, %v7821_v36, %v7787_v6  ;;  %v1211_v13 = vsel %vm10922_vm9, %v7734_v9, %v7821_v36  ;;  %v1214_v6 = vsel %vm10922_vm9, %v7996_v10, %v7969_v35 }
 0x27c   : > { %v8108_v44 = vpop.permute.xlu1 %1397  ;;  %v1081_v52 = vpop.permute.xlu0 %1080  ;;  %1831 = vmatprep.subr.bf16.mxu1 %v1036_v59  ;;  %v1213_v9 = vsel %vm10922_vm9, %v7922_v38, %v7996_v10  ;;  %v1367_v38 = vsel %vm10905_vm4, %v8050_v5, %v8019_v8 }
 0x27d   : > { %v1087_v21 = vsel %vm10907_vm10, %v7971_v30, %v1081_v52  ;;  %v1088_v31 = vsel %vm10907_vm10, %v1081_v52, %v8035_v15  ;;  %v1174_v30 = vsel %vm10921_vm3, %v7736_v54, %v7811_v3  ;;  %v1264_v3 = vsel %vm10902_vm12, %v7881_v24, %v7869_v25 }
 0x27e   : > { %1729 = vmatprep.subr.bf16.mxu0 %v1088_v31 }
 0x27f   : > { %1730 = vmatpush1.bf16.msra.mxu0 %v1087_v21  ;;  %1832 = vmatpush1.bf16.msra.mxu1 %v1035_v23 }
 0x280   : > { %v1365_v12 = vpop.permute.xlu1 %1364  ;;  %v1133_v28 = vpop.permute.xlu0 %1132  ;;  %1731 = vmatprep.subr.bf16.mxu0 %v1175_v63  ;;  %1833 = vmatprep.subr.bf16.mxu1 %v1138_v33 }
 0x281   : > { %v1140_v50 = vsel %vm10901_vm1, %v1133_v28, %v8048_v2  ;;  %v1139_v54 = vsel %vm10901_vm1, %v7944_v57, %v1133_v28  ;;  %v1263_v57 = vsel %vm10902_vm12, %v7789_v22, %v7881_v24  ;;  %vm10906_vm1 = vcmask 908288  }
 0x282   : > { %v1316_v22 = vsel %vm10906_vm1, %v7893_v39, %v7879_v56  ;;  %v1368_v24 = vsel %vm10905_vm4, %v8019_v8, %v8086_v4  ;;  %v1410_v8 = vsel %vm10910_vm5, %v8037_v16, %v8098_v26 }
 0x283   : > { %1732 = vmatpush1.bf16.msra.mxu0 %v1174_v30  ;;  %1834 = vmatpush1.bf16.msra.mxu1 %v1137_v51 }
 0x284   : > { %v1408_v15 = vpop.permute.xlu1 %1407  ;;  %v8133_v45 = vpop.permute.xlu0 %1441  ;;  %1733 = vmatprep.subr.bf16.mxu0 %v1177_v62  ;;  %1835 = vmatprep.subr.bf16.mxu1 %v1140_v50 }
 0x287   : > { %1734 = vmatpush1.bf16.msra.mxu0 %v1176_v14  ;;  %1836 = vmatpush1.bf16.msra.mxu1 %v1139_v54 }
 0x288   : > { %v1404_v46 = vpop.permute.xlu1 %1403  ;;  %v8146_v2 = vpop.permute.xlu0 %1478  ;;  %1735 = vmatprep.subr.bf16.mxu0 %v1264_v3  ;;  %1837 = vmatprep.subr.bf16.mxu1 %v1212_v19 }
 0x28b   : > { %1736 = vmatpush1.bf16.msra.mxu0 %v1263_v57  ;;  %1838 = vmatpush1.bf16.msra.mxu1 %v1211_v13 }
 0x28c   : > { %v1438_v25 = vpop.permute.xlu1 %1437  ;;  %v1259_v47 = vpop.permute.xlu0 %1258  ;;  %1839 = vmatprep.subr.bf16.mxu1 %v1214_v6  ;;  %v6864_v6 = vld [vmem:[%s10770_s4 + $0x8] ss:$12 sps:$4 sm:$0xff]  }
 0x28d   : > { %v1265_v1 = vsel %vm10902_vm12, %v7983_v32, %v1259_v47  ;;  %v1266_v36 = vsel %vm10902_vm12, %v1259_v47, %v8059_v29  ;;  %v1315_v29 = vsel %vm10906_vm1, %v7799_v49, %v7893_v39  ;;  %vm10903_vm12 = vcmask 523264  }
 0x28e   : > { %1737 = vmatprep.subr.bf16.mxu0 %v1266_v36  ;;  %v1447_v39 = vsel %vm10903_vm12, %v8069_v40, %v1438_v25 }
 0x28f   : > { %1738 = vmatpush1.bf16.msra.mxu0 %v1265_v1  ;;  %1840 = vmatpush1.bf16.msra.mxu1 %v1213_v9  ;;  %v6865_v1 = vld [vmem:[%s10770_s4 + $0x20] ss:$12 sps:$4 sm:$0xff]  }
 0x290   : > { %v1475_v35 = vpop.permute.xlu1 %1474  ;;  %v1311_v32 = vpop.permute.xlu0 %1310  ;;  %1739 = vmatprep.subr.bf16.mxu0 %v1368_v24  ;;  %1841 = vmatprep.subr.bf16.mxu1 %v1316_v22 }
 0x291   : > { %v1318_v56 = vsel %vm10906_vm1, %v1311_v32, %v8067_v53  ;;  %v1317_v49 = vsel %vm10906_vm1, %v8082_v41, %v1311_v32  ;;  %v1409_v41 = vsel %vm10910_vm5, %v8108_v44, %v8037_v16  ;;  %v6858_v16 = vld [vmem:[%s10770_s4] ss:$12 sps:$4 sm:$0xff]   ;;  %v6861_v44 = vld [vmem:[%s10770_s4 + $0x1c] ss:$12 sps:$4 sm:$0xff]   ;;  %vm11154_vm1 = vcmask 130048  }
 0x292   : > { %vm11155_vm10 = vmmov %vm11154_vm1 }
 0x293   : > { %1740 = vmatpush1.bf16.msra.mxu0 %v1367_v38  ;;  %1842 = vmatpush1.bf16.msra.mxu1 %v1315_v29 }
 0x294   : > { %v1471_v4 = vpop.permute.xlu1 %1470  ;;  %v1363_v10 = vpop.permute.xlu0 %1362  ;;  %1843 = vmatprep.subr.bf16.mxu1 %v1318_v56 }
 0x295   : > { %v1369_v37 = vsel %vm10905_vm4, %v8061_v27, %v1363_v10  ;;  %v1370_v60 = vsel %vm10905_vm4, %v1363_v10, %v1365_v12  ;;  %v1446_v27 = vsel %vm10903_vm12, %v8084_v42, %v8069_v40  ;;  %v1483_v42 = vsel %vm10909_vm6, %v8075_v20, %v1475_v35 }
 0x296   : > { %1741 = vmatprep.subr.bf16.mxu0 %v1370_v60  ;;  %v1482_v31 = vsel %vm10909_vm6, %v1471_v4, %v8075_v20  ;;  %v6863_v20 = vld [vmem:[%s10770_s4 + $0x18] ss:$12 sps:$4 sm:$0xff]   ;;  %vm11153_vm4 = vcmask 1047680  }
 0x297   : > { %1742 = vmatpush1.bf16.msra.mxu0 %v1369_v37  ;;  %1844 = vmatpush1.bf16.msra.mxu1 %v1317_v49 }
 0x298   : > { %v1444_v5 = vpop.permute.xlu1 %1443  ;;  %v1406_v53 = vpop.permute.xlu0 %1405  ;;  %1743 = vmatprep.subr.bf16.mxu0 %v1447_v39  ;;  %1845 = vmatprep.subr.bf16.mxu1 %v1410_v8 }
 0x299   : > { %v1449_v26 = vsel %vm10903_vm12, %v8133_v45, %v1444_v5  ;;  %v1412_v7 = vsel %vm10910_vm5, %v1406_v53, %v1408_v15  ;;  %v1411_v40 = vsel %vm10910_vm5, %v1404_v46, %v1406_v53 }
 0x29b   : > { %1744 = vmatpush1.bf16.msra.mxu0 %v1446_v27  ;;  %1846 = vmatpush1.bf16.msra.mxu1 %v1409_v41 }
 0x29c   : > { %v1481_v17 = vpop.permute.xlu1 %1480  ;;  %v1440_v18 = vpop.permute.xlu0 %1439  ;;  %1745 = vmatprep.subr.bf16.mxu0 %v1449_v26  ;;  %1847 = vmatprep.subr.bf16.mxu1 %v1412_v7 }
 0x29d   : > { %v1448_v59 = vsel %vm10903_vm12, %v1440_v18, %v8133_v45  ;;  %v1485_v23 = vsel %vm10909_vm6, %v8146_v2, %v1481_v17  ;;  %vm10916_vm12 = vcmask 261120  }
 0x29f   : > { %1746 = vmatpush1.bf16.msra.mxu0 %v1448_v59  ;;  %1848 = vmatpush1.bf16.msra.mxu1 %v1411_v40 }
 0x2a0   : > { %v1477_v52 = vpop.permute.xlu1 %1476  ;;  %v1523_v21 = vpop.permute.xlu0 %1522  ;;  %1849 = vmatprep.subr.bf16.mxu1 %v1483_v42 }
 0x2a1   : > { %v1484_v28 = vsel %vm10909_vm6, %v1477_v52, %v8146_v2 }
 0x2a2   : > { %1748 = vmatmul.mubr.bf16.vlgmr.msra.gmra.mrb[8].mxu0 %v6858_v16 }
 0x2a3   : > { %1850 = vmatpush1.bf16.msra.mxu1 %v1482_v31  ;;  %1757 = vmatprep.mubr.bf16.mxu0 %v6861_v44 }
 0x2a4   : > { %v1525_v63 = vpop.permute.xlu1 %1524  ;;  %v1565_v33 = vpop.permute.xlu0 %1564  ;;  %1851 = vmatprep.subr.bf16.mxu1 %v1485_v23 }
 0x2a5   : > { %v1533_v12 = vsel %vm10904_vm8, %v1523_v21, %v1525_v63 }
 0x2a6   : > { %1768 = vmatprep.subr.bf16.mxu0 %v1533_v12 }
 0x2a7   : > { %1852 = vmatpush1.bf16.msra.mxu1 %v1484_v28 }
 0x2a8   : > { %v1567_v30 = vpop.permute.xlu1 %1566  ;;  %v1521_v51 = vpop.permute.xlu0 %1520 }
 0x2a9   : > { %v1575_v62 = vsel %vm10908_vm13, %v1565_v33, %v1567_v30  ;;  %v1532_v50 = vsel %vm10904_vm8, %v1521_v51, %v1523_v21 }
 0x2aa   : > { %1769 = vmatpush1.bf16.msra.mxu0 %v1532_v50  ;;  %1874 = vmatprep.subr.bf16.mxu1 %v1575_v62 }
 0x2ab   : > { %1854 = vmatmul.mubr.bf16.vlgmr.msra.gmra.mrb[8].mxu1 %v6858_v16  ;;  %1758 = vmatmul.mubr.bf16.gmra.mrb[12].mxu0 %v6863_v20 }
 0x2ac   : > { %v1563_v15 = vpop.permute.xlu1 %1562  ;;  %v1529_v45 = vpop.permute.xlu0 %1528  ;;  %1863 = vmatprep.mubr.bf16.mxu1 %v6861_v44  ;;  %1800 = vmatprep.mubr.bf16.mxu0 %v11129_v43 }
 0x2ad   : > { %v1574_v14 = vsel %vm10908_vm13, %v1563_v15, %v1565_v33 }
 0x2ae   : > { %1875 = vmatpush1.bf16.msra.mxu1 %v1574_v14 }
 0x2b0   : > { %v1531_v54 = vpop.permute.xlu1 %1530  ;;  %v1571_v19 = vpop.permute.xlu0 %1570 }
 0x2b1   : > { %v1535_v3 = vsel %vm10904_vm8, %v1529_v45, %v1531_v54 }
 0x2b2   : > { %1770 = vmatprep.subr.bf16.mxu0 %v1535_v3 }
 0x2b3   : > { %1864 = vmatmul.mubr.bf16.gmra.mrb[12].mxu1 %v6863_v20 }
 0x2b4   : > { %v1573_v46 = vpop.permute.xlu1 %1572  ;;  %v1527_v2 = vpop.permute.xlu0 %1526  ;;  %1906 = vmatprep.mubr.bf16.mxu1 %v11129_v43 }
 0x2b5   : > { %v1577_v13 = vsel %vm10908_vm13, %v1571_v19, %v1573_v46  ;;  %v1534_v57 = vsel %vm10904_vm8, %v1527_v2, %v1529_v45  ;;  %vm11152_vm8 = vcmask 1047936  }
 0x2b6   : > { %1771 = vmatpush1.bf16.msra.mxu0 %v1534_v57  ;;  %1876 = vmatprep.subr.bf16.mxu1 %v1577_v13 }
 0x2b8   : > { %v1569_v25 = vpop.permute.xlu1 %1568 }
 0x2b9   : > { %v1576_v47 = vsel %vm10908_vm13, %v1569_v25, %v1571_v19  ;;  %6408 = vmatmul.mubr.msk.bf16.vlgmr.msra.gmra.mrb[8].mxu0 %vm10916_vm12, %v6864_v6  ;;  %vm11156_vm13 = vmmov %vm11152_vm8 }
 0x2ba   : > { %1877 = vmatpush1.bf16.msra.mxu1 %v1576_v47  ;;  %1810 = vmatprep.mubr.bf16.mxu0 %v11129_v43 }
 0x2bd   : > { %6410 = vmatmul.mubr.msk.bf16.vlgmr.msra.gmra.mrb[8].mxu1 %vm10916_vm12, %v6864_v6 }
 0x2be   : > { %1916 = vmatprep.mubr.bf16.mxu1 %v11129_v43 }
 0x2c1   : > { %6409 = vmatmul.mubr.msk.bf16.gmra.mrb[12].mxu0 %vm10916_vm12, %v6865_v1 }
 0x2c5   : > { %6411 = vmatmul.mubr.msk.bf16.gmra.mrb[12].mxu1 %vm10916_vm12, %v6865_v1  ;;  %v1661_v36 = vpop.permute.xlu0 %1660 }
 0x2c9   : > { %v1666_v35 = vpop.permute.xlu1 %1665  ;;  %v1671_v27 = vpop.permute.xlu0 %1670 }
 0x2cd   : > { %v1676_v16 = vpop.permute.xlu1 %1675 }
 0x38c   : > { %v1802_v9 = vpop.f32.mrb[8].mxu0 }
 0x38d   : > { %v6525_v22 = vadd.f32 %v1802_v9, %v1661_v36  ;;  %v1804_v24 = vpop.f32.mrb[9].mxu0  ;;  %v8257_v9 = vpop.permute.xlu1 %2025 }
 0x38e   : > { %v6526_v32 = vadd.f32 %v1804_v24, %v1661_v36  ;;  %v1806_v29 = vpop.f32.mrb[10].mxu0  ;;  %11137 = vst [vmem:[#allocation48_spill] sm:$0xff] %v8257_v9  ;;  %vm10932_vm5 = vcmp.ne.s16.totalorder %v8257_v9, 0 }
 0x38f   : > { %v6527_v38 = vadd.f32 %v1806_v29, %v1666_v35  ;;  %v1808_v56 = vpop.f32.mrb[11].mxu0  ;;  %v1927_v10 = vmax.f32 %v6525_v22, 0.0 }
 0x390   : > { %v6528_v34 = vadd.f32 %v1808_v56, %v1666_v35  ;;  %v1908_v4 = vpop.f32.mrb[8].mxu1  ;;  %v1928_v49 = vmax.f32 %v6526_v32, 0.0 }
 0x391   : > { %v1931_v58 = vmax.f32 %v6527_v38, 0.0  ;;  %v6533_v37 = vadd.f32 %v1908_v4, %v1661_v36  ;;  %v1910_v60 = vpop.f32.mrb[9].mxu1  ;;  %v8261_v24 = vpop.permute.xlu1 %2077 }
 0x392   : > { %v1932_v55 = vmax.f32 %v6528_v34, 0.0  ;;  %v6534_v8 = vadd.f32 %v1910_v60, %v1661_v36  ;;  %v1912_v39 = vpop.f32.mrb[10].mxu1  ;;  %v8255_v36 = vpop.permute.xlu0 %2023  ;;  %11139 = vst [vmem:[#allocation50_spill] sm:$0xff] %v8261_v24 }
 0x393   : > { %v1943_v48 = vpack.c.bf16 %v1931_v58, %v1927_v10  ;;  %v6535_v5 = vadd.f32 %v1912_v39, %v1666_v35  ;;  %v1914_v53 = vpop.f32.mrb[11].mxu1  ;;  %v1929_v17 = vmax.f32 %v6533_v37, 0.0  ;;  %11136 = vst [vmem:[#allocation47_spill] sm:$0xff] %v8255_v36 }
 0x394   : > { %v1944_v41 = vpack.c.bf16 %v1932_v55, %v1928_v49  ;;  %v6536_v26 = vadd.f32 %v1914_v53, %v1666_v35  ;;  %v1812_v7 = vpop.f32.mrb[12].mxu0  ;;  %v1930_v42 = vmax.f32 %v6534_v8, 0.0 }
 0x395   : > { %v1933_v18 = vmax.f32 %v6535_v5, 0.0  ;;  %v6529_v59 = vadd.f32 %v1812_v7, %v1671_v27  ;;  %v1814_v40 = vpop.f32.mrb[13].mxu0  ;;  %1951 = vrot.lane.b32.xlu0 %v1943_v48, %s7059_s20  ;;  %v8265_v32 = vpop.permute.xlu1 %2215 }
 0x396   : > { %v1934_v44 = vmax.f32 %v6536_v26, 0.0  ;;  %v6530_v52 = vadd.f32 %v1814_v40, %v1671_v27  ;;  %v1816_v21 = vpop.f32.mrb[14].mxu0  ;;  %1953 = vrot.lane.b32.xlu1 %v1944_v41, %s7059_s20  ;;  %v8259_v22 = vpop.permute.xlu0 %2075  ;;  %11141 = vst [vmem:[#allocation52_spill] sm:$0xff] %v8265_v32  ;;  %vm10935_vm15 = vcmp.ne.s16.totalorder %v8265_v32, 0 }
 0x397   : > { %v1973_v31 = vpack.c.bf16 %v1933_v18, %v1929_v17  ;;  %v6531_v23 = vadd.f32 %v1816_v21, %v1676_v16  ;;  %v1818_v63 = vpop.f32.mrb[15].mxu0  ;;  %v1935_v20 = vmax.f32 %v6529_v59, 0.0  ;;  %11138 = vst [vmem:[#allocation49_spill] sm:$0xff] %v8259_v22  ;;  %vm10930_vm7 = vcmp.ne.s16.totalorder %v8259_v22, 0 }
 0x398   : > { %v1974_v33 = vpack.c.bf16 %v1934_v44, %v1930_v42  ;;  %v6532_v12 = vadd.f32 %v1818_v63, %v1676_v16  ;;  %v1918_v28 = vpop.f32.mrb[12].mxu1  ;;  %v1936_v50 = vmax.f32 %v6530_v52, 0.0 }
 0x399   : > { %v1939_v30 = vmax.f32 %v6531_v23, 0.0  ;;  %v6537_v51 = vadd.f32 %v1918_v28, %v1671_v27  ;;  %v1920_v62 = vpop.f32.mrb[13].mxu1  ;;  %1981 = vrot.lane.b32.xlu0 %v1973_v31, %s7060_s22  ;;  %v8269_v38 = vpop.permute.xlu1 %2265 }
 0x39a   : > { %v1940_v15 = vmax.f32 %v6532_v12, 0.0  ;;  %v6538_v45 = vadd.f32 %v1920_v62, %v1671_v27  ;;  %v1922_v14 = vpop.f32.mrb[14].mxu1  ;;  %1983 = vrot.lane.b32.xlu1 %v1974_v33, %s7060_s22  ;;  %v8263_v35 = vpop.permute.xlu0 %2213  ;;  %11143 = vst [vmem:[#allocation54_spill] sm:$0xff] %v8269_v38 }
 0x39b   : > { %v1945_v54 = vpack.c.bf16 %v1939_v30, %v1935_v20  ;;  %v6539_v19 = vadd.f32 %v1922_v14, %v1676_v16  ;;  %v1924_v3 = vpop.f32.mrb[15].mxu1  ;;  %v1937_v13 = vmax.f32 %v6537_v51, 0.0  ;;  %11140 = vst [vmem:[#allocation51_spill] sm:$0xff] %v8263_v35  ;;  %vm2218_vm6 = vcmp.ne.s16.totalorder %v8263_v35, 0 }
 0x39c   : > { %v1946_v46 = vpack.c.bf16 %v1940_v15, %v1936_v50  ;;  %v6540_v2 = vadd.f32 %v1924_v3, %v1676_v16  ;;  %v1938_v6 = vmax.f32 %v6538_v45, 0.0  ;;  %v8406_v50 = vsel %vm10920_vm14, %v8255_v36, %v8257_v9 }
 0x39d   : > { %v1941_v57 = vmax.f32 %v6539_v19, 0.0  ;;  %1955 = vrot.lane.b32.xlu0 %v1945_v54, %s7059_s20  ;;  %v8273_v34 = vpop.permute.xlu1 %2315  ;;  %11161 = vst [vmem:[#allocation64_spill] sm:$0xff] %v8406_v50  ;;  %vm10924_vm14 = vcmask 375808  }
 0x39e   : > { %v1942_v25 = vmax.f32 %v6540_v2, 0.0  ;;  %1957 = vrot.lane.b32.xlu1 %v1946_v46, %s7059_s20  ;;  %v8267_v29 = vpop.permute.xlu0 %2263  ;;  %11145 = vst [vmem:[#allocation56_spill] sm:$0xff] %v8273_v34 }
 0x39f   : > { %v1975_v47 = vpack.c.bf16 %v1941_v57, %v1937_v13  ;;  %11142 = vst [vmem:[#allocation53_spill] sm:$0xff] %v8267_v29  ;;  %vm10931_vm12 = vcmp.ne.s16.totalorder %v8267_v29, 0 }
 0x3a0   : > { %v1976_v1 = vpack.c.bf16 %v1942_v25, %v1938_v6 }
 0x3a1   : > { %1985 = vrot.lane.b32.xlu0 %v1975_v47, %s7060_s22  ;;  %v8277_v10 = vpop.permute.xlu1 %2481 }
 0x3a2   : > { %1987 = vrot.lane.b32.xlu1 %v1976_v1, %s7060_s22  ;;  %v8271_v56 = vpop.permute.xlu0 %2313  ;;  %11147 = vst [vmem:[#allocation58_spill] sm:$0xff] %v8277_v10 }
 0x3a3   : > { %11144 = vst [vmem:[#allocation55_spill] sm:$0xff] %v8271_v56  ;;  %vm2319_vm11 = vcmp.ne.s16.totalorder %v8271_v56, 0  ;;  %v8433_v19 = vsel %vm10924_vm14, %v8271_v56, %v8273_v34  ;;  %vm10927_vm14 = vcmask 408576  }
 0x3a4   : > { %11163 = vst [vmem:[#allocation66_spill] sm:$0xff] %v8433_v19  ;;  %vm10926_vm9 = vcmp.ne.s16.totalorder %v8433_v19, 0 }
 0x3a5   : > { %v8281_v37 = vpop.permute.xlu1 %2575 }
 0x3a6   : > { %v8275_v4 = vpop.permute.xlu0 %2479  ;;  %11149 = vst [vmem:[#allocation60_spill] sm:$0xff] %v8281_v37 }
 0x3a7   : > { %11146 = vst [vmem:[#allocation57_spill] sm:$0xff] %v8275_v4  ;;  %vm2485_vm2 = vcmp.ne.s16.totalorder %v8275_v4, 0  ;;  %v8456_v57 = vsel %vm10927_vm14, %v8275_v4, %v8277_v10  ;;  %vm11050_vm14 = vcmask 637952  }
 0x3a8   : > { %11164 = vst [vmem:[#allocation67_spill] sm:$0xff] %v8456_v57 }
 0x3a9   : > { %v8285_v49 = vpop.permute.xlu1 %2739 }
 0x3aa   : > { %v8279_v58 = vpop.permute.xlu0 %2573  ;;  %11151 = vst [vmem:[#allocation62_spill] sm:$0xff] %v8285_v49 }
 0x3ab   : > { %11148 = vst [vmem:[#allocation59_spill] sm:$0xff] %v8279_v58 }
 0x3ae   : > { %v8283_v60 = vpop.permute.xlu0 %2737 }
 0x3af   : > { %11150 = vst [vmem:[#allocation61_spill] sm:$0xff] %v8283_v60 }
 0x407   : > { %v1952_v55 = vpop.permute.xlu0 %1951 }
 0x408   : > { %1967 = vst.msk [vmem:[#allocation2] sm:$0xff] %vm11152_vm8, %v1952_v55  ;;  %v1954_v8 = vpop.permute.xlu1 %1953  ;;  %vm11157_vm8 = vmmov %vm11153_vm4 }
 0x409   : > { %v8289_v39 = vsel %vm10917_vm0, %v1952_v55, %v1954_v8  ;;  %1969 = vst.msk [vmem:[#allocation2 + $0x10] sm:$0xff] %vm10917_vm0, %v1954_v8  ;;  %v8480_v55 = vsel %vm11050_vm14, %v8279_v58, %v8281_v37 }
 0x40a   : > { %v2323_v2 = vsel %vm10926_vm9, %v8289_v39, 0  ;;  %vm10929_vm9 = vcmp.ne.s16.totalorder %v8456_v57, 0  ;;  %11165 = vst [vmem:[#allocation68_spill] sm:$0xff] %v8480_v55 }
 0x40b   : > { %v1982_v48 = vpop.permute.xlu0 %1981  ;;  %v2489_v47 = vsel %vm10929_vm9, %v8289_v39, 0  ;;  %vm10949_vm9 = vcmp.ne.s16.totalorder %v8480_v55, 0 }
 0x40c   : > { %1997 = vst.msk [vmem:[#allocation2 + $0x18] sm:$0xff] %vm11153_vm4, %v1982_v48  ;;  %v1984_v5 = vpop.permute.xlu1 %1983  ;;  %vm11158_vm4 = vmmov %vm11154_vm1 }
 0x40d   : > { %v8294_v53 = vsel %vm11154_vm1, %v1982_v48, %v1984_v5  ;;  %1999 = vst.msk [vmem:[#allocation2 + $0x28] sm:$0xff] %vm11155_vm10, %v1984_v5  ;;  %vm10918_vm10 = vcmask 900096   ;;  %v2582_v5 = vsel %vm10949_vm9, %v8289_v39, 0 }
 0x40e   : > { %1998 = vst [vmem:[#allocation2 + $0x20] sm:$0xff] %v8294_v53  ;;  %v8326_v42 = vsel %vm10918_vm10, %v8259_v22, %v8261_v24  ;;  %vm10928_vm10 = vcmp.ne.s16.totalorder %v8406_v50, 0 }
 0x40f   : > { %v1956_v27 = vpop.permute.xlu0 %1955  ;;  %v8317_v16 = vld [vmem:[#allocation2] sm:$0xff]  ;;  %v2033_v14 = vsel %vm10928_vm10, %v8289_v39, 0  ;;  %v2366_v6 = vsel %vm10928_vm10, %v8294_v53, 0  ;;  %vm10950_vm10 = vcmp.ne.s16.totalorder %v8269_v38, 0 }
 0x410   : > { %1970 = vst.msk [vmem:[#allocation2 + $0x30] sm:$0xff] %vm11156_vm13, %v1956_v27  ;;  %v1958_v41 = vpop.permute.xlu1 %1957  ;;  %vm11159_vm13 = vmmov %vm11154_vm1  ;;  %v8315_v40 = vld [vmem:[#allocation2 + $0x10] sm:$0xff]  ;;  %vm2029_vm1 = vcmp.ne.s16.totalorder %v8255_v36, 0  ;;  %v2221_v12 = vsel %vm2218_vm6, %v8317_v16, 0  ;;  %v2322_v20 = vsel %vm2319_vm11, %v8317_v16, 0  ;;  %v2488_v51 = vsel %vm2485_vm2, %v8317_v16, 0 }
 0x411   : > { %v8300_v26 = vsel %vm10917_vm0, %v1956_v27, %v1958_v41  ;;  %1972 = vst.msk [vmem:[#allocation2 + $0x40] sm:$0xff] %vm10917_vm0, %v1958_v41  ;;  %v2032_v31 = vsel %vm2029_vm1, %v8317_v16, 0  ;;  %v2034_v28 = vsel %vm10932_vm5, %v8315_v40, 0  ;;  %v2084_v30 = vsel %vm10930_vm7, %v8315_v40, 0 }
 0x412   : > { %v2223_v62 = vsel %vm10935_vm15, %v8315_v40, 0  ;;  %v2271_v15 = vsel %vm10931_vm12, %v8315_v40, 0  ;;  %vm10923_vm0 = vcmask 146432   ;;  %v2273_v48 = vsel %vm10950_vm10, %v8294_v53, 0 }
 0x413   : > { %v1986_v7 = vpop.permute.xlu0 %1985  ;;  %v8303_v17 = vld [vmem:[#allocation2 + $0x18] sm:$0xff]  ;;  %v8419_v45 = vsel %vm10923_vm0, %v8263_v35, %v8265_v32  ;;  %vm10925_vm0 = vcmp.ne.s16.totalorder %v8277_v10, 0 }
 0x414   : > { %2000 = vst.msk [vmem:[#allocation2 + $0x48] sm:$0xff] %vm11157_vm8, %v1986_v7  ;;  %v1988_v18 = vpop.permute.xlu1 %1987  ;;  %2449 = vrot.lane.b32.xlu1 %v8303_v17, %s7063_s25  ;;  %2171 = vrot.lane.b32.xlu0 %v8303_v17, %s7060_s22  ;;  %vm2082_vm8 = vcmp.ne.s16.totalorder %v8326_v42, 0  ;;  %v2365_v44 = vsel %vm2029_vm1, %v8303_v17, 0  ;;  %v8354_v23 = vld [vmem:[#allocation2 + $0x28] sm:$0xff]  ;;  %v2531_v33 = vsel %vm2218_vm6, %v8303_v17, 0  ;;  %11162 = vst [vmem:[#allocation65_spill] sm:$0xff] %v8419_v45 }
 0x415   : > { %v8311_v59 = vsel %vm11158_vm4, %v1986_v7, %v1988_v18  ;;  %2002 = vst.msk [vmem:[#allocation2 + $0x58] sm:$0xff] %vm11159_vm13, %v1988_v18  ;;  %v2085_v52 = vsel %vm2082_vm8, %v8303_v17, 0  ;;  %vm10919_vm4 = vcmask 932864   ;;  %vm2219_vm3 = vcmp.ne.s16.totalorder %v8419_v45, 0 }
 0x416   : > { %2001 = vst [vmem:[#allocation2 + $0x50] sm:$0xff] %v8311_v59  ;;  %v8345_v21 = vsel %vm10919_vm4, %v8267_v29, %v8269_v38  ;;  %vm2321_vm4 = vcmp.ne.s16.totalorder %v8273_v34, 0  ;;  %v2222_v3 = vsel %vm2219_vm3, %v8289_v39, 0  ;;  %v2367_v46 = vsel %vm10932_vm5, %v8354_v23, 0 }
 0x417   : > { %11160 = vst [vmem:[#allocation63_spill] sm:$0xff] %v8345_v21  ;;  %vm2269_vm13 = vcmp.ne.s16.totalorder %v8345_v21, 0  ;;  %v2324_v54 = vsel %vm2321_vm4, %v8315_v40, 0  ;;  %v2490_v13 = vsel %vm10925_vm0, %v8315_v40, 0  ;;  %v2533_v25 = vsel %vm10935_vm15, %v8354_v23, 0  ;;  %v8505_v7 = vld [vmem:[#allocation2 + $0x30] sm:$0xff] }
 0x418   : > { %2137 = vrot.lane.b32.xlu1 %v8315_v40, %s7063_s25  ;;  %2133 = vrot.lane.b32.xlu0 %v8317_v16, %s7063_s25  ;;  %v2272_v63 = vsel %vm2269_vm13, %v8303_v17, 0  ;;  %vm10934_vm0 = vcmp.ne.s16.totalorder %v8261_v24, 0  ;;  %v2532_v8 = vsel %vm2219_vm3, %v8294_v53, 0  ;;  %v8499_v41 = vld [vmem:[#allocation2 + $0x40] sm:$0xff] }
 0x419   : > { %v2086_v1 = vsel %vm10934_vm0, %v8294_v53, 0 }
 0x41b   : > { %v8494_v27 = vld [vmem:[#allocation2 + $0x48] sm:$0xff] }
 0x41c   : > { %2169 = vrot.lane.b32.xlu1 %v8315_v40, %s7060_s22  ;;  %2413 = vrot.lane.b32.xlu0 %v8317_v16, %s7062_s24  ;;  %v2368_v18 = vsel %vm2029_vm1, %v8494_v27, 0 }
 0x420   : > { %2377 = vrot.lane.b32.xlu1 %v2365_v44, %s7074_s30  ;;  %2098 = vrot.lane.b32.xlu0 %v2085_v52, %s7073_s26  ;;  %v2088_v44 = vsel %vm2082_vm8, %v8494_v27, 0  ;;  %v8523_v52 = vld [vmem:[#allocation2 + $0x58] sm:$0xff] }
 0x424   : > { %2417 = vrot.lane.b32.xlu1 %v8315_v40, %s7062_s24  ;;  %2044 = vrot.lane.b32.xlu0 %v2032_v31, %s7074_s30  ;;  %v2035_v31 = vsel %vm2029_vm1, %v8505_v7, 0 }
 0x428   : > { %2453 = vrot.lane.b32.xlu1 %v8354_v23, %s7063_s25  ;;  %2285 = vrot.lane.b32.xlu0 %v2272_v63, %s7071_s29  ;;  %v2534_v63 = vsel %vm2218_vm6, %v8494_v27, 0 }
 0x42c   : > { %2543 = vrot.lane.b32.xlu1 %v2531_v33, %s7072_s16  ;;  %2233 = vrot.lane.b32.xlu0 %v2221_v12, %s7072_s16  ;;  %v2275_v33 = vsel %vm2269_vm13, %v8494_v27, 0  ;;  %v2037_v12 = vsel %vm10932_vm5, %v8499_v41, 0 }
 0x430   : > { %2048 = vrot.lane.b32.xlu1 %v2034_v28, %s7074_s30  ;;  %2334 = vrot.lane.b32.xlu0 %v2322_v20, %s7078_s15  ;;  %v2224_v28 = vsel %vm2218_vm6, %v8505_v7, 0  ;;  %v2087_v20 = vsel %vm10930_vm7, %v8499_v41, 0  ;;  %vm11166_vm7 = vcmask 130048  }
 0x434   : > { %2096 = vrot.lane.b32.xlu1 %v2084_v30, %s7073_s26  ;;  %2500 = vrot.lane.b32.xlu0 %v2488_v51, %s7077_s14  ;;  %v2325_v30 = vsel %vm2319_vm11, %v8505_v7, 0  ;;  %v2491_v51 = vsel %vm2485_vm2, %v8505_v7, 0 }
 0x438   : > { %2135 = vrot.lane.b32.xlu0 %v8289_v39, %s7063_s25  ;;  %2173 = vrot.lane.b32.xlu1 %v8294_v53, %s7060_s22 }
 0x43c   : > { %2415 = vrot.lane.b32.xlu0 %v8289_v39, %s7062_s24  ;;  %2237 = vrot.lane.b32.xlu1 %v2223_v62, %s7072_s16  ;;  %v2226_v62 = vsel %vm10935_vm15, %v8499_v41, 0 }
 0x440   : > { %2451 = vrot.lane.b32.xlu0 %v8294_v53, %s7063_s25  ;;  %2283 = vrot.lane.b32.xlu1 %v2271_v15, %s7071_s29 }
 0x444   : > { %2046 = vrot.lane.b32.xlu0 %v2033_v14, %s7074_s30  ;;  %2338 = vrot.lane.b32.xlu1 %v2324_v54, %s7078_s15  ;;  %v2274_v54 = vsel %vm10931_vm12, %v8499_v41, 0  ;;  %vm11167_vm12 = vcmp.ne.s16.totalorder %v8406_v50, 0 }
 0x448   : > { %2235 = vrot.lane.b32.xlu0 %v2222_v3, %s7072_s16  ;;  %2381 = vrot.lane.b32.xlu1 %v2367_v46, %s7074_s30 }
 0x44c   : > { %2336 = vrot.lane.b32.xlu0 %v2323_v2, %s7078_s15  ;;  %2504 = vrot.lane.b32.xlu1 %v2490_v13, %s7077_s14  ;;  %v2327_v2 = vsel %vm2321_vm4, %v8499_v41, 0 }
 0x450   : > { %2379 = vrot.lane.b32.xlu0 %v2366_v6, %s7074_s30  ;;  %2547 = vrot.lane.b32.xlu1 %v2533_v25, %s7072_s16 }
 0x454   : > { %2502 = vrot.lane.b32.xlu0 %v2489_v47, %s7077_s14  ;;  %2100 = vrot.lane.b32.xlu1 %v2086_v1, %s7073_s26  ;;  %v2036_v47 = vsel %vm11167_vm12, %v8300_v26, 0  ;;  %v2370_v1 = vsel %vm10932_vm5, %v8523_v52, 0  ;;  %vm11169_vm12 = vcmp.ne.s16.totalorder %v8277_v10, 0  ;;  %vm10933_vm5 = vcmp.ne.s16.totalorder %v8279_v58, 0 }
 0x458   : > { %2545 = vrot.lane.b32.xlu0 %v2532_v8, %s7072_s16  ;;  %2287 = vrot.lane.b32.xlu1 %v2273_v48, %s7071_s29 }
 0x45c   : > { %2595 = vrot.lane.b32.xlu0 %v2582_v5, %s7076_s23  ;;  %2455 = vrot.lane.b32.xlu1 %v8494_v27, %s7063_s25 }
 0x460   : > { %2143 = vrot.lane.b32.xlu1 %v8499_v41, %s7063_s25  ;;  %2177 = vrot.lane.b32.xlu0 %v8494_v27, %s7060_s22 }
 0x464   : > { %2175 = vrot.lane.b32.xlu1 %v8499_v41, %s7060_s22  ;;  %2139 = vrot.lane.b32.xlu0 %v8505_v7, %s7063_s25 }
 0x468   : > { %2383 = vrot.lane.b32.xlu1 %v2368_v18, %s7074_s30  ;;  %2419 = vrot.lane.b32.xlu0 %v8505_v7, %s7062_s24  ;;  %v2493_v18 = vsel %vm11169_vm12, %v8499_v41, 0  ;;  %vm11170_vm12 = vcmask 146432  }
 0x46c   : > { %2423 = vrot.lane.b32.xlu1 %v8499_v41, %s7062_s24  ;;  %2104 = vrot.lane.b32.xlu0 %v2088_v44, %s7073_s26 }
 0x470   : > { %2459 = vrot.lane.b32.xlu1 %v8523_v52, %s7063_s25  ;;  %2050 = vrot.lane.b32.xlu0 %v2035_v31, %s7074_s30 }
 0x474   : > { %2549 = vrot.lane.b32.xlu1 %v2534_v63, %s7072_s16  ;;  %2291 = vrot.lane.b32.xlu0 %v2275_v33, %s7071_s29  ;;  %v2581_v63 = vsel %vm10933_vm5, %v8317_v16, 0  ;;  %v2536_v33 = vsel %vm10935_vm15, %v8523_v52, 0 }
 0x478   : > { %2054 = vrot.lane.b32.xlu1 %v2037_v12, %s7074_s30  ;;  %2239 = vrot.lane.b32.xlu0 %v2224_v28, %s7072_s16 }
 0x47c   : > { %2102 = vrot.lane.b32.xlu1 %v2087_v20, %s7073_s26  ;;  %2340 = vrot.lane.b32.xlu0 %v2325_v30, %s7078_s15  ;;  %v2225_v20 = vsel %vm2219_vm3, %v8300_v26, 0  ;;  %v2089_v30 = vsel %vm10934_vm0, %v8311_v59, 0  ;;  %vm11172_vm0 = vcmask 916480  }
 0x47d   : > { %vm11173_vm15 = vmmov %vm11172_vm0 }
 0x480   : > { %2506 = vrot.lane.b32.xlu0 %v2491_v51, %s7077_s14  ;;  %2179 = vrot.lane.b32.xlu1 %v8311_v59, %s7060_s22 }
 0x484   : > { %2141 = vrot.lane.b32.xlu0 %v8300_v26, %s7063_s25  ;;  %2243 = vrot.lane.b32.xlu1 %v2226_v62, %s7072_s16 }
 0x486   : > { %v8567_v15 = vpop.permute.xlu1 %2449  ;;  %v2172_v14 = vpop.permute.xlu0 %2171 }
 0x488   : > { %2421 = vrot.lane.b32.xlu0 %v8300_v26, %s7062_s24  ;;  %2289 = vrot.lane.b32.xlu1 %v2274_v54, %s7071_s29  ;;  %v2584_v54 = vsel %vm10933_vm5, %v8505_v7, 0  ;;  %vm11171_vm5 = vcmask 130048  }
 0x48a   : > { %v2138_v3 = vpop.permute.xlu1 %2137  ;;  %v2134_v46 = vpop.permute.xlu0 %2133 }
 0x48c   : > { %2457 = vrot.lane.b32.xlu0 %v8311_v59, %s7063_s25  ;;  %2344 = vrot.lane.b32.xlu1 %v2327_v2, %s7078_s15 }
 0x48e   : > { %v2170_v13 = vpop.permute.xlu1 %2169  ;;  %v2414_v6 = vpop.permute.xlu0 %2413 }
 0x48f   : > { %v8582_v25 = vsel %vm11166_vm7, %v2170_v13, %v2172_v14  ;;  %vm11168_vm7 = vcmp.ne.s16.totalorder %v8433_v19, 0 }
 0x490   : > { %2189 = vst [vmem:[#allocation3 + $0x50] sm:$0xff] %v8582_v25  ;;  %2052 = vrot.lane.b32.xlu0 %v2036_v47, %s7074_s30  ;;  %2387 = vrot.lane.b32.xlu1 %v2370_v1, %s7074_s30  ;;  %v2624_v5 = vsel %vm11168_vm7, %v8294_v53, 0  ;;  %vm10946_vm7 = vcmp.ne.s16.totalorder %v8281_v37, 0  ;;  %v2625_v1 = vsel %vm2321_vm4, %v8354_v23, 0 }
 0x491   : > { %v2583_v2 = vsel %vm10946_vm7, %v8315_v40, 0 }
 0x492   : > { %v8593_v8 = vpop.permute.xlu1 %2377  ;;  %v8595_v48 = vpop.permute.xlu0 %2098 }
 0x494   : > { %2637 = vrot.lane.b32.xlu0 %v2624_v5, %s7078_s15  ;;  %2510 = vrot.lane.b32.xlu1 %v2493_v18, %s7077_s14 }
 0x496   : > { %v2418_v44 = vpop.permute.xlu1 %2417  ;;  %v2045_v31 = vpop.permute.xlu0 %2044 }
 0x498   : > { %2593 = vrot.lane.b32.xlu0 %v2581_v63, %s7076_s23  ;;  %2553 = vrot.lane.b32.xlu1 %v2536_v33, %s7072_s16  ;;  %v2623_v33 = vsel %vm2319_vm11, %v8303_v17, 0 }
 0x49a   : > { %v2454_v12 = vpop.permute.xlu1 %2453  ;;  %v8614_v28 = vpop.permute.xlu0 %2285 }
 0x49c   : > { %2241 = vrot.lane.b32.xlu0 %v2225_v20, %s7072_s16  ;;  %2106 = vrot.lane.b32.xlu1 %v2089_v30, %s7073_s26 }
 0x49e   : > { %v8625_v51 = vpop.permute.xlu1 %2543  ;;  %v2234_v62 = vpop.permute.xlu0 %2233 }
 0x4a0   : > { %2599 = vrot.lane.b32.xlu0 %v2584_v54, %s7076_s23  ;;  %2597 = vrot.lane.b32.xlu1 %v2583_v2, %s7076_s23 }
 0x4a2   : > { %v2049_v13 = vpop.permute.xlu1 %2048  ;;  %v2335_v47 = vpop.permute.xlu0 %2334 }
 0x4a4   : > { %2673 = vrot.lane.b32.xlu0 %v8289_v39, %s7059_s20  ;;  %2639 = vrot.lane.b32.xlu1 %v2625_v1, %s7078_s15 }
 0x4a6   : > { %v2097_v5 = vpop.permute.xlu1 %2096  ;;  %v8641_v18 = vpop.permute.xlu0 %2500 }
 0x4a7   : > { %v8645_v63 = vsel %vm11170_vm12, %v2097_v5, %v8595_v48  ;;  %v2276_v5 = vsel %vm10950_vm10, %v8311_v59, 0  ;;  %vm11174_vm12 = vcmask 654336   ;;  %vm10961_vm10 = vcmp.ne.s16.totalorder %v8283_v60, 0 }
 0x4a8   : > { %2709 = vrot.lane.b32.xlu0 %v8294_v53, %s7062_s24  ;;  %2635 = vrot.lane.b32.xlu1 %v2623_v33, %s7078_s15 }
 0x4aa   : > { %v2174_v20 = vpop.permute.xlu1 %2173  ;;  %v2136_v30 = vpop.permute.xlu0 %2135 }
 0x4ab   : > { %v8654_v54 = vsel %vm11171_vm5, %v2172_v14, %v2174_v20  ;;  %v8657_v2 = vsel %vm11172_vm0, %v2134_v46, %v2136_v30  ;;  %v8660_v1 = vsel %vm11173_vm15, %v2136_v30, %v2138_v3  ;;  %vm11175_vm5 = vmmov %vm11174_vm12  ;;  %vm11176_vm0 = vcmp.ne.s16.totalorder %v8433_v19, 0 }
 0x4ac   : > { %2671 = vrot.lane.b32.xlu0 %v8317_v16, %s7059_s20  ;;  %2293 = vrot.lane.b32.xlu1 %v2276_v5, %s7071_s29  ;;  %v2326_v3 = vsel %vm11176_vm0, %v8300_v26, 0  ;;  %v2586_v20 = vsel %vm10946_vm7, %v8499_v41, 0  ;;  %vm11177_vm15 = vcmp.ne.s16.totalorder %v8406_v50, 0  ;;  %vm11192_vm7 = vcmp.ne.s16.totalorder %v8433_v19, 0  ;;  %s9065_s29 = smov 0  }
 0x4ae   : > { %v2238_v33 = vpop.permute.xlu1 %2237  ;;  %v2416_v58 = vpop.permute.xlu0 %2415 }
 0x4af   : > { %v8669_v14 = vsel %vm11174_vm12, %v2414_v6, %v2416_v58  ;;  %v8672_v46 = vsel %vm11175_vm5, %v2416_v58, %v2418_v44  ;;  %v2369_v6 = vsel %vm11177_vm15, %v8311_v59, 0  ;;  %vm11178_vm12 = vcmask 113664  }
 0x4b0   : > { %2342 = vrot.lane.b32.xlu0 %v2326_v3, %s7078_s15  ;;  %2603 = vrot.lane.b32.xlu1 %v2586_v20, %s7076_s23  ;;  %vm11179_vm5 = vcmask 916480   ;;  %v2628_v3 = vsel %vm2321_vm4, %v8523_v52, 0  ;;  %vm11181_vm15 = vcmask 932864  }
 0x4b1   : > { %vm11180_vm0 = vmmov %vm11179_vm5 }
 0x4b2   : > { %v2284_v30 = vpop.permute.xlu1 %2283  ;;  %v2452_v5 = vpop.permute.xlu0 %2451 }
 0x4b3   : > { %v8687_v58 = vsel %vm11178_vm12, %v2284_v30, %v8614_v28  ;;  %v8691_v44 = vsel %vm11179_vm5, %v8567_v15, %v2452_v5  ;;  %v8694_v37 = vsel %vm11180_vm0, %v2452_v5, %v2454_v12  ;;  %vm11182_vm12 = vmmov %vm11181_vm15  ;;  %v2626_v15 = vsel %vm2319_vm11, %v8494_v27, 0 }
 0x4b4   : > { %2385 = vrot.lane.b32.xlu0 %v2369_v6, %s7074_s30  ;;  %2645 = vrot.lane.b32.xlu1 %v2628_v3, %s7078_s15  ;;  %vm11183_vm5 = vcmask 900096  }
 0x4b5   : > { %vm11184_vm0 = vmmov %vm11183_vm5 }
 0x4b6   : > { %v2339_v20 = vpop.permute.xlu1 %2338  ;;  %v2047_v38 = vpop.permute.xlu0 %2046 }
 0x4b7   : > { %v2057_v30 = vsel %vm11181_vm15, %v2045_v31, %v2047_v38  ;;  %v2058_v24 = vsel %vm11182_vm12, %v2047_v38, %v2049_v13  ;;  %vm2346_vm15 = vcmask 670720   ;;  %vm11185_vm12 = vcmp.ne.s16.totalorder %v8456_v57, 0 }
 0x4b8   : > { %2679 = vrot.lane.b32.xlu0 %v8300_v26, %s7059_s20  ;;  %2641 = vrot.lane.b32.xlu1 %v2626_v15, %s7078_s15 }
 0x4b9   : > { %2951 = vmatprep.subr.bf16.mxu0 %v2058_v24 }
 0x4ba   : > { %v2382_v12 = vpop.permute.xlu1 %2381  ;;  %v2236_v5 = vpop.permute.xlu0 %2235  ;;  %2952 = vmatpush1.bf16.msra.mxu0 %v2057_v30 }
 0x4bb   : > { %v8710_v6 = vsel %vm11183_vm5, %v2234_v62, %v2236_v5  ;;  %v8713_v31 = vsel %vm11184_vm0, %v2236_v5, %v2238_v33  ;;  %v2492_v62 = vsel %vm11185_vm12, %v8300_v26, 0  ;;  %vm11186_vm5 = vcmask 932864  }
 0x4bc   : > { %2715 = vrot.lane.b32.xlu0 %v8311_v59, %s7062_s24  ;;  %2675 = vrot.lane.b32.xlu1 %v8315_v40, %s7059_s20  ;;  %vm11187_vm0 = vmmov %vm11186_vm5  ;;  %vm11188_vm12 = vcmask 146432  }
 0x4be   : > { %v2505_v38 = vpop.permute.xlu1 %2504  ;;  %v2337_v13 = vpop.permute.xlu0 %2336 }
 0x4bf   : > { %v8720_v24 = vsel %vm2346_vm15, %v2335_v47, %v2337_v13  ;;  %v8723_v3 = vsel %vm2346_vm15, %v2337_v13, %v2339_v20  ;;  %v2535_v20 = vsel %vm2219_vm3, %v8311_v59, 0 }
 0x4c0   : > { %2508 = vrot.lane.b32.xlu0 %v2492_v62, %s7077_s14  ;;  %2711 = vrot.lane.b32.xlu1 %v8354_v23, %s7062_s24 }
 0x4c2   : > { %v2548_v33 = vpop.permute.xlu1 %2547  ;;  %v2380_v30 = vpop.permute.xlu0 %2379 }
 0x4c3   : > { %v8733_v15 = vsel %vm11186_vm5, %v8593_v8, %v2380_v30  ;;  %v8736_v47 = vsel %vm11187_vm0, %v2380_v30, %v2382_v12  ;;  %v2585_v30 = vsel %vm10949_vm9, %v8300_v26, 0  ;;  %vm11189_vm5 = vcmask 113664  }
 0x4c4   : > { %2551 = vrot.lane.b32.xlu0 %v2535_v20, %s7072_s16  ;;  %2707 = vrot.lane.b32.xlu1 %v8303_v17, %s7062_s24  ;;  %vm11190_vm0 = vcmask 900096   ;;  %vm11196_vm9 = vcmp.ne.s16.totalorder %v8456_v57, 0 }
 0x4c6   : > { %v2101_v5 = vpop.permute.xlu1 %2100  ;;  %v2503_v13 = vpop.permute.xlu0 %2502 }
 0x4c7   : > { %v2110_v62 = vsel %vm11188_vm12, %v8595_v48, %v2101_v5  ;;  %v8748_v8 = vsel %vm11050_vm14, %v8641_v18, %v2503_v13  ;;  %v8751_v12 = vsel %vm11050_vm14, %v2503_v13, %v2505_v38  ;;  %vm11191_vm12 = vmmov %vm11190_vm0  ;;  %v2627_v5 = vsel %vm11192_vm7, %v8311_v59, 0 }
 0x4c8   : > { %2601 = vrot.lane.b32.xlu0 %v2585_v30, %s7076_s23  ;;  %2681 = vrot.lane.b32.xlu1 %v8499_v41, %s7059_s20  ;;  %vm10968_vm7 = vcmp.ne.s16.totalorder %v8285_v49, 0  ;;  %v6868_v30 = vld [vmem:[%s10772_s6 + $0x4] ss:$12 sps:$4 sm:$0xff]  }
 0x4c9   : > { %3057 = vmatprep.subr.bf16.mxu1 %v2110_v62  ;;  %v2747_v62 = vsel %vm10968_vm7, %v8315_v40, 0  ;;  %2983 = vmatprep.mubr.bf16.mxu0 %v6868_v30  ;;  %v2788_v40 = vsel %vm11196_vm9, %v8294_v53, 0 }
 0x4ca   : > { %v2288_v20 = vpop.permute.xlu1 %2287  ;;  %v2546_v45 = vpop.permute.xlu0 %2545  ;;  %3058 = vmatpush1.bf16.msra.mxu1 %v8645_v63  ;;  %3089 = vmatprep.mubr.bf16.mxu1 %v6868_v30  ;;  %v2787_v30 = vsel %vm2485_vm2, %v8303_v17, 0 }
 0x4cb   : > { %v8762_v48 = vsel %vm11189_vm5, %v8614_v28, %v2288_v20  ;;  %v8766_v18 = vsel %vm11190_vm0, %v8625_v51, %v2546_v45  ;;  %v8769_v38 = vsel %vm11191_vm12, %v2546_v45, %v2548_v33  ;;  %v8784_v51 = vsel %vm2346_vm15, %v8283_v60, %v8285_v49 }
 0x4cc   : > { %2643 = vrot.lane.b32.xlu0 %v2627_v5, %s7078_s15  ;;  %2717 = vrot.lane.b32.xlu1 %v8523_v52, %s7062_s24  ;;  %11193 = vst [vmem:[#allocation69_spill] sm:$0xff] %v8784_v51  ;;  %vm10971_vm5 = vcmp.ne.s16.totalorder %v8784_v51, 0  ;;  %vm11194_vm0 = vcmask 130048   ;;  %vm11195_vm12 = vcmp.ne.s16.totalorder %v8277_v10, 0 }
 0x4cd   : > { %v2746_v13 = vsel %vm10971_vm5, %v8289_v39, 0  ;;  %v2789_v39 = vsel %vm11195_vm12, %v8354_v23, 0  ;;  %v2745_v23 = vsel %vm10961_vm10, %v8317_v16, 0  ;;  %vm11197_vm9 = vmmov %vm11195_vm12  ;;  %vm11199_vm12 = vcmask 146432  }
 0x4ce   : > { %v8777_v63 = vpop.permute.xlu1 %2455  ;;  %v8779_v28 = vpop.permute.xlu0 %2595 }
 0x4d0   : > { %2677 = vrot.lane.b32.xlu0 %v8505_v7, %s7059_s20  ;;  %2713 = vrot.lane.b32.xlu1 %v8494_v27, %s7062_s24 }
 0x4d2   : > { %v2144_v45 = vpop.permute.xlu1 %2143  ;;  %v2178_v33 = vpop.permute.xlu0 %2177 }
 0x4d4   : > { %2759 = vrot.lane.b32.xlu0 %v2746_v13, %s7075_s19  ;;  %2761 = vrot.lane.b32.xlu1 %v2747_v62, %s7075_s19 }
 0x4d6   : > { %v2176_v20 = vpop.permute.xlu1 %2175  ;;  %v2140_v5 = vpop.permute.xlu0 %2139 }
 0x4d7   : > { %v8804_v55 = vsel %vm11194_vm0, %v2176_v20, %v2178_v33  ;;  %vm11198_vm0 = vcmp.ne.s16.totalorder %v8456_v57, 0 }
 0x4d8   : > { %2191 = vst [vmem:[#allocation3 + $0x70] sm:$0xff] %v8804_v55  ;;  %2803 = vrot.lane.b32.xlu1 %v2789_v39, %s7077_s14  ;;  %2801 = vrot.lane.b32.xlu0 %v2788_v40, %s7077_s14  ;;  %v2750_v39 = vsel %vm10968_vm7, %v8499_v41, 0  ;;  %v2749_v40 = vsel %vm10971_vm5, %v8300_v26, 0  ;;  %vm11203_vm7 = vcmask 113664   ;;  %vm11204_vm5 = vcmask 654336  }
 0x4da   : > { %v8816_v13 = vpop.permute.xlu1 %2383  ;;  %v2420_v62 = vpop.permute.xlu0 %2419 }
 0x4dc   : > { %2799 = vrot.lane.b32.xlu1 %v2787_v30, %s7077_s14  ;;  %2757 = vrot.lane.b32.xlu0 %v2745_v23, %s7075_s19  ;;  %v2792_v30 = vsel %vm11197_vm9, %v8523_v52, 0  ;;  %v2791_v23 = vsel %vm11198_vm0, %v8311_v59, 0  ;;  %v2748_v52 = vsel %vm10961_vm10, %v8505_v7, 0  ;;  %v529_v59 = vld [vmem:[%s10773_s7 + $0x8] sm:$0xff]  ;;  %v530_v7 = vld [vmem:[%s10773_s7 + $0x10] sm:$0xff]  ;;  %vm11200_vm9 = vcmask 130048  }
 0x4dd   : > { %vm11201_vm0 = vcmask 916480  }
 0x4de   : > { %v2424_v53 = vpop.permute.xlu1 %2423  ;;  %v8826_v20 = vpop.permute.xlu0 %2104  ;;  %vm11202_vm10 = vmmov %vm11201_vm0 }
 0x4e0   : > { %2767 = vrot.lane.b32.xlu1 %v2750_v39, %s7075_s19  ;;  %2765 = vrot.lane.b32.xlu0 %v2749_v40, %s7075_s19  ;;  %v2790_v39 = vsel %vm2485_vm2, %v8494_v27, 0  ;;  %v528_v40 = vld [vmem:[%s10773_s7] sm:$0xff]  ;;  %v531_v27 = vld [vmem:[%s10773_s7 + $0x18] sm:$0xff] }
 0x4e2   : > { %v2460_v17 = vpop.permute.xlu1 %2459  ;;  %v2051_v16 = vpop.permute.xlu0 %2050 }
 0x4e4   : > { %2809 = vrot.lane.b32.xlu1 %v2792_v30, %s7077_s14  ;;  %2807 = vrot.lane.b32.xlu0 %v2791_v23, %s7077_s14 }
 0x4e6   : > { %v8844_v41 = vpop.permute.xlu1 %2549  ;;  %v8846_v26 = vpop.permute.xlu0 %2291 }
 0x4e8   : > { %2805 = vrot.lane.b32.xlu1 %v2790_v39, %s7077_s14  ;;  %2763 = vrot.lane.b32.xlu0 %v2748_v52, %s7075_s19 }
 0x4ea   : > { %v2055_v30 = vpop.permute.xlu1 %2054  ;;  %v2240_v23 = vpop.permute.xlu0 %2239 }
 0x4ec   : > { %2902 = vperm.xlu1 %6855, %v529_v59   ;;  %2897 = vperm.xlu0 %6854, %v528_v40  }
 0x4ee   : > { %v2103_v39 = vpop.permute.xlu1 %2102  ;;  %v8868_v52 = vpop.permute.xlu0 %2340 }
 0x4ef   : > { %v2111_v60 = vsel %vm11199_vm12, %v2103_v39, %v8826_v20  ;;  %vm11205_vm12 = vmmov %vm11204_vm5 }
 0x4f0   : > { %2912 = vperm.xlu1 %6855, %v531_v27   ;;  %2907 = vperm.xlu0 %6854, %v530_v7  }
 0x4f2   : > { %v2180_v49 = vpop.permute.xlu1 %2179  ;;  %v8872_v51 = vpop.permute.xlu0 %2506 }
 0x4f3   : > { %v2184_v59 = vsel %vm11200_vm9, %v2178_v33, %v2180_v49  ;;  %vm11206_vm9 = vmmov %vm11201_vm0 }
 0x4f6   : > { %v2244_v40 = vpop.permute.xlu1 %2243  ;;  %v2142_v57 = vpop.permute.xlu0 %2141 }
 0x4f7   : > { %v2147_v10 = vsel %vm11201_vm0, %v2140_v5, %v2142_v57  ;;  %v2148_v19 = vsel %vm11202_vm10, %v2142_v57, %v2144_v45  ;;  %vm11207_vm10 = vcmask 932864  }
 0x4fa   : > { %v2290_v34 = vpop.permute.xlu1 %2289  ;;  %v2422_v50 = vpop.permute.xlu0 %2421 }
 0x4fb   : > { %v2297_v29 = vsel %vm11203_vm7, %v2290_v34, %v8846_v26  ;;  %v8880_v39 = vsel %vm11204_vm5, %v2420_v62, %v2422_v50  ;;  %v8883_v27 = vsel %vm11205_vm12, %v2422_v50, %v2424_v53  ;;  %vm11208_vm7 = vmmov %vm11207_vm10  ;;  %vm11209_vm5 = vcmask 408576  }
 0x4fc   : > { %vm11210_vm12 = vcmask 146432  }
 0x4fe   : > { %v2345_v7 = vpop.permute.xlu1 %2344  ;;  %v2458_v32 = vpop.permute.xlu0 %2457 }
 0x4ff   : > { %v8887_v49 = vsel %vm11206_vm9, %v8777_v63, %v2458_v32  ;;  %v8890_v33 = vsel %vm11201_vm0, %v2458_v32, %v2460_v17  ;;  %vm11211_vm9 = vcmask 900096  }
 0x500   : > { %vm11212_vm0 = vmmov %vm11211_vm9 }
 0x502   : > { %v2388_v57 = vpop.permute.xlu1 %2387  ;;  %v2053_v45 = vpop.permute.xlu0 %2052 }
 0x503   : > { %v2059_v5 = vsel %vm11207_vm10, %v2051_v16, %v2053_v45  ;;  %v2060_v34 = vsel %vm11208_vm7, %v2053_v45, %v2055_v30  ;;  %vm11213_vm10 = vmmov %vm11209_vm5  ;;  %vm11214_vm7 = vcmask 113664  }
 0x504   : > { %2953 = vmatprep.subr.bf16.mxu0 %v2060_v34 }
 0x505   : > { %2954 = vmatpush1.bf16.msra.mxu0 %v2059_v5 }
 0x506   : > { %v8894_v62 = vpop.permute.xlu1 %2510  ;;  %v2638_v50 = vpop.permute.xlu0 %2637  ;;  %2955 = vmatprep.subr.bf16.mxu0 %v8660_v1 }
 0x509   : > { %2956 = vmatpush1.bf16.msra.mxu0 %v8657_v2 }
 0x50a   : > { %v8898_v63 = vpop.permute.xlu1 %2553  ;;  %v2594_v53 = vpop.permute.xlu0 %2593  ;;  %2957 = vmatprep.subr.bf16.mxu0 %v2148_v19 }
 0x50b   : > { %v8902_v32 = vsel %vm11209_vm5, %v2594_v53, %v8779_v28  ;;  %vm11215_vm5 = vcmask 392192  }
 0x50d   : > { %2958 = vmatpush1.bf16.msra.mxu0 %v2147_v10 }
 0x50e   : > { %v2107_v17 = vpop.permute.xlu1 %2106  ;;  %v2242_v16 = vpop.permute.xlu0 %2241  ;;  %2959 = vmatprep.subr.bf16.mxu0 %v8713_v31 }
 0x50f   : > { %v2112_v30 = vsel %vm11210_vm12, %v8826_v20, %v2107_v17  ;;  %v2247_v1 = vsel %vm11211_vm9, %v2240_v23, %v2242_v16  ;;  %v2248_v2 = vsel %vm11212_vm0, %v2242_v16, %v2244_v40  ;;  %vm11216_vm12 = vcmask 932864   ;;  %vm11218_vm0 = vmmov %vm11215_vm5 }
 0x510   : > { %3059 = vmatprep.subr.bf16.mxu1 %v2112_v30  ;;  %vm11217_vm9 = vmmov %vm11216_vm12 }
 0x511   : > { %2960 = vmatpush1.bf16.msra.mxu0 %v8710_v6  ;;  %3060 = vmatpush1.bf16.msra.mxu1 %v2111_v60 }
 0x512   : > { %v2598_v19 = vpop.permute.xlu1 %2597  ;;  %v8910_v45 = vpop.permute.xlu0 %2599  ;;  %2961 = vmatprep.subr.bf16.mxu0 %v2248_v2  ;;  %3061 = vmatprep.subr.bf16.mxu1 %v8654_v54  ;;  %v6869_v2 = vld [vmem:[%s10772_s6 + $0x1c] ss:$12 sps:$4 sm:$0xff]  }
 0x513   : > { %v2606_v10 = vsel %vm11213_vm10, %v8779_v28, %v2598_v19  ;;  %vm11219_vm10 = vcmask 654336  }
 0x515   : > { %2962 = vmatpush1.bf16.msra.mxu0 %v2247_v1  ;;  %3062 = vmatpush1.bf16.msra.mxu1 %v8582_v25  ;;  %v6866_v1 = vld [vmem:[%s10772_s6] ss:$12 sps:$4 sm:$0xff]  }
 0x516   : > { %v2640_v31 = vpop.permute.xlu1 %2639  ;;  %v2674_v20 = vpop.permute.xlu0 %2673  ;;  %2963 = vmatprep.subr.bf16.mxu0 %v8723_v3  ;;  %3063 = vmatprep.subr.bf16.mxu1 %v2184_v59 }
 0x517   : > { %v2648_v6 = vsel %vm2346_vm15, %v2638_v50, %v2640_v31 }
 0x519   : > { %2964 = vmatpush1.bf16.msra.mxu0 %v8720_v24  ;;  %3064 = vmatpush1.bf16.msra.mxu1 %v8804_v55 }
 0x51a   : > { %v2636_v60 = vpop.permute.xlu1 %2635  ;;  %v2710_v23 = vpop.permute.xlu0 %2709  ;;  %3065 = vmatprep.subr.bf16.mxu1 %v8762_v48 }
 0x51b   : > { %v2647_v54 = vsel %vm2346_vm15, %v2636_v60, %v2638_v50  ;;  %v6871_v60 = vld [vmem:[%s10772_s6 + $0x18] ss:$12 sps:$4 sm:$0xff]  }
 0x51d   : > { %3066 = vmatpush1.bf16.msra.mxu1 %v8687_v58 }
 0x51e   : > { %v2294_v25 = vpop.permute.xlu1 %2293  ;;  %v2672_v28 = vpop.permute.xlu0 %2671 }
 0x51f   : > { %v2298_v3 = vsel %vm11214_vm7, %v8846_v26, %v2294_v25  ;;  %v8926_v59 = vsel %vm11215_vm5, %v2672_v28, %v2674_v20  ;;  %vm11220_vm7 = vmmov %vm11219_vm10  ;;  %vm11221_vm5 = vcmask 900096  }
 0x520   : > { %3067 = vmatprep.subr.bf16.mxu1 %v2298_v3 }
 0x521   : > { %3068 = vmatpush1.bf16.msra.mxu1 %v2297_v29 }
 0x522   : > { %v2604_v24 = vpop.permute.xlu1 %2603  ;;  %v2343_v55 = vpop.permute.xlu0 %2342  ;;  %3069 = vmatprep.subr.bf16.mxu1 %v8736_v47 }
 0x523   : > { %v2349_v48 = vsel %vm2346_vm15, %v8868_v52, %v2343_v55  ;;  %v2350_v40 = vsel %vm2346_vm15, %v2343_v55, %v2345_v7 }
 0x524   : > { %2965 = vmatprep.subr.bf16.mxu0 %v2350_v40 }
 0x525   : > { %2966 = vmatpush1.bf16.msra.mxu0 %v2349_v48  ;;  %3070 = vmatpush1.bf16.msra.mxu1 %v8733_v15 }
 0x526   : > { %v2646_v58 = vpop.permute.xlu1 %2645  ;;  %v2386_v26 = vpop.permute.xlu0 %2385  ;;  %2967 = vmatprep.subr.bf16.mxu0 %v8672_v46 }
 0x527   : > { %v2391_v29 = vsel %vm11216_vm12, %v8816_v13, %v2386_v26  ;;  %v2392_v5 = vsel %vm11217_vm9, %v2386_v26, %v2388_v57  ;;  %vm11222_vm12 = vmmov %vm11221_vm5 }
 0x528   : > { %3071 = vmatprep.subr.bf16.mxu1 %v2392_v5  ;;  %vm11223_vm9 = vmmov %vm11218_vm0 }
 0x529   : > { %2968 = vmatpush1.bf16.msra.mxu0 %v8669_v14  ;;  %3072 = vmatpush1.bf16.msra.mxu1 %v2391_v29 }
 0x52a   : > { %v2642_v47 = vpop.permute.xlu1 %2641  ;;  %v2680_v52 = vpop.permute.xlu0 %2679  ;;  %2969 = vmatprep.subr.bf16.mxu0 %v8883_v27  ;;  %3073 = vmatprep.subr.bf16.mxu1 %v8694_v37 }
 0x52d   : > { %2970 = vmatpush1.bf16.msra.mxu0 %v8880_v39  ;;  %3074 = vmatpush1.bf16.msra.mxu1 %v8691_v44 }
 0x52e   : > { %v2676_v46 = vpop.permute.xlu1 %2675  ;;  %v2716_v15 = vpop.permute.xlu0 %2715  ;;  %2971 = vmatprep.subr.bf16.mxu0 %v8751_v12  ;;  %3075 = vmatprep.subr.bf16.mxu1 %v8890_v33 }
 0x52f   : > { %v2684_v13 = vsel %vm11218_vm0, %v2674_v20, %v2676_v46  ;;  %vm11224_vm0 = vcmask 408576  }
 0x531   : > { %2972 = vmatpush1.bf16.msra.mxu0 %v8748_v8  ;;  %3076 = vmatpush1.bf16.msra.mxu1 %v8887_v49 }
 0x532   : > { %v2712_v14 = vpop.permute.xlu1 %2711  ;;  %v2509_v27 = vpop.permute.xlu0 %2508  ;;  %3077 = vmatprep.subr.bf16.mxu1 %v8769_v38 }
 0x533   : > { %v2720_v37 = vsel %vm11219_vm10, %v2710_v23, %v2712_v14  ;;  %v2515_v44 = vsel %vm11050_vm14, %v8872_v51, %v2509_v27  ;;  %v2516_v12 = vsel %vm11050_vm14, %v2509_v27, %v8894_v62  ;;  %vm11225_vm10 = vmmov %vm11224_vm0 }
 0x534   : > { %2973 = vmatprep.subr.bf16.mxu0 %v2516_v12 }
 0x535   : > { %2974 = vmatpush1.bf16.msra.mxu0 %v2515_v44  ;;  %3078 = vmatpush1.bf16.msra.mxu1 %v8766_v18 }
 0x536   : > { %v2708_v39 = vpop.permute.xlu1 %2707  ;;  %v2552_v8 = vpop.permute.xlu0 %2551  ;;  %2975 = vmatprep.subr.bf16.mxu0 %v2606_v10 }
 0x537   : > { %v2719_v7 = vsel %vm11220_vm7, %v2708_v39, %v2710_v23  ;;  %v2557_v38 = vsel %vm11221_vm5, %v8844_v41, %v2552_v8  ;;  %v2558_v49 = vsel %vm11222_vm12, %v2552_v8, %v8898_v63  ;;  %vm11226_vm5 = vmmov %vm11220_vm7 }
 0x538   : > { %3079 = vmatprep.subr.bf16.mxu1 %v2558_v49  ;;  %vm11227_vm12 = vmmov %vm11223_vm9 }
 0x539   : > { %2976 = vmatpush1.bf16.msra.mxu0 %v8902_v32  ;;  %3080 = vmatpush1.bf16.msra.mxu1 %v2557_v38 }
 0x53a   : > { %v2682_v51 = vpop.permute.xlu1 %2681  ;;  %v2602_v33 = vpop.permute.xlu0 %2601  ;;  %3081 = vmatprep.subr.bf16.mxu1 %v2648_v6 }
 0x53b   : > { %v2686_v18 = vsel %vm11223_vm9, %v2680_v52, %v2682_v51  ;;  %v2607_v57 = vsel %vm11224_vm0, %v8910_v45, %v2602_v33  ;;  %v2608_v34 = vsel %vm11225_vm10, %v2602_v33, %v2604_v24  ;;  %vm11228_vm9 = vcmask 375808  }
 0x53c   : > { %2977 = vmatprep.subr.bf16.mxu0 %v2608_v34  ;;  %vm11229_vm0 = vmmov %vm11228_vm9 }
 0x53d   : > { %2978 = vmatpush1.bf16.msra.mxu0 %v2607_v57  ;;  %3082 = vmatpush1.bf16.msra.mxu1 %v2647_v54  ;;  %vm11230_vm10 = vmmov %vm11229_vm0 }
 0x53e   : > { %v2718_v41 = vpop.permute.xlu1 %2717  ;;  %v2644_v62 = vpop.permute.xlu0 %2643  ;;  %2979 = vmatprep.subr.bf16.mxu0 %v2684_v13 }
 0x53f   : > { %v2722_v50 = vsel %vm11220_vm7, %v2716_v15, %v2718_v41  ;;  %v2649_v63 = vsel %vm2346_vm15, %v2642_v47, %v2644_v62  ;;  %v2650_v53 = vsel %vm2346_vm15, %v2644_v62, %v2646_v58  ;;  %vm11231_vm7 = vmmov %vm11229_vm0  ;;  %v6872_v47 = vld [vmem:[%s10772_s6 + $0x8] ss:$12 sps:$4 sm:$0xff]  }
 0x540   : > { %3083 = vmatprep.subr.bf16.mxu1 %v2650_v53 }
 0x541   : > { %2980 = vmatpush1.bf16.msra.mxu0 %v8926_v59  ;;  %3084 = vmatpush1.bf16.msra.mxu1 %v2649_v63  ;;  %v11236_v63 = vmax.f32 %v7281_v61, 0.0  ;;  %v11243_v61 = vld [vmem:[#allocation5_spill] sm:$0xff] }
 0x542   : > { %v2714_v32 = vpop.permute.xlu1 %2713  ;;  %v2678_v17 = vpop.permute.xlu0 %2677  ;;  %2981 = vmatprep.subr.bf16.mxu0 %v2686_v18  ;;  %3085 = vmatprep.subr.bf16.mxu1 %v2720_v37 }
 0x543   : > { %v2721_v16 = vsel %vm11226_vm5, %v2714_v32, %v2716_v15  ;;  %v2685_v30 = vsel %vm11227_vm12, %v2678_v17, %v2680_v52  ;;  %vm11232_vm5 = vcmask 261120   ;;  %v6873_v52 = vld [vmem:[%s10772_s6 + $0x20] ss:$12 sps:$4 sm:$0xff]   ;;  %v11237_v32 = vmax.f32 %v7294_v11, 0.0  ;;  %v11245_v11 = vld [vmem:[#allocation6_spill] sm:$0xff] }
 0x544   : > { %vm11233_vm12 = vmmov %vm11232_vm5 }
 0x545   : > { %2982 = vmatpush1.bf16.msra.mxu0 %v2685_v30  ;;  %3086 = vmatpush1.bf16.msra.mxu1 %v2719_v7 }
 0x546   : > { %v2762_v19 = vpop.permute.xlu1 %2761  ;;  %v2760_v45 = vpop.permute.xlu0 %2759  ;;  %3087 = vmatprep.subr.bf16.mxu1 %v2722_v50 }
 0x547   : > { %v2770_v10 = vsel %vm11228_vm9, %v2760_v45, %v2762_v19  ;;  %vm11234_vm9 = vmmov %vm11232_vm5  ;;  %v11239_v19 = vld [vmem:[#allocation8_spill] sm:$0xff] }
 0x548   : > { %3004 = vmatprep.subr.bf16.mxu0 %v2770_v10  ;;  %2984 = vmatmul.mubr.bf16.vlgmr.msra.gmra.mrb[16].mxu0 %v6866_v1 }
 0x549   : > { %3088 = vmatpush1.bf16.msra.mxu1 %v2721_v16  ;;  %2993 = vmatprep.mubr.bf16.mxu0 %v6869_v2 }
 0x54a   : > { %v2804_v31 = vpop.permute.xlu1 %2803  ;;  %v2802_v20 = vpop.permute.xlu0 %2801 }
 0x54b   : > { %v2812_v6 = vsel %vm11050_vm14, %v2802_v20, %v2804_v31 }
 0x54c   : > { %3110 = vmatprep.subr.bf16.mxu1 %v2812_v6  ;;  %3090 = vmatmul.mubr.bf16.vlgmr.msra.gmra.mrb[16].mxu1 %v6866_v1  ;;  %v11238_v1 = vmax.f32 %v7285_v0, 0.0 }
 0x54d   : > { %3099 = vmatprep.mubr.bf16.mxu1 %v6869_v2 }
 0x54e   : > { %v2800_v23 = vpop.permute.xlu1 %2799  ;;  %v2758_v54 = vpop.permute.xlu0 %2757 }
 0x54f   : > { %v2811_v25 = vsel %vm11050_vm14, %v2800_v23, %v2802_v20  ;;  %v2769_v28 = vsel %vm11229_vm0, %v2758_v54, %v2760_v45  ;;  %vm11235_vm0 = vmmov %vm11232_vm5  ;;  %v11240_v45 = vmax.f32 %v11239_v19, 0.0  ;;  %v11241_v23 = vld [vmem:[#allocation4_spill] sm:$0xff] }
 0x550   : > { %3005 = vmatpush1.bf16.msra.mxu0 %v2769_v28  ;;  %3111 = vmatpush1.bf16.msra.mxu1 %v2811_v25  ;;  %v11242_v54 = vmax.f32 %v11241_v23, 0.0  ;;  %v11244_v28 = vmax.f32 %v11243_v61, 0.0  ;;  %v11261_v61 = vld [vmem:[#allocation14_spill] sm:$0xff] }
 0x551   : > { %2994 = vmatmul.mubr.bf16.gmra.mrb[20].mxu0 %v6871_v60 }
 0x552   : > { %v2768_v3 = vpop.permute.xlu1 %2767  ;;  %v2766_v59 = vpop.permute.xlu0 %2765  ;;  %3036 = vmatprep.mubr.bf16.mxu0 %v11129_v43 }
 0x553   : > { %v2772_v24 = vsel %vm11230_vm10, %v2766_v59, %v2768_v3 }
 0x554   : > { %3006 = vmatprep.subr.bf16.mxu0 %v2772_v24  ;;  %3100 = vmatmul.mubr.bf16.gmra.mrb[20].mxu1 %v6871_v60 }
 0x555   : > { %3142 = vmatprep.mubr.bf16.mxu1 %v11129_v43 }
 0x556   : > { %v2810_v55 = vpop.permute.xlu1 %2809  ;;  %v2808_v48 = vpop.permute.xlu0 %2807 }
 0x557   : > { %v2814_v40 = vsel %vm11050_vm14, %v2808_v48, %v2810_v55  ;;  %v11247_v55 = vld [vmem:[#allocation7_spill] sm:$0xff] }
 0x558   : > { %3112 = vmatprep.subr.bf16.mxu1 %v2814_v40 }
 0x55a   : > { %v2806_v58 = vpop.permute.xlu1 %2805  ;;  %v2764_v26 = vpop.permute.xlu0 %2763 }
 0x55b   : > { %v2813_v29 = vsel %vm11050_vm14, %v2806_v58, %v2808_v48  ;;  %v2771_v5 = vsel %vm11231_vm7, %v2764_v26, %v2766_v59  ;;  %v11246_v59 = vmax.f32 %v11245_v11, 0.0  ;;  %v11248_v48 = vmax.f32 %v11247_v55, 0.0 }
 0x55c   : > { %3007 = vmatpush1.bf16.msra.mxu0 %v2771_v5  ;;  %3113 = vmatpush1.bf16.msra.mxu1 %v2813_v29 }
 0x55f   : > { %6418 = vmatmul.mubr.msk.bf16.vlgmr.msra.gmra.mrb[16].mxu0 %vm11232_vm5, %v6872_v47  ;;  %6420 = vmatmul.mubr.msk.bf16.vlgmr.msra.gmra.mrb[16].mxu1 %vm11233_vm12, %v6872_v47 }
 0x560   : > { %3046 = vmatprep.mubr.bf16.mxu0 %v11129_v43  ;;  %3152 = vmatprep.mubr.bf16.mxu1 %v11129_v43 }
 0x567   : > { %6419 = vmatmul.mubr.msk.bf16.gmra.mrb[20].mxu0 %vm11234_vm9, %v6873_v52  ;;  %6421 = vmatmul.mubr.msk.bf16.gmra.mrb[20].mxu1 %vm11235_vm0, %v6873_v52 }
 0x56b   : > { %v2903_v46 = vpop.permute.xlu1 %2902  ;;  %v2898_v15 = vpop.permute.xlu0 %2897 }
 0x56f   : > { %v2913_v6 = vpop.permute.xlu1 %2912  ;;  %v2908_v60 = vpop.permute.xlu0 %2907 }
 0x632   : > { %v3038_v13 = vpop.f32.mrb[16].mxu0  ;;  %v3144_v14 = vpop.f32.mrb[16].mxu1 }
 0x633   : > { %v6541_v27 = vadd.f32 %v3038_v13, %v2898_v15  ;;  %v6549_v37 = vadd.f32 %v3144_v14, %v2898_v15  ;;  %v3040_v44 = vpop.f32.mrb[17].mxu0  ;;  %v3146_v12 = vpop.f32.mrb[17].mxu1 }
 0x634   : > { %v6542_v39 = vadd.f32 %v3040_v44, %v2898_v15  ;;  %v6550_v8 = vadd.f32 %v3146_v12, %v2898_v15  ;;  %v3042_v7 = vpop.f32.mrb[18].mxu0  ;;  %v3148_v43 = vpop.f32.mrb[18].mxu1 }
 0x635   : > { %v3163_v38 = vmax.f32 %v6541_v27, 0.0  ;;  %v3165_v49 = vmax.f32 %v6549_v37, 0.0  ;;  %v6543_v51 = vadd.f32 %v3042_v7, %v2903_v46  ;;  %v6551_v33 = vadd.f32 %v3148_v43, %v2903_v46  ;;  %v3044_v18 = vpop.f32.mrb[19].mxu0  ;;  %v3150_v57 = vpop.f32.mrb[19].mxu1 }
 0x636   : > { %v3164_v34 = vmax.f32 %v6542_v39, 0.0  ;;  %v3166_v41 = vmax.f32 %v6550_v8, 0.0  ;;  %v6544_v62 = vadd.f32 %v3044_v18, %v2903_v46  ;;  %v6552_v50 = vadd.f32 %v3150_v57, %v2903_v46  ;;  %v11251_v18 = vld [vmem:[#allocation11_spill] sm:$0xff] }
 0x637   : > { %v3179_v53 = vadd.f32 %v3163_v38, %v11236_v63   ;;  %v3181_v17 = vadd.f32 %v3165_v49, %v11237_v32   ;;  %v3167_v16 = vmax.f32 %v6543_v51, 0.0  ;;  %v3169_v30 = vmax.f32 %v6551_v33, 0.0  ;;  %v11249_v49 = vld [vmem:[#allocation9_spill] sm:$0xff] }
 0x638   : > { %v3180_v2 = vadd.f32 %v3164_v34, %v11238_v1   ;;  %v3182_v10 = vadd.f32 %v3166_v41, %v11240_v45   ;;  %v3168_v31 = vmax.f32 %v6544_v62, 0.0  ;;  %v3170_v20 = vmax.f32 %v6552_v50, 0.0  ;;  %v11253_v50 = vld [vmem:[#allocation10_spill] sm:$0xff] }
 0x639   : > { %v3183_v25 = vadd.f32 %v3167_v16, %v11242_v54   ;;  %v3185_v3 = vadd.f32 %v3169_v30, %v11244_v28   ;;  %v11250_v51 = vmax.f32 %v11249_v49, 0.0  ;;  %v11252_v57 = vmax.f32 %v11251_v18, 0.0  ;;  %v11255_v16 = vld [vmem:[#allocation13_spill] sm:$0xff] }
 0x63a   : > { %v3184_v24 = vadd.f32 %v3168_v31, %v11246_v59   ;;  %v3186_v0 = vadd.f32 %v3170_v20, %v11248_v48   ;;  %v3048_v40 = vpop.f32.mrb[20].mxu0  ;;  %v3154_v58 = vpop.f32.mrb[20].mxu1  ;;  %v11254_v63 = vmax.f32 %v11253_v50, 0.0  ;;  %v11256_v30 = vmax.f32 %v11255_v16, 0.0  ;;  %v11257_v31 = vld [vmem:[#allocation12_spill] sm:$0xff] }
 0x63b   : > { %v6545_v26 = vadd.f32 %v3048_v40, %v2908_v60  ;;  %v6553_v29 = vadd.f32 %v3154_v58, %v2908_v60  ;;  %v3050_v5 = vpop.f32.mrb[21].mxu0  ;;  %v3156_v47 = vpop.f32.mrb[21].mxu1  ;;  %v11258_v20 = vmax.f32 %v11257_v31, 0.0  ;;  %v11262_v28 = vmax.f32 %v11261_v61, 0.0  ;;  %v11263_v59 = vld [vmem:[#allocation16_spill] sm:$0xff] }
 0x63c   : > { %v6546_v52 = vadd.f32 %v3050_v5, %v2908_v60  ;;  %v6554_v46 = vadd.f32 %v3156_v47, %v2908_v60  ;;  %v3052_v15 = vpop.f32.mrb[22].mxu0  ;;  %v3158_v13 = vpop.f32.mrb[22].mxu1  ;;  %v11264_v55 = vmax.f32 %v11263_v59, 0.0  ;;  %11265 = vst [vmem:[#allocation8_spill] sm:$0xff] %v3186_v0 }
 0x63d   : > { %v3171_v14 = vmax.f32 %v6545_v26, 0.0  ;;  %v3173_v27 = vmax.f32 %v6553_v29, 0.0  ;;  %v6547_v37 = vadd.f32 %v3052_v15, %v2913_v6  ;;  %v6555_v44 = vadd.f32 %v3158_v13, %v2913_v6  ;;  %v3054_v12 = vpop.f32.mrb[23].mxu0  ;;  %v3160_v39 = vpop.f32.mrb[23].mxu1 }
 0x63e   : > { %v3172_v8 = vmax.f32 %v6546_v52, 0.0  ;;  %v3174_v7 = vmax.f32 %v6554_v46, 0.0  ;;  %v6548_v43 = vadd.f32 %v3054_v12, %v2913_v6  ;;  %v6556_v38 = vadd.f32 %v3160_v39, %v2913_v6  ;;  %v11259_v6 = vld [vmem:[#allocation15_spill] sm:$0xff] }
 0x63f   : > { %v3187_v33 = vadd.f32 %v3171_v14, %v11250_v51   ;;  %v3189_v34 = vadd.f32 %v3173_v27, %v11252_v57   ;;  %v3175_v41 = vmax.f32 %v6547_v37, 0.0  ;;  %v3177_v62 = vmax.f32 %v6555_v44, 0.0 }
 0x640   : > { %v3188_v32 = vadd.f32 %v3172_v8, %v11254_v63   ;;  %v3190_v1 = vadd.f32 %v3174_v7, %v11256_v30   ;;  %v3176_v19 = vmax.f32 %v6548_v43, 0.0  ;;  %v3178_v45 = vmax.f32 %v6556_v38, 0.0 }
 0x641   : > { %v3191_v60 = vadd.f32 %v3175_v41, %v11258_v20   ;;  %v11260_v23 = vmax.f32 %v11259_v6, 0.0 }
 0x642   : > { %v3192_v11 = vadd.f32 %v3176_v19, %v11262_v28   ;;  %v3194_v48 = vadd.f32 %v3178_v45, %v11264_v55  }
 0x643   : > { %v3193_v54 = vadd.f32 %v3177_v62, %v11260_v23  }
 0x644 LB: >> { %v11270_v9 = vld [vmem:[#allocation48_spill] sm:$0xff]  ;;  %v3263_v40 = vpack.c.bf16 %v7022_v24, %v7038_v2  ;;  %s6524_s16 = sshll.u32 %s7046_s29, 4  ;;  %s6285_s26 = smul.u32 48, %s7046_s29  ;;  %v3262_v26 = vpack.c.bf16 %v7026_v25, %v7042_v53  ;;  %v3264_v29 = vpack.c.bf16 %v7018_v3, %v7034_v17  ;;  %v3267_v2 = vpack.c.bf16 %v6990_v11, %v7006_v32  ;;  %v6994_v60 = vphi %v3191_v60, %v11674_v60   ;;  %v6990_v11 = vphi %v3192_v11, %v11673_v11   ;;  %v6986_v54 = vphi %v3193_v54, %v11672_v54   ;;  %v6982_v48 = vphi %v3194_v48, %v11671_v48   ;;  %s7046_s29 = sphi %s9065_s29, %s3200_s29   ;;  %v7042_v53 = vphi %v3179_v53, %v11686_v53   ;;  %v7038_v2 = vphi %v3180_v2, %v11685_v2   ;;  %v7034_v17 = vphi %v3181_v17, %v11684_v17   ;;  %v7030_v10 = vphi %v3182_v10, %v11683_v10   ;;  %v7026_v25 = vphi %v3183_v25, %v11682_v25   ;;  %v7022_v24 = vphi %v3184_v24, %v11681_v24   ;;  %v7018_v3 = vphi %v3185_v3, %v11680_v3   ;;  %v7010_v33 = vphi %v3187_v33, %v11678_v33   ;;  %v7006_v32 = vphi %v3188_v32, %v11677_v32   ;;  %v7002_v34 = vphi %v3189_v34, %v11676_v34   ;;  %v6998_v1 = vphi %v3190_v1, %v11675_v1  }
 0x645   : >> { %v11271_v0 = vld [vmem:[#allocation8_spill] sm:$0xff]  ;;  %s9091_s27 = scalar_lea.vmem %s10768_s2, %s6524_s16  ;;  %s9094_s19 = sshll.u32 %s7046_s29, 5  ;;  %v3266_v25 = vpack.c.bf16 %v6994_v60, %v7010_v33  ;;  %v3268_v24 = vpack.c.bf16 %v6986_v54, %v7002_v34  ;;  %vm11272_vm10 = vcmask 261120   ;;  %vm11292_vm9 = vcmask 1047936  }
 0x646   : >> { %v3265_v58 = vpack.c.bf16 %v11271_v0, %v7030_v10  ;;  %3306 = vmatprep.subr.bf16.mxu0 %v3263_v40  ;;  %s6283_s13 = scalar_lea.vmem %s10769_s3, %s9094_s19  ;;  %s9103_s20 = scalar_lea.vmem %s10770_s4, %s6285_s26  ;;  %v3269_v10 = vpack.c.bf16 %v6982_v48, %v6998_v1  ;;  %v6876_v53 = vld [vmem:[%s9091_s27] sm:$0xff]   ;;  %v10992_v0 = vmov 0   ;;  %vm11273_vm7 = vmmov %vm11272_vm10  ;;  %v6877_v52 = vld [vmem:[%s9091_s27 + $0x8] sm:$0xff]   ;;  %vm11293_vm0 = vcmask 392192  }
 0x647   : >> { %3307 = vmatpush1.bf16.msra.mxu0 %v3262_v26  ;;  %s9108_s25 = scalar_lea.vmem %s10772_s6, %s6285_s26  ;;  %v6425_v17 = vld [vmem:[%s6283_s13 + $0x20] sm:$0xff]  ;;  %v6427_v3 = vld [vmem:[%s6283_s13 + $0x30] sm:$0xff]  ;;  %3338 = vmatprep.mubr.bf16.mxu0 %v10992_v0  ;;  %v6426_v5 = vld [vmem:[%s6283_s13 + $0x28] sm:$0xff]  ;;  %s7080_s16 = smov 48  }
 0x648   : >> { %3359 = vmatprep.subr.bf16.mxu1 %v3265_v58  ;;  %3308 = vmatprep.subr.bf16.mxu0 %v3267_v2  ;;  %v6428_v47 = vld [vmem:[%s6283_s13 + $0x38] sm:$0xff]  ;;  %vm11274_vm5 = vmmov %vm11273_vm7  ;;  %s10975_s26 = smov 16   ;;  %s7082_s30 = smov 96  }
 0x649   : >> { %3360 = vmatpush1.bf16.msra.mxu1 %v3264_v29  ;;  %3391 = vmatprep.mubr.bf16.mxu1 %v10992_v0  ;;  %vm11275_vm12 = vmmov %vm11274_vm5  ;;  %s10996_s23 = smov 80   ;;  %s11002_s27 = smov 112  }
 0x64a   : >> { %3361 = vmatprep.subr.bf16.mxu1 %v3269_v10  ;;  %6874 = vset.pattern.permute.xlu0 %v10992_v0  ;;  %s7085_s28 = smov 1   ;;  %s7086_s17 = smov 127  }
 0x64b   : >> { %3309 = vmatpush1.bf16.msra.mxu0 %v3266_v25  ;;  %3272 = vperm.xlu0 %6874, %v6425_v17   ;;  %s7087_s13 = smov 97   ;;  %s7088_s14 = smov 113  }
 0x64c   : >> { %6875 = vset.pattern.permute.xlu1 %v10992_v0  ;;  %s7089_s15 = smov 95   ;;  %s7090_s22 = smov 81  }
 0x64d   : >> { %3362 = vmatpush1.bf16.msra.mxu1 %v3268_v24  ;;  %3282 = vperm.xlu1 %6875, %v6427_v3   ;;  %s7091_s24 = smov 79   ;;  %s3200_s29 = sadd.s32 1, %s7046_s29  }
 0x64e   : >> { %6457 = vmatmul.mubr.msk.bf16.vlgmr.msra.gmra.mrb[0].mxu0 %vm11272_vm10, %v6876_v53  ;;  %vm11294_vm10 = vcmask 1047680   ;;  %p10573_p4 = scmp.ge.s32.totalorder %s3200_s29, 4  }
 0x64f   : >> { %3348 = vmatprep.mubr.bf16.mxu0 %v10992_v0  ;;  %3277 = vperm.xlu0 %6874, %v6426_v5  }
 0x650   : >> { %6459 = vmatmul.mubr.msk.bf16.vlgmr.msra.gmra.mrb[0].mxu1 %vm11273_vm7, %v6876_v53  ;;  %vm11295_vm7 = vcmask 130048  }
 0x651   : >> { %3401 = vmatprep.mubr.bf16.mxu1 %v10992_v0  ;;  %3287 = vperm.xlu1 %6875, %v6428_v47  }
 0x656   : >> { %6458 = vmatmul.mubr.msk.bf16.gmra.mrb[4].mxu0 %vm11274_vm5, %v6877_v52  ;;  %vm11296_vm5 = vmmov %vm11292_vm9 }
 0x658   : >> { %6460 = vmatmul.mubr.msk.bf16.gmra.mrb[4].mxu1 %vm11275_vm12, %v6877_v52  ;;  %vm11297_vm12 = vmmov %vm11293_vm0 }
 0x6ca   : >> { %v3273_v46 = vpop.permute.xlu0 %3272 }
 0x6cc   : >> { %v3283_v15 = vpop.permute.xlu1 %3282 }
 0x6ce   : >> { %v3278_v13 = vpop.permute.xlu0 %3277 }
 0x6d0   : >> { %v3288_v45 = vpop.permute.xlu1 %3287 }
 0x721   : >> { %v3340_v14 = vpop.f32.mrb[0].mxu0 }
 0x722   : >> { %v9122_v27 = vadd.f32 %v3340_v14, %v3273_v46  ;;  %v3342_v44 = vpop.f32.mrb[1].mxu0 }
 0x723   : >> { %v3393_v37 = vpop.f32.mrb[0].mxu1  ;;  %v9124_v12 = vadd.f32 %v3342_v44, %v3273_v46  ;;  %v3344_v8 = vpop.f32.mrb[2].mxu0 }
 0x724   : >> { %11276 = vst [vmem:[#allocation8_spill] sm:$0xff] %v9122_v27  ;;  %v3395_v39 = vpop.f32.mrb[1].mxu1  ;;  %v9126_v7 = vadd.f32 %v3344_v8, %v3278_v13  ;;  %v3346_v38 = vpop.f32.mrb[3].mxu0  ;;  %v10991_v18 = vmax.f32 %v9122_v27, 0.0  ;;  %v9133_v57 = vadd.f32 %v3393_v37, %v3273_v46 }
 0x725   : >> { %11277 = vst [vmem:[#allocation70_spill] sm:$0xff] %v9124_v12  ;;  %v3397_v43 = vpop.f32.mrb[2].mxu1  ;;  %v9130_v51 = vadd.f32 %v3346_v38, %v3278_v13  ;;  %v10988_v62 = vmax.f32 %v9124_v12, 0.0  ;;  %v9139_v50 = vadd.f32 %v3395_v39, %v3273_v46 }
 0x726   : >> { %11278 = vst [vmem:[#allocation71_spill] sm:$0xff] %v9126_v7  ;;  %v9128_v49 = vadd.f32 %v3397_v43, %v3278_v13  ;;  %v3399_v33 = vpop.f32.mrb[3].mxu1  ;;  %11281 = vst [vmem:[#allocation74_spill] sm:$0xff] %v9133_v57  ;;  %v10989_v34 = vmax.f32 %v9126_v7, 0.0  ;;  %v10990_v31 = vmax.f32 %v9133_v57, 0.0 }
 0x727   : >> { %11280 = vst [vmem:[#allocation73_spill] sm:$0xff] %v9130_v51  ;;  %v9136_v41 = vadd.f32 %v3399_v33, %v3278_v13  ;;  %11283 = vst [vmem:[#allocation76_spill] sm:$0xff] %v9139_v50  ;;  %v10985_v63 = vmax.f32 %v9130_v51, 0.0  ;;  %v10987_v23 = vmax.f32 %v9139_v50, 0.0 }
 0x728   : >> { %11279 = vst [vmem:[#allocation72_spill] sm:$0xff] %v9128_v49  ;;  %v3428_v32 = vpack.c.bf16 %v10989_v34, %v10991_v18  ;;  %v10986_v16 = vmax.f32 %v9128_v49, 0.0  ;;  %v11350_v34 = vld [vmem:[#allocation32_spill] sm:$0xff] }
 0x729   : >> { %11282 = vst [vmem:[#allocation75_spill] sm:$0xff] %v9136_v41  ;;  %v3429_v30 = vpack.c.bf16 %v10985_v63, %v10988_v62  ;;  %v10984_v1 = vmax.f32 %v9136_v41, 0.0  ;;  %v3350_v19 = vpop.f32.mrb[4].mxu0  ;;  %v6880_v41 = vld [vmem:[%s9103_s20 + $0x34] ss:$12 sps:$4 sm:$0xff]  }
 0x72a   : >> { %3436 = vrot.lane.b32.xlu0 %v3428_v32, %s7080_s16  ;;  %v9154_v20 = vadd.f32 %v3350_v19, %v3283_v15  ;;  %v3352_v60 = vpop.f32.mrb[5].mxu0  ;;  %v3458_v59 = vpack.c.bf16 %v10986_v16, %v10990_v31  ;;  %v11340_v16 = vld [vmem:[#allocation28_spill] sm:$0xff]  ;;  %v11351_v31 = vmov %v11350_v34  ;;  %4340 = vmatprep.mubr.bf16.mxu0 %v6880_v41 }
 0x72b   : >> { %v3403_v6 = vpop.f32.mrb[4].mxu1  ;;  %3438 = vrot.lane.b32.xlu1 %v3429_v30, %s7080_s16  ;;  %v9158_v54 = vadd.f32 %v3352_v60, %v3283_v15  ;;  %v3354_v61 = vpop.f32.mrb[6].mxu0  ;;  %v3459_v29 = vpack.c.bf16 %v10984_v1, %v10987_v23  ;;  %4446 = vmatprep.mubr.bf16.mxu1 %v6880_v41 }
 0x72c   : >> { %11284 = vst [vmem:[#allocation77_spill] sm:$0xff] %v9154_v20  ;;  %v9160_v28 = vadd.f32 %v3403_v6, %v3283_v15  ;;  %v3405_v11 = vpop.f32.mrb[5].mxu1  ;;  %v10983_v55 = vmax.f32 %v9154_v20, 0.0  ;;  %v3356_v48 = vpop.f32.mrb[7].mxu0  ;;  %v9169_v26 = vadd.f32 %v3354_v61, %v3288_v45  ;;  %v11300_v6 = vld [vmem:[#allocation37_spill] sm:$0xff] }
 0x72d   : >> { %11285 = vst [vmem:[#allocation78_spill] sm:$0xff] %v9158_v54  ;;  %v9167_v40 = vadd.f32 %v3405_v11, %v3283_v15  ;;  %v3407_v58 = vpop.f32.mrb[6].mxu1  ;;  %v10981_v2 = vmax.f32 %v9158_v54, 0.0  ;;  %v9176_v10 = vadd.f32 %v3356_v48, %v3288_v45  ;;  %v11302_v11 = vld [vmem:[#allocation23_spill] sm:$0xff] }
 0x72e   : >> { %11286 = vst [vmem:[#allocation79_spill] sm:$0xff] %v9160_v28  ;;  %11288 = vst [vmem:[#allocation81_spill] sm:$0xff] %v9169_v26  ;;  %v9178_v53 = vadd.f32 %v3407_v58, %v3288_v45  ;;  %v3409_v17 = vpop.f32.mrb[7].mxu1  ;;  %3466 = vrot.lane.b32.xlu0 %v3458_v59, %s10975_s26  ;;  %v10982_v25 = vmax.f32 %v9160_v28, 0.0  ;;  %v10979_v24 = vmax.f32 %v9169_v26, 0.0  ;;  %v11303_v59 = vmov %v11302_v11  ;;  %v11305_v58 = vld [vmem:[#allocation17_spill] sm:$0xff] }
 0x72f   : >> { %11287 = vst [vmem:[#allocation80_spill] sm:$0xff] %v9167_v40  ;;  %11289 = vst [vmem:[#allocation82_spill] sm:$0xff] %v9176_v10  ;;  %v9182_v3 = vadd.f32 %v3409_v17, %v3288_v45  ;;  %3468 = vrot.lane.b32.xlu1 %v3459_v29, %s10975_s26  ;;  %v10977_v5 = vmax.f32 %v9176_v10, 0.0  ;;  %v10980_v47 = vmax.f32 %v9167_v40, 0.0  ;;  %v11307_v17 = vld [vmem:[#allocation27_spill] sm:$0xff] }
 0x730   : >> { %11290 = vst [vmem:[#allocation83_spill] sm:$0xff] %v9178_v53  ;;  %v10978_v52 = vmax.f32 %v9178_v53, 0.0  ;;  %v3430_v15 = vpack.c.bf16 %v10979_v24, %v10983_v55 }
 0x731   : >> { %11291 = vst [vmem:[#allocation84_spill] sm:$0xff] %v9182_v3  ;;  %v10974_v46 = vmax.f32 %v9182_v3, 0.0  ;;  %v3431_v13 = vpack.c.bf16 %v10977_v5, %v10981_v2 }
 0x732   : >> { %v3460_v14 = vpack.c.bf16 %v10978_v52, %v10982_v25  ;;  %3440 = vrot.lane.b32.xlu0 %v3430_v15, %s7080_s16  ;;  %v11308_v15 = vmov %v11307_v17  ;;  %v11334_v25 = vld [vmem:[#allocation26_spill] sm:$0xff] }
 0x733   : >> { %v3461_v37 = vpack.c.bf16 %v10974_v46, %v10980_v47  ;;  %3442 = vrot.lane.b32.xlu1 %v3431_v13, %s7080_s16  ;;  %v11335_v55 = vmov %v11334_v25 }
 0x736   : >> { %3470 = vrot.lane.b32.xlu0 %v3460_v14, %s10975_s26  ;;  %v11310_v14 = vld [vmem:[#allocation21_spill] sm:$0xff] }
 0x737   : >> { %3472 = vrot.lane.b32.xlu1 %v3461_v37, %s10975_s26  ;;  %s7092_s26 = smov 111  }
 0x79c   : >> { %v3437_v44 = vpop.permute.xlu0 %3436 }
 0x79d   : >> { %3452 = vst.msk [vmem:[#allocation2] sm:$0xff] %vm11292_vm9, %v3437_v44  ;;  %v3439_v39 = vpop.permute.xlu1 %3438  ;;  %vm11298_vm9 = vmmov %vm11294_vm10 }
 0x79e   : >> { %3454 = vst.msk [vmem:[#allocation2 + $0x10] sm:$0xff] %vm11293_vm0, %v3439_v39  ;;  %vm11299_vm0 = vmmov %vm11295_vm7 }
 0x7a0   : >> { %v3467_v8 = vpop.permute.xlu0 %3466 }
 0x7a1   : >> { %3482 = vst.msk [vmem:[#allocation2 + $0x18] sm:$0xff] %vm11294_vm10, %v3467_v8  ;;  %v3469_v43 = vpop.permute.xlu1 %3468  ;;  %vm11301_vm10 = vcmp.ne.s16.totalorder %v11300_v6, 0 }
 0x7a2   : >> { %3484 = vst.msk [vmem:[#allocation2 + $0x28] sm:$0xff] %vm11295_vm7, %v3469_v43  ;;  %vm11304_vm7 = vcmp.ne.s16.totalorder %v11302_v11, 0 }
 0x7a4   : >> { %v9214_v38 = vld [vmem:[#allocation2] sm:$0xff]  ;;  %v9216_v33 = vpop.permute.xlu0 %3440 }
 0x7a5   : >> { %3584 = vrot.lane.b32.xlu0 %v9214_v38, %s7082_s30  ;;  %v9220_v32 = vpop.permute.xlu1 %3442  ;;  %3455 = vst.msk [vmem:[#allocation2 + $0x30] sm:$0xff] %vm11296_vm5, %v9216_v33  ;;  %v9240_v60 = vld [vmem:[#allocation2 + $0x10] sm:$0xff]  ;;  %vm11306_vm5 = vcmp.ne.s16.totalorder %v11305_v58, 0 }
 0x7a6   : >> { %3457 = vst.msk [vmem:[#allocation2 + $0x40] sm:$0xff] %vm11297_vm12, %v9220_v32  ;;  %v3494_v29 = vsel %vm11306_vm5, %v9214_v38, 0  ;;  %vm11309_vm12 = vcmp.ne.s16.totalorder %v11307_v17, 0 }
 0x7a8   : >> { %v9226_v30 = vld [vmem:[#allocation2 + $0x18] sm:$0xff]  ;;  %v9228_v19 = vpop.permute.xlu0 %3470 }
 0x7a9   : >> { %3796 = vrot.lane.b32.xlu0 %v9214_v38, %s10996_s23  ;;  %3832 = vrot.lane.b32.xlu1 %v9226_v30, %s11002_s27  ;;  %v9234_v45 = vpop.permute.xlu1 %3472  ;;  %3485 = vst.msk [vmem:[#allocation2 + $0x48] sm:$0xff] %vm11298_vm9, %v9228_v19  ;;  %v3537_v61 = vsel %vm11301_vm10, %v9226_v30, 0  ;;  %v3664_v48 = vsel %vm11304_vm7, %v9226_v30, 0  ;;  %v3748_v13 = vsel %vm11309_vm12, %v9226_v30, 0  ;;  %vm11311_vm9 = vcmp.ne.s16.totalorder %v11310_v14, 0 }
 0x7aa   : >> { %3487 = vst.msk [vmem:[#allocation2 + $0x58] sm:$0xff] %vm11299_vm0, %v9234_v45  ;;  %v3622_v37 = vsel %vm11311_vm9, %v9214_v38, 0  ;;  %vm11316_vm7 = vcmask 392192   ;;  %vm11322_vm9 = vcmask 130048  }
 0x7ad   : >> { %3588 = vrot.lane.b32.xlu1 %v9240_v60, %s7082_s30  ;;  %3550 = vrot.lane.b32.xlu0 %v3537_v61, %s7085_s28  ;;  %v11312_v61 = vld [vmem:[#allocation25_spill] sm:$0xff] }
 0x7ae   : >> { %vm11313_vm0 = vcmp.ne.s16.totalorder %v11312_v61, 0 }
 0x7af   : >> { %v3706_v11 = vsel %vm11313_vm0, %v9214_v38, 0 }
 0x7b1   : >> { %3676 = vrot.lane.b32.xlu1 %v3664_v48, %s7086_s17  ;;  %3506 = vrot.lane.b32.xlu0 %v3494_v29, %s7087_s13  ;;  %v9270_v48 = vld [vmem:[#allocation2 + $0x28] sm:$0xff] }
 0x7b2   : >> { %v11314_v29 = vld [vmem:[#allocation29_spill] sm:$0xff] }
 0x7b3   : >> { %vm11315_vm10 = vcmp.ne.s16.totalorder %v11314_v29, 0 }
 0x7b4   : >> { %v3862_v17 = vsel %vm11315_vm10, %v9214_v38, 0 }
 0x7b5   : >> { %3760 = vrot.lane.b32.xlu1 %v3748_v13, %s7088_s14  ;;  %3634 = vrot.lane.b32.xlu0 %v3622_v37, %s7089_s15  ;;  %v9279_v13 = vsel %vm11316_vm7, %v3437_v44, %v3439_v39  ;;  %v11317_v37 = vld [vmem:[#allocation31_spill] sm:$0xff]  ;;  %v9294_v44 = vsel %vm11322_vm9, %v3467_v8, %v3469_v43  ;;  %v11329_v8 = vld [vmem:[#allocation24_spill] sm:$0xff]  ;;  %vm11336_vm9 = vcmp.ne.s16.totalorder %v11334_v25, 0  ;;  %v11344_v25 = vld [vmem:[#allocation30_spill] sm:$0xff] }
 0x7b6   : >> { %vm11318_vm5 = vcmp.ne.s16.totalorder %v11317_v37, 0  ;;  %v11323_v39 = vld [vmem:[#allocation19_spill] sm:$0xff]  ;;  %v3708_v1 = vsel %vm11336_vm9, %v9240_v60, 0  ;;  %v11345_v23 = vmov %v11344_v25  ;;  %vm11352_vm9 = vcmp.ne.s16.totalorder %v11350_v34, 0  ;;  %v9358_v34 = vld [vmem:[#allocation2 + $0x30] sm:$0xff] }
 0x7b7   : >> { %v3904_v46 = vsel %vm11318_vm5, %v9226_v30, 0  ;;  %vm11324_vm0 = vcmp.ne.s16.totalorder %v11323_v39, 0  ;;  %vm11330_vm5 = vcmp.ne.s16.totalorder %v11329_v8, 0  ;;  %v3906_v18 = vsel %vm11352_vm9, %v9270_v48, 0 }
 0x7b8   : >> { %v3666_v43 = vsel %vm11330_vm5, %v9270_v48, 0  ;;  %vm11346_vm5 = vcmp.ne.s16.totalorder %v11344_v25, 0  ;;  %v11356_v25 = vld [vmem:[#allocation44_spill] sm:$0xff]  ;;  %vm11364_vm9 = vcmp.ne.s16.totalorder %v11305_v58, 0 }
 0x7b9   : >> { %3800 = vrot.lane.b32.xlu1 %v9240_v60, %s10996_s23  ;;  %3718 = vrot.lane.b32.xlu0 %v3706_v11, %s7090_s22  ;;  %v11319_v11 = vld [vmem:[#allocation18_spill] sm:$0xff]  ;;  %v11357_v26 = vmov %v11356_v25 }
 0x7ba   : >> { %v11320_v5 = vmov %v11319_v11  ;;  %vm11321_vm12 = vcmp.ne.s16.totalorder %v11319_v11, 0 }
 0x7bb   : >> { %v3496_v52 = vsel %vm11321_vm12, %v9240_v60, 0 }
 0x7bd   : >> { %3836 = vrot.lane.b32.xlu1 %v9270_v48, %s11002_s27  ;;  %3874 = vrot.lane.b32.xlu0 %v3862_v17, %s7091_s24  ;;  %v3536_v17 = vsel %vm11324_vm0, %v9240_v60, 0 }
 0x7c1   : >> { %3916 = vrot.lane.b32.xlu1 %v3904_v46, %s7092_s26  ;;  %3586 = vrot.lane.b32.xlu0 %v9279_v13, %s7082_s30  ;;  %v11325_v46 = vld [vmem:[#allocation22_spill] sm:$0xff] }
 0x7c2   : >> { %vm11326_vm10 = vcmp.ne.s16.totalorder %v11325_v46, 0 }
 0x7c3   : >> { %v3624_v11 = vsel %vm11326_vm10, %v9240_v60, 0  ;;  %vm11341_vm10 = vcmp.ne.s16.totalorder %v11340_v16, 0 }
 0x7c5   : >> { %3510 = vrot.lane.b32.xlu1 %v3496_v52, %s7087_s13  ;;  %3798 = vrot.lane.b32.xlu0 %v9279_v13, %s10996_s23  ;;  %v11327_v52 = vld [vmem:[#allocation38_spill] sm:$0xff] }
 0x7c6   : >> { %vm11328_vm7 = vcmp.ne.s16.totalorder %v11327_v52, 0 }
 0x7c7   : >> { %v3495_v24 = vsel %vm11328_vm7, %v9279_v13, 0 }
 0x7c9   : >> { %3548 = vrot.lane.b32.xlu1 %v3536_v17, %s7085_s28  ;;  %3834 = vrot.lane.b32.xlu0 %v9294_v44, %s11002_s27  ;;  %v11331_v17 = vld [vmem:[#allocation39_spill] sm:$0xff] }
 0x7ca   : >> { %v11332_v47 = vmov %v11331_v17  ;;  %vm11333_vm12 = vcmp.ne.s16.totalorder %v11331_v17, 0  ;;  %v3750_v17 = vsel %vm11341_vm10, %v9270_v48, 0  ;;  %vm11358_vm10 = vcmp.ne.s16.totalorder %v11356_v25, 0 }
 0x7cb   : >> { %v3623_v2 = vsel %vm11333_vm12, %v9279_v13, 0  ;;  %v3497_v25 = vsel %vm11364_vm9, %v9358_v34, 0  ;;  %vm11370_vm9 = vcmask 392192  }
 0x7cd   : >> { %3638 = vrot.lane.b32.xlu1 %v3624_v11, %s7089_s15  ;;  %3508 = vrot.lane.b32.xlu0 %v3495_v24, %s7087_s13  ;;  %v11337_v11 = vld [vmem:[#allocation40_spill] sm:$0xff] }
 0x7ce   : >> { %v11338_v63 = vmov %v11337_v11  ;;  %vm11339_vm0 = vcmp.ne.s16.totalorder %v11337_v11, 0  ;;  %v3864_v11 = vsel %vm11346_vm5, %v9240_v60, 0  ;;  %vm11362_vm5 = vcmp.ne.s16.totalorder %v11300_v6, 0 }
 0x7cf   : >> { %v3665_v24 = vsel %vm11339_vm0, %v9294_v44, 0 }
 0x7d1   : >> { %3680 = vrot.lane.b32.xlu1 %v3666_v43, %s7086_s17  ;;  %3636 = vrot.lane.b32.xlu0 %v3623_v2, %s7089_s15  ;;  %v11342_v43 = vld [vmem:[#allocation41_spill] sm:$0xff] }
 0x7d2   : >> { %vm11343_vm7 = vcmp.ne.s16.totalorder %v11342_v43, 0 }
 0x7d3   : >> { %v3707_v2 = vsel %vm11343_vm7, %v9279_v13, 0 }
 0x7d5   : >> { %3722 = vrot.lane.b32.xlu1 %v3708_v1, %s7090_s22  ;;  %3678 = vrot.lane.b32.xlu0 %v3665_v24, %s7086_s17  ;;  %v11347_v1 = vld [vmem:[#allocation42_spill] sm:$0xff] }
 0x7d6   : >> { %v11348_v62 = vmov %v11347_v1  ;;  %vm11349_vm12 = vcmp.ne.s16.totalorder %v11347_v1, 0  ;;  %v3905_v1 = vsel %vm11358_vm10, %v9294_v44, 0  ;;  %vm11366_vm10 = vcmp.ne.s16.totalorder %v11310_v14, 0 }
 0x7d7   : >> { %v3749_v24 = vsel %vm11349_vm12, %v9294_v44, 0  ;;  %vm11363_vm12 = vcmp.ne.s16.totalorder %v11303_v59, 0 }
 0x7d9   : >> { %3764 = vrot.lane.b32.xlu1 %v3750_v17, %s7088_s14  ;;  %3720 = vrot.lane.b32.xlu0 %v3707_v2, %s7090_s22  ;;  %v11353_v17 = vld [vmem:[#allocation43_spill] sm:$0xff] }
 0x7da   : >> { %v11354_v0 = vmov %v11353_v17  ;;  %vm11355_vm0 = vcmp.ne.s16.totalorder %v11353_v17, 0  ;;  %v9360_v17 = vld [vmem:[#allocation2 + $0x48] sm:$0xff] }
 0x7db   : >> { %v3863_v2 = vsel %vm11355_vm0, %v9279_v13, 0  ;;  %vm11365_vm0 = vcmp.ne.s16.totalorder %v11308_v15, 0 }
 0x7dd   : >> { %3878 = vrot.lane.b32.xlu1 %v3864_v11, %s7091_s24  ;;  %3762 = vrot.lane.b32.xlu0 %v3749_v24, %s7088_s14  ;;  %v11359_v11 = vld [vmem:[#allocation20_spill] sm:$0xff] }
 0x7de   : >> { %v11360_v40 = vmov %v11359_v11  ;;  %vm11361_vm7 = vcmp.ne.s16.totalorder %v11359_v11, 0  ;;  %v9383_v11 = vld [vmem:[#allocation2 + $0x40] sm:$0xff] }
 0x7df   : >> { %v3538_v24 = vsel %vm11361_vm7, %v9294_v44, 0  ;;  %vm11367_vm7 = vcmp.ne.s16.totalorder %v11312_v61, 0 }
 0x7e1   : >> { %3920 = vrot.lane.b32.xlu1 %v3906_v18, %s7092_s26  ;;  %3876 = vrot.lane.b32.xlu0 %v3863_v2, %s7091_s24  ;;  %v3540_v18 = vsel %vm11362_vm5, %v9360_v17, 0  ;;  %v3667_v2 = vsel %vm11363_vm12, %v9360_v17, 0  ;;  %vm11368_vm5 = vcmp.ne.s16.totalorder %v11320_v5, 0  ;;  %vm11369_vm12 = vcmp.ne.s16.totalorder %v11314_v29, 0 }
 0x7e5   : >> { %3918 = vrot.lane.b32.xlu0 %v3905_v1, %s7092_s26  ;;  %3552 = vrot.lane.b32.xlu1 %v3538_v24, %s7085_s28  ;;  %v3751_v1 = vsel %vm11365_vm0, %v9360_v17, 0  ;;  %v3625_v24 = vsel %vm11366_vm10, %v9358_v34, 0  ;;  %vm11371_vm0 = vcmp.ne.s16.totalorder %v11323_v39, 0  ;;  %vm11372_vm10 = vcmask 130048  }
 0x7e9   : >> { %3802 = vrot.lane.b32.xlu0 %v9358_v34, %s10996_s23  ;;  %3590 = vrot.lane.b32.xlu1 %v9358_v34, %s7082_s30 }
 0x7ed   : >> { %3838 = vrot.lane.b32.xlu1 %v9360_v17, %s11002_s27  ;;  %3556 = vrot.lane.b32.xlu0 %v3540_v18, %s7085_s28  ;;  %v9394_v18 = vld [vmem:[#allocation2 + $0x58] sm:$0xff] }
 0x7f1   : >> { %3682 = vrot.lane.b32.xlu1 %v3667_v2, %s7086_s17  ;;  %3512 = vrot.lane.b32.xlu0 %v3497_v25, %s7087_s13  ;;  %v3709_v2 = vsel %vm11367_vm7, %v9358_v34, 0  ;;  %v3499_v25 = vsel %vm11368_vm5, %v9383_v11, 0  ;;  %vm11373_vm7 = vcmp.ne.s16.totalorder %v11325_v46, 0  ;;  %vm11374_vm5 = vcmp.ne.s16.totalorder %v11327_v52, 0 }
 0x7f5   : >> { %3766 = vrot.lane.b32.xlu1 %v3751_v1, %s7088_s14  ;;  %3594 = vrot.lane.b32.xlu0 %v9383_v11, %s7082_s30  ;;  %v3865_v1 = vsel %vm11369_vm12, %v9358_v34, 0  ;;  %vm11375_vm12 = vcmp.ne.s16.totalorder %v11329_v8, 0 }
 0x7f9   : >> { %3806 = vrot.lane.b32.xlu1 %v9383_v11, %s10996_s23  ;;  %3640 = vrot.lane.b32.xlu0 %v3625_v24, %s7089_s15  ;;  %v9413_v24 = vsel %vm11370_vm9, %v9216_v33, %v9220_v32  ;;  %v3627_v33 = vsel %vm11373_vm7, %v9383_v11, 0  ;;  %vm11380_vm7 = vcmp.ne.s16.totalorder %v11340_v16, 0 }
 0x7fa   : >> { %v3498_v32 = vsel %vm11374_vm5, %v9413_v24, 0 }
 0x7fd   : >> { %3842 = vrot.lane.b32.xlu1 %v9394_v18, %s11002_s27  ;;  %3724 = vrot.lane.b32.xlu0 %v3709_v2, %s7090_s22  ;;  %v3539_v2 = vsel %vm11371_vm0, %v9383_v11, 0  ;;  %vm11378_vm0 = vcmp.ne.s16.totalorder %v11335_v55, 0 }
 0x801   : >> { %3516 = vrot.lane.b32.xlu1 %v3499_v25, %s7087_s13  ;;  %3880 = vrot.lane.b32.xlu0 %v3865_v1, %s7091_s24  ;;  %v9424_v25 = vsel %vm11372_vm10, %v9228_v19, %v9234_v45  ;;  %v3669_v19 = vsel %vm11375_vm12, %v9394_v18, 0  ;;  %v11376_v45 = vld [vmem:[#allocation45_spill] sm:$0xff]  ;;  %vm11379_vm10 = vmmov %vm11374_vm5  ;;  %vm11384_vm12 = vcmp.ne.s16.totalorder %v11345_v23, 0 }
 0x802   : >> { %vm11377_vm9 = vcmp.ne.s16.totalorder %v11376_v45, 0 }
 0x803   : >> { %v3947_v1 = vsel %vm11377_vm9, %v9279_v13, 0 }
 0x805   : >> { %3554 = vrot.lane.b32.xlu1 %v3539_v2, %s7085_s28  ;;  %3804 = vrot.lane.b32.xlu0 %v9413_v24, %s10996_s23  ;;  %s7093_s23 = smov 65   ;;  %v3711_v2 = vsel %vm11378_vm0, %v9383_v11, 0  ;;  %vm11386_vm0 = vcmp.ne.s16.totalorder %v11351_v31, 0 }
 0x809   : >> { %3592 = vrot.lane.b32.xlu1 %v9413_v24, %s7082_s30  ;;  %3840 = vrot.lane.b32.xlu0 %v9424_v25, %s11002_s27  ;;  %s7094_s27 = smov 64  }
 0x80d   : >> { %3644 = vrot.lane.b32.xlu1 %v3627_v33, %s7089_s15  ;;  %3514 = vrot.lane.b32.xlu0 %v3498_v32, %s7087_s13  ;;  %v3989_v33 = vsel %vm11379_vm10, %v9294_v44, 0  ;;  %vm11387_vm10 = vcmp.ne.s16.totalorder %v11360_v40, 0  ;;  %v11390_v40 = vld [vmem:[#allocation34_spill] sm:$0xff] }
 0x811   : >> { %3686 = vrot.lane.b32.xlu1 %v3669_v19, %s7086_s17  ;;  %3960 = vrot.lane.b32.xlu0 %v3947_v1, %s7093_s23  ;;  %v3753_v19 = vsel %vm11380_vm7, %v9394_v18, 0  ;;  %v11381_v1 = vld [vmem:[#allocation33_spill] sm:$0xff]  ;;  %vm11388_vm7 = vcmp.ne.s16.totalorder %v11317_v37, 0 }
 0x812   : >> { %vm11383_vm5 = vcmp.ne.s16.totalorder %v11381_v1, 0 }
 0x813   : >> { %v3946_v8 = vsel %vm11383_vm5, %v9214_v38, 0  ;;  %vm11385_vm9 = vmmov %vm11383_vm5  ;;  %vm11389_vm5 = vcmp.ne.s16.totalorder %v11332_v47, 0 }
 0x815   : >> { %3728 = vrot.lane.b32.xlu1 %v3711_v2, %s7090_s22  ;;  %4002 = vrot.lane.b32.xlu0 %v3989_v33, %s7087_s13  ;;  %v3867_v2 = vsel %vm11384_vm12, %v9383_v11, 0  ;;  %v3949_v33 = vsel %vm11385_vm9, %v9358_v34, 0  ;;  %vm11391_vm12 = vcmp.ne.s16.totalorder %v11390_v40, 0  ;;  %vm11392_vm9 = vcmp.ne.s16.totalorder %v11338_v63, 0 }
 0x816   : >> { %v3948_v55 = vsel %vm11391_vm12, %v9240_v60, 0 }
 0x817   : >> { %v9454_v32 = vpop.permute.xlu0 %3584 }
 0x819   : >> { %3770 = vrot.lane.b32.xlu1 %v3753_v19, %s7088_s14  ;;  %3958 = vrot.lane.b32.xlu0 %v3946_v8, %s7093_s23  ;;  %v3909_v8 = vsel %vm11386_vm0, %v9394_v18, 0  ;;  %vm11393_vm0 = vcmp.ne.s16.totalorder %v11320_v5, 0 }
 0x81a   : >> { %v3990_v61 = vsel %vm11393_vm0, %v9270_v48, 0 }
 0x81b   : >> { %v9464_v15 = vpop.permute.xlu1 %3832  ;;  %v9466_v29 = vpop.permute.xlu0 %3796 }
 0x81d   : >> { %3884 = vrot.lane.b32.xlu1 %v3867_v2, %s7091_s24  ;;  %3964 = vrot.lane.b32.xlu0 %v3949_v33, %s7093_s23  ;;  %v3541_v2 = vsel %vm11387_vm10, %v9424_v25, 0  ;;  %vm11394_vm10 = vcmp.ne.s16.totalorder %v11342_v43, 0  ;;  %v3951_v43 = vsel %vm11391_vm12, %v9383_v11, 0  ;;  %vm11401_vm12 = vcmp.ne.s16.totalorder %v11357_v26, 0 }
 0x81f   : >> { %v9476_v1 = vpop.permute.xlu1 %3588  ;;  %v9478_v19 = vpop.permute.xlu0 %3550 }
 0x821   : >> { %3926 = vrot.lane.b32.xlu1 %v3909_v8, %s7092_s26  ;;  %4038 = vrot.lane.b32.xlu0 %v9279_v13, %s7094_s27  ;;  %v3907_v8 = vsel %vm11388_vm7, %v9360_v17, 0  ;;  %vm11395_vm7 = vcmp.ne.s16.totalorder %v11305_v58, 0 }
 0x822   : >> { %v3988_v63 = vsel %vm11395_vm7, %v9226_v30, 0 }
 0x823   : >> { %v9486_v6 = vpop.permute.xlu1 %3676  ;;  %v3507_v16 = vpop.permute.xlu0 %3506 }
 0x825   : >> { %4074 = vrot.lane.b32.xlu0 %v9294_v44, %s7082_s30  ;;  %3558 = vrot.lane.b32.xlu1 %v3541_v2, %s7085_s28  ;;  %v3626_v2 = vsel %vm11389_vm5, %v9413_v24, 0  ;;  %vm11396_vm5 = vcmp.ne.s16.totalorder %v11348_v62, 0  ;;  %s11497_s28 = smov 112  }
 0x827   : >> { %v9494_v33 = vpop.permute.xlu1 %3760  ;;  %v9496_v23 = vpop.permute.xlu0 %3634 }
 0x829   : >> { %4036 = vrot.lane.b32.xlu0 %v9214_v38, %s7094_s27  ;;  %3922 = vrot.lane.b32.xlu1 %v3907_v8, %s7092_s26  ;;  %v3668_v8 = vsel %vm11392_vm9, %v9424_v25, 0  ;;  %vm11397_vm9 = vmmov %vm11393_vm0  ;;  %vm11398_vm0 = vcmask 793600  }
 0x82b   : >> { %v9504_v31 = vpop.permute.xlu1 %3800  ;;  %v9506_v39 = vpop.permute.xlu0 %3718 }
 0x82d   : >> { %3642 = vrot.lane.b32.xlu0 %v3626_v2, %s7089_s15  ;;  %3962 = vrot.lane.b32.xlu1 %v3948_v55, %s7093_s23  ;;  %v3710_v55 = vsel %vm11394_vm10, %v9413_v24, 0  ;;  %vm11399_vm10 = vmmov %vm11398_vm0 }
 0x82f   : >> { %v9516_v37 = vpop.permute.xlu1 %3836  ;;  %v9518_v59 = vpop.permute.xlu0 %3874 }
 0x831   : >> { %3684 = vrot.lane.b32.xlu0 %v3668_v8, %s7086_s17  ;;  %4004 = vrot.lane.b32.xlu1 %v3990_v61, %s7087_s13  ;;  %v3752_v61 = vsel %vm11396_vm5, %v9424_v25, 0  ;;  %vm11400_vm5 = vcmp.ne.s16.totalorder %v11354_v0, 0  ;;  %s11500_s17 = smov 80  }
 0x833   : >> { %v9528_v3 = vpop.permute.xlu1 %3916  ;;  %v9530_v2 = vpop.permute.xlu0 %3586 }
 0x835   : >> { %3726 = vrot.lane.b32.xlu0 %v3710_v55, %s7090_s22  ;;  %4000 = vrot.lane.b32.xlu1 %v3988_v63, %s7087_s13  ;;  %v3993_v63 = vsel %vm11397_vm9, %v9394_v18, 0  ;;  %vm11402_vm9 = vcmp.ne.s16.totalorder %v11376_v45, 0  ;;  %s7099_s22 = smov 110  }
 0x837   : >> { %v3511_v10 = vpop.permute.xlu1 %3510  ;;  %v9540_v8 = vpop.permute.xlu0 %3798 }
 0x839   : >> { %3768 = vrot.lane.b32.xlu0 %v3752_v61, %s7088_s14  ;;  %3968 = vrot.lane.b32.xlu1 %v3951_v43, %s7093_s23  ;;  %v3991_v43 = vsel %vm11395_vm7, %v9360_v17, 0  ;;  %s7097_s14 = smov 18  }
 0x83b   : >> { %v3549_v53 = vpop.permute.xlu1 %3548  ;;  %v9550_v54 = vpop.permute.xlu0 %3834 }
 0x83d   : >> { %4044 = vrot.lane.b32.xlu0 %v9413_v24, %s7094_s27  ;;  %4010 = vrot.lane.b32.xlu1 %v3993_v63, %s7087_s13 }
 0x83f   : >> { %v9558_v55 = vpop.permute.xlu1 %3638  ;;  %v3509_v40 = vpop.permute.xlu0 %3508 }
 0x840   : >> { %v3518_v62 = vsel %vm11398_vm0, %v3507_v16, %v3509_v40  ;;  %v3519_v61 = vsel %vm11399_vm10, %v3509_v40, %v3511_v10  ;;  %v3866_v16 = vsel %vm11400_vm5, %v9413_v24, 0  ;;  %vm11403_vm0 = vcmp.ne.s16.totalorder %v11327_v52, 0 }
 0x841   : >> { %4080 = vrot.lane.b32.xlu0 %v9424_v25, %s7082_s30  ;;  %4006 = vrot.lane.b32.xlu1 %v3991_v43, %s7087_s13  ;;  %v3992_v26 = vsel %vm11403_vm0, %v9424_v25, 0  ;;  %vm11404_vm10 = vcmask 7168  }
 0x842   : >> { %4308 = vmatprep.subr.bf16.mxu0 %v3519_v61  ;;  %v3908_v61 = vsel %vm11401_vm12, %v9424_v25, 0  ;;  %vm11407_vm5 = vmmov %vm11404_vm10  ;;  %vm11408_vm12 = vcmp.ne.s16.totalorder %v11332_v47, 0 }
 0x843   : >> { %v9568_v5 = vpop.permute.xlu1 %3680  ;;  %v9570_v63 = vpop.permute.xlu0 %3636  ;;  %4309 = vmatpush1.bf16.msra.mxu0 %v3518_v62  ;;  %v3560_v51 = vsel %vm11407_vm5, %v3549_v53, %v9478_v19  ;;  %vm11414_vm5 = vcmp.ne.s16.totalorder %v11310_v14, 0 }
 0x845   : >> { %3882 = vrot.lane.b32.xlu0 %v3866_v16, %s7091_s24  ;;  %4040 = vrot.lane.b32.xlu1 %v9240_v60, %s7094_s27  ;;  %v3950_v16 = vsel %vm11402_vm9, %v9413_v24, 0  ;;  %s7100_s24 = smov 82  }
 0x847   : >> { %v9578_v40 = vpop.permute.xlu1 %3722  ;;  %v9580_v10 = vpop.permute.xlu0 %3678 }
 0x849   : >> { %3924 = vrot.lane.b32.xlu0 %v3908_v61, %s7092_s26  ;;  %4076 = vrot.lane.b32.xlu1 %v9270_v48, %s7082_s30  ;;  %s7095_s26 = smov 63  }
 0x84b   : >> { %v9588_v62 = vpop.permute.xlu1 %3764  ;;  %v9590_v43 = vpop.permute.xlu0 %3720 }
 0x84d   : >> { %3966 = vrot.lane.b32.xlu0 %v3950_v16, %s7093_s23  ;;  %4072 = vrot.lane.b32.xlu1 %v9226_v30, %s7082_s30  ;;  %s7103_s23 = smov 46  }
 0x84f   : >> { %v9598_v0 = vpop.permute.xlu1 %3878  ;;  %v9600_v61 = vpop.permute.xlu0 %3762 }
 0x851   : >> { %4008 = vrot.lane.b32.xlu0 %v3992_v26, %s7087_s13  ;;  %4046 = vrot.lane.b32.xlu1 %v9383_v11, %s7094_s27  ;;  %v11405_v26 = vld [vmem:[#allocation46_spill] sm:$0xff]  ;;  %s7096_s13 = smov 114  }
 0x852   : >> { %vm11406_vm7 = vcmp.ne.s16.totalorder %v11405_v26, 0 }
 0x853   : >> { %v9608_v45 = vpop.permute.xlu1 %3920  ;;  %v9610_v58 = vpop.permute.xlu0 %3876  ;;  %v4103_v20 = vsel %vm11406_vm7, %v9279_v13, 0  ;;  %v4145_v13 = vsel %vm11408_vm12, %v9294_v44, 0 }
 0x855   : >> { %4042 = vrot.lane.b32.xlu0 %v9358_v34, %s7094_s27  ;;  %4082 = vrot.lane.b32.xlu1 %v9394_v18, %s7082_s30  ;;  %s6289_s27 = scalar_lea.vmem %s10771_s5, %s9094_s19 }
 0x857   : >> { %v3553_v16 = vpop.permute.xlu1 %3552  ;;  %v9616_v28 = vpop.permute.xlu0 %3918 }
 0x858   : >> { %v3561_v52 = vsel %vm11404_vm10, %v9478_v19, %v3553_v16  ;;  %v11411_v19 = vld [vmem:[#allocation36_spill] sm:$0xff]  ;;  %vm11413_vm10 = vcmp.ne.s16.totalorder %v11325_v46, 0  ;;  %v6440_v46 = vld [vmem:[%s6289_s27 + $0x30] sm:$0xff] }
 0x859   : >> { %4116 = vrot.lane.b32.xlu0 %v4103_v20, %s7095_s26  ;;  %4078 = vrot.lane.b32.xlu1 %v9360_v17, %s7082_s30  ;;  %v11409_v20 = vld [vmem:[#allocation35_spill] sm:$0xff]  ;;  %vm11412_vm0 = vcmp.ne.s16.totalorder %v11411_v19, 0  ;;  %v4146_v41 = vsel %vm11413_vm10, %v9270_v48, 0  ;;  %s7102_s30 = smov 50  }
 0x85a   : >> { %4414 = vmatprep.subr.bf16.mxu1 %v3561_v52  ;;  %vm11410_vm9 = vcmp.ne.s16.totalorder %v11409_v20, 0 }
 0x85b   : >> { %v9629_v49 = vpop.permute.xlu1 %3590  ;;  %v9631_v7 = vpop.permute.xlu0 %3802  ;;  %4415 = vmatpush1.bf16.msra.mxu1 %v3560_v51  ;;  %v4104_v16 = vsel %vm11410_vm9, %v9240_v60, 0  ;;  %v4102_v51 = vsel %vm11412_vm0, %v9214_v38, 0  ;;  %v4144_v38 = vsel %vm11414_vm5, %v9226_v30, 0  ;;  %vm11415_vm12 = vmmov %vm11410_vm9  ;;  %vm11416_vm9 = vcmp.ne.s16.totalorder %v11332_v47, 0 }
 0x85c   : >> { %v4148_v26 = vsel %vm11416_vm9, %v9424_v25, 0  ;;  %vm11417_vm0 = vmmov %vm11413_vm10  ;;  %vm11418_vm10 = vcmp.ne.s16.totalorder %v11411_v19, 0  ;;  %vm11422_vm9 = vcmask 785408  }
 0x85d   : >> { %4158 = vrot.lane.b32.xlu0 %v4145_v13, %s7089_s15  ;;  %4118 = vrot.lane.b32.xlu1 %v4104_v16, %s7095_s26  ;;  %v4106_v16 = vsel %vm11406_vm7, %v9413_v24, 0  ;;  %vm11419_vm7 = vmmov %vm11414_vm5  ;;  %vm11420_vm5 = vcmask 793600  }
 0x85e   : >> { %v4147_v47 = vsel %vm11419_vm7, %v9360_v17, 0 }
 0x85f   : >> { %v9641_v53 = vpop.permute.xlu1 %3838  ;;  %v9643_v52 = vpop.permute.xlu0 %3556 }
 0x861   : >> { %4114 = vrot.lane.b32.xlu0 %v4102_v51, %s7095_s26  ;;  %4160 = vrot.lane.b32.xlu1 %v4146_v41, %s7089_s15  ;;  %v4107_v41 = vsel %vm11415_vm12, %v9383_v11, 0  ;;  %v4149_v11 = vsel %vm11417_vm0, %v9394_v18, 0  ;;  %v6439_v18 = vld [vmem:[%s6289_s27 + $0x28] sm:$0xff]  ;;  %vm11421_vm12 = vmmov %vm11420_vm5 }
 0x862   : >> { %vm11423_vm0 = vmmov %vm11422_vm9 }
 0x863   : >> { %v9653_v60 = vpop.permute.xlu1 %3682  ;;  %v3513_v13 = vpop.permute.xlu0 %3512  ;;  %vm11425_vm7 = vmmov %vm11423_vm0 }
 0x865   : >> { %4122 = vrot.lane.b32.xlu0 %v4106_v16, %s7095_s26  ;;  %4156 = vrot.lane.b32.xlu1 %v4144_v38, %s7089_s15  ;;  %v4105_v38 = vsel %vm11418_vm10, %v9358_v34, 0  ;;  %vm11424_vm10 = vmmov %vm11423_vm0 }
 0x867   : >> { %v9663_v48 = vpop.permute.xlu1 %3766  ;;  %v3595_v51 = vpop.permute.xlu0 %3594 }
 0x869   : >> { %4124 = vrot.lane.b32.xlu1 %v4107_v41, %s7095_s26  ;;  %4164 = vrot.lane.b32.xlu0 %v4148_v26, %s7089_s15  ;;  %v6438_v26 = vld [vmem:[%s6289_s27 + $0x20] sm:$0xff] }
 0x86b   : >> { %v9673_v24 = vpop.permute.xlu1 %3806  ;;  %v9675_v16 = vpop.permute.xlu0 %3640 }
 0x86d   : >> { %4166 = vrot.lane.b32.xlu1 %v4149_v11, %s7089_s15  ;;  %4120 = vrot.lane.b32.xlu0 %v4105_v38, %s7095_s26  ;;  %v6441_v11 = vld [vmem:[%s6289_s27 + $0x38] sm:$0xff]  ;;  %s7101_s26 = smov 78  }
 0x86f   : >> { %v9689_v41 = vpop.permute.xlu1 %3842  ;;  %v9691_v20 = vpop.permute.xlu0 %3724 }
 0x871   : >> { %4162 = vrot.lane.b32.xlu1 %v4147_v47, %s7089_s15  ;;  %4254 = vperm.xlu0 %6874, %v6438_v26   ;;  %s7098_s15 = smov 14  }
 0x873   : >> { %v3517_v19 = vpop.permute.xlu1 %3516  ;;  %v9697_v34 = vpop.permute.xlu0 %3880 }
 0x875   : >> { %4259 = vperm.xlu1 %6875, %v6439_v18   ;;  %4264 = vperm.xlu0 %6874, %v6440_v46   ;;  %v3597_v18 = vsel %vm11422_vm9, %v9530_v2, %v9476_v1  ;;  %vm11428_vm9 = vcmask 7168  }
 0x877   : >> { %v3555_v38 = vpop.permute.xlu1 %3554  ;;  %v9699_v50 = vpop.permute.xlu0 %3804 }
 0x879   : >> { %4269 = vperm.xlu1 %6875, %v6441_v11   ;;  %v3596_v11 = vsel %vm11423_vm0, %v9454_v32, %v9530_v2  ;;  %vm11429_vm0 = vmmov %vm11428_vm9 }
 0x87b   : >> { %v3593_v12 = vpop.permute.xlu1 %3592  ;;  %v9701_v57 = vpop.permute.xlu0 %3840 }
 0x87c   : >> { %v3599_v22 = vsel %vm11424_vm10, %v3593_v12, %v3595_v51 }
 0x87f   : >> { %v3645_v14 = vpop.permute.xlu1 %3644  ;;  %v3515_v27 = vpop.permute.xlu0 %3514 }
 0x880   : >> { %v3520_v47 = vsel %vm11420_vm5, %v3513_v13, %v3515_v27  ;;  %v3521_v26 = vsel %vm11421_vm12, %v3515_v27, %v3517_v19  ;;  %v3598_v27 = vsel %vm11425_vm7, %v9629_v49, %v3593_v12  ;;  %vm11426_vm5 = vcmask 777216  }
 0x881   : >> { %4310 = vmatprep.subr.bf16.mxu0 %v3521_v26  ;;  %v3647_v1 = vsel %vm11426_vm5, %v9570_v63, %v9558_v55  ;;  %vm11427_vm12 = vmmov %vm11426_vm5 }
 0x882   : >> { %4311 = vmatpush1.bf16.msra.mxu0 %v3520_v47  ;;  %v3646_v32 = vsel %vm11427_vm12, %v9496_v23, %v9570_v63  ;;  %vm11430_vm10 = vmmov %vm11426_vm5  ;;  %vm11433_vm12 = vcmask 662528  }
 0x883   : >> { %v3687_v46 = vpop.permute.xlu1 %3686  ;;  %v9708_v4 = vpop.permute.xlu0 %3960  ;;  %4312 = vmatprep.subr.bf16.mxu0 %v3597_v18  ;;  %v3562_v18 = vsel %vm11429_vm0, %v3555_v38, %v9643_v52  ;;  %vm11431_vm7 = vmmov %vm11426_vm5  ;;  %vm11432_vm5 = vcmask 1039360  }
 0x884   : >> { %v3689_v38 = vsel %vm11432_vm5, %v9580_v10, %v9568_v5  ;;  %vm11435_vm0 = vmmov %vm11433_vm12 }
 0x885   : >> { %v3730_v5 = vsel %vm11435_vm0, %v9506_v39, %v9590_v43 }
 0x886   : >> { %4313 = vmatpush1.bf16.msra.mxu0 %v3596_v11 }
 0x887   : >> { %v3729_v13 = vpop.permute.xlu1 %3728  ;;  %v9714_v56 = vpop.permute.xlu0 %4002  ;;  %4314 = vmatprep.subr.bf16.mxu0 %v3599_v22 }
 0x88a   : >> { %4315 = vmatpush1.bf16.msra.mxu0 %v3598_v27 }
 0x88b   : >> { %v3771_v19 = vpop.permute.xlu1 %3770  ;;  %v9721_v47 = vpop.permute.xlu0 %3958  ;;  %4316 = vmatprep.subr.bf16.mxu0 %v3647_v1 }
 0x88e   : >> { %4317 = vmatpush1.bf16.msra.mxu0 %v3646_v32 }
 0x88f   : >> { %v9726_v2 = vpop.permute.xlu1 %3884  ;;  %v9728_v22 = vpop.permute.xlu0 %3964 }
 0x893   : >> { %v9730_v51 = vpop.permute.xlu1 %3926  ;;  %v9732_v12 = vpop.permute.xlu0 %4038 }
 0x897   : >> { %v3559_v49 = vpop.permute.xlu1 %3558  ;;  %v9734_v55 = vpop.permute.xlu0 %4074 }
 0x898   : >> { %v3563_v26 = vsel %vm11428_vm9, %v9643_v52, %v3559_v49  ;;  %vm11434_vm9 = vmmov %vm11432_vm5 }
 0x899   : >> { %4416 = vmatprep.subr.bf16.mxu1 %v3563_v26 }
 0x89a   : >> { %4417 = vmatpush1.bf16.msra.mxu1 %v3562_v18 }
 0x89b   : >> { %v9740_v23 = vpop.permute.xlu1 %3922  ;;  %v9742_v63 = vpop.permute.xlu0 %4036  ;;  %4418 = vmatprep.subr.bf16.mxu1 %v9294_v44  ;;  %v3731_v44 = vsel %vm11433_vm12, %v9590_v43, %v9578_v40  ;;  %vm11439_vm12 = vmmov %vm11434_vm9 }
 0x89e   : >> { %4419 = vmatpush1.bf16.msra.mxu1 %v9226_v30 }
 0x89f   : >> { %v9746_v11 = vpop.permute.xlu1 %3962  ;;  %v3643_v27 = vpop.permute.xlu0 %3642  ;;  %4420 = vmatprep.subr.bf16.mxu1 %v9424_v25 }
 0x8a0   : >> { %v3648_v1 = vsel %vm11430_vm10, %v9675_v16, %v3643_v27  ;;  %v3649_v52 = vsel %vm11431_vm7, %v3643_v27, %v3645_v14  ;;  %v3688_v14 = vsel %vm11434_vm9, %v9486_v6, %v9580_v10  ;;  %vm11436_vm10 = vmmov %vm11432_vm5  ;;  %vm11440_vm9 = vcmask 654336  }
 0x8a1   : >> { %4318 = vmatprep.subr.bf16.mxu0 %v3649_v52  ;;  %vm11437_vm7 = vmmov %vm11435_vm0  ;;  %v3809_v39 = vsel %vm11440_vm9, %v9540_v8, %v9504_v31 }
 0x8a2   : >> { %4319 = vmatpush1.bf16.msra.mxu0 %v3648_v1  ;;  %4421 = vmatpush1.bf16.msra.mxu1 %v9360_v17  ;;  %vm11438_vm5 = vmmov %vm11435_vm0  ;;  %vm11441_vm0 = vcmask 924672  }
 0x8a3   : >> { %v9759_v30 = vpop.permute.xlu1 %4004  ;;  %v3685_v25 = vpop.permute.xlu0 %3684  ;;  %4320 = vmatprep.subr.bf16.mxu0 %v3731_v44  ;;  %4422 = vmatprep.subr.bf16.mxu1 %v3689_v38  ;;  %v3773_v10 = vsel %vm11441_vm0, %v9600_v61, %v9588_v62 }
 0x8a4   : >> { %v3691_v16 = vsel %vm11436_vm10, %v3685_v25, %v3687_v46  ;;  %v3690_v6 = vsel %vm11439_vm12, %v9653_v60, %v3685_v25  ;;  %vm11442_vm10 = vmmov %vm11440_vm9 }
 0x8a5   : >> { %vm11445_vm12 = vmmov %vm11441_vm0 }
 0x8a6   : >> { %4321 = vmatpush1.bf16.msra.mxu0 %v3730_v5  ;;  %4423 = vmatpush1.bf16.msra.mxu1 %v3688_v14  ;;  %v6881_v14 = vld [vmem:[%s9103_s20 + $0x4c] ss:$12 sps:$4 sm:$0xff]  }
 0x8a7   : >> { %v9768_v40 = vpop.permute.xlu1 %4000  ;;  %v3727_v17 = vpop.permute.xlu0 %3726  ;;  %4424 = vmatprep.subr.bf16.mxu1 %v3691_v16 }
 0x8a8   : >> { %v3732_v32 = vsel %vm11437_vm7, %v9691_v20, %v3727_v17  ;;  %v3733_v49 = vsel %vm11438_vm5, %v3727_v17, %v3729_v13  ;;  %v3808_v20 = vsel %vm11442_vm10, %v9466_v29, %v9540_v8  ;;  %vm11443_vm7 = vmmov %vm11441_vm0  ;;  %vm11447_vm10 = vcmask 916480  }
 0x8a9   : >> { %4322 = vmatprep.subr.bf16.mxu0 %v3733_v49  ;;  %v3772_v60 = vsel %vm11443_vm7, %v9494_v33, %v9600_v61  ;;  %vm11444_vm5 = vmmov %vm11440_vm9  ;;  %v3845_v8 = vsel %vm11447_vm10, %v9550_v54, %v9516_v37  ;;  %vm11448_vm7 = vcmask 646144  }
 0x8aa   : >> { %4323 = vmatpush1.bf16.msra.mxu0 %v3732_v32  ;;  %4425 = vmatpush1.bf16.msra.mxu1 %v3690_v6  ;;  %v3811_v31 = vsel %vm11444_vm5, %v9699_v50, %v9673_v24  ;;  %vm11446_vm9 = vmmov %vm11444_vm5  ;;  %v3887_v61 = vsel %vm11448_vm7, %v9610_v58, %v9598_v0 }
 0x8ab   : >> { %v3969_v43 = vpop.permute.xlu1 %3968  ;;  %v3769_v46 = vpop.permute.xlu0 %3768  ;;  %4324 = vmatprep.subr.bf16.mxu0 %v3809_v39  ;;  %4426 = vmatprep.subr.bf16.mxu1 %v3773_v10  ;;  %v3810_v29 = vsel %vm11446_vm9, %v9631_v7, %v9699_v50  ;;  %vm11449_vm5 = vmmov %vm11447_vm10  ;;  %v6883_v10 = vld [vmem:[%s9103_s20 + $0x48] ss:$12 sps:$4 sm:$0xff]  }
 0x8ac   : >> { %v3775_v62 = vsel %vm11445_vm12, %v3769_v46, %v3771_v19  ;;  %v3774_v33 = vsel %vm11441_vm0, %v9663_v48, %v3769_v46  ;;  %v3844_v7 = vsel %vm11449_vm5, %v9464_v15, %v9550_v54  ;;  %vm11450_vm12 = vmmov %vm11448_vm7 }
 0x8ad   : >> { %v3886_v50 = vsel %vm11450_vm12, %v9518_v59, %v9610_v58  ;;  %vm11451_vm9 = vmmov %vm11449_vm5  ;;  %vm11456_vm12 = vcmask 531456  }
 0x8ae   : >> { %4325 = vmatpush1.bf16.msra.mxu0 %v3808_v20  ;;  %4427 = vmatpush1.bf16.msra.mxu1 %v3772_v60  ;;  %v3847_v37 = vsel %vm11451_vm9, %v9701_v57, %v9689_v41  ;;  %vm11452_vm0 = vmmov %vm11448_vm7  ;;  %v3971_v58 = vsel %vm11456_vm12, %v9708_v4, %v9746_v11 }
 0x8af   : >> { %v4011_v13 = vpop.permute.xlu1 %4010  ;;  %v9791_v26 = vpop.permute.xlu0 %4044  ;;  %4326 = vmatprep.subr.bf16.mxu0 %v3811_v31  ;;  %4428 = vmatprep.subr.bf16.mxu1 %v3775_v62  ;;  %vm11453_vm10 = vmmov %vm11452_vm0  ;;  %v11478_v62 = vmov 0  }
 0x8b0   : >> { %vm11454_vm7 = vmmov %vm11449_vm5  ;;  %vm11455_vm5 = vcmask 908288  }
 0x8b1   : >> { %v3846_v54 = vsel %vm11454_vm7, %v9641_v53, %v9701_v57  ;;  %v3929_v59 = vsel %vm11455_vm5, %v9616_v28, %v9608_v45  ;;  %vm11457_vm9 = vmmov %vm11455_vm5 }
 0x8b2   : >> { %4327 = vmatpush1.bf16.msra.mxu0 %v3810_v29  ;;  %4429 = vmatpush1.bf16.msra.mxu1 %v3774_v33 }
 0x8b3   : >> { %v4007_v24 = vpop.permute.xlu1 %4006  ;;  %v9804_v19 = vpop.permute.xlu0 %4080  ;;  %4328 = vmatprep.subr.bf16.mxu0 %v3887_v61  ;;  %4430 = vmatprep.subr.bf16.mxu1 %v3845_v8 }
 0x8b6   : >> { %4329 = vmatpush1.bf16.msra.mxu0 %v3886_v50  ;;  %4431 = vmatpush1.bf16.msra.mxu1 %v3844_v7  ;;  %v6884_v7 = vld [vmem:[%s9103_s20 + $0x38] ss:$12 sps:$4 sm:$0xff]  }
 0x8b7   : >> { %v4041_v0 = vpop.permute.xlu1 %4040  ;;  %v3883_v48 = vpop.permute.xlu0 %3882  ;;  %4432 = vmatprep.subr.bf16.mxu1 %v3847_v37 }
 0x8b8   : >> { %v3888_v18 = vsel %vm11452_vm0, %v9697_v34, %v3883_v48  ;;  %v3889_v27 = vsel %vm11453_vm10, %v3883_v48, %v9726_v2  ;;  %v3928_v34 = vsel %vm11457_vm9, %v9528_v3, %v9616_v28  ;;  %vm11458_vm0 = vmmov %vm11456_vm12 }
 0x8b9   : >> { %4330 = vmatprep.subr.bf16.mxu0 %v3889_v27  ;;  %v3970_v57 = vsel %vm11458_vm0, %v9721_v47, %v9708_v4  ;;  %vm11459_vm10 = vmmov %vm11455_vm5 }
 0x8ba   : >> { %4331 = vmatpush1.bf16.msra.mxu0 %v3888_v18  ;;  %4433 = vmatpush1.bf16.msra.mxu1 %v3846_v54  ;;  %vm11460_vm7 = vmmov %vm11458_vm0 }
 0x8bb   : >> { %v4077_v15 = vpop.permute.xlu1 %4076  ;;  %v3925_v41 = vpop.permute.xlu0 %3924  ;;  %4332 = vmatprep.subr.bf16.mxu0 %v3971_v58  ;;  %4434 = vmatprep.subr.bf16.mxu1 %v3929_v59  ;;  %vm11461_vm5 = vmmov %vm11458_vm0  ;;  %vm11464_vm0 = vcmask 523264  }
 0x8bc   : >> { %v3931_v45 = vsel %vm11459_vm10, %v3925_v41, %v9730_v51  ;;  %vm11462_vm12 = vmmov %vm11457_vm9  ;;  %vm11463_vm9 = vcmask 793600   ;;  %v4049_v3 = vsel %vm11464_vm0, %v9732_v12, %v4041_v0  ;;  %v6885_v0 = vld [vmem:[%s9103_s20 + $0x50] ss:$12 sps:$4 sm:$0xff]  }
 0x8bd   : >> { %v3930_v28 = vsel %vm11462_vm12, %v9740_v23, %v3925_v41  ;;  %v4013_v4 = vsel %vm11463_vm9, %v9714_v56, %v9759_v30  ;;  %vm11465_vm10 = vmmov %vm11464_vm0 }
 0x8be   : >> { %4333 = vmatpush1.bf16.msra.mxu0 %v3970_v57  ;;  %4435 = vmatpush1.bf16.msra.mxu1 %v3928_v34 }
 0x8bf   : >> { %v4073_v53 = vpop.permute.xlu1 %4072  ;;  %v3967_v2 = vpop.permute.xlu0 %3966  ;;  %4436 = vmatprep.subr.bf16.mxu1 %v3931_v45 }
 0x8c0   : >> { %v3972_v11 = vsel %vm11460_vm7, %v9728_v22, %v3967_v2  ;;  %v3973_v1 = vsel %vm11461_vm5, %v3967_v2, %v3969_v43  ;;  %v4048_v22 = vsel %vm11465_vm10, %v9742_v63, %v9732_v12  ;;  %vm11466_vm7 = vmmov %vm11463_vm9  ;;  %v6878_v63 = vld [vmem:[%s9103_s20 + $0x30] ss:$12 sps:$4 sm:$0xff]   ;;  %vm11471_vm10 = vcmask 785408   ;;  %s11487_s20 = smov 16  }
 0x8c1   : >> { %4334 = vmatprep.subr.bf16.mxu0 %v3973_v1  ;;  %v4012_v23 = vsel %vm11466_vm7, %v9768_v40, %v9714_v56  ;;  %vm11467_vm5 = vmmov %vm11464_vm0  ;;  %v4085_v56 = vsel %vm11471_vm10, %v9734_v55, %v4077_v15 }
 0x8c2   : >> { %4335 = vmatpush1.bf16.msra.mxu0 %v3972_v11  ;;  %4437 = vmatpush1.bf16.msra.mxu1 %v3930_v28  ;;  %vm11468_vm12 = vmmov %vm11466_vm7 }
 0x8c3   : >> { %v4047_v47 = vpop.permute.xlu1 %4046  ;;  %v4009_v51 = vpop.permute.xlu0 %4008  ;;  %4336 = vmatprep.subr.bf16.mxu0 %v4049_v3  ;;  %4438 = vmatprep.subr.bf16.mxu1 %v4013_v4  ;;  %vm11469_vm9 = vmmov %vm11464_vm0 }
 0x8c4   : >> { %v4051_v52 = vsel %vm11467_vm5, %v9791_v26, %v4047_v47  ;;  %v4015_v38 = vsel %vm11468_vm12, %v4009_v51, %v4011_v13  ;;  %vm11470_vm0 = vmmov %vm11466_vm7  ;;  %vm11474_vm12 = vcmask 515072  }
 0x8c5   : >> { %v4014_v12 = vsel %vm11470_vm0, %v4007_v24, %v4009_v51  ;;  %vm11472_vm7 = vmmov %vm11471_vm10  ;;  %vm11476_vm0 = vcmask 777216  }
 0x8c6   : >> { %4337 = vmatpush1.bf16.msra.mxu0 %v4048_v22  ;;  %4439 = vmatpush1.bf16.msra.mxu1 %v4012_v23  ;;  %v4084_v40 = vsel %vm11472_vm7, %v4073_v53, %v9734_v55  ;;  %vm11473_vm5 = vmmov %vm11472_vm7 }
 0x8c7   : >> { %v4083_v44 = vpop.permute.xlu1 %4082  ;;  %v4043_v30 = vpop.permute.xlu0 %4042  ;;  %4338 = vmatprep.subr.bf16.mxu0 %v4051_v52  ;;  %4440 = vmatprep.subr.bf16.mxu1 %v4015_v38  ;;  %vm11477_vm10 = vmmov %vm11474_vm12 }
 0x8c8   : >> { %v4050_v25 = vsel %vm11469_vm9, %v4043_v30, %v9791_v26  ;;  %v4087_v17 = vsel %vm11473_vm5, %v9804_v19, %v4083_v44  ;;  %vm11475_vm9 = vmmov %vm11473_vm5 }
 0x8c9   : >> { %vm11479_vm7 = vmmov %vm11476_vm0 }
 0x8ca   : >> { %4339 = vmatpush1.bf16.msra.mxu0 %v4050_v25  ;;  %4441 = vmatpush1.bf16.msra.mxu1 %v4014_v12  ;;  %vm11480_vm5 = vmmov %vm11477_vm10 }
 0x8cb   : >> { %v4079_v5 = vpop.permute.xlu1 %4078  ;;  %v4117_v16 = vpop.permute.xlu0 %4116  ;;  %4442 = vmatprep.subr.bf16.mxu1 %v4085_v56 }
 0x8cc   : >> { %v4086_v39 = vsel %vm11475_vm9, %v4079_v5, %v9804_v19  ;;  %vm11482_vm9 = vmmov %vm11480_vm5 }
 0x8cd   : >> { %4341 = vmatmul.mubr.bf16.vlgmr.msra.gmra.mrb[8].mxu0 %v6878_v63 }
 0x8ce   : >> { %4443 = vmatpush1.bf16.msra.mxu1 %v4084_v40  ;;  %4350 = vmatprep.mubr.bf16.mxu0 %v6881_v14 }
 0x8cf   : >> { %v4119_v32 = vpop.permute.xlu1 %4118  ;;  %v4159_v49 = vpop.permute.xlu0 %4158  ;;  %4444 = vmatprep.subr.bf16.mxu1 %v4087_v17 }
 0x8d0   : >> { %v4127_v6 = vsel %vm11474_vm12, %v4117_v16, %v4119_v32  ;;  %vm11481_vm12 = vmmov %vm11476_vm0 }
 0x8d1   : >> { %4361 = vmatprep.subr.bf16.mxu0 %v4127_v6 }
 0x8d2   : >> { %4445 = vmatpush1.bf16.msra.mxu1 %v4086_v39 }
 0x8d3   : >> { %v4161_v43 = vpop.permute.xlu1 %4160  ;;  %v4115_v46 = vpop.permute.xlu0 %4114 }
 0x8d4   : >> { %v4169_v55 = vsel %vm11476_vm0, %v4159_v49, %v4161_v43  ;;  %v4126_v20 = vsel %vm11477_vm10, %v4115_v46, %v4117_v16  ;;  %vm11483_vm10 = vcmask 261120  }
 0x8d5   : >> { %4362 = vmatpush1.bf16.msra.mxu0 %v4126_v20  ;;  %4467 = vmatprep.subr.bf16.mxu1 %v4169_v55 }
 0x8d6   : >> { %4447 = vmatmul.mubr.bf16.vlgmr.msra.gmra.mrb[8].mxu1 %v6878_v63  ;;  %4351 = vmatmul.mubr.bf16.gmra.mrb[12].mxu0 %v6883_v10 }
 0x8d7   : >> { %v4157_v60 = vpop.permute.xlu1 %4156  ;;  %v4123_v31 = vpop.permute.xlu0 %4122  ;;  %4456 = vmatprep.mubr.bf16.mxu1 %v6881_v14  ;;  %4393 = vmatprep.mubr.bf16.mxu0 %v11478_v62 }
 0x8d8   : >> { %v4168_v13 = vsel %vm11479_vm7, %v4157_v60, %v4159_v49  ;;  %vm11484_vm7 = vmmov %vm11483_vm10 }
 0x8d9   : >> { %4468 = vmatpush1.bf16.msra.mxu1 %v4168_v13 }
 0x8db   : >> { %v4125_v26 = vpop.permute.xlu1 %4124  ;;  %v4165_v29 = vpop.permute.xlu0 %4164 }
 0x8dc   : >> { %v4129_v33 = vsel %vm11480_vm5, %v4123_v31, %v4125_v26  ;;  %vm11485_vm5 = vmmov %vm11484_vm7 }
 0x8dd   : >> { %4363 = vmatprep.subr.bf16.mxu0 %v4129_v33 }
 0x8de   : >> { %4457 = vmatmul.mubr.bf16.gmra.mrb[12].mxu1 %v6883_v10 }
 0x8df   : >> { %v4167_v8 = vpop.permute.xlu1 %4166  ;;  %v4121_v61 = vpop.permute.xlu0 %4120  ;;  %4499 = vmatprep.mubr.bf16.mxu1 %v11478_v62 }
 0x8e0   : >> { %v4171_v24 = vsel %vm11481_vm12, %v4165_v29, %v4167_v8  ;;  %v4128_v19 = vsel %vm11482_vm9, %v4121_v61, %v4123_v31  ;;  %vm11486_vm12 = vmmov %vm11485_vm5  ;;  %vm11488_vm9 = vcmask 1047936  }
 0x8e1   : >> { %4364 = vmatpush1.bf16.msra.mxu0 %v4128_v19  ;;  %4469 = vmatprep.subr.bf16.mxu1 %v4171_v24  ;;  %vm11494_vm14 = vmmov %vm11488_vm9 }
 0x8e3   : >> { %v4163_v50 = vpop.permute.xlu1 %4162 }
 0x8e4   : >> { %v4170_v37 = vsel %vm11476_vm0, %v4163_v50, %v4165_v29  ;;  %6467 = vmatmul.mubr.msk.bf16.vlgmr.msra.gmra.mrb[8].mxu0 %vm11483_vm10, %v6884_v7  ;;  %vm11489_vm0 = vcmask 392192  }
 0x8e5   : >> { %4470 = vmatpush1.bf16.msra.mxu1 %v4170_v37  ;;  %4403 = vmatprep.mubr.bf16.mxu0 %v11478_v62  ;;  %vm11490_vm10 = vmmov %vm11489_vm0 }
 0x8e8   : >> { %6469 = vmatmul.mubr.msk.bf16.vlgmr.msra.gmra.mrb[8].mxu1 %vm11484_vm7, %v6884_v7  ;;  %vm11491_vm7 = vcmask 1047680  }
 0x8e9   : >> { %4509 = vmatprep.mubr.bf16.mxu1 %v11478_v62 }
 0x8ec   : >> { %6468 = vmatmul.mubr.msk.bf16.gmra.mrb[12].mxu0 %vm11485_vm5, %v6885_v0  ;;  %vm11492_vm5 = vcmask 130048  }
 0x8f0   : >> { %6470 = vmatmul.mubr.msk.bf16.gmra.mrb[12].mxu1 %vm11486_vm12, %v6885_v0  ;;  %v4255_v48 = vpop.permute.xlu0 %4254  ;;  %vm11493_vm12 = vmmov %vm11492_vm5 }
 0x8f4   : >> { %v4260_v59 = vpop.permute.xlu1 %4259  ;;  %v4265_v52 = vpop.permute.xlu0 %4264 }
 0x8f8   : >> { %v4270_v14 = vpop.permute.xlu1 %4269 }
 0x9b7   : >> { %v4395_v18 = vpop.f32.mrb[8].mxu0 }
 0x9b8   : >> { %v6589_v27 = vadd.f32 %v4395_v18, %v4255_v48  ;;  %v4397_v54 = vpop.f32.mrb[9].mxu0 }
 0x9b9   : >> { %v6590_v58 = vadd.f32 %v4397_v54, %v4255_v48  ;;  %v4399_v15 = vpop.f32.mrb[10].mxu0 }
 0x9ba   : >> { %v6591_v41 = vadd.f32 %v4399_v15, %v4260_v59  ;;  %v4401_v34 = vpop.f32.mrb[11].mxu0  ;;  %v4520_v53 = vmax.f32 %v6589_v27, 0.0 }
 0x9bb   : >> { %v6592_v57 = vadd.f32 %v4401_v34, %v4260_v59  ;;  %v4501_v45 = vpop.f32.mrb[8].mxu1  ;;  %v4521_v28 = vmax.f32 %v6590_v58, 0.0 }
 0x9bc   : >> { %v4524_v2 = vmax.f32 %v6591_v41, 0.0  ;;  %v6597_v11 = vadd.f32 %v4501_v45, %v4255_v48  ;;  %v4503_v1 = vpop.f32.mrb[9].mxu1 }
 0x9bd   : >> { %v4525_v4 = vmax.f32 %v6592_v57, 0.0  ;;  %v6598_v3 = vadd.f32 %v4503_v1, %v4255_v48  ;;  %v4505_v47 = vpop.f32.mrb[10].mxu1 }
 0x9be   : >> { %v4536_v51 = vpack.c.bf16 %v4524_v2, %v4520_v53  ;;  %v6599_v22 = vadd.f32 %v4505_v47, %v4260_v59  ;;  %v4507_v23 = vpop.f32.mrb[11].mxu1  ;;  %v4522_v25 = vmax.f32 %v6597_v11, 0.0 }
 0x9bf   : >> { %v4537_v38 = vpack.c.bf16 %v4525_v4, %v4521_v28  ;;  %v6600_v44 = vadd.f32 %v4507_v23, %v4260_v59  ;;  %v4405_v30 = vpop.f32.mrb[12].mxu0  ;;  %v4523_v5 = vmax.f32 %v6598_v3, 0.0 }
 0x9c0   : >> { %v4526_v12 = vmax.f32 %v6599_v22, 0.0  ;;  %v6593_v63 = vadd.f32 %v4405_v30, %v4265_v52  ;;  %v4407_v56 = vpop.f32.mrb[13].mxu0  ;;  %4544 = vrot.lane.b32.xlu0 %v4536_v51, %s7080_s16 }
 0x9c1   : >> { %v4527_v16 = vmax.f32 %v6600_v44, 0.0  ;;  %v6594_v40 = vadd.f32 %v4407_v56, %v4265_v52  ;;  %v4409_v17 = vpop.f32.mrb[14].mxu0  ;;  %4546 = vrot.lane.b32.xlu1 %v4537_v38, %s7080_s16 }
 0x9c2   : >> { %v4566_v32 = vpack.c.bf16 %v4526_v12, %v4522_v25  ;;  %v6595_v49 = vadd.f32 %v4409_v17, %v4270_v14  ;;  %v4411_v6 = vpop.f32.mrb[15].mxu0  ;;  %v4528_v46 = vmax.f32 %v6593_v63, 0.0  ;;  %v11503_v12 = vld [vmem:[#allocation49_spill] sm:$0xff] }
 0x9c3   : >> { %v4567_v39 = vpack.c.bf16 %v4527_v16, %v4523_v5  ;;  %v6596_v10 = vadd.f32 %v4411_v6, %v4270_v14  ;;  %v4511_v43 = vpop.f32.mrb[12].mxu1  ;;  %v4529_v31 = vmax.f32 %v6594_v40, 0.0  ;;  %v11506_v5 = vld [vmem:[#allocation52_spill] sm:$0xff]  ;;  %v11508_v40 = vld [vmem:[#allocation53_spill] sm:$0xff] }
 0x9c4   : >> { %v4532_v55 = vmax.f32 %v6595_v49, 0.0  ;;  %v6601_v20 = vadd.f32 %v4511_v43, %v4265_v52  ;;  %v4513_v60 = vpop.f32.mrb[13].mxu1  ;;  %4574 = vrot.lane.b32.xlu0 %v4566_v32, %s11487_s20  ;;  %v11510_v32 = vld [vmem:[#allocation64_spill] sm:$0xff]  ;;  %v5705_v43 = vld [vmem:[%s10775_s9 + $0x8] sm:$0xff] (%p10573_p4) }
 0x9c5   : >> { %v4533_v13 = vmax.f32 %v6596_v10, 0.0  ;;  %v6602_v26 = vadd.f32 %v4513_v60, %v4265_v52  ;;  %v4515_v29 = vpop.f32.mrb[14].mxu1  ;;  %4576 = vrot.lane.b32.xlu1 %v4567_v39, %s11487_s20  ;;  %v11511_v49 = vmov %v11510_v32  ;;  %v6896_v39 = vld [vmem:[%s10774_s8] sm:$0xff] (%p10573_p4)  }
 0x9c6   : >> { %v4538_v33 = vpack.c.bf16 %v4532_v55, %v4528_v46  ;;  %v6603_v8 = vadd.f32 %v4515_v29, %v4270_v14  ;;  %v4517_v61 = vpop.f32.mrb[15].mxu1  ;;  %v4530_v7 = vmax.f32 %v6601_v20, 0.0  ;;  %v11516_v20 = vld [vmem:[#allocation66_spill] sm:$0xff] }
 0x9c7   : >> { %v4539_v24 = vpack.c.bf16 %v4533_v13, %v4529_v31  ;;  %v6604_v19 = vadd.f32 %v4517_v61, %v4270_v14  ;;  %v4531_v37 = vmax.f32 %v6602_v26, 0.0  ;;  %v11518_v31 = vld [vmem:[#allocation58_spill] sm:$0xff] }
 0x9c8   : >> { %v4534_v50 = vmax.f32 %v6603_v8, 0.0  ;;  %4548 = vrot.lane.b32.xlu0 %v4538_v33, %s7080_s16  ;;  %v11521_v33 = vld [vmem:[#allocation67_spill] sm:$0xff] }
 0x9c9   : >> { %v4535_v0 = vmax.f32 %v6604_v19, 0.0  ;;  %4550 = vrot.lane.b32.xlu1 %v4539_v24, %s7080_s16  ;;  %v11522_v8 = vmov %v11521_v33  ;;  %v11524_v24 = vld [vmem:[#allocation50_spill] sm:$0xff] }
 0x9ca   : >> { %v4568_v48 = vpack.c.bf16 %v4534_v50, %v4530_v7  ;;  %v11525_v19 = vmov %v11524_v24 }
 0x9cb   : >> { %v4569_v18 = vpack.c.bf16 %v4535_v0, %v4531_v37  ;;  %v11527_v37 = vld [vmem:[#allocation54_spill] sm:$0xff] }
 0x9cc   : >> { %4578 = vrot.lane.b32.xlu0 %v4568_v48, %s11487_s20  ;;  %v11529_v48 = vld [vmem:[#allocation68_spill] sm:$0xff] }
 0x9cd   : >> { %4580 = vrot.lane.b32.xlu1 %v4569_v18, %s11487_s20  ;;  %v11530_v18 = vmov %v11529_v48 }
 0xa32   : >> { %v4545_v27 = vpop.permute.xlu0 %4544 }
 0xa33   : >> { %4560 = vst.msk [vmem:[#allocation2] sm:$0xff] %vm11488_vm9, %v4545_v27  ;;  %v4547_v54 = vpop.permute.xlu1 %4546  ;;  %vm11495_vm9 = vmmov %vm11489_vm0 }
 0xa34   : >> { %v9897_v59 = vsel %vm11489_vm0, %v4545_v27, %v4547_v54  ;;  %4562 = vst.msk [vmem:[#allocation2 + $0x10] sm:$0xff] %vm11490_vm10, %v4547_v54  ;;  %vm11496_vm10 = vmmov %vm11491_vm7 }
 0xa35   : >> { %v4759_v46 = vsel %vm2219_vm3, %v9897_v59, 0 }
 0xa36   : >> { %v4575_v58 = vpop.permute.xlu0 %4574 }
 0xa37   : >> { %4590 = vst.msk [vmem:[#allocation2 + $0x18] sm:$0xff] %vm11491_vm7, %v4575_v58  ;;  %v4577_v15 = vpop.permute.xlu1 %4576  ;;  %vm11498_vm7 = vmmov %vm11492_vm5 }
 0xa38   : >> { %v9902_v41 = vsel %vm11492_vm5, %v4575_v58, %v4577_v15  ;;  %4592 = vst.msk [vmem:[#allocation2 + $0x28] sm:$0xff] %vm11493_vm12, %v4577_v15  ;;  %vm11504_vm12 = vcmp.ne.s16.totalorder %v11503_v12, 0 }
 0xa39   : >> { %4591 = vst [vmem:[#allocation2 + $0x20] sm:$0xff] %v9902_v41  ;;  %v5041_v50 = vsel %vm2219_vm3, %v9902_v41, 0 }
 0xa3a   : >> { %v4549_v34 = vpop.permute.xlu0 %4548  ;;  %v9925_v4 = vld [vmem:[#allocation2] sm:$0xff] }
 0xa3b   : >> { %4563 = vst.msk [vmem:[#allocation2 + $0x30] sm:$0xff] %vm11494_vm14, %v4549_v34  ;;  %v4551_v57 = vpop.permute.xlu1 %4550  ;;  %vm11499_vm14 = vmmov %vm11492_vm5  ;;  %v9923_v28 = vld [vmem:[#allocation2 + $0x10] sm:$0xff]  ;;  %v4602_v51 = vsel %vm2029_vm1, %v9925_v4, 0  ;;  %v4758_v38 = vsel %vm2218_vm6, %v9925_v4, 0  ;;  %vm11501_vm5 = vcmp.ne.s16.totalorder %v11270_v9, 0  ;;  %v4842_v25 = vsel %vm2319_vm11, %v9925_v4, 0 }
 0xa3c   : >> { %v9908_v45 = vsel %vm11495_vm9, %v4549_v34, %v4551_v57  ;;  %4565 = vst.msk [vmem:[#allocation2 + $0x40] sm:$0xff] %vm11489_vm0, %v4551_v57  ;;  %v4604_v44 = vsel %vm11501_vm5, %v9923_v28, 0  ;;  %v4644_v63 = vsel %vm11504_vm12, %v9923_v28, 0  ;;  %v4998_v14 = vsel %vm2485_vm2, %v9925_v4, 0 }
 0xa3d   : >> { %vm11507_vm9 = vcmp.ne.s16.totalorder %v11506_v5, 0  ;;  %vm11509_vm0 = vcmp.ne.s16.totalorder %v11508_v40, 0  ;;  %v4844_v10 = vsel %vm2321_vm4, %v9923_v28, 0 }
 0xa3e   : >> { %v4579_v53 = vpop.permute.xlu0 %4578  ;;  %v9911_v2 = vld [vmem:[#allocation2 + $0x18] sm:$0xff]  ;;  %v4760_v16 = vsel %vm11507_vm9, %v9923_v28, 0  ;;  %v4800_v17 = vsel %vm11509_vm0, %v9923_v28, 0  ;;  %vm11523_vm0 = vcmp.ne.s16.totalorder %v11521_v33, 0 }
 0xa3f   : >> { %4593 = vst.msk [vmem:[#allocation2 + $0x48] sm:$0xff] %vm11496_vm10, %v4579_v53  ;;  %v4581_v11 = vpop.permute.xlu1 %4580  ;;  %4968 = vrot.lane.b32.xlu1 %v9911_v2, %s11497_s28  ;;  %4730 = vrot.lane.b32.xlu0 %v9911_v2, %s11487_s20  ;;  %v4884_v3 = vsel %vm2029_vm1, %v9911_v2, 0  ;;  %v4645_v47 = vsel %vm2082_vm8, %v9911_v2, 0  ;;  %v9949_v22 = vld [vmem:[#allocation2 + $0x28] sm:$0xff]  ;;  %v4801_v23 = vsel %vm2269_vm13, %v9911_v2, 0  ;;  %v5040_v52 = vsel %vm2218_vm6, %v9911_v2, 0 }
 0xa40   : >> { %v9919_v1 = vsel %vm11498_vm7, %v4579_v53, %v4581_v11  ;;  %4595 = vst.msk [vmem:[#allocation2 + $0x58] sm:$0xff] %vm11499_vm14, %v4581_v11  ;;  %vm11512_vm10 = vcmp.ne.s16.totalorder %v11510_v32, 0  ;;  %vm11515_vm7 = vmmov %vm11501_vm5  ;;  %vm11517_vm14 = vcmp.ne.s16.totalorder %v11516_v20, 0  ;;  %vm11519_vm5 = vcmp.ne.s16.totalorder %v11518_v31, 0 }
 0xa41   : >> { %4594 = vst [vmem:[#allocation2 + $0x50] sm:$0xff] %v9919_v1  ;;  %v4603_v6 = vsel %vm11512_vm10, %v9897_v59, 0  ;;  %v4886_v55 = vsel %vm11515_vm7, %v9949_v22, 0  ;;  %v4843_v60 = vsel %vm11517_vm14, %v9897_v59, 0  ;;  %v5000_v13 = vsel %vm11519_vm5, %v9923_v28, 0  ;;  %vm11520_vm12 = vmmov %vm11512_vm10 }
 0xa42   : >> { %v4885_v26 = vsel %vm11520_vm12, %v9902_v41, 0  ;;  %v5042_v29 = vsel %vm11507_vm9, %v9949_v22, 0  ;;  %v4999_v61 = vsel %vm11523_vm0, %v9897_v59, 0  ;;  %vm11526_vm10 = vcmp.ne.s16.totalorder %v11524_v24, 0  ;;  %v10059_v15 = vld [vmem:[#allocation2 + $0x30] sm:$0xff] }
 0xa43   : >> { %4696 = vrot.lane.b32.xlu1 %v9923_v28, %s11497_s28  ;;  %4692 = vrot.lane.b32.xlu0 %v9925_v4, %s11497_s28  ;;  %v4646_v7 = vsel %vm11526_vm10, %v9902_v41, 0  ;;  %vm11528_vm7 = vcmp.ne.s16.totalorder %v11527_v37, 0  ;;  %vm11531_vm14 = vcmp.ne.s16.totalorder %v11529_v48, 0  ;;  %v10053_v58 = vld [vmem:[#allocation2 + $0x40] sm:$0xff]  ;;  %v4605_v11 = vsel %vm2029_vm1, %v10059_v15, 0 }
 0xa44   : >> { %v4802_v0 = vsel %vm11528_vm7, %v9902_v41, 0  ;;  %v5083_v27 = vsel %vm11531_vm14, %v9897_v59, 0  ;;  %vm11532_vm5 = vcmp.ne.s16.totalorder %v11270_v9, 0  ;;  %vm11533_vm12 = vcmp.ne.s16.totalorder %v11503_v12, 0 }
 0xa45   : >> { %vm11534_vm0 = vcmp.ne.s16.totalorder %v11508_v40, 0  ;;  %vm11535_vm10 = vcmask 130048   ;;  %vm11536_vm7 = vcmp.ne.s16.totalorder %v11511_v49, 0  ;;  %vm11537_vm14 = vmmov %vm11532_vm5  ;;  %v5704_v40 = vld [vmem:[%s10775_s9] sm:$0xff] (%p10573_p4) }
 0xa46   : >> { %v10048_v54 = vld [vmem:[#allocation2 + $0x48] sm:$0xff] }
 0xa47   : >> { %4728 = vrot.lane.b32.xlu1 %v9923_v28, %s11487_s20  ;;  %4932 = vrot.lane.b32.xlu0 %v9925_v4, %s11500_s17  ;;  %v4887_v34 = vsel %vm2029_vm1, %v10048_v54, 0  ;;  %v4648_v57 = vsel %vm2082_vm8, %v10048_v54, 0  ;;  %v10077_v53 = vld [vmem:[#allocation2 + $0x58] sm:$0xff] }
 0xa4b   : >> { %4896 = vrot.lane.b32.xlu1 %v4884_v3, %s7096_s13  ;;  %4658 = vrot.lane.b32.xlu0 %v4645_v47, %s7097_s14  ;;  %v5043_v3 = vsel %vm2218_vm6, %v10048_v54, 0  ;;  %v4804_v47 = vsel %vm2269_vm13, %v10048_v54, 0 }
 0xa4f   : >> { %4936 = vrot.lane.b32.xlu1 %v9923_v28, %s11500_s17  ;;  %4614 = vrot.lane.b32.xlu0 %v4602_v51, %s7096_s13  ;;  %v4607_v51 = vsel %vm11532_vm5, %v10053_v58, 0  ;;  %vm11538_vm5 = vcmp.ne.s16.totalorder %v11516_v20, 0 }
 0xa50   : >> { %v5125_v33 = vsel %vm11538_vm5, %v9902_v41, 0  ;;  %vm11547_vm5 = vcmask 146432  }
 0xa53   : >> { %4972 = vrot.lane.b32.xlu1 %v9949_v22, %s11497_s28  ;;  %4814 = vrot.lane.b32.xlu0 %v4801_v23, %s7098_s15  ;;  %v4761_v23 = vsel %vm2218_vm6, %v10059_v15, 0 }
 0xa57   : >> { %5052 = vrot.lane.b32.xlu1 %v5040_v52, %s7099_s22  ;;  %4770 = vrot.lane.b32.xlu0 %v4758_v38, %s7099_s22  ;;  %v4647_v52 = vsel %vm11533_vm12, %v10053_v58, 0  ;;  %v4845_v38 = vsel %vm2319_vm11, %v10059_v15, 0  ;;  %vm11539_vm12 = vcmp.ne.s16.totalorder %v11518_v31, 0 }
 0xa5b   : >> { %4618 = vrot.lane.b32.xlu1 %v4604_v44, %s7096_s13  ;;  %4854 = vrot.lane.b32.xlu0 %v4842_v25, %s7100_s24  ;;  %v5001_v44 = vsel %vm2485_vm2, %v10059_v15, 0  ;;  %v4763_v25 = vsel %vm11507_vm9, %v10053_v58, 0 }
 0xa5f   : >> { %4656 = vrot.lane.b32.xlu1 %v4644_v63, %s7097_s14  ;;  %5010 = vrot.lane.b32.xlu0 %v4998_v14, %s7101_s26 }
 0xa63   : >> { %4694 = vrot.lane.b32.xlu0 %v9897_v59, %s11497_s28  ;;  %4732 = vrot.lane.b32.xlu1 %v9902_v41, %s11487_s20 }
 0xa67   : >> { %4934 = vrot.lane.b32.xlu0 %v9897_v59, %s11500_s17  ;;  %4774 = vrot.lane.b32.xlu1 %v4760_v16, %s7099_s22  ;;  %v4803_v16 = vsel %vm11534_vm0, %v10053_v58, 0  ;;  %vm11542_vm0 = vcmp.ne.s16.totalorder %v11506_v5, 0  ;;  %v6888_v5 = vld [vmem:[%s9108_s25 + $0x34] ss:$12 sps:$4 sm:$0xff]  }
 0xa68   : >> { %v5045_v48 = vsel %vm11542_vm0, %v10077_v53, 0  ;;  %5476 = vmatprep.mubr.bf16.mxu0 %v6888_v5  ;;  %5582 = vmatprep.mubr.bf16.mxu1 %v6888_v5 }
 0xa6b   : >> { %4970 = vrot.lane.b32.xlu0 %v9902_v41, %s11497_s28  ;;  %4812 = vrot.lane.b32.xlu1 %v4800_v17, %s7098_s15 }
 0xa6f   : >> { %4616 = vrot.lane.b32.xlu0 %v4603_v6, %s7096_s13  ;;  %4858 = vrot.lane.b32.xlu1 %v4844_v10, %s7100_s24  ;;  %v4847_v6 = vsel %vm2321_vm4, %v10053_v58, 0 }
 0xa73   : >> { %4772 = vrot.lane.b32.xlu0 %v4759_v46, %s7099_s22  ;;  %4900 = vrot.lane.b32.xlu1 %v4886_v55, %s7096_s13 }
 0xa77   : >> { %4856 = vrot.lane.b32.xlu0 %v4843_v60, %s7100_s24  ;;  %5014 = vrot.lane.b32.xlu1 %v5000_v13, %s7101_s26  ;;  %v4606_v60 = vsel %vm11536_vm7, %v9908_v45, 0  ;;  %v4889_v13 = vsel %vm11537_vm14, %v10077_v53, 0 }
 0xa7b   : >> { %4898 = vrot.lane.b32.xlu0 %v4885_v26, %s7096_s13  ;;  %5056 = vrot.lane.b32.xlu1 %v5042_v29, %s7099_s22 }
 0xa7f   : >> { %5012 = vrot.lane.b32.xlu0 %v4999_v61, %s7101_s26  ;;  %4660 = vrot.lane.b32.xlu1 %v4646_v7, %s7097_s14  ;;  %v5003_v61 = vsel %vm11539_vm12, %v10053_v58, 0  ;;  %vm11548_vm12 = vcmask 130048  }
 0xa83   : >> { %5054 = vrot.lane.b32.xlu0 %v5041_v50, %s7099_s22  ;;  %4816 = vrot.lane.b32.xlu1 %v4802_v0, %s7098_s15  ;;  %v11540_v50 = vld [vmem:[#allocation59_spill] sm:$0xff] }
 0xa84   : >> { %vm11541_vm9 = vcmp.ne.s16.totalorder %v11540_v50, 0  ;;  %v5708_v50 = vld [vmem:[%s10775_s9 + $0x20] sm:$0xff] (%p10573_p4) }
 0xa85   : >> { %v5082_v0 = vsel %vm11541_vm9, %v9925_v4, 0  ;;  %vm11544_vm7 = vmmov %vm11541_vm9  ;;  %vm11549_vm9 = vcmask 916480  }
 0xa86   : >> { %vm11550_vm0 = vmmov %vm11549_vm9 }
 0xa87   : >> { %5096 = vrot.lane.b32.xlu0 %v5083_v27, %s7102_s30  ;;  %4974 = vrot.lane.b32.xlu1 %v10048_v54, %s11497_s28 }
 0xa8b   : >> { %4702 = vrot.lane.b32.xlu1 %v10053_v58, %s11497_s28  ;;  %4736 = vrot.lane.b32.xlu0 %v10048_v54, %s11487_s20 }
 0xa8f   : >> { %4734 = vrot.lane.b32.xlu1 %v10053_v58, %s11487_s20  ;;  %4698 = vrot.lane.b32.xlu0 %v10059_v15, %s11497_s28 }
 0xa93   : >> { %4902 = vrot.lane.b32.xlu1 %v4887_v34, %s7096_s13  ;;  %4938 = vrot.lane.b32.xlu0 %v10059_v15, %s11500_s17 }
 0xa97   : >> { %4942 = vrot.lane.b32.xlu1 %v10053_v58, %s11500_s17  ;;  %4664 = vrot.lane.b32.xlu0 %v4648_v57, %s7097_s14  ;;  %v4762_v57 = vsel %vm2219_vm3, %v9908_v45, 0 }
 0xa9b   : >> { %4978 = vrot.lane.b32.xlu1 %v10077_v53, %s11497_s28  ;;  %4620 = vrot.lane.b32.xlu0 %v4605_v11, %s7096_s13 }
 0xa9f   : >> { %5058 = vrot.lane.b32.xlu1 %v5043_v3, %s7099_s22  ;;  %4820 = vrot.lane.b32.xlu0 %v4804_v47, %s7098_s15 }
 0xaa3   : >> { %4624 = vrot.lane.b32.xlu1 %v4607_v51, %s7096_s13  ;;  %4776 = vrot.lane.b32.xlu0 %v4761_v23, %s7099_s22  ;;  %v5085_v51 = vsel %vm11544_vm7, %v10059_v15, 0  ;;  %v11545_v23 = vld [vmem:[#allocation60_spill] sm:$0xff]  ;;  %vm11552_vm7 = vcmask 654336  }
 0xaa4   : >> { %vm11546_vm14 = vcmp.ne.s16.totalorder %v11545_v23, 0 }
 0xaa7   : >> { %4662 = vrot.lane.b32.xlu1 %v4647_v52, %s7097_s14  ;;  %4860 = vrot.lane.b32.xlu0 %v4845_v38, %s7100_s24  ;;  %v5084_v52 = vsel %vm11546_vm14, %v9923_v28, 0  ;;  %vm11553_vm14 = vmmov %vm11552_vm7 }
 0xaab   : >> { %5016 = vrot.lane.b32.xlu0 %v5001_v44, %s7101_s26  ;;  %4738 = vrot.lane.b32.xlu1 %v9919_v1, %s11487_s20  ;;  %s6295_s20 = scalar_lea.vmem %s10773_s7, %s9094_s19 }
 0xaaf   : >> { %4700 = vrot.lane.b32.xlu0 %v9908_v45, %s11497_s28  ;;  %4780 = vrot.lane.b32.xlu1 %v4763_v25, %s7099_s22  ;;  %v5126_v25 = vsel %vm2321_vm4, %v9949_v22, 0 }
 0xab1   : >> { %v10121_v63 = vpop.permute.xlu1 %4968  ;;  %v4731_v14 = vpop.permute.xlu0 %4730 }
 0xab3   : >> { %4940 = vrot.lane.b32.xlu0 %v9908_v45, %s11500_s17  ;;  %4818 = vrot.lane.b32.xlu1 %v4803_v16, %s7098_s15 }
 0xab5   : >> { %v4697_v17 = vpop.permute.xlu1 %4696  ;;  %v4693_v32 = vpop.permute.xlu0 %4692 }
 0xab7   : >> { %4976 = vrot.lane.b32.xlu0 %v9919_v1, %s11497_s28  ;;  %4864 = vrot.lane.b32.xlu1 %v4847_v6, %s7100_s24 }
 0xab9   : >> { %v4729_v10 = vpop.permute.xlu1 %4728  ;;  %v4933_v46 = vpop.permute.xlu0 %4932 }
 0xaba   : >> { %v10136_v55 = vsel %vm11535_vm10, %v4729_v10, %v4731_v14  ;;  %vm11543_vm10 = vcmp.ne.s16.totalorder %v11525_v19, 0 }
 0xabb   : >> { %4748 = vst [vmem:[#allocation3 + $0x50] sm:$0xff] %v10136_v55  ;;  %4622 = vrot.lane.b32.xlu0 %v4606_v60, %s7096_s13  ;;  %4906 = vrot.lane.b32.xlu1 %v4889_v13, %s7096_s13  ;;  %v4649_v11 = vsel %vm11543_vm10, %v9919_v1, 0  ;;  %v5124_v60 = vsel %vm2319_vm11, %v9911_v2, 0  ;;  %vm11551_vm10 = vcmp.ne.s16.totalorder %v11527_v37, 0  ;;  %v5707_v37 = vld [vmem:[%s10775_s9 + $0x18] sm:$0xff] (%p10573_p4) }
 0xabd   : >> { %v10147_v26 = vpop.permute.xlu1 %4896  ;;  %v10149_v29 = vpop.permute.xlu0 %4658 }
 0xabf   : >> { %5138 = vrot.lane.b32.xlu0 %v5125_v33, %s7100_s24  ;;  %5020 = vrot.lane.b32.xlu1 %v5003_v61, %s7101_s26 }
 0xac1   : >> { %v4937_v24 = vpop.permute.xlu1 %4936  ;;  %v4615_v7 = vpop.permute.xlu0 %4614 }
 0xac3   : >> { %5094 = vrot.lane.b32.xlu0 %v5082_v0, %s7102_s30  ;;  %5062 = vrot.lane.b32.xlu1 %v5045_v48, %s7099_s22 }
 0xac5   : >> { %v4973_v27 = vpop.permute.xlu1 %4972  ;;  %v10167_v34 = vpop.permute.xlu0 %4814 }
 0xac7   : >> { %4778 = vrot.lane.b32.xlu0 %v4762_v57, %s7099_s22  ;;  %4666 = vrot.lane.b32.xlu1 %v4649_v11, %s7097_s14  ;;  %v4805_v57 = vsel %vm11551_vm10, %v9919_v1, 0  ;;  %vm11558_vm10 = vcmask 916480  }
 0xac9   : >> { %v10177_v3 = vpop.permute.xlu1 %5052  ;;  %v4771_v47 = vpop.permute.xlu0 %4770 }
 0xacb   : >> { %5100 = vrot.lane.b32.xlu0 %v5085_v51, %s7102_s30  ;;  %5098 = vrot.lane.b32.xlu1 %v5084_v52, %s7102_s30 }
 0xacd   : >> { %v4619_v38 = vpop.permute.xlu1 %4618  ;;  %v4855_v44 = vpop.permute.xlu0 %4854 }
 0xacf   : >> { %5174 = vrot.lane.b32.xlu0 %v9897_v59, %s7080_s16  ;;  %5140 = vrot.lane.b32.xlu1 %v5126_v25, %s7100_s24 }
 0xad1   : >> { %v4657_v16 = vpop.permute.xlu1 %4656  ;;  %v10193_v6 = vpop.permute.xlu0 %5010 }
 0xad2   : >> { %v10197_v10 = vsel %vm11547_vm5, %v4657_v16, %v10149_v29  ;;  %vm11554_vm5 = vcmp.ne.s16.totalorder %v11516_v20, 0 }
 0xad3   : >> { %5210 = vrot.lane.b32.xlu0 %v9902_v41, %s11500_s17  ;;  %5136 = vrot.lane.b32.xlu1 %v5124_v60, %s7100_s24 }
 0xad5   : >> { %v4733_v13 = vpop.permute.xlu1 %4732  ;;  %v4695_v33 = vpop.permute.xlu0 %4694 }
 0xad6   : >> { %v10206_v61 = vsel %vm11548_vm12, %v4731_v14, %v4733_v13  ;;  %v10209_v0 = vsel %vm11549_vm9, %v4693_v32, %v4695_v33  ;;  %v10212_v48 = vsel %vm11550_vm0, %v4695_v33, %v4697_v17  ;;  %v4846_v17 = vsel %vm11554_vm5, %v9908_v45, 0 }
 0xad7   : >> { %5172 = vrot.lane.b32.xlu0 %v9925_v4, %s7080_s16  ;;  %4822 = vrot.lane.b32.xlu1 %v4805_v57, %s7098_s15  ;;  %vm11555_vm12 = vcmp.ne.s16.totalorder %v11545_v23, 0  ;;  %vm11556_vm9 = vcmp.ne.s16.totalorder %v11511_v49, 0  ;;  %vm11557_vm0 = vcmask 113664   ;;  %v5129_v33 = vsel %vm2321_vm4, %v10077_v53, 0  ;;  %v5706_v49 = vld [vmem:[%s10775_s9 + $0x10] sm:$0xff] (%p10573_p4) }
 0xad8   : >> { %v5087_v52 = vsel %vm11555_vm12, %v10053_v58, 0  ;;  %vm11562_vm12 = vcmask 900096  }
 0xad9   : >> { %v4775_v11 = vpop.permute.xlu1 %4774  ;;  %v4935_v51 = vpop.permute.xlu0 %4934 }
 0xada   : >> { %v10221_v14 = vsel %vm11552_vm7, %v4933_v46, %v4935_v51  ;;  %v10224_v32 = vsel %vm11553_vm14, %v4935_v51, %v4937_v24  ;;  %v4888_v46 = vsel %vm11556_vm9, %v9919_v1, 0  ;;  %vm11559_vm7 = vmmov %vm11558_vm10  ;;  %vm11560_vm14 = vcmask 932864  }
 0xadb   : >> { %4862 = vrot.lane.b32.xlu0 %v4846_v17, %s7100_s24  ;;  %5104 = vrot.lane.b32.xlu1 %v5087_v52, %s7102_s30  ;;  %vm11561_vm5 = vmmov %vm11560_vm14 }
 0xadc   : >> { %vm11563_vm9 = vmmov %vm11562_vm12 }
 0xadd   : >> { %v4813_v25 = vpop.permute.xlu1 %4812  ;;  %v4971_v16 = vpop.permute.xlu0 %4970 }
 0xade   : >> { %v10239_v24 = vsel %vm11557_vm0, %v4813_v25, %v10167_v34  ;;  %v10243_v60 = vsel %vm11558_vm10, %v10121_v63, %v4971_v16  ;;  %v10246_v13 = vsel %vm11559_vm7, %v4971_v16, %v4973_v27  ;;  %v5127_v63 = vsel %vm2319_vm11, %v10048_v54, 0  ;;  %vm11565_vm10 = vmmov %vm11561_vm5 }
 0xadf   : >> { %4904 = vrot.lane.b32.xlu0 %v4888_v46, %s7096_s13  ;;  %5146 = vrot.lane.b32.xlu1 %v5129_v33, %s7100_s24  ;;  %vm11564_vm0 = vcmp.ne.s16.totalorder %v11522_v8, 0  ;;  %vm11566_vm7 = vmmov %vm11561_vm5  ;;  %vm11688_vm11 = vcmask (%p10573_p4), 261120  }
 0xae1   : >> { %v4859_v57 = vpop.permute.xlu1 %4858  ;;  %v4617_v51 = vpop.permute.xlu0 %4616 }
 0xae2   : >> { %v4626_v17 = vsel %vm11560_vm14, %v4615_v7, %v4617_v51  ;;  %v4627_v52 = vsel %vm11561_vm5, %v4617_v51, %v4619_v38  ;;  %vm11567_vm14 = vcmask 146432   ;;  %vm11568_vm5 = vcmask 637952  }
 0xae3   : >> { %5180 = vrot.lane.b32.xlu0 %v9908_v45, %s7080_s16  ;;  %5142 = vrot.lane.b32.xlu1 %v5127_v63, %s7100_s24 }
 0xae4   : >> { %5444 = vmatprep.subr.bf16.mxu0 %v4627_v52 }
 0xae5   : >> { %v4901_v27 = vpop.permute.xlu1 %4900  ;;  %v4773_v25 = vpop.permute.xlu0 %4772  ;;  %5445 = vmatpush1.bf16.msra.mxu0 %v4626_v17 }
 0xae6   : >> { %v10262_v16 = vsel %vm11562_vm12, %v4771_v47, %v4773_v25  ;;  %v10265_v7 = vsel %vm11563_vm9, %v4773_v25, %v4775_v11  ;;  %v5002_v47 = vsel %vm11564_vm0, %v9908_v45, 0  ;;  %vm11569_vm12 = vmmov %vm11568_vm5  ;;  %vm11570_vm9 = vcmp.ne.s16.totalorder %v11530_v18, 0 }
 0xae7   : >> { %5216 = vrot.lane.b32.xlu0 %v9919_v1, %s11500_s17  ;;  %5176 = vrot.lane.b32.xlu1 %v9923_v28, %s7080_s16  ;;  %vm11571_vm0 = vcmask 113664  }
 0xae9   : >> { %v5015_v38 = vpop.permute.xlu1 %5014  ;;  %v4857_v46 = vpop.permute.xlu0 %4856 }
 0xaea   : >> { %v10272_v33 = vsel %vm2346_vm15, %v4855_v44, %v4857_v46  ;;  %v10275_v51 = vsel %vm2346_vm15, %v4857_v46, %v4859_v57  ;;  %v5044_v57 = vsel %vm2219_vm3, %v9919_v1, 0 }
 0xaeb   : >> { %5018 = vrot.lane.b32.xlu0 %v5002_v47, %s7101_s26  ;;  %5212 = vrot.lane.b32.xlu1 %v9949_v22, %s11500_s17  ;;  %v5086_v47 = vsel %vm11570_vm9, %v9908_v45, 0  ;;  %vm11581_vm9 = vcmask 130048  }
 0xaed   : >> { %v5057_v11 = vpop.permute.xlu1 %5056  ;;  %v4899_v17 = vpop.permute.xlu0 %4898 }
 0xaee   : >> { %v10285_v52 = vsel %vm11565_vm10, %v10147_v26, %v4899_v17  ;;  %v10288_v44 = vsel %vm11566_vm7, %v4899_v17, %v4901_v27  ;;  %vm11572_vm10 = vcmask 900096  }
 0xaef   : >> { %5060 = vrot.lane.b32.xlu0 %v5044_v57, %s7099_s22  ;;  %5208 = vrot.lane.b32.xlu1 %v9911_v2, %s11500_s17  ;;  %vm11573_vm7 = vmmov %vm11572_vm10 }
 0xaf1   : >> { %v4661_v63 = vpop.permute.xlu1 %4660  ;;  %v5013_v25 = vpop.permute.xlu0 %5012 }
 0xaf2   : >> { %v4669_v46 = vsel %vm11567_vm14, %v10149_v29, %v4661_v63  ;;  %v10300_v26 = vsel %vm11568_vm5, %v10193_v6, %v5013_v25  ;;  %v10303_v27 = vsel %vm11569_vm12, %v5013_v25, %v5015_v38  ;;  %vm11574_vm14 = vcmp.ne.s16.totalorder %v11516_v20, 0  ;;  %v11575_v25 = vld [vmem:[#allocation69_spill] sm:$0xff] }
 0xaf3   : >> { %5102 = vrot.lane.b32.xlu0 %v5086_v47, %s7102_s30  ;;  %5182 = vrot.lane.b32.xlu1 %v10053_v58, %s7080_s16  ;;  %v5128_v63 = vsel %vm11574_vm14, %v9919_v1, 0  ;;  %vm11577_vm5 = vcmp.ne.s16.totalorder %v11575_v25, 0 }
 0xaf4   : >> { %5550 = vmatprep.subr.bf16.mxu1 %v4669_v46  ;;  %v5239_v47 = vsel %vm11577_vm5, %v9897_v59, 0  ;;  %v5709_v46 = vld [vmem:[%s10775_s9 + $0x28] sm:$0xff] (%p10573_p4) }
 0xaf5   : >> { %v4817_v17 = vpop.permute.xlu1 %4816  ;;  %v5055_v57 = vpop.permute.xlu0 %5054  ;;  %5551 = vmatpush1.bf16.msra.mxu1 %v10197_v10 }
 0xaf6   : >> { %v10314_v29 = vsel %vm11571_vm0, %v10167_v34, %v4817_v17  ;;  %v10318_v6 = vsel %vm11572_vm10, %v10177_v3, %v5055_v57  ;;  %v10321_v38 = vsel %vm11573_vm7, %v5055_v57, %v5057_v11  ;;  %v11578_v17 = vld [vmem:[#allocation62_spill] sm:$0xff]  ;;  %vm11582_vm0 = vcmp.ne.s16.totalorder %v11518_v31, 0  ;;  %v6897_v57 = vld [vmem:[%s10774_s8 + $0x8] sm:$0xff] (%p10573_p4)  }
 0xaf7   : >> { %5144 = vrot.lane.b32.xlu0 %v5128_v63, %s7100_s24  ;;  %5218 = vrot.lane.b32.xlu1 %v10077_v53, %s11500_s17  ;;  %vm11580_vm12 = vcmp.ne.s16.totalorder %v11578_v17, 0  ;;  %v5282_v59 = vsel %vm11582_vm0, %v9949_v22, 0  ;;  %vm11583_vm10 = vcmp.ne.s16.totalorder %v11522_v8, 0  ;;  %v6453_v8 = vld [vmem:[%s6295_s20 + $0x30] sm:$0xff] }
 0xaf8   : >> { %v5240_v63 = vsel %vm11580_vm12, %v9923_v28, 0  ;;  %v5281_v28 = vsel %vm11583_vm10, %v9902_v41, 0  ;;  %vm11586_vm14 = vmmov %vm11580_vm12 }
 0xaf9   : >> { %v10329_v10 = vpop.permute.xlu1 %4974  ;;  %v10331_v34 = vpop.permute.xlu0 %5096  ;;  %vm11587_vm12 = vmmov %vm11582_vm0 }
 0xafb   : >> { %5178 = vrot.lane.b32.xlu0 %v10059_v15, %s7080_s16  ;;  %5214 = vrot.lane.b32.xlu1 %v10048_v54, %s11500_s17 }
 0xafd   : >> { %v10337_v3 = vpop.permute.xlu1 %4702  ;;  %v4737_v11 = vpop.permute.xlu0 %4736 }
 0xaff   : >> { %5252 = vrot.lane.b32.xlu0 %v5239_v47, %s7103_s23  ;;  %5254 = vrot.lane.b32.xlu1 %v5240_v63, %s7103_s23  ;;  %v11584_v47 = vld [vmem:[#allocation61_spill] sm:$0xff]  ;;  %v5243_v63 = vsel %vm11586_vm14, %v10053_v58, 0  ;;  %vm11592_vm14 = vcmask 916480  }
 0xb00   : >> { %vm11585_vm7 = vcmp.ne.s16.totalorder %v11584_v47, 0  ;;  %v5710_v47 = vld [vmem:[%s10775_s9 + $0x30] sm:$0xff] (%p10573_p4) }
 0xb01   : >> { %v4735_v9 = vpop.permute.xlu1 %4734  ;;  %v4699_v12 = vpop.permute.xlu0 %4698  ;;  %v5238_v22 = vsel %vm11585_vm7, %v9925_v4, 0  ;;  %vm11589_vm0 = vmmov %vm11585_vm7  ;;  %vm11591_vm7 = vcmask 130048  }
 0xb02   : >> { %v10349_v18 = vsel %vm11581_vm9, %v4735_v9, %v4737_v11  ;;  %v5280_v9 = vsel %vm2485_vm2, %v9911_v2, 0  ;;  %v5242_v2 = vsel %vm11577_vm5, %v9908_v45, 0  ;;  %vm11588_vm9 = vmmov %vm11583_vm10  ;;  %vm11590_vm10 = vcmask 146432  }
 0xb03   : >> { %4750 = vst [vmem:[#allocation3 + $0x70] sm:$0xff] %v10349_v18  ;;  %5296 = vrot.lane.b32.xlu1 %v5282_v59, %s7101_s26  ;;  %5294 = vrot.lane.b32.xlu0 %v5281_v28, %s7101_s26  ;;  %v5285_v28 = vsel %vm11587_vm12, %v10077_v53, 0  ;;  %v5283_v53 = vsel %vm2485_vm2, %v10048_v54, 0  ;;  %vm11593_vm5 = vmmov %vm11592_vm14  ;;  %vm11594_vm12 = vcmask 113664  }
 0xb04   : > { %vm11689_vm2 = vmmov (%p10573_p4), %vm11688_vm11 }
 0xb05   : >> { %v10360_v25 = vpop.permute.xlu1 %4902  ;;  %v4939_v5 = vpop.permute.xlu0 %4938  ;;  %vm11690_vm6 = vmmov (%p10573_p4), %vm11689_vm2 }
 0xb06   : > { %vm11691_vm3 = vmmov (%p10573_p4), %vm11689_vm2 }
 0xb07   : >> { %5292 = vrot.lane.b32.xlu1 %v5280_v9, %s7101_s26  ;;  %5250 = vrot.lane.b32.xlu0 %v5238_v22, %s7103_s23  ;;  %v5284_v9 = vsel %vm11588_vm9, %v9919_v1, 0  ;;  %v5241_v1 = vsel %vm11589_vm0, %v10059_v15, 0  ;;  %v6452_v22 = vld [vmem:[%s6295_s20 + $0x28] sm:$0xff]  ;;  %vm11595_vm9 = vcmask 654336   ;;  %vm11692_vm1 = vmmov (%p10573_p4), %vm11689_vm2 }
 0xb08   : >> { %vm11596_vm0 = vmmov %vm11595_vm9 }
 0xb09   : >> { %v4943_v41 = vpop.permute.xlu1 %4942  ;;  %v10370_v17 = vpop.permute.xlu0 %4664  ;;  %vm11693_vm8 = vmmov (%p10573_p4), %vm11692_vm1 }
 0xb0a   : > { %vm11694_vm4 = vmmov (%p10573_p4), %vm11692_vm1 }
 0xb0b   : >> { %5260 = vrot.lane.b32.xlu1 %v5243_v63, %s7103_s23  ;;  %5258 = vrot.lane.b32.xlu0 %v5242_v2, %s7103_s23  ;;  %v6451_v63 = vld [vmem:[%s6295_s20 + $0x20] sm:$0xff]  ;;  %vm11695_vm13 = vmmov (%p10573_p4), %vm11692_vm1 }
 0xb0d   : >> { %v4979_v4 = vpop.permute.xlu1 %4978  ;;  %v4621_v59 = vpop.permute.xlu0 %4620 }
 0xb0f   : >> { %5302 = vrot.lane.b32.xlu1 %v5285_v28, %s7101_s26  ;;  %5300 = vrot.lane.b32.xlu0 %v5284_v9, %s7101_s26  ;;  %v6454_v9 = vld [vmem:[%s6295_s20 + $0x38] sm:$0xff] }
 0xb11   : >> { %v10388_v58 = vpop.permute.xlu1 %5058  ;;  %v10390_v45 = vpop.permute.xlu0 %4820 }
 0xb13   : >> { %5298 = vrot.lane.b32.xlu1 %v5283_v53, %s7101_s26  ;;  %5256 = vrot.lane.b32.xlu0 %v5241_v1, %s7103_s23 }
 0xb15   : >> { %v4625_v2 = vpop.permute.xlu1 %4624  ;;  %v4777_v28 = vpop.permute.xlu0 %4776 }
 0xb17   : >> { %5395 = vperm.xlu1 %6875, %v6452_v22   ;;  %5390 = vperm.xlu0 %6874, %v6451_v63  }
 0xb19   : >> { %v4663_v19 = vpop.permute.xlu1 %4662  ;;  %v10404_v20 = vpop.permute.xlu0 %4860 }
 0xb1a   : >> { %v4670_v54 = vsel %vm11590_vm10, %v4663_v19, %v10370_v17  ;;  %vm11597_vm10 = vmmov %vm11593_vm5 }
 0xb1b   : >> { %5405 = vperm.xlu1 %6875, %v6454_v9   ;;  %5400 = vperm.xlu0 %6874, %v6453_v8  }
 0xb1d   : >> { %v4739_v15 = vpop.permute.xlu1 %4738  ;;  %v10408_v53 = vpop.permute.xlu0 %5016 }
 0xb1e   : >> { %v4743_v1 = vsel %vm11591_vm7, %v4737_v11, %v4739_v15  ;;  %vm11598_vm7 = vmmov %vm11593_vm5 }
 0xb21   : >> { %v4781_v21 = vpop.permute.xlu1 %4780  ;;  %v4701_v23 = vpop.permute.xlu0 %4700 }
 0xb22   : >> { %v4706_v22 = vsel %vm11592_vm14, %v4699_v12, %v4701_v23  ;;  %v4707_v63 = vsel %vm11593_vm5, %v4701_v23, %v10337_v3  ;;  %vm11599_vm14 = vcmask 932864  }
 0xb23   : >> { %vm11600_vm5 = vmmov %vm11599_vm14 }
 0xb25   : >> { %v4819_v30 = vpop.permute.xlu1 %4818  ;;  %v4941_v31 = vpop.permute.xlu0 %4940 }
 0xb26   : >> { %v4826_v35 = vsel %vm11594_vm12, %v4819_v30, %v10390_v45  ;;  %v10417_v19 = vsel %vm11595_vm9, %v4939_v5, %v4941_v31  ;;  %v10420_v8 = vsel %vm11596_vm0, %v4941_v31, %v4943_v41  ;;  %vm11601_vm12 = vcmask 408576  }
 0xb27   : >> { %vm11602_vm9 = vcmask 146432   ;;  %vm11603_vm0 = vcmask 900096  }
 0xb29   : >> { %v4865_v9 = vpop.permute.xlu1 %4864  ;;  %v4977_v11 = vpop.permute.xlu0 %4976 }
 0xb2a   : >> { %v10424_v15 = vsel %vm11597_vm10, %v10329_v10, %v4977_v11  ;;  %v10427_v12 = vsel %vm11598_vm7, %v4977_v11, %v4979_v4  ;;  %vm11604_vm10 = vmmov %vm11603_vm0 }
 0xb2b   : >> { %vm11605_vm7 = vmmov %vm11601_vm12 }
 0xb2d   : >> { %v4907_v23 = vpop.permute.xlu1 %4906  ;;  %v4623_v3 = vpop.permute.xlu0 %4622 }
 0xb2e   : >> { %v4628_v36 = vsel %vm11599_vm14, %v4621_v59, %v4623_v3  ;;  %v4629_v30 = vsel %vm11600_vm5, %v4623_v3, %v4625_v2  ;;  %vm11606_vm14 = vcmask 113664   ;;  %vm11607_vm5 = vcmask 392192  }
 0xb2f   : >> { %5446 = vmatprep.subr.bf16.mxu0 %v4629_v30 }
 0xb30   : >> { %5447 = vmatpush1.bf16.msra.mxu0 %v4628_v36 }
 0xb31   : >> { %v10431_v5 = vpop.permute.xlu1 %5020  ;;  %v5139_v31 = vpop.permute.xlu0 %5138  ;;  %5448 = vmatprep.subr.bf16.mxu0 %v10212_v48 }
 0xb34   : >> { %5449 = vmatpush1.bf16.msra.mxu0 %v10209_v0 }
 0xb35   : >> { %v10435_v10 = vpop.permute.xlu1 %5062  ;;  %v5095_v41 = vpop.permute.xlu0 %5094  ;;  %5450 = vmatprep.subr.bf16.mxu0 %v4707_v63 }
 0xb36   : >> { %v10439_v4 = vsel %vm11601_vm12, %v5095_v41, %v10331_v34  ;;  %vm11608_vm12 = vcmask 932864  }
 0xb38   : >> { %5451 = vmatpush1.bf16.msra.mxu0 %v4706_v22 }
 0xb39   : >> { %v4667_v59 = vpop.permute.xlu1 %4666  ;;  %v4779_v2 = vpop.permute.xlu0 %4778  ;;  %5452 = vmatprep.subr.bf16.mxu0 %v10265_v7 }
 0xb3a   : >> { %v4671_v36 = vsel %vm11602_vm9, %v10370_v17, %v4667_v59  ;;  %v4784_v48 = vsel %vm11603_vm0, %v4777_v28, %v4779_v2  ;;  %v4785_v0 = vsel %vm11604_vm10, %v4779_v2, %v4781_v21  ;;  %vm11609_vm9 = vmmov %vm11608_vm12  ;;  %vm11611_vm10 = vcmask 654336  }
 0xb3b   : >> { %5552 = vmatprep.subr.bf16.mxu1 %v4671_v36  ;;  %vm11610_vm0 = vmmov %vm11607_vm5 }
 0xb3c   : >> { %5453 = vmatpush1.bf16.msra.mxu0 %v10262_v16  ;;  %5553 = vmatpush1.bf16.msra.mxu1 %v4670_v54 }
 0xb3d   : >> { %v5099_v63 = vpop.permute.xlu1 %5098  ;;  %v10447_v11 = vpop.permute.xlu0 %5100  ;;  %5454 = vmatprep.subr.bf16.mxu0 %v4785_v0  ;;  %5554 = vmatprep.subr.bf16.mxu1 %v10206_v61  ;;  %v6889_v0 = vld [vmem:[%s9108_s25 + $0x4c] ss:$12 sps:$4 sm:$0xff]  }
 0xb3e   : >> { %v5107_v7 = vsel %vm11605_vm7, %v10331_v34, %v5099_v63  ;;  %vm11612_vm7 = vcmask 637952  }
 0xb40   : >> { %5455 = vmatpush1.bf16.msra.mxu0 %v4784_v48  ;;  %5555 = vmatpush1.bf16.msra.mxu1 %v10136_v55  ;;  %v6886_v48 = vld [vmem:[%s9108_s25 + $0x30] ss:$12 sps:$4 sm:$0xff]  }
 0xb41   : >> { %v5141_v17 = vpop.permute.xlu1 %5140  ;;  %v5175_v28 = vpop.permute.xlu0 %5174  ;;  %5456 = vmatprep.subr.bf16.mxu0 %v10275_v51  ;;  %5556 = vmatprep.subr.bf16.mxu1 %v4743_v1 }
 0xb42   : >> { %v5149_v21 = vsel %vm2346_vm15, %v5139_v31, %v5141_v17 }
 0xb44   : >> { %5457 = vmatpush1.bf16.msra.mxu0 %v10272_v33  ;;  %5557 = vmatpush1.bf16.msra.mxu1 %v10349_v18 }
 0xb45   : >> { %v5137_v16 = vpop.permute.xlu1 %5136  ;;  %v5211_v54 = vpop.permute.xlu0 %5210  ;;  %5558 = vmatprep.subr.bf16.mxu1 %v10314_v29 }
 0xb46   : >> { %v5148_v61 = vsel %vm2346_vm15, %v5137_v16, %v5139_v31  ;;  %v6891_v16 = vld [vmem:[%s9108_s25 + $0x48] ss:$12 sps:$4 sm:$0xff]  }
 0xb48   : >> { %5559 = vmatpush1.bf16.msra.mxu1 %v10239_v24 }
 0xb49   : >> { %v4823_v55 = vpop.permute.xlu1 %4822  ;;  %v5173_v34 = vpop.permute.xlu0 %5172 }
 0xb4a   : >> { %v4827_v51 = vsel %vm11606_vm14, %v10390_v45, %v4823_v55  ;;  %v10463_v1 = vsel %vm11607_vm5, %v5173_v34, %v5175_v28  ;;  %vm11613_vm14 = vmmov %vm11612_vm7 }
 0xb4b   : >> { %5560 = vmatprep.subr.bf16.mxu1 %v4827_v51  ;;  %vm11614_vm5 = vmmov %vm11611_vm10 }
 0xb4c   : >> { %5561 = vmatpush1.bf16.msra.mxu1 %v4826_v35 }
 0xb4d   : >> { %v5105_v33 = vpop.permute.xlu1 %5104  ;;  %v4863_v18 = vpop.permute.xlu0 %4862  ;;  %5562 = vmatprep.subr.bf16.mxu1 %v10288_v44 }
 0xb4e   : >> { %v4868_v29 = vsel %vm2346_vm15, %v10404_v20, %v4863_v18  ;;  %v4869_v22 = vsel %vm2346_vm15, %v4863_v18, %v4865_v9 }
 0xb4f   : >> { %5458 = vmatprep.subr.bf16.mxu0 %v4869_v22 }
 0xb50   : >> { %5459 = vmatpush1.bf16.msra.mxu0 %v4868_v29  ;;  %5563 = vmatpush1.bf16.msra.mxu1 %v10285_v52 }
 0xb51   : >> { %v5147_v24 = vpop.permute.xlu1 %5146  ;;  %v4905_v45 = vpop.permute.xlu0 %4904  ;;  %5460 = vmatprep.subr.bf16.mxu0 %v10224_v32 }
 0xb52   : >> { %v4910_v35 = vsel %vm11608_vm12, %v10360_v25, %v4905_v45  ;;  %v4911_v3 = vsel %vm11609_vm9, %v4905_v45, %v4907_v23  ;;  %vm11615_vm12 = vcmask 900096  }
 0xb53   : >> { %5564 = vmatprep.subr.bf16.mxu1 %v4911_v3  ;;  %vm11616_vm9 = vmmov %vm11615_vm12 }
 0xb54   : >> { %5461 = vmatpush1.bf16.msra.mxu0 %v10221_v14  ;;  %5565 = vmatpush1.bf16.msra.mxu1 %v4910_v35 }
 0xb55   : >> { %v5143_v20 = vpop.permute.xlu1 %5142  ;;  %v5181_v44 = vpop.permute.xlu0 %5180  ;;  %5462 = vmatprep.subr.bf16.mxu0 %v10420_v8  ;;  %5566 = vmatprep.subr.bf16.mxu1 %v10246_v13 }
 0xb58   : >> { %5463 = vmatpush1.bf16.msra.mxu0 %v10417_v19  ;;  %5567 = vmatpush1.bf16.msra.mxu1 %v10243_v60 }
 0xb59   : >> { %v5177_v32 = vpop.permute.xlu1 %5176  ;;  %v5217_v52 = vpop.permute.xlu0 %5216  ;;  %5464 = vmatprep.subr.bf16.mxu0 %v10303_v27  ;;  %5568 = vmatprep.subr.bf16.mxu1 %v10427_v12 }
 0xb5a   : >> { %v5185_v25 = vsel %vm11610_vm0, %v5175_v28, %v5177_v32 }
 0xb5c   : >> { %5465 = vmatpush1.bf16.msra.mxu0 %v10300_v26  ;;  %5569 = vmatpush1.bf16.msra.mxu1 %v10424_v15 }
 0xb5d   : >> { %v5213_v14 = vpop.permute.xlu1 %5212  ;;  %v5019_v8 = vpop.permute.xlu0 %5018  ;;  %5570 = vmatprep.subr.bf16.mxu1 %v10321_v38 }
 0xb5e   : >> { %v5221_v13 = vsel %vm11611_vm10, %v5211_v54, %v5213_v14  ;;  %v5024_v60 = vsel %vm11612_vm7, %v10408_v53, %v5019_v8  ;;  %v5025_v27 = vsel %vm11613_vm14, %v5019_v8, %v10431_v5  ;;  %vm11617_vm10 = vcmask 408576   ;;  %vm11619_vm14 = vmmov %vm11614_vm5 }
 0xb5f   : >> { %5466 = vmatprep.subr.bf16.mxu0 %v5025_v27  ;;  %vm11618_vm7 = vmmov %vm11617_vm10 }
 0xb60   : >> { %5467 = vmatpush1.bf16.msra.mxu0 %v5024_v60  ;;  %5571 = vmatpush1.bf16.msra.mxu1 %v10318_v6 }
 0xb61   : >> { %v5209_v19 = vpop.permute.xlu1 %5208  ;;  %v5061_v26 = vpop.permute.xlu0 %5060  ;;  %5468 = vmatprep.subr.bf16.mxu0 %v5107_v7 }
 0xb62   : >> { %v5220_v9 = vsel %vm11614_vm5, %v5209_v19, %v5211_v54  ;;  %v5066_v38 = vsel %vm11615_vm12, %v10388_v58, %v5061_v26  ;;  %v5067_v15 = vsel %vm11616_vm9, %v5061_v26, %v10435_v10  ;;  %vm11620_vm12 = vmmov %vm11610_vm0  ;;  %vm11621_vm9 = vcmask 375808  }
 0xb63   : >> { %5572 = vmatprep.subr.bf16.mxu1 %v5067_v15 }
 0xb64   : >> { %5469 = vmatpush1.bf16.msra.mxu0 %v10439_v4  ;;  %5573 = vmatpush1.bf16.msra.mxu1 %v5066_v38 }
 0xb65   : >> { %v5183_v53 = vpop.permute.xlu1 %5182  ;;  %v5103_v12 = vpop.permute.xlu0 %5102  ;;  %5574 = vmatprep.subr.bf16.mxu1 %v5149_v21 }
 0xb66   : >> { %v5187_v6 = vsel %vm11610_vm0, %v5181_v44, %v5183_v53  ;;  %v5108_v23 = vsel %vm11617_vm10, %v10447_v11, %v5103_v12  ;;  %v5109_v30 = vsel %vm11618_vm7, %v5103_v12, %v5105_v33  ;;  %vm11622_vm0 = vcmask 637952   ;;  %vm11624_vm7 = vmmov %vm11621_vm9 }
 0xb67   : >> { %5470 = vmatprep.subr.bf16.mxu0 %v5109_v30  ;;  %vm11623_vm10 = vmmov %vm11622_vm0 }
 0xb68   : >> { %5471 = vmatpush1.bf16.msra.mxu0 %v5108_v23  ;;  %5575 = vmatpush1.bf16.msra.mxu1 %v5148_v61 }
 0xb69   : >> { %v5219_v58 = vpop.permute.xlu1 %5218  ;;  %v5145_v5 = vpop.permute.xlu0 %5144  ;;  %5472 = vmatprep.subr.bf16.mxu0 %v5185_v25 }
 0xb6a   : >> { %v5223_v31 = vsel %vm11619_vm14, %v5217_v52, %v5219_v58  ;;  %v5150_v10 = vsel %vm2346_vm15, %v5143_v20, %v5145_v5  ;;  %v5151_v41 = vsel %vm2346_vm15, %v5145_v5, %v5147_v24  ;;  %vm11625_vm14 = vmmov %vm11624_vm7  ;;  %v6892_v20 = vld [vmem:[%s9108_s25 + $0x38] ss:$12 sps:$4 sm:$0xff]   ;;  %vm11696_vm15 = vcmask (%p10573_p4), 523264  }
 0xb6b   : >> { %5576 = vmatprep.subr.bf16.mxu1 %v5151_v41 }
 0xb6c   : >> { %5473 = vmatpush1.bf16.msra.mxu0 %v10463_v1  ;;  %5577 = vmatpush1.bf16.msra.mxu1 %v5150_v10  ;;  %v11633_v10 = vld [vmem:[#allocation8_spill] sm:$0xff] }
 0xb6d   : >> { %v5215_v4 = vpop.permute.xlu1 %5214  ;;  %v5179_v59 = vpop.permute.xlu0 %5178  ;;  %5474 = vmatprep.subr.bf16.mxu0 %v5187_v6  ;;  %5578 = vmatprep.subr.bf16.mxu1 %v5221_v13  ;;  %v11634_v41 = vmax.f32 %v11633_v10, 0.0 }
 0xb6e   : >> { %v5222_v2 = vsel %vm11614_vm5, %v5215_v4, %v5217_v52  ;;  %v5186_v36 = vsel %vm11620_vm12, %v5179_v59, %v5181_v44  ;;  %vm11626_vm5 = vmmov %vm11622_vm0  ;;  %v6893_v44 = vld [vmem:[%s9108_s25 + $0x50] ss:$12 sps:$4 sm:$0xff]  }
 0xb6f   : >> { %vm11627_vm12 = vmmov %vm11622_vm0  ;;  %v11635_v59 = vld [vmem:[#allocation74_spill] sm:$0xff] }
 0xb70   : >> { %5475 = vmatpush1.bf16.msra.mxu0 %v5186_v36  ;;  %5579 = vmatpush1.bf16.msra.mxu1 %v5220_v9 }
 0xb71   : >> { %v5255_v63 = vpop.permute.xlu1 %5254  ;;  %v5253_v11 = vpop.permute.xlu0 %5252  ;;  %5580 = vmatprep.subr.bf16.mxu1 %v5223_v31 }
 0xb72   : >> { %v5263_v7 = vsel %vm11621_vm9, %v5253_v11, %v5255_v63  ;;  %vm11628_vm9 = vmmov %vm11624_vm7  ;;  %v11638_v63 = vld [vmem:[#allocation70_spill] sm:$0xff] }
 0xb73   : >> { %5497 = vmatprep.subr.bf16.mxu0 %v5263_v7  ;;  %5477 = vmatmul.mubr.bf16.vlgmr.msra.gmra.mrb[16].mxu0 %v6886_v48 }
 0xb74   : >> { %5581 = vmatpush1.bf16.msra.mxu1 %v5222_v2  ;;  %5486 = vmatprep.mubr.bf16.mxu0 %v6889_v0  ;;  %v11636_v2 = vmax.f32 %v11635_v59, 0.0 }
 0xb75   : >> { %v5297_v17 = vpop.permute.xlu1 %5296  ;;  %v5295_v28 = vpop.permute.xlu0 %5294 }
 0xb76   : >> { %v5305_v21 = vsel %vm11622_vm0, %v5295_v28, %v5297_v17  ;;  %vm11629_vm0 = vcmask 261120  }
 0xb77   : >> { %5603 = vmatprep.subr.bf16.mxu1 %v5305_v21  ;;  %5583 = vmatmul.mubr.bf16.vlgmr.msra.gmra.mrb[16].mxu1 %v6886_v48 }
 0xb78   : >> { %5592 = vmatprep.mubr.bf16.mxu1 %v6889_v0 }
 0xb79   : >> { %v5293_v54 = vpop.permute.xlu1 %5292  ;;  %v5251_v61 = vpop.permute.xlu0 %5250 }
 0xb7a   : >> { %v5304_v55 = vsel %vm11623_vm10, %v5293_v54, %v5295_v28  ;;  %v5262_v34 = vsel %vm11624_vm7, %v5251_v61, %v5253_v11  ;;  %vm11630_vm10 = vmmov %vm11629_vm0  ;;  %v11639_v11 = vmax.f32 %v11638_v63, 0.0  ;;  %v11641_v28 = vld [vmem:[#allocation76_spill] sm:$0xff] }
 0xb7b   : >> { %5498 = vmatpush1.bf16.msra.mxu0 %v5262_v34  ;;  %5604 = vmatpush1.bf16.msra.mxu1 %v5304_v55  ;;  %vm11631_vm7 = vmmov %vm11629_vm0  ;;  %v11642_v21 = vmax.f32 %v11641_v28, 0.0 }
 0xb7c   : >> { %5487 = vmatmul.mubr.bf16.gmra.mrb[20].mxu0 %v6891_v16 }
 0xb7d   : >> { %v5261_v51 = vpop.permute.xlu1 %5260  ;;  %v5259_v1 = vpop.permute.xlu0 %5258  ;;  %5529 = vmatprep.mubr.bf16.mxu0 %v11478_v62 }
 0xb7e   : >> { %v5265_v33 = vsel %vm11625_vm14, %v5259_v1, %v5261_v51  ;;  %vm11632_vm14 = vmmov %vm11629_vm0  ;;  %v11644_v51 = vld [vmem:[#allocation71_spill] sm:$0xff] }
 0xb7f   : >> { %5499 = vmatprep.subr.bf16.mxu0 %v5265_v33  ;;  %5593 = vmatmul.mubr.bf16.gmra.mrb[20].mxu1 %v6891_v16  ;;  %v11647_v33 = vld [vmem:[#allocation72_spill] sm:$0xff] }
 0xb80   : >> { %5635 = vmatprep.mubr.bf16.mxu1 %v11478_v62 }
 0xb81   : >> { %v5303_v18 = vpop.permute.xlu1 %5302  ;;  %v5301_v29 = vpop.permute.xlu0 %5300 }
 0xb82   : >> { %v5307_v22 = vsel %vm11626_vm5, %v5301_v29, %v5303_v18  ;;  %vm11697_vm5 = vmmov (%p10573_p4), %vm11696_vm15 }
 0xb83   : >> { %5605 = vmatprep.subr.bf16.mxu1 %v5307_v22  ;;  %v11650_v22 = vld [vmem:[#allocation73_spill] sm:$0xff] }
 0xb85   : >> { %v5299_v24 = vpop.permute.xlu1 %5298  ;;  %v5257_v45 = vpop.permute.xlu0 %5256 }
 0xb86   : >> { %v5306_v35 = vsel %vm11627_vm12, %v5299_v24, %v5301_v29  ;;  %v5264_v3 = vsel %vm11628_vm9, %v5257_v45, %v5259_v1  ;;  %v11645_v1 = vmax.f32 %v11644_v51, 0.0  ;;  %v11651_v24 = vmax.f32 %v11650_v22, 0.0  ;;  %v11662_v51 = vld [vmem:[#allocation81_spill] sm:$0xff]  ;;  %vm11698_vm12 = vmmov (%p10573_p4), %vm11697_vm5 }
 0xb87   : >> { %5500 = vmatpush1.bf16.msra.mxu0 %v5264_v3  ;;  %5606 = vmatpush1.bf16.msra.mxu1 %v5306_v35  ;;  %v11652_v35 = vld [vmem:[#allocation75_spill] sm:$0xff]  ;;  %vm11699_vm9 = vmmov (%p10573_p4), %vm11697_vm5 }
 0xb8a   : >> { %6477 = vmatmul.mubr.msk.bf16.vlgmr.msra.gmra.mrb[16].mxu0 %vm11629_vm0, %v6892_v20  ;;  %6479 = vmatmul.mubr.msk.bf16.vlgmr.msra.gmra.mrb[16].mxu1 %vm11630_vm10, %v6892_v20  ;;  %v11653_v20 = vmax.f32 %v11652_v35, 0.0  ;;  %vm11700_vm0 = vmmov (%p10573_p4), %vm11697_vm5 }
 0xb8b   : >> { %5539 = vmatprep.mubr.bf16.mxu0 %v11478_v62  ;;  %5645 = vmatprep.mubr.bf16.mxu1 %v11478_v62  ;;  %vm11701_vm10 = vmmov (%p10573_p4), %vm11700_vm0 }
 0xb92   : >> { %6478 = vmatmul.mubr.msk.bf16.gmra.mrb[20].mxu0 %vm11631_vm7, %v6893_v44  ;;  %6480 = vmatmul.mubr.msk.bf16.gmra.mrb[20].mxu1 %vm11632_vm14, %v6893_v44  ;;  %vm11702_vm7 = vmmov (%p10573_p4), %vm11700_vm0 }
 0xb93   : > { %vm11703_vm14 = vmmov (%p10573_p4), %vm11700_vm0 }
 0xb96   : >> { %v5396_v32 = vpop.permute.xlu1 %5395  ;;  %v5391_v52 = vpop.permute.xlu0 %5390 }
 0xb9a   : >> { %v5406_v55 = vpop.permute.xlu1 %5405  ;;  %v5401_v34 = vpop.permute.xlu0 %5400 }
 0xc5d   : >> { %v5531_v25 = vpop.f32.mrb[16].mxu0  ;;  %v5637_v14 = vpop.f32.mrb[16].mxu1 }
 0xc5e   : >> { %v6605_v8 = vadd.f32 %v5531_v25, %v5391_v52  ;;  %v6613_v13 = vadd.f32 %v5637_v14, %v5391_v52  ;;  %v5533_v60 = vpop.f32.mrb[17].mxu0  ;;  %v5639_v27 = vpop.f32.mrb[17].mxu1 }
 0xc5f   : >> { %v6606_v19 = vadd.f32 %v5533_v60, %v5391_v52  ;;  %v6614_v26 = vadd.f32 %v5639_v27, %v5391_v52  ;;  %v5535_v9 = vpop.f32.mrb[18].mxu0  ;;  %v5641_v38 = vpop.f32.mrb[18].mxu1 }
 0xc60   : >> { %v5656_v15 = vmax.f32 %v6605_v8, 0.0  ;;  %v5658_v53 = vmax.f32 %v6613_v13, 0.0  ;;  %v6607_v62 = vadd.f32 %v5535_v9, %v5396_v32  ;;  %v6615_v12 = vadd.f32 %v5641_v38, %v5396_v32  ;;  %v5537_v6 = vpop.f32.mrb[19].mxu0  ;;  %v5643_v23 = vpop.f32.mrb[19].mxu1 }
 0xc61   : >> { %v5657_v30 = vmax.f32 %v6606_v19, 0.0  ;;  %v5659_v58 = vmax.f32 %v6614_v26, 0.0  ;;  %v6608_v5 = vadd.f32 %v5537_v6, %v5396_v32  ;;  %v6616_v31 = vadd.f32 %v5643_v23, %v5396_v32 }
 0xc62   : >> { %v10530_v4 = vadd.f32 %v5656_v15, %v11634_v41   ;;  %v10534_v17 = vadd.f32 %v5658_v53, %v11636_v2   ;;  %v5660_v48 = vmax.f32 %v6607_v62, 0.0  ;;  %v5662_v0 = vmax.f32 %v6615_v12, 0.0 }
 0xc63   : >> { %v10538_v2 = vadd.f32 %v5657_v30, %v11639_v11   ;;  %v10542_v10 = vadd.f32 %v5659_v58, %v11642_v21   ;;  %v5661_v54 = vmax.f32 %v6608_v5, 0.0  ;;  %v5663_v61 = vmax.f32 %v6616_v31, 0.0  ;;  %v11654_v30 = vld [vmem:[#allocation77_spill] sm:$0xff]  ;;  %v11656_v31 = vld [vmem:[#allocation79_spill] sm:$0xff]  ;;  %v11660_v11 = vld [vmem:[#allocation80_spill] sm:$0xff] }
 0xc64   : >> { %v11637_v36 = vmov %v10534_v17  ;;  %v10546_v25 = vadd.f32 %v5660_v48, %v11645_v1   ;;  %v11648_v17 = vmax.f32 %v11647_v33, 0.0  ;;  %v11655_v58 = vmax.f32 %v11654_v30, 0.0  ;;  %v11658_v48 = vld [vmem:[#allocation78_spill] sm:$0xff] }
 0xc65   : >> { %v11640_v7 = vmov %v10538_v2  ;;  %v11643_v16 = vmov %v10542_v10  ;;  %v5677_v45 = vadd.f32 %v5661_v54, %v11651_v24   ;;  %v5541_v44 = vpop.f32.mrb[20].mxu0  ;;  %v5647_v32 = vpop.f32.mrb[20].mxu1  ;;  %v11657_v10 = vmax.f32 %v11656_v31, 0.0 }
 0xc66   : >> { %v11646_v18 = vmov %v10546_v25  ;;  %v10550_v3 = vadd.f32 %v5662_v0, %v11648_v17   ;;  %v5679_v0 = vadd.f32 %v5663_v61, %v11653_v20   ;;  %v6609_v52 = vadd.f32 %v5541_v44, %v5401_v34  ;;  %v5543_v8 = vpop.f32.mrb[21].mxu0  ;;  %v5649_v13 = vpop.f32.mrb[21].mxu1  ;;  %v11666_v17 = vld [vmem:[#allocation82_spill] sm:$0xff]  ;;  %v11668_v44 = vld [vmem:[#allocation84_spill] sm:$0xff] }
 0xc67   : >> { %v6617_v14 = vadd.f32 %v5647_v32, %v5401_v34  ;;  %v6610_v60 = vadd.f32 %v5543_v8, %v5401_v34  ;;  %v6618_v27 = vadd.f32 %v5649_v13, %v5401_v34  ;;  %v5545_v19 = vpop.f32.mrb[22].mxu0  ;;  %v5651_v25 = vpop.f32.mrb[22].mxu1  ;;  %v11659_v63 = vmax.f32 %v11658_v48, 0.0 }
 0xc68   : >> { %v11649_v29 = vmov %v10550_v3  ;;  %v5664_v26 = vmax.f32 %v6609_v52, 0.0  ;;  %v6611_v38 = vadd.f32 %v5545_v19, %v5406_v55  ;;  %v6619_v3 = vadd.f32 %v5651_v25, %v5406_v55  ;;  %v5547_v15 = vpop.f32.mrb[23].mxu0  ;;  %v5653_v53 = vpop.f32.mrb[23].mxu1  ;;  %11679 = vst [vmem:[#allocation8_spill] sm:$0xff] %v5679_v0 }
 0xc69   : >> { %v5666_v9 = vmax.f32 %v6617_v14, 0.0  ;;  %v5665_v62 = vmax.f32 %v6610_v60, 0.0  ;;  %v5667_v12 = vmax.f32 %v6618_v27, 0.0  ;;  %v6612_v6 = vadd.f32 %v5547_v15, %v5406_v55 }
 0xc6a   : >> { %v6620_v23 = vadd.f32 %v5653_v53, %v5406_v55  ;;  %v5680_v5 = vadd.f32 %v5664_v26, %v11655_v58   ;;  %v5668_v59 = vmax.f32 %v6611_v38, 0.0  ;;  %v5670_v2 = vmax.f32 %v6619_v3, 0.0  ;;  %v11664_v55 = vld [vmem:[#allocation83_spill] sm:$0xff] }
 0xc6b   : >> { %v5682_v41 = vadd.f32 %v5666_v9, %v11657_v10   ;;  %v5681_v28 = vadd.f32 %v5665_v62, %v11659_v63   ;;  %v11661_v21 = vmax.f32 %v11660_v11, 0.0  ;;  %v5669_v54 = vmax.f32 %v6612_v6, 0.0  ;;  %v5993_v38 = vld [vmem:[%s10777_s11 + $0x38] sm:$0x1] (%p10573_p4) }
 0xc6c   : >> { %v5671_v34 = vmax.f32 %v6620_v23, 0.0  ;;  %v11663_v1 = vmax.f32 %v11662_v51, 0.0  ;;  %v11665_v33 = vmax.f32 %v11664_v55, 0.0  ;;  %v11667_v24 = vmax.f32 %v11666_v17, 0.0  ;;  %3199 = sbr.rel (!%p10573_p4) target bundleno = 1604 (0x644), region = 113 }
 0xc6d   : >> { %v5683_v61 = vadd.f32 %v5667_v12, %v11661_v21   ;;  %v11669_v32 = vmax.f32 %v11668_v44, 0.0  ;;  %v11680_v3 = vmov %v11649_v29  ;;  %v11682_v25 = vmov %v11646_v18 }
 0xc6e   : >> { %v5684_v22 = vadd.f32 %v5668_v59, %v11663_v1   ;;  %v5686_v35 = vadd.f32 %v5670_v2, %v11665_v33   ;;  %v5685_v20 = vadd.f32 %v5669_v54, %v11667_v24   ;;  %v11678_v33 = vmov %v5680_v5  ;;  %v5992_v25 = vld [vmem:[%s10777_s11 + $0x30] sm:$0xff] (%p10573_p4) }
 0xc6f   : >> { %v5687_v52 = vadd.f32 %v5671_v34, %v11669_v32   ;;  %v11675_v1 = vmov %v5683_v61  ;;  %v11676_v34 = vmov %v5682_v41  ;;  %v11677_v32 = vmov %v5681_v28 }
 0xc70   : >> { %v11672_v54 = vmov %v5686_v35  ;;  %v11673_v11 = vmov %v5685_v20  ;;  %v11674_v60 = vmov %v5684_v22  ;;  %v11681_v24 = vmov %v5677_v45 }
 0xc71   : >> { %v11671_v48 = vmov %v5687_v52  ;;  %v11683_v10 = vmov %v11643_v16  ;;  %v11684_v17 = vmov %v11637_v36  ;;  %v11685_v2 = vmov %v11640_v7  ;;  %v6899_v60 = vld [vmem:[%s10774_s8 + $0x18] sm:$0xff] (%p10573_p4)  }
 0xc72   : >> { %v11686_v53 = vmov %v10530_v4  ;;  %v5697_v14 = vpack.c.bf16 (%p10573_p4), %v5677_v45, %v11640_v7  ;;  %v5699_v8 = vpack.c.bf16 (%p10573_p4), %v5679_v0, %v11643_v16  ;;  %v5696_v13 = vpack.c.bf16 (%p10573_p4), %v11646_v18, %v10530_v4  ;;  %v5711_v4 = vld [vmem:[%s10775_s9 + $0x38] sm:$0xff] (%p10573_p4)  ;;  %v5987_v0 = vld [vmem:[%s10777_s11 + $0x8] sm:$0xff] (%p10573_p4)  ;;  %v6898_v7 = vld [vmem:[%s10774_s8 + $0x10] sm:$0xff] (%p10573_p4)  }
 0xc73   : > { %v5698_v27 = vpack.c.bf16 %v11649_v29, %v11637_v36  ;;  %v11687_v19 = vmov 0   ;;  %v5701_v26 = vpack.c.bf16 %v5685_v20, %v5681_v28  ;;  %v5703_v9 = vpack.c.bf16 %v5687_v52, %v5683_v61  ;;  %v5986_v36 = vld [vmem:[%s10777_s11] sm:$0xff]  ;;  %v5988_v16 = vld [vmem:[%s10777_s11 + $0x10] sm:$0xff]  ;;  %v5989_v18 = vld [vmem:[%s10777_s11 + $0x18] sm:$0xff] }
 0xc74   : > { %5816 = vmatprep.mubr.bf16.mxu0 %v11687_v19  ;;  %5889 = vmatprep.mubr.bf16.mxu1 %v11687_v19  ;;  %v5700_v42 = vpack.c.bf16 %v5684_v22, %v5680_v5  ;;  %v5702_v56 = vpack.c.bf16 %v5686_v35, %v5682_v41  ;;  %v5990_v29 = vld [vmem:[%s10777_s11 + $0x20] sm:$0xff]  ;;  %v5991_v45 = vld [vmem:[%s10777_s11 + $0x28] sm:$0xff] }
 0xc75   : > { %5784 = vmatprep.subr.bf16.mxu0 %v5697_v14  ;;  %5857 = vmatprep.subr.bf16.mxu1 %v5699_v8 }
 0xc76   : > { %5785 = vmatpush1.bf16.msra.mxu0 %v5696_v13  ;;  %5858 = vmatpush1.bf16.msra.mxu1 %v5698_v27 }
 0xc77   : > { %5786 = vmatprep.subr.bf16.mxu0 %v5701_v26  ;;  %5859 = vmatprep.subr.bf16.mxu1 %v5703_v9 }
 0xc78   : > { %6894 = vset.pattern.permute.xlu0 %v11687_v19  ;;  %6895 = vset.pattern.permute.xlu1 %v11687_v19 }
 0xc79   : > { %5714 = vperm.xlu0 %6894, %v5704_v40   ;;  %5724 = vperm.xlu1 %6895, %v5706_v49  }
 0xc7a   : > { %5787 = vmatpush1.bf16.msra.mxu0 %v5700_v42  ;;  %5860 = vmatpush1.bf16.msra.mxu1 %v5702_v56 }
 0xc7d   : > { %6485 = vmatmul.mubr.msk.bf16.vlgmr.msra.gmra.mrb[0].mxu0 %vm11688_vm11, %v6896_v39  ;;  %6489 = vmatmul.mubr.msk.bf16.vlgmr.msra.gmra.mrb[0].mxu1 %vm11689_vm2, %v6896_v39 }
 0xc7e   : > { %5826 = vmatprep.mubr.bf16.mxu0 %v11687_v19  ;;  %5899 = vmatprep.mubr.bf16.mxu1 %v11687_v19 }
 0xc7f   : > { %5719 = vperm.xlu0 %6894, %v5705_v43   ;;  %5729 = vperm.xlu1 %6895, %v5707_v37  }
 0xc83   : > { %5734 = vperm.xlu0 %6894, %v5708_v50   ;;  %5739 = vperm.xlu1 %6895, %v5709_v46  }
 0xc85   : > { %6486 = vmatmul.mubr.msk.bf16.gmra.mrb[4].mxu0 %vm11690_vm6, %v6897_v57  ;;  %6490 = vmatmul.mubr.msk.bf16.gmra.mrb[4].mxu1 %vm11691_vm3, %v6897_v57 }
 0xc86   : > { %5836 = vmatprep.mubr.bf16.mxu0 %v11687_v19  ;;  %5909 = vmatprep.mubr.bf16.mxu1 %v11687_v19 }
 0xc87   : > { %5744 = vperm.xlu0 %6894, %v5710_v47   ;;  %5749 = vperm.xlu1 %6895, %v5711_v4  }
 0xc8b   : > { %5996 = vperm.xlu0 %6894, %v5986_v36   ;;  %6001 = vperm.xlu1 %6895, %v5987_v0  }
 0xc8d   : > { %6487 = vmatmul.mubr.msk.bf16.gmra.mrb[8].mxu0 %vm11692_vm1, %v6898_v7  ;;  %6491 = vmatmul.mubr.msk.bf16.gmra.mrb[8].mxu1 %vm11693_vm8, %v6898_v7 }
 0xc8e   : > { %5846 = vmatprep.mubr.bf16.mxu0 %v11687_v19  ;;  %5919 = vmatprep.mubr.bf16.mxu1 %v11687_v19 }
 0xc8f   : > { %6006 = vperm.xlu0 %6894, %v5988_v16   ;;  %6011 = vperm.xlu1 %6895, %v5989_v18  }
 0xc93   : > { %6016 = vperm.xlu0 %6894, %v5990_v29   ;;  %6021 = vperm.xlu1 %6895, %v5991_v45  }
 0xc95   : > { %6488 = vmatmul.mubr.msk.bf16.gmra.mrb[12].mxu0 %vm11694_vm4, %v6899_v60  ;;  %6492 = vmatmul.mubr.msk.bf16.gmra.mrb[12].mxu1 %vm11695_vm13, %v6899_v60 }
 0xc96   : > { %6099 = vmatprep.mubr.bf16.mxu0 %v11687_v19  ;;  %6172 = vmatprep.mubr.bf16.mxu1 %v11687_v19 }
 0xc97   : > { %6026 = vperm.xlu0 %6894, %v5992_v25   ;;  %6031 = vperm.xlu1 %6895, %v5993_v38  }
 0xcf8   : > { %v5715_v3 = vpop.permute.xlu0 %5714  ;;  %v5725_v53 = vpop.permute.xlu1 %5724 }
 0xcfe   : > { %v5720_v15 = vpop.permute.xlu0 %5719  ;;  %v5730_v33 = vpop.permute.xlu1 %5729 }
 0xd02   : > { %v5735_v16 = vpop.permute.xlu0 %5734  ;;  %v5740_v18 = vpop.permute.xlu1 %5739 }
 0xd50   : > { %v5818_v62 = vpop.f32.mrb[0].mxu0  ;;  %v5891_v12 = vpop.f32.mrb[0].mxu1 }
 0xd51   : > { %v5819_v6 = vadd.f32 %v5818_v62, %v5715_v3  ;;  %v5892_v23 = vadd.f32 %v5891_v12, %v5715_v3  ;;  %v5820_v30 = vpop.f32.mrb[1].mxu0  ;;  %v5893_v58 = vpop.f32.mrb[1].mxu1 }
 0xd52   : > { %v5821_v5 = vadd.f32 %v5820_v30, %v5715_v3  ;;  %v5894_v31 = vadd.f32 %v5893_v58, %v5715_v3  ;;  %v5822_v10 = vpop.f32.mrb[2].mxu0  ;;  %v5895_v41 = vpop.f32.mrb[2].mxu1 }
 0xd53   : > { %v5932_v59 = vmax.f32 %v5892_v23, 0.0  ;;  %v5823_v2 = vadd.f32 %v5822_v10, %v5720_v15  ;;  %v5896_v48 = vadd.f32 %v5895_v41, %v5720_v15  ;;  %v5824_v63 = vpop.f32.mrb[3].mxu0  ;;  %v5897_v28 = vpop.f32.mrb[3].mxu1  ;;  %v5930_v61 = vmax.f32 %v5819_v6, 0.0 }
 0xd54   : > { %v5825_v11 = vadd.f32 %v5824_v63, %v5720_v15  ;;  %v5898_v21 = vadd.f32 %v5897_v28, %v5720_v15  ;;  %v5931_v51 = vmax.f32 %v5821_v5, 0.0  ;;  %v5933_v1 = vmax.f32 %v5894_v31, 0.0 }
 0xd55   : > { %v5934_v54 = vmax.f32 %v5823_v2, 0.0  ;;  %v5936_v34 = vmax.f32 %v5896_v48, 0.0 }
 0xd56   : > { %v5935_v22 = vmax.f32 %v5825_v11, 0.0  ;;  %v5937_v55 = vmax.f32 %v5898_v21, 0.0 }
 0xd57   : > { %v5970_v35 = vpack.c.bf16 %v5934_v54, %v5930_v61  ;;  %v5972_v17 = vpack.c.bf16 %v5936_v34, %v5932_v59 }
 0xd58   : > { %v5971_v24 = vpack.c.bf16 %v5935_v22, %v5931_v51  ;;  %v5973_v20 = vpack.c.bf16 %v5937_v55, %v5933_v1  ;;  %v5828_v44 = vpop.f32.mrb[4].mxu0  ;;  %v5901_v32 = vpop.f32.mrb[4].mxu1 }
 0xd59   : > { %v5829_v52 = vadd.f32 %v5828_v44, %v5725_v53  ;;  %v5902_v14 = vadd.f32 %v5901_v32, %v5725_v53  ;;  %v5830_v8 = vpop.f32.mrb[5].mxu0  ;;  %v5903_v13 = vpop.f32.mrb[5].mxu1 }
 0xd5a   : > { %v5831_v27 = vadd.f32 %v5830_v8, %v5725_v53  ;;  %v5904_v26 = vadd.f32 %v5903_v13, %v5725_v53  ;;  %v5832_v9 = vpop.f32.mrb[6].mxu0  ;;  %v5905_v42 = vpop.f32.mrb[6].mxu1  ;;  %6067 = vmatprep.subr.bf16.mxu0 %v5971_v24  ;;  %6140 = vmatprep.subr.bf16.mxu1 %v5973_v20 }
 0xd5b   : > { %v5940_v56 = vmax.f32 %v5902_v14, 0.0  ;;  %v5833_v40 = vadd.f32 %v5832_v9, %v5730_v33  ;;  %v5906_v49 = vadd.f32 %v5905_v42, %v5730_v33  ;;  %v5834_v39 = vpop.f32.mrb[7].mxu0  ;;  %v5907_v43 = vpop.f32.mrb[7].mxu1  ;;  %6068 = vmatpush1.bf16.msra.mxu0 %v5970_v35  ;;  %6141 = vmatpush1.bf16.msra.mxu1 %v5972_v17  ;;  %v5938_v46 = vmax.f32 %v5829_v52, 0.0 }
 0xd5c   : > { %v5835_v37 = vadd.f32 %v5834_v39, %v5730_v33  ;;  %v5908_v50 = vadd.f32 %v5907_v43, %v5730_v33  ;;  %v5939_v4 = vmax.f32 %v5831_v27, 0.0  ;;  %v5941_v36 = vmax.f32 %v5904_v26, 0.0  ;;  %v5745_v51 = vpop.permute.xlu0 %5744  ;;  %v5750_v1 = vpop.permute.xlu1 %5749 }
 0xd5d   : > { %v5942_v57 = vmax.f32 %v5833_v40, 0.0  ;;  %v5944_v47 = vmax.f32 %v5906_v49, 0.0 }
 0xd5e   : > { %v5943_v0 = vmax.f32 %v5835_v37, 0.0  ;;  %v5945_v7 = vmax.f32 %v5908_v50, 0.0 }
 0xd5f   : > { %v5974_v29 = vpack.c.bf16 %v5942_v57, %v5938_v46  ;;  %v5976_v45 = vpack.c.bf16 %v5944_v47, %v5940_v56 }
 0xd60   : > { %v5975_v60 = vpack.c.bf16 %v5943_v0, %v5939_v4  ;;  %v5977_v25 = vpack.c.bf16 %v5945_v7, %v5941_v36  ;;  %v5838_v38 = vpop.f32.mrb[8].mxu0  ;;  %v5911_v3 = vpop.f32.mrb[8].mxu1 }
 0xd61   : > { %v5839_v15 = vadd.f32 %v5838_v38, %v5735_v16  ;;  %v5912_v53 = vadd.f32 %v5911_v3, %v5735_v16  ;;  %v5840_v62 = vpop.f32.mrb[9].mxu0  ;;  %v5913_v12 = vpop.f32.mrb[9].mxu1 }
 0xd62   : > { %v5841_v6 = vadd.f32 %v5840_v62, %v5735_v16  ;;  %v5914_v23 = vadd.f32 %v5913_v12, %v5735_v16  ;;  %v5842_v30 = vpop.f32.mrb[10].mxu0  ;;  %v5915_v58 = vpop.f32.mrb[10].mxu1  ;;  %6069 = vmatprep.subr.bf16.mxu0 %v5975_v60  ;;  %6142 = vmatprep.subr.bf16.mxu1 %v5977_v25  ;;  %v6903_v60 = vld [vmem:[%s10776_s10 + $0x18] sm:$0x1f]  }
 0xd63   : > { %v5843_v5 = vadd.f32 %v5842_v30, %v5740_v18  ;;  %v5916_v31 = vadd.f32 %v5915_v58, %v5740_v18  ;;  %v5844_v10 = vpop.f32.mrb[11].mxu0  ;;  %v5917_v41 = vpop.f32.mrb[11].mxu1  ;;  %6070 = vmatpush1.bf16.msra.mxu0 %v5974_v29  ;;  %6143 = vmatpush1.bf16.msra.mxu1 %v5976_v45  ;;  %v5946_v48 = vmax.f32 %v5839_v15, 0.0  ;;  %v5948_v63 = vmax.f32 %v5912_v53, 0.0  ;;  %v6901_v29 = vld [vmem:[%s10776_s10 + $0x8] sm:$0xff]   ;;  %v6902_v45 = vld [vmem:[%s10776_s10 + $0x10] sm:$0xff]  }
 0xd64   : > { %v5845_v59 = vadd.f32 %v5844_v10, %v5740_v18  ;;  %v5918_v2 = vadd.f32 %v5917_v41, %v5740_v18  ;;  %v5947_v21 = vmax.f32 %v5841_v6, 0.0  ;;  %v5949_v61 = vmax.f32 %v5914_v23, 0.0  ;;  %v6900_v18 = vld [vmem:[%s10776_s10] sm:$0xff]   ;;  %v5997_v25 = vpop.permute.xlu0 %5996  ;;  %v6002_v38 = vpop.permute.xlu1 %6001 }
 0xd65   : > { %v5950_v28 = vmax.f32 %v5843_v5, 0.0  ;;  %v5952_v11 = vmax.f32 %v5916_v31, 0.0 }
 0xd66   : > { %v5951_v54 = vmax.f32 %v5845_v59, 0.0  ;;  %v5953_v34 = vmax.f32 %v5918_v2, 0.0 }
 0xd67   : > { %v5978_v22 = vpack.c.bf16 %v5950_v28, %v5946_v48  ;;  %v5980_v55 = vpack.c.bf16 %v5952_v11, %v5948_v63 }
 0xd68   : > { %v5979_v33 = vpack.c.bf16 %v5951_v54, %v5947_v21  ;;  %v5981_v35 = vpack.c.bf16 %v5953_v34, %v5949_v61  ;;  %v5848_v17 = vpop.f32.mrb[12].mxu0  ;;  %v5921_v24 = vpop.f32.mrb[12].mxu1 }
 0xd69   : > { %v5849_v20 = vadd.f32 %v5848_v17, %v5745_v51  ;;  %v5922_v44 = vadd.f32 %v5921_v24, %v5745_v51  ;;  %v5850_v32 = vpop.f32.mrb[13].mxu0  ;;  %v5923_v52 = vpop.f32.mrb[13].mxu1 }
 0xd6a   : > { %v5851_v14 = vadd.f32 %v5850_v32, %v5745_v51  ;;  %v5924_v8 = vadd.f32 %v5923_v52, %v5745_v51  ;;  %v5852_v13 = vpop.f32.mrb[14].mxu0  ;;  %v5925_v27 = vpop.f32.mrb[14].mxu1  ;;  %6071 = vmatprep.subr.bf16.mxu0 %v5979_v33  ;;  %6144 = vmatprep.subr.bf16.mxu1 %v5981_v35 }
 0xd6b   : > { %v5853_v26 = vadd.f32 %v5852_v13, %v5750_v1  ;;  %v5926_v9 = vadd.f32 %v5925_v27, %v5750_v1  ;;  %v5854_v42 = vpop.f32.mrb[15].mxu0  ;;  %v5927_v56 = vpop.f32.mrb[15].mxu1  ;;  %6072 = vmatpush1.bf16.msra.mxu0 %v5978_v22  ;;  %6145 = vmatpush1.bf16.msra.mxu1 %v5980_v55  ;;  %v5954_v39 = vmax.f32 %v5849_v20, 0.0  ;;  %v5956_v43 = vmax.f32 %v5922_v44, 0.0 }
 0xd6c   : > { %v5855_v40 = vadd.f32 %v5854_v42, %v5750_v1  ;;  %v5928_v49 = vadd.f32 %v5927_v56, %v5750_v1  ;;  %v5955_v46 = vmax.f32 %v5851_v14, 0.0  ;;  %v5957_v57 = vmax.f32 %v5924_v8, 0.0  ;;  %v6007_v48 = vpop.permute.xlu0 %6006  ;;  %v6012_v63 = vpop.permute.xlu1 %6011 }
 0xd6d   : > { %v5958_v37 = vmax.f32 %v5853_v26, 0.0  ;;  %v5960_v50 = vmax.f32 %v5926_v9, 0.0 }
 0xd6e   : > { %v5959_v47 = vmax.f32 %v5855_v40, 0.0  ;;  %v5961_v4 = vmax.f32 %v5928_v49, 0.0 }
 0xd6f   : > { %v5982_v36 = vpack.c.bf16 %v5958_v37, %v5954_v39  ;;  %v5984_v0 = vpack.c.bf16 %v5960_v50, %v5956_v43 }
 0xd70   : > { %v5983_v7 = vpack.c.bf16 %v5959_v47, %v5955_v46  ;;  %v5985_v16 = vpack.c.bf16 %v5961_v4, %v5957_v57  ;;  %v6017_v32 = vpop.permute.xlu0 %6016  ;;  %v6022_v52 = vpop.permute.xlu1 %6021 }
 0xd72   : > { %6073 = vmatprep.subr.bf16.mxu0 %v5983_v7  ;;  %6146 = vmatprep.subr.bf16.mxu1 %v5985_v16 }
 0xd73   : > { %6074 = vmatpush1.bf16.msra.mxu0 %v5982_v36  ;;  %6147 = vmatpush1.bf16.msra.mxu1 %v5984_v0 }
 0xd74   : > { %v6027_v47 = vpop.permute.xlu0 %6026  ;;  %v6032_v4 = vpop.permute.xlu1 %6031 }
 0xd76   : > { %6497 = vmatmul.mubr.msk.bf16.vlgmr.msra.gmra.mrb[16].mxu0 %vm11696_vm15, %v6900_v18  ;;  %6501 = vmatmul.mubr.msk.bf16.vlgmr.msra.gmra.mrb[16].mxu1 %vm11697_vm5, %v6900_v18 }
 0xd77   : > { %6109 = vmatprep.mubr.bf16.mxu0 %v11687_v19  ;;  %6182 = vmatprep.mubr.bf16.mxu1 %v11687_v19 }
 0xd7e   : > { %6498 = vmatmul.mubr.msk.bf16.gmra.mrb[20].mxu0 %vm11698_vm12, %v6901_v29  ;;  %6502 = vmatmul.mubr.msk.bf16.gmra.mrb[20].mxu1 %vm11699_vm9, %v6901_v29 }
 0xd7f   : > { %6119 = vmatprep.mubr.bf16.mxu0 %v11687_v19  ;;  %6192 = vmatprep.mubr.bf16.mxu1 %v11687_v19 }
 0xd86   : > { %6499 = vmatmul.mubr.msk.bf16.gmra.mrb[24].mxu0 %vm11700_vm0, %v6902_v45  ;;  %6503 = vmatmul.mubr.msk.bf16.gmra.mrb[24].mxu1 %vm11701_vm10, %v6902_v45 }
 0xd87   : > { %6129 = vmatprep.mubr.bf16.mxu0 %v11687_v19  ;;  %6202 = vmatprep.mubr.bf16.mxu1 %v11687_v19 }
 0xd8e   : > { %6500 = vmatmul.mubr.msk.bf16.gmra.mrb[28].mxu0 %vm11702_vm7, %v6903_v60  ;;  %6504 = vmatmul.mubr.msk.bf16.gmra.mrb[28].mxu1 %vm11703_vm14, %v6903_v60 }
 0xe49   : > { %v6101_v3 = vpop.f32.mrb[16].mxu0  ;;  %v6174_v15 = vpop.f32.mrb[16].mxu1 }
 0xe4a   : > { %v6102_v53 = vadd.f32 %v6101_v3, %v5997_v25  ;;  %v6175_v62 = vadd.f32 %v6174_v15, %v5997_v25  ;;  %v6103_v12 = vpop.f32.mrb[17].mxu0  ;;  %v6176_v19 = vpop.f32.mrb[17].mxu1 }
 0xe4b   : > { %v6104_v6 = vadd.f32 %v6103_v12, %v5997_v25  ;;  %v6177_v23 = vadd.f32 %v6176_v19, %v5997_v25  ;;  %v6105_v30 = vpop.f32.mrb[18].mxu0  ;;  %v6178_v58 = vpop.f32.mrb[18].mxu1 }
 0xe4c   : > { %6213 = vst [vmem:[%s7200_s18] sm:$0xff] %v6102_v53  ;;  %v6106_v5 = vadd.f32 %v6105_v30, %v6002_v38  ;;  %v6179_v31 = vadd.f32 %v6178_v58, %v6002_v38  ;;  %v6107_v10 = vpop.f32.mrb[19].mxu0  ;;  %v6180_v41 = vpop.f32.mrb[19].mxu1  ;;  %6505 = vst [vmem:[%s7200_s18 + $0x80] sm:$0xff] %v6175_v62 }
 0xe4d   : > { %6214 = vst [vmem:[%s7200_s18 + $0x8] sm:$0xff] %v6104_v6  ;;  %v6108_v59 = vadd.f32 %v6107_v10, %v6002_v38  ;;  %v6181_v2 = vadd.f32 %v6180_v41, %v6002_v38  ;;  %6506 = vst [vmem:[%s7200_s18 + $0x88] sm:$0xff] %v6177_v23 }
 0xe4e   : > { %6215 = vst [vmem:[%s7200_s18 + $0x10] sm:$0xff] %v6106_v5  ;;  %6507 = vst [vmem:[%s7200_s18 + $0x90] sm:$0xff] %v6179_v31 }
 0xe4f   : > { %6216 = vst [vmem:[%s7200_s18 + $0x18] sm:$0xff] %v6108_v59  ;;  %6508 = vst [vmem:[%s7200_s18 + $0x98] sm:$0xff] %v6181_v2 }
 0xe51   : > { %v6111_v28 = vpop.f32.mrb[20].mxu0  ;;  %v6184_v11 = vpop.f32.mrb[20].mxu1 }
 0xe52   : > { %v6112_v21 = vadd.f32 %v6111_v28, %v6007_v48  ;;  %v6185_v61 = vadd.f32 %v6184_v11, %v6007_v48  ;;  %v6113_v54 = vpop.f32.mrb[21].mxu0  ;;  %v6186_v34 = vpop.f32.mrb[21].mxu1 }
 0xe53   : > { %v6114_v51 = vadd.f32 %v6113_v54, %v6007_v48  ;;  %v6187_v1 = vadd.f32 %v6186_v34, %v6007_v48  ;;  %v6115_v22 = vpop.f32.mrb[22].mxu0  ;;  %v6188_v55 = vpop.f32.mrb[22].mxu1 }
 0xe54   : > { %6217 = vst [vmem:[%s7200_s18 + $0x20] sm:$0xff] %v6112_v21  ;;  %v6116_v33 = vadd.f32 %v6115_v22, %v6012_v63  ;;  %v6189_v35 = vadd.f32 %v6188_v55, %v6012_v63  ;;  %v6117_v17 = vpop.f32.mrb[23].mxu0  ;;  %v6190_v24 = vpop.f32.mrb[23].mxu1  ;;  %6509 = vst [vmem:[%s7200_s18 + $0xa0] sm:$0xff] %v6185_v61 }
 0xe55   : > { %6218 = vst [vmem:[%s7200_s18 + $0x28] sm:$0xff] %v6114_v51  ;;  %v6118_v20 = vadd.f32 %v6117_v17, %v6012_v63  ;;  %v6191_v44 = vadd.f32 %v6190_v24, %v6012_v63  ;;  %6510 = vst [vmem:[%s7200_s18 + $0xa8] sm:$0xff] %v6187_v1 }
 0xe56   : > { %6219 = vst [vmem:[%s7200_s18 + $0x30] sm:$0xff] %v6116_v33  ;;  %6511 = vst [vmem:[%s7200_s18 + $0xb0] sm:$0xff] %v6189_v35 }
 0xe57   : > { %6220 = vst [vmem:[%s7200_s18 + $0x38] sm:$0xff] %v6118_v20  ;;  %6512 = vst [vmem:[%s7200_s18 + $0xb8] sm:$0xff] %v6191_v44 }
 0xe59   : > { %v6121_v14 = vpop.f32.mrb[24].mxu0  ;;  %v6194_v8 = vpop.f32.mrb[24].mxu1 }
 0xe5a   : > { %v6122_v13 = vadd.f32 %v6121_v14, %v6017_v32  ;;  %v6195_v27 = vadd.f32 %v6194_v8, %v6017_v32  ;;  %v6123_v26 = vpop.f32.mrb[25].mxu0  ;;  %v6196_v9 = vpop.f32.mrb[25].mxu1 }
 0xe5b   : > { %v6124_v42 = vadd.f32 %v6123_v26, %v6017_v32  ;;  %v6197_v56 = vadd.f32 %v6196_v9, %v6017_v32  ;;  %v6125_v40 = vpop.f32.mrb[26].mxu0  ;;  %v6198_v49 = vpop.f32.mrb[26].mxu1 }
 0xe5c   : > { %6221 = vst [vmem:[%s7200_s18 + $0x40] sm:$0xff] %v6122_v13  ;;  %v6126_v39 = vadd.f32 %v6125_v40, %v6022_v52  ;;  %v6199_v43 = vadd.f32 %v6198_v49, %v6022_v52  ;;  %v6127_v37 = vpop.f32.mrb[27].mxu0  ;;  %v6200_v50 = vpop.f32.mrb[27].mxu1  ;;  %6513 = vst [vmem:[%s7200_s18 + $0xc0] sm:$0xff] %v6195_v27 }
 0xe5d   : > { %6222 = vst [vmem:[%s7200_s18 + $0x48] sm:$0xff] %v6124_v42  ;;  %v6128_v46 = vadd.f32 %v6127_v37, %v6022_v52  ;;  %v6201_v57 = vadd.f32 %v6200_v50, %v6022_v52  ;;  %6514 = vst [vmem:[%s7200_s18 + $0xc8] sm:$0xff] %v6197_v56 }
 0xe5e   : > { %6223 = vst [vmem:[%s7200_s18 + $0x50] sm:$0xff] %v6126_v39  ;;  %6515 = vst [vmem:[%s7200_s18 + $0xd0] sm:$0xff] %v6199_v43 }
 0xe5f   : > { %6224 = vst [vmem:[%s7200_s18 + $0x58] sm:$0xff] %v6128_v46  ;;  %6516 = vst [vmem:[%s7200_s18 + $0xd8] sm:$0xff] %v6201_v57 }
 0xe61   : > { %v6131_v36 = vpop.f32.mrb[28].mxu0  ;;  %v6204_v0 = vpop.f32.mrb[28].mxu1 }
 0xe62   : > { %v6132_v7 = vadd.f32 %v6131_v36, %v6027_v47  ;;  %v6205_v16 = vadd.f32 %v6204_v0, %v6027_v47  ;;  %v6133_v18 = vpop.f32.mrb[29].mxu0  ;;  %v6206_v29 = vpop.f32.mrb[29].mxu1 }
 0xe63   : > { %v6134_v45 = vadd.f32 %v6133_v18, %v6027_v47  ;;  %v6207_v60 = vadd.f32 %v6206_v29, %v6027_v47  ;;  %v6135_v25 = vpop.f32.mrb[30].mxu0  ;;  %v6208_v38 = vpop.f32.mrb[30].mxu1 }
 0xe64   : > { %6225 = vst [vmem:[%s7200_s18 + $0x60] sm:$0xff] %v6132_v7  ;;  %v6136_v3 = vadd.f32 %v6135_v25, %v6032_v4  ;;  %v6209_v15 = vadd.f32 %v6208_v38, %v6032_v4  ;;  %v6137_v53 = vpop.f32.mrb[31].mxu0  ;;  %v6210_v62 = vpop.f32.mrb[31].mxu1  ;;  %6517 = vst [vmem:[%s7200_s18 + $0xe0] sm:$0xff] %v6205_v16 }
 0xe65   : > { %6226 = vst [vmem:[%s7200_s18 + $0x68] sm:$0xff] %v6134_v45  ;;  %v6138_v12 = vadd.f32 %v6137_v53, %v6032_v4  ;;  %v6211_v19 = vadd.f32 %v6210_v62, %v6032_v4  ;;  %6518 = vst [vmem:[%s7200_s18 + $0xe8] sm:$0xff] %v6207_v60 }
 0xe66   : > { %6227 = vst [vmem:[%s7200_s18 + $0x70] sm:$0x1] %v6136_v3  ;;  %6519 = vst [vmem:[%s7200_s18 + $0xf0] sm:$0x1] %v6209_v15 }
 0xe67   : > { %6228 = vst [vmem:[%s7200_s18 + $0x78] sm:$0x1] %v6138_v12  ;;  %6520 = vst [vmem:[%s7200_s18 + $0xf8] sm:$0x1] %v6211_v19 }
 0xe68 PF: > { %s22_s21 = sadd.s32 1, %s6978_s21  }
 0xe69   : > { %p19_p5 = scmp.ge.s32.totalorder %s22_s21, 4  }
 0xe6b   :  { %21 = sbr.rel (!%p19_p5) target bundleno = 1 (0x1), region = 124 }

</bundles_post_ra>
